<compile_context>
chip_gen: v6e
topology: v6e:2x2x1
jax: 0.10.0
libtpu: 0.0.40
codegen_flags: <defaults>
</compile_context>

<pallas_src>
import functools

import jax
import jax.numpy as jnp
from jax.experimental import pallas as pl
from jax.experimental.pallas import tpu as pltpu


# ---------------------------------------------------------------------------
# Fused DBlock kernel (one batch element per grid step, everything in VMEM).
# ---------------------------------------------------------------------------
def _dblock_kernel(x_ref, w1_ref, b1_ref, w2_ref, b2_ref, wu_ref, bu_ref,
                   mask_ref, o_ref, xp_ref, pt_ref, *, C, K, pad, R, Wp, N):
    f32 = jnp.float32

    # Zero the flat padded-activation buffer every grid step (tiny; scratch is
    # per-core and persists across grid iterations / megacore splits, so do
    # NOT gate this on program_id == 0).
    xp_ref[...] = jnp.zeros_like(xp_ref)
    mask = mask_ref[...]                       # (1, N): 1.0 where n < W else 0.0
    base = pad * Wp + pad                      # flat offset of the interior

    def write_interior(v):
        # v: (C, N) f32 on the compute domain (column = m*Wp + n).  Zero the
        # row-wrap garbage columns so the zero-padding ring stays exact, and
        # cast to bf16 exactly once here.
        xp_ref[:, base:base + N] = (v * mask).astype(xp_ref.dtype)

    def conv_kxk(w, b):
        # im2col via K*K lane-shifted slice stores into the persistent bf16
        # scratch (row order (ky, kx, ic) matches the weight layout), then one
        # fat MXU matmul with the spatial axis on the lanes.
        for ky in range(K):
            for kx in range(K):
                t = ky * K + kx
                off = ky * Wp + kx
                pt_ref[t * C:(t + 1) * C, :] = xp_ref[:, off:off + N]
        acc = jnp.dot(w, pt_ref[...], preferred_element_type=f32)   # (C, N)
        return acc + b

    cur = x_ref[0].astype(f32)                 # (C, N), channels on sublanes

    # --- 3 x ResBlock, fully in VMEM --------------------------------------
    for r in range(R):
        write_interior(cur)
        h = jnp.maximum(conv_kxk(w1_ref[r], b1_ref[r]), 0.0)
        write_interior(h)
        cur = conv_kxk(w2_ref[r], b2_ref[r]) + cur

    # --- ConvTranspose2d(C, C//2, 4, 2, 1) + ReLU as ONE fused matmul ------
    # y[2m+ry, 2n+rx, oc] = sum_{dh,dw,ic} act_pad1[m+ry+dh, n+rx+dw, ic] *
    #                       Wt[ic, oc, 3-ry-2dh, 3-rx-2dw]
    # All 4 phases share the 3x3 window act_pad1[m+a, n+b] (a, b in 0..2), so
    # a single (4*Cout, 9*C) weight (zeros where a phase skips a tap) computes
    # every phase in one lane-dense matmul.
    write_interior(cur)
    for a in range(3):
        for b in range(3):
            t = a * 3 + b
            off = (a + 1) * Wp + (b + 1)       # act_pad1[m+a, n+b] == xp[m+a+1, n+b+1]
            pt_ref[t * C:(t + 1) * C, :] = xp_ref[:, off:off + N]
    y = jnp.dot(wu_ref[...], pt_ref[:9 * C, :], preferred_element_type=f32)
    y = jnp.maximum(y + bu_ref[...], 0.0)      # (4*Cout, N)
    o_ref[0] = y.astype(o_ref.dtype)


# ---------------------------------------------------------------------------
# Weight preparation (done once per call, in XLA).
# ---------------------------------------------------------------------------
def _prep_res_w(w):
    """Conv2d weight (O, I, K, K) -> (O, K*K*I) bf16, column order (ky, kx, ic)."""
    O, I, K1, K2 = w.shape
    return jnp.transpose(w, (0, 2, 3, 1)).reshape(O, K1 * K2 * I).astype(jnp.bfloat16)


def _prep_up_w(wu):
    """ConvTranspose2d weight (Cin, Cout, 4, 4) -> fused (4*Cout, 9*Cin) bf16.

    Row p*Cout+oc (p = 2*ry+rx is the output sub-pixel phase), column
    (a*3+b)*Cin+ic (the shared 3x3 window of the pad-1 activation).  Entry is
    wu[ic, oc, 3-ry-2*dh, 3-rx-2*dw] with (dh, dw) = (a-ry, b-rx) when both
    are in {0, 1}, and 0 otherwise.
    """
    Cin, Cout = wu.shape[0], wu.shape[1]
    wall = jnp.zeros((4 * Cout, 9 * Cin), jnp.float32)
    for ry in range(2):
        for rx in range(2):
            p = 2 * ry + rx
            for dh in range(2):
                for dw in range(2):
                    a, b = ry + dh, rx + dw
                    t = a * 3 + b
                    blk = wu[:, :, 3 - ry - 2 * dh, 3 - rx - 2 * dw]   # (Cin, Cout)
                    wall = wall.at[p * Cout:(p + 1) * Cout,
                                   t * Cin:(t + 1) * Cin].set(blk.T)
    return wall.astype(jnp.bfloat16)


def _oihw_to_hwio(w):      # Conv2d weight (O, I, kH, kW) -> (kH, kW, I, O)
    return jnp.transpose(w, (2, 3, 1, 0))


def _convT_to_hwio(w):     # ConvTranspose2d (I, O, kH, kW) -> flipped (kH, kW, I, O)
    return jnp.transpose(w[:, :, ::-1, ::-1], (2, 3, 0, 1))


def _vmem_limit_bytes():
    """Per-generation VMEM budget (v7x: 64 MiB/core; v5e/v6e: 128 MiB)."""
    cap = 128 * 1024 * 1024
    try:
        cap = int(pltpu.get_tpu_info().vmem_capacity_bytes)
    except Exception:
        pass
    return max(16 * 1024 * 1024, min((cap * 6) // 10, 96 * 1024 * 1024))


# ---------------------------------------------------------------------------
# Public forward (NCHW in, NCHW out).
# ---------------------------------------------------------------------------
@functools.partial(jax.jit, static_argnums=(2, 3))
def dblock_forward(x_nchw, params, ksize=5, num_resblocks=3):
    B, C, H, W = x_nchw.shape
    K = ksize
    pad = K // 2
    Wp = W + 2 * pad
    Hp = H + 2 * pad
    N = H * Wp                       # compute-domain columns (lane axis)
    Cout = C // 2
    R = num_resblocks
    KKC = K * K * C

    # Channels-first, flat padded-row input: x_flat[b, c, h*Wp + w] = x[b,c,h,w]
    # for w < W and 0 otherwise (NCHW needs no transpose for this layout).
    x = x_nchw.astype(jnp.float32)
    x_flat = jnp.pad(x, ((0, 0), (0, 0), (0, 0), (0, Wp - W))).reshape(B, C, N)

    w1s = jnp.stack([_prep_res_w(w1) for (w1, _, _, _) in params["res"]])    # (R, C, KKC) bf16
    b1s = jnp.stack([b1 for (_, b1, _, _) in params["res"]]).reshape(R, C, 1).astype(jnp.float32)
    w2s = jnp.stack([_prep_res_w(w2) for (_, _, w2, _) in params["res"]])    # (R, C, KKC) bf16
    b2s = jnp.stack([b2 for (_, _, _, b2) in params["res"]]).reshape(R, C, 1).astype(jnp.float32)
    wup = _prep_up_w(params["wu"])                                           # (4*Cout, 9*C) bf16
    bup = jnp.tile(params["bu"].reshape(1, Cout), (4, 1)).reshape(
        4 * Cout, 1).astype(jnp.float32)

    # Column-validity mask on the flat compute domain (n < W).
    maskv = jnp.tile((jnp.arange(Wp) < W).astype(jnp.float32), (H,)).reshape(1, N)

    # Flat padded-activation buffer: long enough for the largest tap shift.
    l_need = (K - 1) * Wp + (K - 1) + N
    l_buf = ((max(l_need, Hp * Wp) + 127) // 128) * 128

    kernel = functools.partial(_dblock_kernel, C=C, K=K, pad=pad, R=R, Wp=Wp, N=N)

    out = pl.pallas_call(
        kernel,
        out_shape=jax.ShapeDtypeStruct((B, 4 * Cout, N), jnp.float32),
        grid=(B,),
        in_specs=[
            pl.BlockSpec((1, C, N), lambda b: (b, 0, 0)),
            pl.BlockSpec((R, C, KKC), lambda b: (0, 0, 0)),
            pl.BlockSpec((R, C, 1), lambda b: (0, 0, 0)),
            pl.BlockSpec((R, C, KKC), lambda b: (0, 0, 0)),
            pl.BlockSpec((R, C, 1), lambda b: (0, 0, 0)),
            pl.BlockSpec((4 * Cout, 9 * C), lambda b: (0, 0)),
            pl.BlockSpec((4 * Cout, 1), lambda b: (0, 0)),
            pl.BlockSpec((1, N), lambda b: (0, 0)),
        ],
        out_specs=pl.BlockSpec((1, 4 * Cout, N), lambda b: (b, 0, 0)),
        scratch_shapes=[
            pltpu.VMEM((C, l_buf), jnp.bfloat16),      # flat zero-padded activation
            pltpu.VMEM((KKC, N), jnp.bfloat16),        # persistent im2col scratch
        ],
        compiler_params=pltpu.CompilerParams(
            dimension_semantics=("parallel",),
            vmem_limit_bytes=_vmem_limit_bytes(),
        ),
    )(x_flat, w1s, b1s, w2s, b2s, wup, bup, maskv)

    # Un-flatten + pixel-shuffle the 4 phases + -> NCHW in one XLA transpose:
    # out[b, (2ry+rx)*Cout + oc, m*Wp + n] -> y[b, oc, 2m+ry, 2n+rx]
    y = out.reshape(B, 2, 2, Cout, H, Wp)[..., :W]
    y = jnp.transpose(y, (0, 3, 4, 1, 5, 2)).reshape(B, Cout, 2 * H, 2 * W)
    return y


# ---------------------------------------------------------------------------
# Parameters and XLA reference (mirrors the kernel's bf16 matmul numerics).
# ---------------------------------------------------------------------------
def init_params(key, C, ksize=5, num_resblocks=3):
    params = {"res": []}
    keys = jax.random.split(key, 4 * num_resblocks + 2)
    ki = 0
    for _ in range(num_resblocks):
        w1 = 0.05 * jax.random.normal(keys[ki], (C, C, ksize, ksize), jnp.float32); ki += 1
        b1 = 0.05 * jax.random.normal(keys[ki], (C,), jnp.float32); ki += 1
        w2 = 0.05 * jax.random.normal(keys[ki], (C, C, ksize, ksize), jnp.float32); ki += 1
        b2 = 0.05 * jax.random.normal(keys[ki], (C,), jnp.float32); ki += 1
        params["res"].append((w1, b1, w2, b2))
    # ConvTranspose2d weight layout in PyTorch: (in_channels, out_channels, kH, kW)
    params["wu"] = 0.05 * jax.random.normal(keys[ki], (C, C // 2, 4, 4), jnp.float32); ki += 1
    params["bu"] = 0.05 * jax.random.normal(keys[ki], (C // 2,), jnp.float32); ki += 1
    return params


def dblock_reference(x_nchw, params, ksize=5):
    """Pure-JAX reference with the same bf16-operand / f32-accumulate numerics."""
    x = jnp.transpose(x_nchw, (0, 2, 3, 1)).astype(jnp.float32)
    pad = ksize // 2
    dn = ("NHWC", "HWIO", "NHWC")

    def conv(inp, w_hwio, pads, lhs_dil=(1, 1)):
        return jax.lax.conv_general_dilated(
            inp.astype(jnp.bfloat16), w_hwio.astype(jnp.bfloat16), (1, 1), pads,
            lhs_dilation=lhs_dil, dimension_numbers=dn,
            preferred_element_type=jnp.float32)

    out = x
    for (w1, b1, w2, b2) in params["res"]:
        h = jnp.maximum(conv(out, _oihw_to_hwio(w1), ((pad, pad), (pad, pad))) + b1, 0.0)
        out = conv(h, _oihw_to_hwio(w2), ((pad, pad), (pad, pad))) + b2 + out
    up = conv(out, _convT_to_hwio(params["wu"]), ((2, 2), (2, 2)), lhs_dil=(2, 2)) + params["bu"]
    up = jnp.maximum(up, 0.0)
    return jnp.transpose(up, (0, 3, 1, 2))


if __name__ == "__main__":
    key = jax.random.PRNGKey(0)
    kx, kp = jax.random.split(key)

    B, C, H, W = 2, 4, 16, 16
    x = jax.random.normal(kx, (B, C, H, W), jnp.float32)
    params = init_params(kp, C, ksize=5, num_resblocks=3)

    y = dblock_forward(x, params)
    y = jax.block_until_ready(y)

    assert y.shape == (B, C // 2, 2 * H, 2 * W), y.shape

    y_ref = dblock_reference(x, params)
    if not jnp.allclose(y, y_ref, rtol=2e-2, atol=2e-2):
        err = float(jnp.max(jnp.abs(y - y_ref)))
        raise AssertionError(f"Pallas DBlock does not match reference (max abs err {err})")

    print("KERNEL_OK")
</pallas_src>

<mosaic_0001>
module attributes {stable_mosaic.version = 11 : i64} {
  func.func @_dblock_kernel(%arg0: i32, %arg1: memref<1x4x320xf32, #tpu.memory_space<vmem>>, %arg2: memref<3x4x100xbf16, #tpu.memory_space<vmem>>, %arg3: memref<3x4x1xf32, #tpu.memory_space<vmem>>, %arg4: memref<3x4x100xbf16, #tpu.memory_space<vmem>>, %arg5: memref<3x4x1xf32, #tpu.memory_space<vmem>>, %arg6: memref<8x36xbf16, #tpu.memory_space<vmem>>, %arg7: memref<8x1xf32, #tpu.memory_space<vmem>>, %arg8: memref<1x320xf32, #tpu.memory_space<vmem>>, %arg9: memref<1x8x320xf32, #tpu.memory_space<vmem>>, %arg10: memref<4x512xbf16, #tpu.memory_space<vmem>>, %arg11: memref<100x320xbf16, #tpu.memory_space<vmem>>) attributes {dimension_semantics = [#tpu.dimension_semantics<parallel>], iteration_bounds = array<i64: 2>, scalar_prefetch = 0 : i64, scratch_operands = 2 : i64, tpu.core_type = #tpu.core_type<tc>, window_params = [{transform_indices = @transform_0, window_bounds = array<i64: 1, 4, 320>}, {pipeline_mode = #tpu.pipeline_mode<synchronous>, transform_indices = @transform_1, window_bounds = array<i64: 3, 4, 100>}, {pipeline_mode = #tpu.pipeline_mode<synchronous>, transform_indices = @transform_2, window_bounds = array<i64: 3, 4, 1>}, {pipeline_mode = #tpu.pipeline_mode<synchronous>, transform_indices = @transform_3, window_bounds = array<i64: 3, 4, 100>}, {pipeline_mode = #tpu.pipeline_mode<synchronous>, transform_indices = @transform_4, window_bounds = array<i64: 3, 4, 1>}, {pipeline_mode = #tpu.pipeline_mode<synchronous>, transform_indices = @transform_5, window_bounds = array<i64: 8, 36>}, {pipeline_mode = #tpu.pipeline_mode<synchronous>, transform_indices = @transform_6, window_bounds = array<i64: 8, 1>}, {pipeline_mode = #tpu.pipeline_mode<synchronous>, transform_indices = @transform_7, window_bounds = array<i64: 1, 320>}, {transform_indices = @transform_8, window_bounds = array<i64: 1, 8, 320>}]} {
    %cst = arith.constant 0.000000e+00 : bf16
    %0 = vector.broadcast %cst : bf16 to vector<4x512xbf16>
    %c0 = arith.constant 0 : index
    %c0_0 = arith.constant 0 : index
    %1 = vector.load %arg10[%c0, %c0_0] : memref<4x512xbf16, #tpu.memory_space<vmem>>, vector<4x512xbf16>
    tpu.vector_store %arg10[%c0, %c0_0], %0 {strides = array<i32>} : memref<4x512xbf16, #tpu.memory_space<vmem>>, vector<4x512xbf16>,
    %c0_1 = arith.constant 0 : index
    %c0_2 = arith.constant 0 : index
    %2 = vector.load %arg8[%c0_1, %c0_2] : memref<1x320xf32, #tpu.memory_space<vmem>>, vector<1x320xf32>
    %c0_3 = arith.constant 0 : index
    %c0_4 = arith.constant 0 : index
    %c0_5 = arith.constant 0 : index
    %3 = vector.load %arg1[%c0_3, %c0_4, %c0_5] : memref<1x4x320xf32, #tpu.memory_space<vmem>>, vector<1x4x320xf32>
    %4 = vector.shape_cast %3 : vector<1x4x320xf32> to vector<4x320xf32>
    %5 = vector.broadcast %2 : vector<1x320xf32> to vector<4x320xf32>
    %6 = arith.mulf %4, %5 : vector<4x320xf32>
    %7 = arith.truncf %6 : vector<4x320xf32> to vector<4x320xbf16>
    %c0_6 = arith.constant 0 : index
    %c42 = arith.constant 42 : index
    %8 = vector.load %arg10[%c0_6, %c42] : memref<4x512xbf16, #tpu.memory_space<vmem>>, vector<4x320xbf16>
    tpu.vector_store %arg10[%c0_6, %c42], %7 {strides = array<i32>} : memref<4x512xbf16, #tpu.memory_space<vmem>>, vector<4x320xbf16>,
    %c0_7 = arith.constant 0 : index
    %c0_8 = arith.constant 0 : index
    %c0_9 = arith.constant 0 : index
    %9 = vector.load %arg2[%c0_7, %c0_8, %c0_9] : memref<3x4x100xbf16, #tpu.memory_space<vmem>>, vector<1x4x100xbf16>
    %10 = vector.shape_cast %9 : vector<1x4x100xbf16> to vector<4x100xbf16>
    %c0_10 = arith.constant 0 : index
    %c0_11 = arith.constant 0 : index
    %c0_12 = arith.constant 0 : index
    %11 = vector.load %arg3[%c0_10, %c0_11, %c0_12] : memref<3x4x1xf32, #tpu.memory_space<vmem>>, vector<1x4x1xf32>
    %12 = vector.shape_cast %11 : vector<1x4x1xf32> to vector<4x1xf32>
    %c0_13 = arith.constant 0 : index
    %c0_14 = arith.constant 0 : index
    %13 = vector.load %arg10[%c0_13, %c0_14] : memref<4x512xbf16, #tpu.memory_space<vmem>>, vector<4x320xbf16>
    %c0_15 = arith.constant 0 : index
    %c0_16 = arith.constant 0 : index
    %14 = vector.load %arg11[%c0_15, %c0_16] : memref<100x320xbf16, #tpu.memory_space<vmem>>, vector<4x320xbf16>
    tpu.vector_store %arg11[%c0_15, %c0_16], %13 {strides = array<i32>} : memref<100x320xbf16, #tpu.memory_space<vmem>>, vector<4x320xbf16>,
    %c0_17 = arith.constant 0 : index
    %c1 = arith.constant 1 : index
    %15 = vector.load %arg10[%c0_17, %c1] : memref<4x512xbf16, #tpu.memory_space<vmem>>, vector<4x320xbf16>
    %c4 = arith.constant 4 : index
    %c0_18 = arith.constant 0 : index
    %16 = vector.load %arg11[%c4, %c0_18] : memref<100x320xbf16, #tpu.memory_space<vmem>>, vector<4x320xbf16>
    tpu.vector_store %arg11[%c4, %c0_18], %15 {strides = array<i32>} : memref<100x320xbf16, #tpu.memory_space<vmem>>, vector<4x320xbf16>,
    %c0_19 = arith.constant 0 : index
    %c2 = arith.constant 2 : index
    %17 = vector.load %arg10[%c0_19, %c2] : memref<4x512xbf16, #tpu.memory_space<vmem>>, vector<4x320xbf16>
    %c8 = arith.constant 8 : index
    %c0_20 = arith.constant 0 : index
    %18 = vector.load %arg11[%c8, %c0_20] : memref<100x320xbf16, #tpu.memory_space<vmem>>, vector<4x320xbf16>
    tpu.vector_store %arg11[%c8, %c0_20], %17 {strides = array<i32>} : memref<100x320xbf16, #tpu.memory_space<vmem>>, vector<4x320xbf16>,
    %c0_21 = arith.constant 0 : index
    %c3 = arith.constant 3 : index
    %19 = vector.load %arg10[%c0_21, %c3] : memref<4x512xbf16, #tpu.memory_space<vmem>>, vector<4x320xbf16>
    %c12 = arith.constant 12 : index
    %c0_22 = arith.constant 0 : index
    %20 = vector.load %arg11[%c12, %c0_22] : memref<100x320xbf16, #tpu.memory_space<vmem>>, vector<4x320xbf16>
    tpu.vector_store %arg11[%c12, %c0_22], %19 {strides = array<i32>} : memref<100x320xbf16, #tpu.memory_space<vmem>>, vector<4x320xbf16>,
    %c0_23 = arith.constant 0 : index
    %c4_24 = arith.constant 4 : index
    %21 = vector.load %arg10[%c0_23, %c4_24] : memref<4x512xbf16, #tpu.memory_space<vmem>>, vector<4x320xbf16>
    %c16 = arith.constant 16 : index
    %c0_25 = arith.constant 0 : index
    %22 = vector.load %arg11[%c16, %c0_25] : memref<100x320xbf16, #tpu.memory_space<vmem>>, vector<4x320xbf16>
    tpu.vector_store %arg11[%c16, %c0_25], %21 {strides = array<i32>} : memref<100x320xbf16, #tpu.memory_space<vmem>>, vector<4x320xbf16>,
    %c0_26 = arith.constant 0 : index
    %c20 = arith.constant 20 : index
    %23 = vector.load %arg10[%c0_26, %c20] : memref<4x512xbf16, #tpu.memory_space<vmem>>, vector<4x320xbf16>
    %c20_27 = arith.constant 20 : index
    %c0_28 = arith.constant 0 : index
    %24 = vector.load %arg11[%c20_27, %c0_28] : memref<100x320xbf16, #tpu.memory_space<vmem>>, vector<4x320xbf16>
    tpu.vector_store %arg11[%c20_27, %c0_28], %23 {strides = array<i32>} : memref<100x320xbf16, #tpu.memory_space<vmem>>, vector<4x320xbf16>,
    %c0_29 = arith.constant 0 : index
    %c21 = arith.constant 21 : index
    %25 = vector.load %arg10[%c0_29, %c21] : memref<4x512xbf16, #tpu.memory_space<vmem>>, vector<4x320xbf16>
    %c24 = arith.constant 24 : index
    %c0_30 = arith.constant 0 : index
    %26 = vector.load %arg11[%c24, %c0_30] : memref<100x320xbf16, #tpu.memory_space<vmem>>, vector<4x320xbf16>
    tpu.vector_store %arg11[%c24, %c0_30], %25 {strides = array<i32>} : memref<100x320xbf16, #tpu.memory_space<vmem>>, vector<4x320xbf16>,
    %c0_31 = arith.constant 0 : index
    %c22 = arith.constant 22 : index
    %27 = vector.load %arg10[%c0_31, %c22] : memref<4x512xbf16, #tpu.memory_space<vmem>>, vector<4x320xbf16>
    %c28 = arith.constant 28 : index
    %c0_32 = arith.constant 0 : index
    %28 = vector.load %arg11[%c28, %c0_32] : memref<100x320xbf16, #tpu.memory_space<vmem>>, vector<4x320xbf16>
    tpu.vector_store %arg11[%c28, %c0_32], %27 {strides = array<i32>} : memref<100x320xbf16, #tpu.memory_space<vmem>>, vector<4x320xbf16>,
    %c0_33 = arith.constant 0 : index
    %c23 = arith.constant 23 : index
    %29 = vector.load %arg10[%c0_33, %c23] : memref<4x512xbf16, #tpu.memory_space<vmem>>, vector<4x320xbf16>
    %c32 = arith.constant 32 : index
    %c0_34 = arith.constant 0 : index
    %30 = vector.load %arg11[%c32, %c0_34] : memref<100x320xbf16, #tpu.memory_space<vmem>>, vector<4x320xbf16>
    tpu.vector_store %arg11[%c32, %c0_34], %29 {strides = array<i32>} : memref<100x320xbf16, #tpu.memory_space<vmem>>, vector<4x320xbf16>,
    %c0_35 = arith.constant 0 : index
    %c24_36 = arith.constant 24 : index
    %31 = vector.load %arg10[%c0_35, %c24_36] : memref<4x512xbf16, #tpu.memory_space<vmem>>, vector<4x320xbf16>
    %c36 = arith.constant 36 : index
    %c0_37 = arith.constant 0 : index
    %32 = vector.load %arg11[%c36, %c0_37] : memref<100x320xbf16, #tpu.memory_space<vmem>>, vector<4x320xbf16>
    tpu.vector_store %arg11[%c36, %c0_37], %31 {strides = array<i32>} : memref<100x320xbf16, #tpu.memory_space<vmem>>, vector<4x320xbf16>,
    %c0_38 = arith.constant 0 : index
    %c40 = arith.constant 40 : index
    %33 = vector.load %arg10[%c0_38, %c40] : memref<4x512xbf16, #tpu.memory_space<vmem>>, vector<4x320xbf16>
    %c40_39 = arith.constant 40 : index
    %c0_40 = arith.constant 0 : index
    %34 = vector.load %arg11[%c40_39, %c0_40] : memref<100x320xbf16, #tpu.memory_space<vmem>>, vector<4x320xbf16>
    tpu.vector_store %arg11[%c40_39, %c0_40], %33 {strides = array<i32>} : memref<100x320xbf16, #tpu.memory_space<vmem>>, vector<4x320xbf16>,
    %c0_41 = arith.constant 0 : index
    %c41 = arith.constant 41 : index
    %35 = vector.load %arg10[%c0_41, %c41] : memref<4x512xbf16, #tpu.memory_space<vmem>>, vector<4x320xbf16>
    %c44 = arith.constant 44 : index
    %c0_42 = arith.constant 0 : index
    %36 = vector.load %arg11[%c44, %c0_42] : memref<100x320xbf16, #tpu.memory_space<vmem>>, vector<4x320xbf16>
    tpu.vector_store %arg11[%c44, %c0_42], %35 {strides = array<i32>} : memref<100x320xbf16, #tpu.memory_space<vmem>>, vector<4x320xbf16>,
    %c0_43 = arith.constant 0 : index
    %c42_44 = arith.constant 42 : index
    %37 = vector.load %arg10[%c0_43, %c42_44] : memref<4x512xbf16, #tpu.memory_space<vmem>>, vector<4x320xbf16>
    %c48 = arith.constant 48 : index
    %c0_45 = arith.constant 0 : index
    %38 = vector.load %arg11[%c48, %c0_45] : memref<100x320xbf16, #tpu.memory_space<vmem>>, vector<4x320xbf16>
    tpu.vector_store %arg11[%c48, %c0_45], %37 {strides = array<i32>} : memref<100x320xbf16, #tpu.memory_space<vmem>>, vector<4x320xbf16>,
    %c0_46 = arith.constant 0 : index
    %c43 = arith.constant 43 : index
    %39 = vector.load %arg10[%c0_46, %c43] : memref<4x512xbf16, #tpu.memory_space<vmem>>, vector<4x320xbf16>
    %c52 = arith.constant 52 : index
    %c0_47 = arith.constant 0 : index
    %40 = vector.load %arg11[%c52, %c0_47] : memref<100x320xbf16, #tpu.memory_space<vmem>>, vector<4x320xbf16>
    tpu.vector_store %arg11[%c52, %c0_47], %39 {strides = array<i32>} : memref<100x320xbf16, #tpu.memory_space<vmem>>, vector<4x320xbf16>,
    %c0_48 = arith.constant 0 : index
    %c44_49 = arith.constant 44 : index
    %41 = vector.load %arg10[%c0_48, %c44_49] : memref<4x512xbf16, #tpu.memory_space<vmem>>, vector<4x320xbf16>
    %c56 = arith.constant 56 : index
    %c0_50 = arith.constant 0 : index
    %42 = vector.load %arg11[%c56, %c0_50] : memref<100x320xbf16, #tpu.memory_space<vmem>>, vector<4x320xbf16>
    tpu.vector_store %arg11[%c56, %c0_50], %41 {strides = array<i32>} : memref<100x320xbf16, #tpu.memory_space<vmem>>, vector<4x320xbf16>,
    %c0_51 = arith.constant 0 : index
    %c60 = arith.constant 60 : index
    %43 = vector.load %arg10[%c0_51, %c60] : memref<4x512xbf16, #tpu.memory_space<vmem>>, vector<4x320xbf16>
    %c60_52 = arith.constant 60 : index
    %c0_53 = arith.constant 0 : index
    %44 = vector.load %arg11[%c60_52, %c0_53] : memref<100x320xbf16, #tpu.memory_space<vmem>>, vector<4x320xbf16>
    tpu.vector_store %arg11[%c60_52, %c0_53], %43 {strides = array<i32>} : memref<100x320xbf16, #tpu.memory_space<vmem>>, vector<4x320xbf16>,
    %c0_54 = arith.constant 0 : index
    %c61 = arith.constant 61 : index
    %45 = vector.load %arg10[%c0_54, %c61] : memref<4x512xbf16, #tpu.memory_space<vmem>>, vector<4x320xbf16>
    %c64 = arith.constant 64 : index
    %c0_55 = arith.constant 0 : index
    %46 = vector.load %arg11[%c64, %c0_55] : memref<100x320xbf16, #tpu.memory_space<vmem>>, vector<4x320xbf16>
    tpu.vector_store %arg11[%c64, %c0_55], %45 {strides = array<i32>} : memref<100x320xbf16, #tpu.memory_space<vmem>>, vector<4x320xbf16>,
    %c0_56 = arith.constant 0 : index
    %c62 = arith.constant 62 : index
    %47 = vector.load %arg10[%c0_56, %c62] : memref<4x512xbf16, #tpu.memory_space<vmem>>, vector<4x320xbf16>
    %c68 = arith.constant 68 : index
    %c0_57 = arith.constant 0 : index
    %48 = vector.load %arg11[%c68, %c0_57] : memref<100x320xbf16, #tpu.memory_space<vmem>>, vector<4x320xbf16>
    tpu.vector_store %arg11[%c68, %c0_57], %47 {strides = array<i32>} : memref<100x320xbf16, #tpu.memory_space<vmem>>, vector<4x320xbf16>,
    %c0_58 = arith.constant 0 : index
    %c63 = arith.constant 63 : index
    %49 = vector.load %arg10[%c0_58, %c63] : memref<4x512xbf16, #tpu.memory_space<vmem>>, vector<4x320xbf16>
    %c72 = arith.constant 72 : index
    %c0_59 = arith.constant 0 : index
    %50 = vector.load %arg11[%c72, %c0_59] : memref<100x320xbf16, #tpu.memory_space<vmem>>, vector<4x320xbf16>
    tpu.vector_store %arg11[%c72, %c0_59], %49 {strides = array<i32>} : memref<100x320xbf16, #tpu.memory_space<vmem>>, vector<4x320xbf16>,
    %c0_60 = arith.constant 0 : index
    %c64_61 = arith.constant 64 : index
    %51 = vector.load %arg10[%c0_60, %c64_61] : memref<4x512xbf16, #tpu.memory_space<vmem>>, vector<4x320xbf16>
    %c76 = arith.constant 76 : index
    %c0_62 = arith.constant 0 : index
    %52 = vector.load %arg11[%c76, %c0_62] : memref<100x320xbf16, #tpu.memory_space<vmem>>, vector<4x320xbf16>
    tpu.vector_store %arg11[%c76, %c0_62], %51 {strides = array<i32>} : memref<100x320xbf16, #tpu.memory_space<vmem>>, vector<4x320xbf16>,
    %c0_63 = arith.constant 0 : index
    %c80 = arith.constant 80 : index
    %53 = vector.load %arg10[%c0_63, %c80] : memref<4x512xbf16, #tpu.memory_space<vmem>>, vector<4x320xbf16>
    %c80_64 = arith.constant 80 : index
    %c0_65 = arith.constant 0 : index
    %54 = vector.load %arg11[%c80_64, %c0_65] : memref<100x320xbf16, #tpu.memory_space<vmem>>, vector<4x320xbf16>
    tpu.vector_store %arg11[%c80_64, %c0_65], %53 {strides = array<i32>} : memref<100x320xbf16, #tpu.memory_space<vmem>>, vector<4x320xbf16>,
    %c0_66 = arith.constant 0 : index
    %c81 = arith.constant 81 : index
    %55 = vector.load %arg10[%c0_66, %c81] : memref<4x512xbf16, #tpu.memory_space<vmem>>, vector<4x320xbf16>
    %c84 = arith.constant 84 : index
    %c0_67 = arith.constant 0 : index
    %56 = vector.load %arg11[%c84, %c0_67] : memref<100x320xbf16, #tpu.memory_space<vmem>>, vector<4x320xbf16>
    tpu.vector_store %arg11[%c84, %c0_67], %55 {strides = array<i32>} : memref<100x320xbf16, #tpu.memory_space<vmem>>, vector<4x320xbf16>,
    %c0_68 = arith.constant 0 : index
    %c82 = arith.constant 82 : index
    %57 = vector.load %arg10[%c0_68, %c82] : memref<4x512xbf16, #tpu.memory_space<vmem>>, vector<4x320xbf16>
    %c88 = arith.constant 88 : index
    %c0_69 = arith.constant 0 : index
    %58 = vector.load %arg11[%c88, %c0_69] : memref<100x320xbf16, #tpu.memory_space<vmem>>, vector<4x320xbf16>
    tpu.vector_store %arg11[%c88, %c0_69], %57 {strides = array<i32>} : memref<100x320xbf16, #tpu.memory_space<vmem>>, vector<4x320xbf16>,
    %c0_70 = arith.constant 0 : index
    %c83 = arith.constant 83 : index
    %59 = vector.load %arg10[%c0_70, %c83] : memref<4x512xbf16, #tpu.memory_space<vmem>>, vector<4x320xbf16>
    %c92 = arith.constant 92 : index
    %c0_71 = arith.constant 0 : index
    %60 = vector.load %arg11[%c92, %c0_71] : memref<100x320xbf16, #tpu.memory_space<vmem>>, vector<4x320xbf16>
    tpu.vector_store %arg11[%c92, %c0_71], %59 {strides = array<i32>} : memref<100x320xbf16, #tpu.memory_space<vmem>>, vector<4x320xbf16>,
    %c0_72 = arith.constant 0 : index
    %c84_73 = arith.constant 84 : index
    %61 = vector.load %arg10[%c0_72, %c84_73] : memref<4x512xbf16, #tpu.memory_space<vmem>>, vector<4x320xbf16>
    %c96 = arith.constant 96 : index
    %c0_74 = arith.constant 0 : index
    %62 = vector.load %arg11[%c96, %c0_74] : memref<100x320xbf16, #tpu.memory_space<vmem>>, vector<4x320xbf16>
    tpu.vector_store %arg11[%c96, %c0_74], %61 {strides = array<i32>} : memref<100x320xbf16, #tpu.memory_space<vmem>>, vector<4x320xbf16>,
    %c0_75 = arith.constant 0 : index
    %c0_76 = arith.constant 0 : index
    %63 = vector.load %arg11[%c0_75, %c0_76] : memref<100x320xbf16, #tpu.memory_space<vmem>>, vector<100x320xbf16>
    %cst_77 = arith.constant dense<0.000000e+00> : vector<4x320xf32>
    %64 = tpu.matmul %10, %63, %cst_77 {dimension_numbers = #tpu.dot_dimension_numbers<[1], [0], [0], [1], [0, 0, 1, 1], [], []>} : vector<4x100xbf16>, vector<100x320xbf16>, vector<4x320xf32> -> vector<4x320xf32>
    %65 = vector.broadcast %12 : vector<4x1xf32> to vector<4x320xf32>
    %66 = arith.addf %64, %65 : vector<4x320xf32>
    %cst_78 = arith.constant 0.000000e+00 : f32
    %67 = vector.broadcast %cst_78 : f32 to vector<4x320xf32>
    %68 = arith.maximumf %66, %67 : vector<4x320xf32>
    %69 = vector.broadcast %2 : vector<1x320xf32> to vector<4x320xf32>
    %70 = arith.mulf %68, %69 : vector<4x320xf32>
    %71 = arith.truncf %70 : vector<4x320xf32> to vector<4x320xbf16>
    %c0_79 = arith.constant 0 : index
    %c42_80 = arith.constant 42 : index
    %72 = vector.load %arg10[%c0_79, %c42_80] : memref<4x512xbf16, #tpu.memory_space<vmem>>, vector<4x320xbf16>
    tpu.vector_store %arg10[%c0_79, %c42_80], %71 {strides = array<i32>} : memref<4x512xbf16, #tpu.memory_space<vmem>>, vector<4x320xbf16>,
    %c0_81 = arith.constant 0 : index
    %c0_82 = arith.constant 0 : index
    %c0_83 = arith.constant 0 : index
    %73 = vector.load %arg4[%c0_81, %c0_82, %c0_83] : memref<3x4x100xbf16, #tpu.memory_space<vmem>>, vector<1x4x100xbf16>
    %74 = vector.shape_cast %73 : vector<1x4x100xbf16> to vector<4x100xbf16>
    %c0_84 = arith.constant 0 : index
    %c0_85 = arith.constant 0 : index
    %c0_86 = arith.constant 0 : index
    %75 = vector.load %arg5[%c0_84, %c0_85, %c0_86] : memref<3x4x1xf32, #tpu.memory_space<vmem>>, vector<1x4x1xf32>
    %76 = vector.shape_cast %75 : vector<1x4x1xf32> to vector<4x1xf32>
    %c0_87 = arith.constant 0 : index
    %c0_88 = arith.constant 0 : index
    %77 = vector.load %arg10[%c0_87, %c0_88] : memref<4x512xbf16, #tpu.memory_space<vmem>>, vector<4x320xbf16>
    %c0_89 = arith.constant 0 : index
    %c0_90 = arith.constant 0 : index
    %78 = vector.load %arg11[%c0_89, %c0_90] : memref<100x320xbf16, #tpu.memory_space<vmem>>, vector<4x320xbf16>
    tpu.vector_store %arg11[%c0_89, %c0_90], %77 {strides = array<i32>} : memref<100x320xbf16, #tpu.memory_space<vmem>>, vector<4x320xbf16>,
    %c0_91 = arith.constant 0 : index
    %c1_92 = arith.constant 1 : index
    %79 = vector.load %arg10[%c0_91, %c1_92] : memref<4x512xbf16, #tpu.memory_space<vmem>>, vector<4x320xbf16>
    %c4_93 = arith.constant 4 : index
    %c0_94 = arith.constant 0 : index
    %80 = vector.load %arg11[%c4_93, %c0_94] : memref<100x320xbf16, #tpu.memory_space<vmem>>, vector<4x320xbf16>
    tpu.vector_store %arg11[%c4_93, %c0_94], %79 {strides = array<i32>} : memref<100x320xbf16, #tpu.memory_space<vmem>>, vector<4x320xbf16>,
    %c0_95 = arith.constant 0 : index
    %c2_96 = arith.constant 2 : index
    %81 = vector.load %arg10[%c0_95, %c2_96] : memref<4x512xbf16, #tpu.memory_space<vmem>>, vector<4x320xbf16>
    %c8_97 = arith.constant 8 : index
    %c0_98 = arith.constant 0 : index
    %82 = vector.load %arg11[%c8_97, %c0_98] : memref<100x320xbf16, #tpu.memory_space<vmem>>, vector<4x320xbf16>
    tpu.vector_store %arg11[%c8_97, %c0_98], %81 {strides = array<i32>} : memref<100x320xbf16, #tpu.memory_space<vmem>>, vector<4x320xbf16>,
    %c0_99 = arith.constant 0 : index
    %c3_100 = arith.constant 3 : index
    %83 = vector.load %arg10[%c0_99, %c3_100] : memref<4x512xbf16, #tpu.memory_space<vmem>>, vector<4x320xbf16>
    %c12_101 = arith.constant 12 : index
    %c0_102 = arith.constant 0 : index
    %84 = vector.load %arg11[%c12_101, %c0_102] : memref<100x320xbf16, #tpu.memory_space<vmem>>, vector<4x320xbf16>
    tpu.vector_store %arg11[%c12_101, %c0_102], %83 {strides = array<i32>} : memref<100x320xbf16, #tpu.memory_space<vmem>>, vector<4x320xbf16>,
    %c0_103 = arith.constant 0 : index
    %c4_104 = arith.constant 4 : index
    %85 = vector.load %arg10[%c0_103, %c4_104] : memref<4x512xbf16, #tpu.memory_space<vmem>>, vector<4x320xbf16>
    %c16_105 = arith.constant 16 : index
    %c0_106 = arith.constant 0 : index
    %86 = vector.load %arg11[%c16_105, %c0_106] : memref<100x320xbf16, #tpu.memory_space<vmem>>, vector<4x320xbf16>
    tpu.vector_store %arg11[%c16_105, %c0_106], %85 {strides = array<i32>} : memref<100x320xbf16, #tpu.memory_space<vmem>>, vector<4x320xbf16>,
    %c0_107 = arith.constant 0 : index
    %c20_108 = arith.constant 20 : index
    %87 = vector.load %arg10[%c0_107, %c20_108] : memref<4x512xbf16, #tpu.memory_space<vmem>>, vector<4x320xbf16>
    %c20_109 = arith.constant 20 : index
    %c0_110 = arith.constant 0 : index
    %88 = vector.load %arg11[%c20_109, %c0_110] : memref<100x320xbf16, #tpu.memory_space<vmem>>, vector<4x320xbf16>
    tpu.vector_store %arg11[%c20_109, %c0_110], %87 {strides = array<i32>} : memref<100x320xbf16, #tpu.memory_space<vmem>>, vector<4x320xbf16>,
    %c0_111 = arith.constant 0 : index
    %c21_112 = arith.constant 21 : index
    %89 = vector.load %arg10[%c0_111, %c21_112] : memref<4x512xbf16, #tpu.memory_space<vmem>>, vector<4x320xbf16>
    %c24_113 = arith.constant 24 : index
    %c0_114 = arith.constant 0 : index
    %90 = vector.load %arg11[%c24_113, %c0_114] : memref<100x320xbf16, #tpu.memory_space<vmem>>, vector<4x320xbf16>
    tpu.vector_store %arg11[%c24_113, %c0_114], %89 {strides = array<i32>} : memref<100x320xbf16, #tpu.memory_space<vmem>>, vector<4x320xbf16>,
    %c0_115 = arith.constant 0 : index
    %c22_116 = arith.constant 22 : index
    %91 = vector.load %arg10[%c0_115, %c22_116] : memref<4x512xbf16, #tpu.memory_space<vmem>>, vector<4x320xbf16>
    %c28_117 = arith.constant 28 : index
    %c0_118 = arith.constant 0 : index
    %92 = vector.load %arg11[%c28_117, %c0_118] : memref<100x320xbf16, #tpu.memory_space<vmem>>, vector<4x320xbf16>
    tpu.vector_store %arg11[%c28_117, %c0_118], %91 {strides = array<i32>} : memref<100x320xbf16, #tpu.memory_space<vmem>>, vector<4x320xbf16>,
    %c0_119 = arith.constant 0 : index
    %c23_120 = arith.constant 23 : index
    %93 = vector.load %arg10[%c0_119, %c23_120] : memref<4x512xbf16, #tpu.memory_space<vmem>>, vector<4x320xbf16>
    %c32_121 = arith.constant 32 : index
    %c0_122 = arith.constant 0 : index
    %94 = vector.load %arg11[%c32_121, %c0_122] : memref<100x320xbf16, #tpu.memory_space<vmem>>, vector<4x320xbf16>
    tpu.vector_store %arg11[%c32_121, %c0_122], %93 {strides = array<i32>} : memref<100x320xbf16, #tpu.memory_space<vmem>>, vector<4x320xbf16>,
    %c0_123 = arith.constant 0 : index
    %c24_124 = arith.constant 24 : index
    %95 = vector.load %arg10[%c0_123, %c24_124] : memref<4x512xbf16, #tpu.memory_space<vmem>>, vector<4x320xbf16>
    %c36_125 = arith.constant 36 : index
    %c0_126 = arith.constant 0 : index
    %96 = vector.load %arg11[%c36_125, %c0_126] : memref<100x320xbf16, #tpu.memory_space<vmem>>, vector<4x320xbf16>
    tpu.vector_store %arg11[%c36_125, %c0_126], %95 {strides = array<i32>} : memref<100x320xbf16, #tpu.memory_space<vmem>>, vector<4x320xbf16>,
    %c0_127 = arith.constant 0 : index
    %c40_128 = arith.constant 40 : index
    %97 = vector.load %arg10[%c0_127, %c40_128] : memref<4x512xbf16, #tpu.memory_space<vmem>>, vector<4x320xbf16>
    %c40_129 = arith.constant 40 : index
    %c0_130 = arith.constant 0 : index
    %98 = vector.load %arg11[%c40_129, %c0_130] : memref<100x320xbf16, #tpu.memory_space<vmem>>, vector<4x320xbf16>
    tpu.vector_store %arg11[%c40_129, %c0_130], %97 {strides = array<i32>} : memref<100x320xbf16, #tpu.memory_space<vmem>>, vector<4x320xbf16>,
    %c0_131 = arith.constant 0 : index
    %c41_132 = arith.constant 41 : index
    %99 = vector.load %arg10[%c0_131, %c41_132] : memref<4x512xbf16, #tpu.memory_space<vmem>>, vector<4x320xbf16>
    %c44_133 = arith.constant 44 : index
    %c0_134 = arith.constant 0 : index
    %100 = vector.load %arg11[%c44_133, %c0_134] : memref<100x320xbf16, #tpu.memory_space<vmem>>, vector<4x320xbf16>
    tpu.vector_store %arg11[%c44_133, %c0_134], %99 {strides = array<i32>} : memref<100x320xbf16, #tpu.memory_space<vmem>>, vector<4x320xbf16>,
    %c0_135 = arith.constant 0 : index
    %c42_136 = arith.constant 42 : index
    %101 = vector.load %arg10[%c0_135, %c42_136] : memref<4x512xbf16, #tpu.memory_space<vmem>>, vector<4x320xbf16>
    %c48_137 = arith.constant 48 : index
    %c0_138 = arith.constant 0 : index
    %102 = vector.load %arg11[%c48_137, %c0_138] : memref<100x320xbf16, #tpu.memory_space<vmem>>, vector<4x320xbf16>
    tpu.vector_store %arg11[%c48_137, %c0_138], %101 {strides = array<i32>} : memref<100x320xbf16, #tpu.memory_space<vmem>>, vector<4x320xbf16>,
    %c0_139 = arith.constant 0 : index
    %c43_140 = arith.constant 43 : index
    %103 = vector.load %arg10[%c0_139, %c43_140] : memref<4x512xbf16, #tpu.memory_space<vmem>>, vector<4x320xbf16>
    %c52_141 = arith.constant 52 : index
    %c0_142 = arith.constant 0 : index
    %104 = vector.load %arg11[%c52_141, %c0_142] : memref<100x320xbf16, #tpu.memory_space<vmem>>, vector<4x320xbf16>
    tpu.vector_store %arg11[%c52_141, %c0_142], %103 {strides = array<i32>} : memref<100x320xbf16, #tpu.memory_space<vmem>>, vector<4x320xbf16>,
    %c0_143 = arith.constant 0 : index
    %c44_144 = arith.constant 44 : index
    %105 = vector.load %arg10[%c0_143, %c44_144] : memref<4x512xbf16, #tpu.memory_space<vmem>>, vector<4x320xbf16>
    %c56_145 = arith.constant 56 : index
    %c0_146 = arith.constant 0 : index
    %106 = vector.load %arg11[%c56_145, %c0_146] : memref<100x320xbf16, #tpu.memory_space<vmem>>, vector<4x320xbf16>
    tpu.vector_store %arg11[%c56_145, %c0_146], %105 {strides = array<i32>} : memref<100x320xbf16, #tpu.memory_space<vmem>>, vector<4x320xbf16>,
    %c0_147 = arith.constant 0 : index
    %c60_148 = arith.constant 60 : index
    %107 = vector.load %arg10[%c0_147, %c60_148] : memref<4x512xbf16, #tpu.memory_space<vmem>>, vector<4x320xbf16>
    %c60_149 = arith.constant 60 : index
    %c0_150 = arith.constant 0 : index
    %108 = vector.load %arg11[%c60_149, %c0_150] : memref<100x320xbf16, #tpu.memory_space<vmem>>, vector<4x320xbf16>
    tpu.vector_store %arg11[%c60_149, %c0_150], %107 {strides = array<i32>} : memref<100x320xbf16, #tpu.memory_space<vmem>>, vector<4x320xbf16>,
    %c0_151 = arith.constant 0 : index
    %c61_152 = arith.constant 61 : index
    %109 = vector.load %arg10[%c0_151, %c61_152] : memref<4x512xbf16, #tpu.memory_space<vmem>>, vector<4x320xbf16>
    %c64_153 = arith.constant 64 : index
    %c0_154 = arith.constant 0 : index
    %110 = vector.load %arg11[%c64_153, %c0_154] : memref<100x320xbf16, #tpu.memory_space<vmem>>, vector<4x320xbf16>
    tpu.vector_store %arg11[%c64_153, %c0_154], %109 {strides = array<i32>} : memref<100x320xbf16, #tpu.memory_space<vmem>>, vector<4x320xbf16>,
    %c0_155 = arith.constant 0 : index
    %c62_156 = arith.constant 62 : index
    %111 = vector.load %arg10[%c0_155, %c62_156] : memref<4x512xbf16, #tpu.memory_space<vmem>>, vector<4x320xbf16>
    %c68_157 = arith.constant 68 : index
    %c0_158 = arith.constant 0 : index
    %112 = vector.load %arg11[%c68_157, %c0_158] : memref<100x320xbf16, #tpu.memory_space<vmem>>, vector<4x320xbf16>
    tpu.vector_store %arg11[%c68_157, %c0_158], %111 {strides = array<i32>} : memref<100x320xbf16, #tpu.memory_space<vmem>>, vector<4x320xbf16>,
    %c0_159 = arith.constant 0 : index
    %c63_160 = arith.constant 63 : index
    %113 = vector.load %arg10[%c0_159, %c63_160] : memref<4x512xbf16, #tpu.memory_space<vmem>>, vector<4x320xbf16>
    %c72_161 = arith.constant 72 : index
    %c0_162 = arith.constant 0 : index
    %114 = vector.load %arg11[%c72_161, %c0_162] : memref<100x320xbf16, #tpu.memory_space<vmem>>, vector<4x320xbf16>
    tpu.vector_store %arg11[%c72_161, %c0_162], %113 {strides = array<i32>} : memref<100x320xbf16, #tpu.memory_space<vmem>>, vector<4x320xbf16>,
    %c0_163 = arith.constant 0 : index
    %c64_164 = arith.constant 64 : index
    %115 = vector.load %arg10[%c0_163, %c64_164] : memref<4x512xbf16, #tpu.memory_space<vmem>>, vector<4x320xbf16>
    %c76_165 = arith.constant 76 : index
    %c0_166 = arith.constant 0 : index
    %116 = vector.load %arg11[%c76_165, %c0_166] : memref<100x320xbf16, #tpu.memory_space<vmem>>, vector<4x320xbf16>
    tpu.vector_store %arg11[%c76_165, %c0_166], %115 {strides = array<i32>} : memref<100x320xbf16, #tpu.memory_space<vmem>>, vector<4x320xbf16>,
    %c0_167 = arith.constant 0 : index
    %c80_168 = arith.constant 80 : index
    %117 = vector.load %arg10[%c0_167, %c80_168] : memref<4x512xbf16, #tpu.memory_space<vmem>>, vector<4x320xbf16>
    %c80_169 = arith.constant 80 : index
    %c0_170 = arith.constant 0 : index
    %118 = vector.load %arg11[%c80_169, %c0_170] : memref<100x320xbf16, #tpu.memory_space<vmem>>, vector<4x320xbf16>
    tpu.vector_store %arg11[%c80_169, %c0_170], %117 {strides = array<i32>} : memref<100x320xbf16, #tpu.memory_space<vmem>>, vector<4x320xbf16>,
    %c0_171 = arith.constant 0 : index
    %c81_172 = arith.constant 81 : index
    %119 = vector.load %arg10[%c0_171, %c81_172] : memref<4x512xbf16, #tpu.memory_space<vmem>>, vector<4x320xbf16>
    %c84_173 = arith.constant 84 : index
    %c0_174 = arith.constant 0 : index
    %120 = vector.load %arg11[%c84_173, %c0_174] : memref<100x320xbf16, #tpu.memory_space<vmem>>, vector<4x320xbf16>
    tpu.vector_store %arg11[%c84_173, %c0_174], %119 {strides = array<i32>} : memref<100x320xbf16, #tpu.memory_space<vmem>>, vector<4x320xbf16>,
    %c0_175 = arith.constant 0 : index
    %c82_176 = arith.constant 82 : index
    %121 = vector.load %arg10[%c0_175, %c82_176] : memref<4x512xbf16, #tpu.memory_space<vmem>>, vector<4x320xbf16>
    %c88_177 = arith.constant 88 : index
    %c0_178 = arith.constant 0 : index
    %122 = vector.load %arg11[%c88_177, %c0_178] : memref<100x320xbf16, #tpu.memory_space<vmem>>, vector<4x320xbf16>
    tpu.vector_store %arg11[%c88_177, %c0_178], %121 {strides = array<i32>} : memref<100x320xbf16, #tpu.memory_space<vmem>>, vector<4x320xbf16>,
    %c0_179 = arith.constant 0 : index
    %c83_180 = arith.constant 83 : index
    %123 = vector.load %arg10[%c0_179, %c83_180] : memref<4x512xbf16, #tpu.memory_space<vmem>>, vector<4x320xbf16>
    %c92_181 = arith.constant 92 : index
    %c0_182 = arith.constant 0 : index
    %124 = vector.load %arg11[%c92_181, %c0_182] : memref<100x320xbf16, #tpu.memory_space<vmem>>, vector<4x320xbf16>
    tpu.vector_store %arg11[%c92_181, %c0_182], %123 {strides = array<i32>} : memref<100x320xbf16, #tpu.memory_space<vmem>>, vector<4x320xbf16>,
    %c0_183 = arith.constant 0 : index
    %c84_184 = arith.constant 84 : index
    %125 = vector.load %arg10[%c0_183, %c84_184] : memref<4x512xbf16, #tpu.memory_space<vmem>>, vector<4x320xbf16>
    %c96_185 = arith.constant 96 : index
    %c0_186 = arith.constant 0 : index
    %126 = vector.load %arg11[%c96_185, %c0_186] : memref<100x320xbf16, #tpu.memory_space<vmem>>, vector<4x320xbf16>
    tpu.vector_store %arg11[%c96_185, %c0_186], %125 {strides = array<i32>} : memref<100x320xbf16, #tpu.memory_space<vmem>>, vector<4x320xbf16>,
    %c0_187 = arith.constant 0 : index
    %c0_188 = arith.constant 0 : index
    %127 = vector.load %arg11[%c0_187, %c0_188] : memref<100x320xbf16, #tpu.memory_space<vmem>>, vector<100x320xbf16>
    %cst_189 = arith.constant dense<0.000000e+00> : vector<4x320xf32>
    %128 = tpu.matmul %74, %127, %cst_189 {dimension_numbers = #tpu.dot_dimension_numbers<[1], [0], [0], [1], [0, 0, 1, 1], [], []>} : vector<4x100xbf16>, vector<100x320xbf16>, vector<4x320xf32> -> vector<4x320xf32>
    %129 = vector.broadcast %76 : vector<4x1xf32> to vector<4x320xf32>
    %130 = arith.addf %128, %129 : vector<4x320xf32>
    %131 = arith.addf %130, %4 : vector<4x320xf32>
    %132 = vector.broadcast %2 : vector<1x320xf32> to vector<4x320xf32>
    %133 = arith.mulf %131, %132 : vector<4x320xf32>
    %134 = arith.truncf %133 : vector<4x320xf32> to vector<4x320xbf16>
    %c0_190 = arith.constant 0 : index
    %c42_191 = arith.constant 42 : index
    %135 = vector.load %arg10[%c0_190, %c42_191] : memref<4x512xbf16, #tpu.memory_space<vmem>>, vector<4x320xbf16>
    tpu.vector_store %arg10[%c0_190, %c42_191], %134 {strides = array<i32>} : memref<4x512xbf16, #tpu.memory_space<vmem>>, vector<4x320xbf16>,
    %c1_192 = arith.constant 1 : index
    %c0_193 = arith.constant 0 : index
    %c0_194 = arith.constant 0 : index
    %136 = vector.load %arg2[%c1_192, %c0_193, %c0_194] : memref<3x4x100xbf16, #tpu.memory_space<vmem>>, vector<1x4x100xbf16>
    %137 = vector.shape_cast %136 : vector<1x4x100xbf16> to vector<4x100xbf16>
    %c1_195 = arith.constant 1 : index
    %c0_196 = arith.constant 0 : index
    %c0_197 = arith.constant 0 : index
    %138 = vector.load %arg3[%c1_195, %c0_196, %c0_197] : memref<3x4x1xf32, #tpu.memory_space<vmem>>, vector<1x4x1xf32>
    %139 = vector.shape_cast %138 : vector<1x4x1xf32> to vector<4x1xf32>
    %c0_198 = arith.constant 0 : index
    %c0_199 = arith.constant 0 : index
    %140 = vector.load %arg10[%c0_198, %c0_199] : memref<4x512xbf16, #tpu.memory_space<vmem>>, vector<4x320xbf16>
    %c0_200 = arith.constant 0 : index
    %c0_201 = arith.constant 0 : index
    %141 = vector.load %arg11[%c0_200, %c0_201] : memref<100x320xbf16, #tpu.memory_space<vmem>>, vector<4x320xbf16>
    tpu.vector_store %arg11[%c0_200, %c0_201], %140 {strides = array<i32>} : memref<100x320xbf16, #tpu.memory_space<vmem>>, vector<4x320xbf16>,
    %c0_202 = arith.constant 0 : index
    %c1_203 = arith.constant 1 : index
    %142 = vector.load %arg10[%c0_202, %c1_203] : memref<4x512xbf16, #tpu.memory_space<vmem>>, vector<4x320xbf16>
    %c4_204 = arith.constant 4 : index
    %c0_205 = arith.constant 0 : index
    %143 = vector.load %arg11[%c4_204, %c0_205] : memref<100x320xbf16, #tpu.memory_space<vmem>>, vector<4x320xbf16>
    tpu.vector_store %arg11[%c4_204, %c0_205], %142 {strides = array<i32>} : memref<100x320xbf16, #tpu.memory_space<vmem>>, vector<4x320xbf16>,
    %c0_206 = arith.constant 0 : index
    %c2_207 = arith.constant 2 : index
    %144 = vector.load %arg10[%c0_206, %c2_207] : memref<4x512xbf16, #tpu.memory_space<vmem>>, vector<4x320xbf16>
    %c8_208 = arith.constant 8 : index
    %c0_209 = arith.constant 0 : index
    %145 = vector.load %arg11[%c8_208, %c0_209] : memref<100x320xbf16, #tpu.memory_space<vmem>>, vector<4x320xbf16>
    tpu.vector_store %arg11[%c8_208, %c0_209], %144 {strides = array<i32>} : memref<100x320xbf16, #tpu.memory_space<vmem>>, vector<4x320xbf16>,
    %c0_210 = arith.constant 0 : index
    %c3_211 = arith.constant 3 : index
    %146 = vector.load %arg10[%c0_210, %c3_211] : memref<4x512xbf16, #tpu.memory_space<vmem>>, vector<4x320xbf16>
    %c12_212 = arith.constant 12 : index
    %c0_213 = arith.constant 0 : index
    %147 = vector.load %arg11[%c12_212, %c0_213] : memref<100x320xbf16, #tpu.memory_space<vmem>>, vector<4x320xbf16>
    tpu.vector_store %arg11[%c12_212, %c0_213], %146 {strides = array<i32>} : memref<100x320xbf16, #tpu.memory_space<vmem>>, vector<4x320xbf16>,
    %c0_214 = arith.constant 0 : index
    %c4_215 = arith.constant 4 : index
    %148 = vector.load %arg10[%c0_214, %c4_215] : memref<4x512xbf16, #tpu.memory_space<vmem>>, vector<4x320xbf16>
    %c16_216 = arith.constant 16 : index
    %c0_217 = arith.constant 0 : index
    %149 = vector.load %arg11[%c16_216, %c0_217] : memref<100x320xbf16, #tpu.memory_space<vmem>>, vector<4x320xbf16>
    tpu.vector_store %arg11[%c16_216, %c0_217], %148 {strides = array<i32>} : memref<100x320xbf16, #tpu.memory_space<vmem>>, vector<4x320xbf16>,
    %c0_218 = arith.constant 0 : index
    %c20_219 = arith.constant 20 : index
    %150 = vector.load %arg10[%c0_218, %c20_219] : memref<4x512xbf16, #tpu.memory_space<vmem>>, vector<4x320xbf16>
    %c20_220 = arith.constant 20 : index
    %c0_221 = arith.constant 0 : index
    %151 = vector.load %arg11[%c20_220, %c0_221] : memref<100x320xbf16, #tpu.memory_space<vmem>>, vector<4x320xbf16>
    tpu.vector_store %arg11[%c20_220, %c0_221], %150 {strides = array<i32>} : memref<100x320xbf16, #tpu.memory_space<vmem>>, vector<4x320xbf16>,
    %c0_222 = arith.constant 0 : index
    %c21_223 = arith.constant 21 : index
    %152 = vector.load %arg10[%c0_222, %c21_223] : memref<4x512xbf16, #tpu.memory_space<vmem>>, vector<4x320xbf16>
    %c24_224 = arith.constant 24 : index
    %c0_225 = arith.constant 0 : index
    %153 = vector.load %arg11[%c24_224, %c0_225] : memref<100x320xbf16, #tpu.memory_space<vmem>>, vector<4x320xbf16>
    tpu.vector_store %arg11[%c24_224, %c0_225], %152 {strides = array<i32>} : memref<100x320xbf16, #tpu.memory_space<vmem>>, vector<4x320xbf16>,
    %c0_226 = arith.constant 0 : index
    %c22_227 = arith.constant 22 : index
    %154 = vector.load %arg10[%c0_226, %c22_227] : memref<4x512xbf16, #tpu.memory_space<vmem>>, vector<4x320xbf16>
    %c28_228 = arith.constant 28 : index
    %c0_229 = arith.constant 0 : index
    %155 = vector.load %arg11[%c28_228, %c0_229] : memref<100x320xbf16, #tpu.memory_space<vmem>>, vector<4x320xbf16>
    tpu.vector_store %arg11[%c28_228, %c0_229], %154 {strides = array<i32>} : memref<100x320xbf16, #tpu.memory_space<vmem>>, vector<4x320xbf16>,
    %c0_230 = arith.constant 0 : index
    %c23_231 = arith.constant 23 : index
    %156 = vector.load %arg10[%c0_230, %c23_231] : memref<4x512xbf16, #tpu.memory_space<vmem>>, vector<4x320xbf16>
    %c32_232 = arith.constant 32 : index
    %c0_233 = arith.constant 0 : index
    %157 = vector.load %arg11[%c32_232, %c0_233] : memref<100x320xbf16, #tpu.memory_space<vmem>>, vector<4x320xbf16>
    tpu.vector_store %arg11[%c32_232, %c0_233], %156 {strides = array<i32>} : memref<100x320xbf16, #tpu.memory_space<vmem>>, vector<4x320xbf16>,
    %c0_234 = arith.constant 0 : index
    %c24_235 = arith.constant 24 : index
    %158 = vector.load %arg10[%c0_234, %c24_235] : memref<4x512xbf16, #tpu.memory_space<vmem>>, vector<4x320xbf16>
    %c36_236 = arith.constant 36 : index
    %c0_237 = arith.constant 0 : index
    %159 = vector.load %arg11[%c36_236, %c0_237] : memref<100x320xbf16, #tpu.memory_space<vmem>>, vector<4x320xbf16>
    tpu.vector_store %arg11[%c36_236, %c0_237], %158 {strides = array<i32>} : memref<100x320xbf16, #tpu.memory_space<vmem>>, vector<4x320xbf16>,
    %c0_238 = arith.constant 0 : index
    %c40_239 = arith.constant 40 : index
    %160 = vector.load %arg10[%c0_238, %c40_239] : memref<4x512xbf16, #tpu.memory_space<vmem>>, vector<4x320xbf16>
    %c40_240 = arith.constant 40 : index
    %c0_241 = arith.constant 0 : index
    %161 = vector.load %arg11[%c40_240, %c0_241] : memref<100x320xbf16, #tpu.memory_space<vmem>>, vector<4x320xbf16>
    tpu.vector_store %arg11[%c40_240, %c0_241], %160 {strides = array<i32>} : memref<100x320xbf16, #tpu.memory_space<vmem>>, vector<4x320xbf16>,
    %c0_242 = arith.constant 0 : index
    %c41_243 = arith.constant 41 : index
    %162 = vector.load %arg10[%c0_242, %c41_243] : memref<4x512xbf16, #tpu.memory_space<vmem>>, vector<4x320xbf16>
    %c44_244 = arith.constant 44 : index
    %c0_245 = arith.constant 0 : index
    %163 = vector.load %arg11[%c44_244, %c0_245] : memref<100x320xbf16, #tpu.memory_space<vmem>>, vector<4x320xbf16>
    tpu.vector_store %arg11[%c44_244, %c0_245], %162 {strides = array<i32>} : memref<100x320xbf16, #tpu.memory_space<vmem>>, vector<4x320xbf16>,
    %c0_246 = arith.constant 0 : index
    %c42_247 = arith.constant 42 : index
    %164 = vector.load %arg10[%c0_246, %c42_247] : memref<4x512xbf16, #tpu.memory_space<vmem>>, vector<4x320xbf16>
    %c48_248 = arith.constant 48 : index
    %c0_249 = arith.constant 0 : index
    %165 = vector.load %arg11[%c48_248, %c0_249] : memref<100x320xbf16, #tpu.memory_space<vmem>>, vector<4x320xbf16>
    tpu.vector_store %arg11[%c48_248, %c0_249], %164 {strides = array<i32>} : memref<100x320xbf16, #tpu.memory_space<vmem>>, vector<4x320xbf16>,
    %c0_250 = arith.constant 0 : index
    %c43_251 = arith.constant 43 : index
    %166 = vector.load %arg10[%c0_250, %c43_251] : memref<4x512xbf16, #tpu.memory_space<vmem>>, vector<4x320xbf16>
    %c52_252 = arith.constant 52 : index
    %c0_253 = arith.constant 0 : index
    %167 = vector.load %arg11[%c52_252, %c0_253] : memref<100x320xbf16, #tpu.memory_space<vmem>>, vector<4x320xbf16>
    tpu.vector_store %arg11[%c52_252, %c0_253], %166 {strides = array<i32>} : memref<100x320xbf16, #tpu.memory_space<vmem>>, vector<4x320xbf16>,
    %c0_254 = arith.constant 0 : index
    %c44_255 = arith.constant 44 : index
    %168 = vector.load %arg10[%c0_254, %c44_255] : memref<4x512xbf16, #tpu.memory_space<vmem>>, vector<4x320xbf16>
    %c56_256 = arith.constant 56 : index
    %c0_257 = arith.constant 0 : index
    %169 = vector.load %arg11[%c56_256, %c0_257] : memref<100x320xbf16, #tpu.memory_space<vmem>>, vector<4x320xbf16>
    tpu.vector_store %arg11[%c56_256, %c0_257], %168 {strides = array<i32>} : memref<100x320xbf16, #tpu.memory_space<vmem>>, vector<4x320xbf16>,
    %c0_258 = arith.constant 0 : index
    %c60_259 = arith.constant 60 : index
    %170 = vector.load %arg10[%c0_258, %c60_259] : memref<4x512xbf16, #tpu.memory_space<vmem>>, vector<4x320xbf16>
    %c60_260 = arith.constant 60 : index
    %c0_261 = arith.constant 0 : index
    %171 = vector.load %arg11[%c60_260, %c0_261] : memref<100x320xbf16, #tpu.memory_space<vmem>>, vector<4x320xbf16>
    tpu.vector_store %arg11[%c60_260, %c0_261], %170 {strides = array<i32>} : memref<100x320xbf16, #tpu.memory_space<vmem>>, vector<4x320xbf16>,
    %c0_262 = arith.constant 0 : index
    %c61_263 = arith.constant 61 : index
    %172 = vector.load %arg10[%c0_262, %c61_263] : memref<4x512xbf16, #tpu.memory_space<vmem>>, vector<4x320xbf16>
    %c64_264 = arith.constant 64 : index
    %c0_265 = arith.constant 0 : index
    %173 = vector.load %arg11[%c64_264, %c0_265] : memref<100x320xbf16, #tpu.memory_space<vmem>>, vector<4x320xbf16>
    tpu.vector_store %arg11[%c64_264, %c0_265], %172 {strides = array<i32>} : memref<100x320xbf16, #tpu.memory_space<vmem>>, vector<4x320xbf16>,
    %c0_266 = arith.constant 0 : index
    %c62_267 = arith.constant 62 : index
    %174 = vector.load %arg10[%c0_266, %c62_267] : memref<4x512xbf16, #tpu.memory_space<vmem>>, vector<4x320xbf16>
    %c68_268 = arith.constant 68 : index
    %c0_269 = arith.constant 0 : index
    %175 = vector.load %arg11[%c68_268, %c0_269] : memref<100x320xbf16, #tpu.memory_space<vmem>>, vector<4x320xbf16>
    tpu.vector_store %arg11[%c68_268, %c0_269], %174 {strides = array<i32>} : memref<100x320xbf16, #tpu.memory_space<vmem>>, vector<4x320xbf16>,
    %c0_270 = arith.constant 0 : index
    %c63_271 = arith.constant 63 : index
    %176 = vector.load %arg10[%c0_270, %c63_271] : memref<4x512xbf16, #tpu.memory_space<vmem>>, vector<4x320xbf16>
    %c72_272 = arith.constant 72 : index
    %c0_273 = arith.constant 0 : index
    %177 = vector.load %arg11[%c72_272, %c0_273] : memref<100x320xbf16, #tpu.memory_space<vmem>>, vector<4x320xbf16>
    tpu.vector_store %arg11[%c72_272, %c0_273], %176 {strides = array<i32>} : memref<100x320xbf16, #tpu.memory_space<vmem>>, vector<4x320xbf16>,
    %c0_274 = arith.constant 0 : index
    %c64_275 = arith.constant 64 : index
    %178 = vector.load %arg10[%c0_274, %c64_275] : memref<4x512xbf16, #tpu.memory_space<vmem>>, vector<4x320xbf16>
    %c76_276 = arith.constant 76 : index
    %c0_277 = arith.constant 0 : index
    %179 = vector.load %arg11[%c76_276, %c0_277] : memref<100x320xbf16, #tpu.memory_space<vmem>>, vector<4x320xbf16>
    tpu.vector_store %arg11[%c76_276, %c0_277], %178 {strides = array<i32>} : memref<100x320xbf16, #tpu.memory_space<vmem>>, vector<4x320xbf16>,
    %c0_278 = arith.constant 0 : index
    %c80_279 = arith.constant 80 : index
    %180 = vector.load %arg10[%c0_278, %c80_279] : memref<4x512xbf16, #tpu.memory_space<vmem>>, vector<4x320xbf16>
    %c80_280 = arith.constant 80 : index
    %c0_281 = arith.constant 0 : index
    %181 = vector.load %arg11[%c80_280, %c0_281] : memref<100x320xbf16, #tpu.memory_space<vmem>>, vector<4x320xbf16>
    tpu.vector_store %arg11[%c80_280, %c0_281], %180 {strides = array<i32>} : memref<100x320xbf16, #tpu.memory_space<vmem>>, vector<4x320xbf16>,
    %c0_282 = arith.constant 0 : index
    %c81_283 = arith.constant 81 : index
    %182 = vector.load %arg10[%c0_282, %c81_283] : memref<4x512xbf16, #tpu.memory_space<vmem>>, vector<4x320xbf16>
    %c84_284 = arith.constant 84 : index
    %c0_285 = arith.constant 0 : index
    %183 = vector.load %arg11[%c84_284, %c0_285] : memref<100x320xbf16, #tpu.memory_space<vmem>>, vector<4x320xbf16>
    tpu.vector_store %arg11[%c84_284, %c0_285], %182 {strides = array<i32>} : memref<100x320xbf16, #tpu.memory_space<vmem>>, vector<4x320xbf16>,
    %c0_286 = arith.constant 0 : index
    %c82_287 = arith.constant 82 : index
    %184 = vector.load %arg10[%c0_286, %c82_287] : memref<4x512xbf16, #tpu.memory_space<vmem>>, vector<4x320xbf16>
    %c88_288 = arith.constant 88 : index
    %c0_289 = arith.constant 0 : index
    %185 = vector.load %arg11[%c88_288, %c0_289] : memref<100x320xbf16, #tpu.memory_space<vmem>>, vector<4x320xbf16>
    tpu.vector_store %arg11[%c88_288, %c0_289], %184 {strides = array<i32>} : memref<100x320xbf16, #tpu.memory_space<vmem>>, vector<4x320xbf16>,
    %c0_290 = arith.constant 0 : index
    %c83_291 = arith.constant 83 : index
    %186 = vector.load %arg10[%c0_290, %c83_291] : memref<4x512xbf16, #tpu.memory_space<vmem>>, vector<4x320xbf16>
    %c92_292 = arith.constant 92 : index
    %c0_293 = arith.constant 0 : index
    %187 = vector.load %arg11[%c92_292, %c0_293] : memref<100x320xbf16, #tpu.memory_space<vmem>>, vector<4x320xbf16>
    tpu.vector_store %arg11[%c92_292, %c0_293], %186 {strides = array<i32>} : memref<100x320xbf16, #tpu.memory_space<vmem>>, vector<4x320xbf16>,
    %c0_294 = arith.constant 0 : index
    %c84_295 = arith.constant 84 : index
    %188 = vector.load %arg10[%c0_294, %c84_295] : memref<4x512xbf16, #tpu.memory_space<vmem>>, vector<4x320xbf16>
    %c96_296 = arith.constant 96 : index
    %c0_297 = arith.constant 0 : index
    %189 = vector.load %arg11[%c96_296, %c0_297] : memref<100x320xbf16, #tpu.memory_space<vmem>>, vector<4x320xbf16>
    tpu.vector_store %arg11[%c96_296, %c0_297], %188 {strides = array<i32>} : memref<100x320xbf16, #tpu.memory_space<vmem>>, vector<4x320xbf16>,
    %c0_298 = arith.constant 0 : index
    %c0_299 = arith.constant 0 : index
    %190 = vector.load %arg11[%c0_298, %c0_299] : memref<100x320xbf16, #tpu.memory_space<vmem>>, vector<100x320xbf16>
    %cst_300 = arith.constant dense<0.000000e+00> : vector<4x320xf32>
    %191 = tpu.matmul %137, %190, %cst_300 {dimension_numbers = #tpu.dot_dimension_numbers<[1], [0], [0], [1], [0, 0, 1, 1], [], []>} : vector<4x100xbf16>, vector<100x320xbf16>, vector<4x320xf32> -> vector<4x320xf32>
    %192 = vector.broadcast %139 : vector<4x1xf32> to vector<4x320xf32>
    %193 = arith.addf %191, %192 : vector<4x320xf32>
    %cst_301 = arith.constant 0.000000e+00 : f32
    %194 = vector.broadcast %cst_301 : f32 to vector<4x320xf32>
    %195 = arith.maximumf %193, %194 : vector<4x320xf32>
    %196 = vector.broadcast %2 : vector<1x320xf32> to vector<4x320xf32>
    %197 = arith.mulf %195, %196 : vector<4x320xf32>
    %198 = arith.truncf %197 : vector<4x320xf32> to vector<4x320xbf16>
    %c0_302 = arith.constant 0 : index
    %c42_303 = arith.constant 42 : index
    %199 = vector.load %arg10[%c0_302, %c42_303] : memref<4x512xbf16, #tpu.memory_space<vmem>>, vector<4x320xbf16>
    tpu.vector_store %arg10[%c0_302, %c42_303], %198 {strides = array<i32>} : memref<4x512xbf16, #tpu.memory_space<vmem>>, vector<4x320xbf16>,
    %c1_304 = arith.constant 1 : index
    %c0_305 = arith.constant 0 : index
    %c0_306 = arith.constant 0 : index
    %200 = vector.load %arg4[%c1_304, %c0_305, %c0_306] : memref<3x4x100xbf16, #tpu.memory_space<vmem>>, vector<1x4x100xbf16>
    %201 = vector.shape_cast %200 : vector<1x4x100xbf16> to vector<4x100xbf16>
    %c1_307 = arith.constant 1 : index
    %c0_308 = arith.constant 0 : index
    %c0_309 = arith.constant 0 : index
    %202 = vector.load %arg5[%c1_307, %c0_308, %c0_309] : memref<3x4x1xf32, #tpu.memory_space<vmem>>, vector<1x4x1xf32>
    %203 = vector.shape_cast %202 : vector<1x4x1xf32> to vector<4x1xf32>
    %c0_310 = arith.constant 0 : index
    %c0_311 = arith.constant 0 : index
    %204 = vector.load %arg10[%c0_310, %c0_311] : memref<4x512xbf16, #tpu.memory_space<vmem>>, vector<4x320xbf16>
    %c0_312 = arith.constant 0 : index
    %c0_313 = arith.constant 0 : index
    %205 = vector.load %arg11[%c0_312, %c0_313] : memref<100x320xbf16, #tpu.memory_space<vmem>>, vector<4x320xbf16>
    tpu.vector_store %arg11[%c0_312, %c0_313], %204 {strides = array<i32>} : memref<100x320xbf16, #tpu.memory_space<vmem>>, vector<4x320xbf16>,
    %c0_314 = arith.constant 0 : index
    %c1_315 = arith.constant 1 : index
    %206 = vector.load %arg10[%c0_314, %c1_315] : memref<4x512xbf16, #tpu.memory_space<vmem>>, vector<4x320xbf16>
    %c4_316 = arith.constant 4 : index
    %c0_317 = arith.constant 0 : index
    %207 = vector.load %arg11[%c4_316, %c0_317] : memref<100x320xbf16, #tpu.memory_space<vmem>>, vector<4x320xbf16>
    tpu.vector_store %arg11[%c4_316, %c0_317], %206 {strides = array<i32>} : memref<100x320xbf16, #tpu.memory_space<vmem>>, vector<4x320xbf16>,
    %c0_318 = arith.constant 0 : index
    %c2_319 = arith.constant 2 : index
    %208 = vector.load %arg10[%c0_318, %c2_319] : memref<4x512xbf16, #tpu.memory_space<vmem>>, vector<4x320xbf16>
    %c8_320 = arith.constant 8 : index
    %c0_321 = arith.constant 0 : index
    %209 = vector.load %arg11[%c8_320, %c0_321] : memref<100x320xbf16, #tpu.memory_space<vmem>>, vector<4x320xbf16>
    tpu.vector_store %arg11[%c8_320, %c0_321], %208 {strides = array<i32>} : memref<100x320xbf16, #tpu.memory_space<vmem>>, vector<4x320xbf16>,
    %c0_322 = arith.constant 0 : index
    %c3_323 = arith.constant 3 : index
    %210 = vector.load %arg10[%c0_322, %c3_323] : memref<4x512xbf16, #tpu.memory_space<vmem>>, vector<4x320xbf16>
    %c12_324 = arith.constant 12 : index
    %c0_325 = arith.constant 0 : index
    %211 = vector.load %arg11[%c12_324, %c0_325] : memref<100x320xbf16, #tpu.memory_space<vmem>>, vector<4x320xbf16>
    tpu.vector_store %arg11[%c12_324, %c0_325], %210 {strides = array<i32>} : memref<100x320xbf16, #tpu.memory_space<vmem>>, vector<4x320xbf16>,
    %c0_326 = arith.constant 0 : index
    %c4_327 = arith.constant 4 : index
    %212 = vector.load %arg10[%c0_326, %c4_327] : memref<4x512xbf16, #tpu.memory_space<vmem>>, vector<4x320xbf16>
    %c16_328 = arith.constant 16 : index
    %c0_329 = arith.constant 0 : index
    %213 = vector.load %arg11[%c16_328, %c0_329] : memref<100x320xbf16, #tpu.memory_space<vmem>>, vector<4x320xbf16>
    tpu.vector_store %arg11[%c16_328, %c0_329], %212 {strides = array<i32>} : memref<100x320xbf16, #tpu.memory_space<vmem>>, vector<4x320xbf16>,
    %c0_330 = arith.constant 0 : index
    %c20_331 = arith.constant 20 : index
    %214 = vector.load %arg10[%c0_330, %c20_331] : memref<4x512xbf16, #tpu.memory_space<vmem>>, vector<4x320xbf16>
    %c20_332 = arith.constant 20 : index
    %c0_333 = arith.constant 0 : index
    %215 = vector.load %arg11[%c20_332, %c0_333] : memref<100x320xbf16, #tpu.memory_space<vmem>>, vector<4x320xbf16>
    tpu.vector_store %arg11[%c20_332, %c0_333], %214 {strides = array<i32>} : memref<100x320xbf16, #tpu.memory_space<vmem>>, vector<4x320xbf16>,
    %c0_334 = arith.constant 0 : index
    %c21_335 = arith.constant 21 : index
    %216 = vector.load %arg10[%c0_334, %c21_335] : memref<4x512xbf16, #tpu.memory_space<vmem>>, vector<4x320xbf16>
    %c24_336 = arith.constant 24 : index
    %c0_337 = arith.constant 0 : index
    %217 = vector.load %arg11[%c24_336, %c0_337] : memref<100x320xbf16, #tpu.memory_space<vmem>>, vector<4x320xbf16>
    tpu.vector_store %arg11[%c24_336, %c0_337], %216 {strides = array<i32>} : memref<100x320xbf16, #tpu.memory_space<vmem>>, vector<4x320xbf16>,
    %c0_338 = arith.constant 0 : index
    %c22_339 = arith.constant 22 : index
    %218 = vector.load %arg10[%c0_338, %c22_339] : memref<4x512xbf16, #tpu.memory_space<vmem>>, vector<4x320xbf16>
    %c28_340 = arith.constant 28 : index
    %c0_341 = arith.constant 0 : index
    %219 = vector.load %arg11[%c28_340, %c0_341] : memref<100x320xbf16, #tpu.memory_space<vmem>>, vector<4x320xbf16>
    tpu.vector_store %arg11[%c28_340, %c0_341], %218 {strides = array<i32>} : memref<100x320xbf16, #tpu.memory_space<vmem>>, vector<4x320xbf16>,
    %c0_342 = arith.constant 0 : index
    %c23_343 = arith.constant 23 : index
    %220 = vector.load %arg10[%c0_342, %c23_343] : memref<4x512xbf16, #tpu.memory_space<vmem>>, vector<4x320xbf16>
    %c32_344 = arith.constant 32 : index
    %c0_345 = arith.constant 0 : index
    %221 = vector.load %arg11[%c32_344, %c0_345] : memref<100x320xbf16, #tpu.memory_space<vmem>>, vector<4x320xbf16>
    tpu.vector_store %arg11[%c32_344, %c0_345], %220 {strides = array<i32>} : memref<100x320xbf16, #tpu.memory_space<vmem>>, vector<4x320xbf16>,
    %c0_346 = arith.constant 0 : index
    %c24_347 = arith.constant 24 : index
    %222 = vector.load %arg10[%c0_346, %c24_347] : memref<4x512xbf16, #tpu.memory_space<vmem>>, vector<4x320xbf16>
    %c36_348 = arith.constant 36 : index
    %c0_349 = arith.constant 0 : index
    %223 = vector.load %arg11[%c36_348, %c0_349] : memref<100x320xbf16, #tpu.memory_space<vmem>>, vector<4x320xbf16>
    tpu.vector_store %arg11[%c36_348, %c0_349], %222 {strides = array<i32>} : memref<100x320xbf16, #tpu.memory_space<vmem>>, vector<4x320xbf16>,
    %c0_350 = arith.constant 0 : index
    %c40_351 = arith.constant 40 : index
    %224 = vector.load %arg10[%c0_350, %c40_351] : memref<4x512xbf16, #tpu.memory_space<vmem>>, vector<4x320xbf16>
    %c40_352 = arith.constant 40 : index
    %c0_353 = arith.constant 0 : index
    %225 = vector.load %arg11[%c40_352, %c0_353] : memref<100x320xbf16, #tpu.memory_space<vmem>>, vector<4x320xbf16>
    tpu.vector_store %arg11[%c40_352, %c0_353], %224 {strides = array<i32>} : memref<100x320xbf16, #tpu.memory_space<vmem>>, vector<4x320xbf16>,
    %c0_354 = arith.constant 0 : index
    %c41_355 = arith.constant 41 : index
    %226 = vector.load %arg10[%c0_354, %c41_355] : memref<4x512xbf16, #tpu.memory_space<vmem>>, vector<4x320xbf16>
    %c44_356 = arith.constant 44 : index
    %c0_357 = arith.constant 0 : index
    %227 = vector.load %arg11[%c44_356, %c0_357] : memref<100x320xbf16, #tpu.memory_space<vmem>>, vector<4x320xbf16>
    tpu.vector_store %arg11[%c44_356, %c0_357], %226 {strides = array<i32>} : memref<100x320xbf16, #tpu.memory_space<vmem>>, vector<4x320xbf16>,
    %c0_358 = arith.constant 0 : index
    %c42_359 = arith.constant 42 : index
    %228 = vector.load %arg10[%c0_358, %c42_359] : memref<4x512xbf16, #tpu.memory_space<vmem>>, vector<4x320xbf16>
    %c48_360 = arith.constant 48 : index
    %c0_361 = arith.constant 0 : index
    %229 = vector.load %arg11[%c48_360, %c0_361] : memref<100x320xbf16, #tpu.memory_space<vmem>>, vector<4x320xbf16>
    tpu.vector_store %arg11[%c48_360, %c0_361], %228 {strides = array<i32>} : memref<100x320xbf16, #tpu.memory_space<vmem>>, vector<4x320xbf16>,
    %c0_362 = arith.constant 0 : index
    %c43_363 = arith.constant 43 : index
    %230 = vector.load %arg10[%c0_362, %c43_363] : memref<4x512xbf16, #tpu.memory_space<vmem>>, vector<4x320xbf16>
    %c52_364 = arith.constant 52 : index
    %c0_365 = arith.constant 0 : index
    %231 = vector.load %arg11[%c52_364, %c0_365] : memref<100x320xbf16, #tpu.memory_space<vmem>>, vector<4x320xbf16>
    tpu.vector_store %arg11[%c52_364, %c0_365], %230 {strides = array<i32>} : memref<100x320xbf16, #tpu.memory_space<vmem>>, vector<4x320xbf16>,
    %c0_366 = arith.constant 0 : index
    %c44_367 = arith.constant 44 : index
    %232 = vector.load %arg10[%c0_366, %c44_367] : memref<4x512xbf16, #tpu.memory_space<vmem>>, vector<4x320xbf16>
    %c56_368 = arith.constant 56 : index
    %c0_369 = arith.constant 0 : index
    %233 = vector.load %arg11[%c56_368, %c0_369] : memref<100x320xbf16, #tpu.memory_space<vmem>>, vector<4x320xbf16>
    tpu.vector_store %arg11[%c56_368, %c0_369], %232 {strides = array<i32>} : memref<100x320xbf16, #tpu.memory_space<vmem>>, vector<4x320xbf16>,
    %c0_370 = arith.constant 0 : index
    %c60_371 = arith.constant 60 : index
    %234 = vector.load %arg10[%c0_370, %c60_371] : memref<4x512xbf16, #tpu.memory_space<vmem>>, vector<4x320xbf16>
    %c60_372 = arith.constant 60 : index
    %c0_373 = arith.constant 0 : index
    %235 = vector.load %arg11[%c60_372, %c0_373] : memref<100x320xbf16, #tpu.memory_space<vmem>>, vector<4x320xbf16>
    tpu.vector_store %arg11[%c60_372, %c0_373], %234 {strides = array<i32>} : memref<100x320xbf16, #tpu.memory_space<vmem>>, vector<4x320xbf16>,
    %c0_374 = arith.constant 0 : index
    %c61_375 = arith.constant 61 : index
    %236 = vector.load %arg10[%c0_374, %c61_375] : memref<4x512xbf16, #tpu.memory_space<vmem>>, vector<4x320xbf16>
    %c64_376 = arith.constant 64 : index
    %c0_377 = arith.constant 0 : index
    %237 = vector.load %arg11[%c64_376, %c0_377] : memref<100x320xbf16, #tpu.memory_space<vmem>>, vector<4x320xbf16>
    tpu.vector_store %arg11[%c64_376, %c0_377], %236 {strides = array<i32>} : memref<100x320xbf16, #tpu.memory_space<vmem>>, vector<4x320xbf16>,
    %c0_378 = arith.constant 0 : index
    %c62_379 = arith.constant 62 : index
    %238 = vector.load %arg10[%c0_378, %c62_379] : memref<4x512xbf16, #tpu.memory_space<vmem>>, vector<4x320xbf16>
    %c68_380 = arith.constant 68 : index
    %c0_381 = arith.constant 0 : index
    %239 = vector.load %arg11[%c68_380, %c0_381] : memref<100x320xbf16, #tpu.memory_space<vmem>>, vector<4x320xbf16>
    tpu.vector_store %arg11[%c68_380, %c0_381], %238 {strides = array<i32>} : memref<100x320xbf16, #tpu.memory_space<vmem>>, vector<4x320xbf16>,
    %c0_382 = arith.constant 0 : index
    %c63_383 = arith.constant 63 : index
    %240 = vector.load %arg10[%c0_382, %c63_383] : memref<4x512xbf16, #tpu.memory_space<vmem>>, vector<4x320xbf16>
    %c72_384 = arith.constant 72 : index
    %c0_385 = arith.constant 0 : index
    %241 = vector.load %arg11[%c72_384, %c0_385] : memref<100x320xbf16, #tpu.memory_space<vmem>>, vector<4x320xbf16>
    tpu.vector_store %arg11[%c72_384, %c0_385], %240 {strides = array<i32>} : memref<100x320xbf16, #tpu.memory_space<vmem>>, vector<4x320xbf16>,
    %c0_386 = arith.constant 0 : index
    %c64_387 = arith.constant 64 : index
    %242 = vector.load %arg10[%c0_386, %c64_387] : memref<4x512xbf16, #tpu.memory_space<vmem>>, vector<4x320xbf16>
    %c76_388 = arith.constant 76 : index
    %c0_389 = arith.constant 0 : index
    %243 = vector.load %arg11[%c76_388, %c0_389] : memref<100x320xbf16, #tpu.memory_space<vmem>>, vector<4x320xbf16>
    tpu.vector_store %arg11[%c76_388, %c0_389], %242 {strides = array<i32>} : memref<100x320xbf16, #tpu.memory_space<vmem>>, vector<4x320xbf16>,
    %c0_390 = arith.constant 0 : index
    %c80_391 = arith.constant 80 : index
    %244 = vector.load %arg10[%c0_390, %c80_391] : memref<4x512xbf16, #tpu.memory_space<vmem>>, vector<4x320xbf16>
    %c80_392 = arith.constant 80 : index
    %c0_393 = arith.constant 0 : index
    %245 = vector.load %arg11[%c80_392, %c0_393] : memref<100x320xbf16, #tpu.memory_space<vmem>>, vector<4x320xbf16>
    tpu.vector_store %arg11[%c80_392, %c0_393], %244 {strides = array<i32>} : memref<100x320xbf16, #tpu.memory_space<vmem>>, vector<4x320xbf16>,
    %c0_394 = arith.constant 0 : index
    %c81_395 = arith.constant 81 : index
    %246 = vector.load %arg10[%c0_394, %c81_395] : memref<4x512xbf16, #tpu.memory_space<vmem>>, vector<4x320xbf16>
    %c84_396 = arith.constant 84 : index
    %c0_397 = arith.constant 0 : index
    %247 = vector.load %arg11[%c84_396, %c0_397] : memref<100x320xbf16, #tpu.memory_space<vmem>>, vector<4x320xbf16>
    tpu.vector_store %arg11[%c84_396, %c0_397], %246 {strides = array<i32>} : memref<100x320xbf16, #tpu.memory_space<vmem>>, vector<4x320xbf16>,
    %c0_398 = arith.constant 0 : index
    %c82_399 = arith.constant 82 : index
    %248 = vector.load %arg10[%c0_398, %c82_399] : memref<4x512xbf16, #tpu.memory_space<vmem>>, vector<4x320xbf16>
    %c88_400 = arith.constant 88 : index
    %c0_401 = arith.constant 0 : index
    %249 = vector.load %arg11[%c88_400, %c0_401] : memref<100x320xbf16, #tpu.memory_space<vmem>>, vector<4x320xbf16>
    tpu.vector_store %arg11[%c88_400, %c0_401], %248 {strides = array<i32>} : memref<100x320xbf16, #tpu.memory_space<vmem>>, vector<4x320xbf16>,
    %c0_402 = arith.constant 0 : index
    %c83_403 = arith.constant 83 : index
    %250 = vector.load %arg10[%c0_402, %c83_403] : memref<4x512xbf16, #tpu.memory_space<vmem>>, vector<4x320xbf16>
    %c92_404 = arith.constant 92 : index
    %c0_405 = arith.constant 0 : index
    %251 = vector.load %arg11[%c92_404, %c0_405] : memref<100x320xbf16, #tpu.memory_space<vmem>>, vector<4x320xbf16>
    tpu.vector_store %arg11[%c92_404, %c0_405], %250 {strides = array<i32>} : memref<100x320xbf16, #tpu.memory_space<vmem>>, vector<4x320xbf16>,
    %c0_406 = arith.constant 0 : index
    %c84_407 = arith.constant 84 : index
    %252 = vector.load %arg10[%c0_406, %c84_407] : memref<4x512xbf16, #tpu.memory_space<vmem>>, vector<4x320xbf16>
    %c96_408 = arith.constant 96 : index
    %c0_409 = arith.constant 0 : index
    %253 = vector.load %arg11[%c96_408, %c0_409] : memref<100x320xbf16, #tpu.memory_space<vmem>>, vector<4x320xbf16>
    tpu.vector_store %arg11[%c96_408, %c0_409], %252 {strides = array<i32>} : memref<100x320xbf16, #tpu.memory_space<vmem>>, vector<4x320xbf16>,
    %c0_410 = arith.constant 0 : index
    %c0_411 = arith.constant 0 : index
    %254 = vector.load %arg11[%c0_410, %c0_411] : memref<100x320xbf16, #tpu.memory_space<vmem>>, vector<100x320xbf16>
    %cst_412 = arith.constant dense<0.000000e+00> : vector<4x320xf32>
    %255 = tpu.matmul %201, %254, %cst_412 {dimension_numbers = #tpu.dot_dimension_numbers<[1], [0], [0], [1], [0, 0, 1, 1], [], []>} : vector<4x100xbf16>, vector<100x320xbf16>, vector<4x320xf32> -> vector<4x320xf32>
    %256 = vector.broadcast %203 : vector<4x1xf32> to vector<4x320xf32>
    %257 = arith.addf %255, %256 : vector<4x320xf32>
    %258 = arith.addf %257, %131 : vector<4x320xf32>
    %259 = vector.broadcast %2 : vector<1x320xf32> to vector<4x320xf32>
    %260 = arith.mulf %258, %259 : vector<4x320xf32>
    %261 = arith.truncf %260 : vector<4x320xf32> to vector<4x320xbf16>
    %c0_413 = arith.constant 0 : index
    %c42_414 = arith.constant 42 : index
    %262 = vector.load %arg10[%c0_413, %c42_414] : memref<4x512xbf16, #tpu.memory_space<vmem>>, vector<4x320xbf16>
    tpu.vector_store %arg10[%c0_413, %c42_414], %261 {strides = array<i32>} : memref<4x512xbf16, #tpu.memory_space<vmem>>, vector<4x320xbf16>,
    %c2_415 = arith.constant 2 : index
    %c0_416 = arith.constant 0 : index
    %c0_417 = arith.constant 0 : index
    %263 = vector.load %arg2[%c2_415, %c0_416, %c0_417] : memref<3x4x100xbf16, #tpu.memory_space<vmem>>, vector<1x4x100xbf16>
    %264 = vector.shape_cast %263 : vector<1x4x100xbf16> to vector<4x100xbf16>
    %c2_418 = arith.constant 2 : index
    %c0_419 = arith.constant 0 : index
    %c0_420 = arith.constant 0 : index
    %265 = vector.load %arg3[%c2_418, %c0_419, %c0_420] : memref<3x4x1xf32, #tpu.memory_space<vmem>>, vector<1x4x1xf32>
    %266 = vector.shape_cast %265 : vector<1x4x1xf32> to vector<4x1xf32>
    %c0_421 = arith.constant 0 : index
    %c0_422 = arith.constant 0 : index
    %267 = vector.load %arg10[%c0_421, %c0_422] : memref<4x512xbf16, #tpu.memory_space<vmem>>, vector<4x320xbf16>
    %c0_423 = arith.constant 0 : index
    %c0_424 = arith.constant 0 : index
    %268 = vector.load %arg11[%c0_423, %c0_424] : memref<100x320xbf16, #tpu.memory_space<vmem>>, vector<4x320xbf16>
    tpu.vector_store %arg11[%c0_423, %c0_424], %267 {strides = array<i32>} : memref<100x320xbf16, #tpu.memory_space<vmem>>, vector<4x320xbf16>,
    %c0_425 = arith.constant 0 : index
    %c1_426 = arith.constant 1 : index
    %269 = vector.load %arg10[%c0_425, %c1_426] : memref<4x512xbf16, #tpu.memory_space<vmem>>, vector<4x320xbf16>
    %c4_427 = arith.constant 4 : index
    %c0_428 = arith.constant 0 : index
    %270 = vector.load %arg11[%c4_427, %c0_428] : memref<100x320xbf16, #tpu.memory_space<vmem>>, vector<4x320xbf16>
    tpu.vector_store %arg11[%c4_427, %c0_428], %269 {strides = array<i32>} : memref<100x320xbf16, #tpu.memory_space<vmem>>, vector<4x320xbf16>,
    %c0_429 = arith.constant 0 : index
    %c2_430 = arith.constant 2 : index
    %271 = vector.load %arg10[%c0_429, %c2_430] : memref<4x512xbf16, #tpu.memory_space<vmem>>, vector<4x320xbf16>
    %c8_431 = arith.constant 8 : index
    %c0_432 = arith.constant 0 : index
    %272 = vector.load %arg11[%c8_431, %c0_432] : memref<100x320xbf16, #tpu.memory_space<vmem>>, vector<4x320xbf16>
    tpu.vector_store %arg11[%c8_431, %c0_432], %271 {strides = array<i32>} : memref<100x320xbf16, #tpu.memory_space<vmem>>, vector<4x320xbf16>,
    %c0_433 = arith.constant 0 : index
    %c3_434 = arith.constant 3 : index
    %273 = vector.load %arg10[%c0_433, %c3_434] : memref<4x512xbf16, #tpu.memory_space<vmem>>, vector<4x320xbf16>
    %c12_435 = arith.constant 12 : index
    %c0_436 = arith.constant 0 : index
    %274 = vector.load %arg11[%c12_435, %c0_436] : memref<100x320xbf16, #tpu.memory_space<vmem>>, vector<4x320xbf16>
    tpu.vector_store %arg11[%c12_435, %c0_436], %273 {strides = array<i32>} : memref<100x320xbf16, #tpu.memory_space<vmem>>, vector<4x320xbf16>,
    %c0_437 = arith.constant 0 : index
    %c4_438 = arith.constant 4 : index
    %275 = vector.load %arg10[%c0_437, %c4_438] : memref<4x512xbf16, #tpu.memory_space<vmem>>, vector<4x320xbf16>
    %c16_439 = arith.constant 16 : index
    %c0_440 = arith.constant 0 : index
    %276 = vector.load %arg11[%c16_439, %c0_440] : memref<100x320xbf16, #tpu.memory_space<vmem>>, vector<4x320xbf16>
    tpu.vector_store %arg11[%c16_439, %c0_440], %275 {strides = array<i32>} : memref<100x320xbf16, #tpu.memory_space<vmem>>, vector<4x320xbf16>,
    %c0_441 = arith.constant 0 : index
    %c20_442 = arith.constant 20 : index
    %277 = vector.load %arg10[%c0_441, %c20_442] : memref<4x512xbf16, #tpu.memory_space<vmem>>, vector<4x320xbf16>
    %c20_443 = arith.constant 20 : index
    %c0_444 = arith.constant 0 : index
    %278 = vector.load %arg11[%c20_443, %c0_444] : memref<100x320xbf16, #tpu.memory_space<vmem>>, vector<4x320xbf16>
    tpu.vector_store %arg11[%c20_443, %c0_444], %277 {strides = array<i32>} : memref<100x320xbf16, #tpu.memory_space<vmem>>, vector<4x320xbf16>,
    %c0_445 = arith.constant 0 : index
    %c21_446 = arith.constant 21 : index
    %279 = vector.load %arg10[%c0_445, %c21_446] : memref<4x512xbf16, #tpu.memory_space<vmem>>, vector<4x320xbf16>
    %c24_447 = arith.constant 24 : index
    %c0_448 = arith.constant 0 : index
    %280 = vector.load %arg11[%c24_447, %c0_448] : memref<100x320xbf16, #tpu.memory_space<vmem>>, vector<4x320xbf16>
    tpu.vector_store %arg11[%c24_447, %c0_448], %279 {strides = array<i32>} : memref<100x320xbf16, #tpu.memory_space<vmem>>, vector<4x320xbf16>,
    %c0_449 = arith.constant 0 : index
    %c22_450 = arith.constant 22 : index
    %281 = vector.load %arg10[%c0_449, %c22_450] : memref<4x512xbf16, #tpu.memory_space<vmem>>, vector<4x320xbf16>
    %c28_451 = arith.constant 28 : index
    %c0_452 = arith.constant 0 : index
    %282 = vector.load %arg11[%c28_451, %c0_452] : memref<100x320xbf16, #tpu.memory_space<vmem>>, vector<4x320xbf16>
    tpu.vector_store %arg11[%c28_451, %c0_452], %281 {strides = array<i32>} : memref<100x320xbf16, #tpu.memory_space<vmem>>, vector<4x320xbf16>,
    %c0_453 = arith.constant 0 : index
    %c23_454 = arith.constant 23 : index
    %283 = vector.load %arg10[%c0_453, %c23_454] : memref<4x512xbf16, #tpu.memory_space<vmem>>, vector<4x320xbf16>
    %c32_455 = arith.constant 32 : index
    %c0_456 = arith.constant 0 : index
    %284 = vector.load %arg11[%c32_455, %c0_456] : memref<100x320xbf16, #tpu.memory_space<vmem>>, vector<4x320xbf16>
    tpu.vector_store %arg11[%c32_455, %c0_456], %283 {strides = array<i32>} : memref<100x320xbf16, #tpu.memory_space<vmem>>, vector<4x320xbf16>,
    %c0_457 = arith.constant 0 : index
    %c24_458 = arith.constant 24 : index
    %285 = vector.load %arg10[%c0_457, %c24_458] : memref<4x512xbf16, #tpu.memory_space<vmem>>, vector<4x320xbf16>
    %c36_459 = arith.constant 36 : index
    %c0_460 = arith.constant 0 : index
    %286 = vector.load %arg11[%c36_459, %c0_460] : memref<100x320xbf16, #tpu.memory_space<vmem>>, vector<4x320xbf16>
    tpu.vector_store %arg11[%c36_459, %c0_460], %285 {strides = array<i32>} : memref<100x320xbf16, #tpu.memory_space<vmem>>, vector<4x320xbf16>,
    %c0_461 = arith.constant 0 : index
    %c40_462 = arith.constant 40 : index
    %287 = vector.load %arg10[%c0_461, %c40_462] : memref<4x512xbf16, #tpu.memory_space<vmem>>, vector<4x320xbf16>
    %c40_463 = arith.constant 40 : index
    %c0_464 = arith.constant 0 : index
    %288 = vector.load %arg11[%c40_463, %c0_464] : memref<100x320xbf16, #tpu.memory_space<vmem>>, vector<4x320xbf16>
    tpu.vector_store %arg11[%c40_463, %c0_464], %287 {strides = array<i32>} : memref<100x320xbf16, #tpu.memory_space<vmem>>, vector<4x320xbf16>,
    %c0_465 = arith.constant 0 : index
    %c41_466 = arith.constant 41 : index
    %289 = vector.load %arg10[%c0_465, %c41_466] : memref<4x512xbf16, #tpu.memory_space<vmem>>, vector<4x320xbf16>
    %c44_467 = arith.constant 44 : index
    %c0_468 = arith.constant 0 : index
    %290 = vector.load %arg11[%c44_467, %c0_468] : memref<100x320xbf16, #tpu.memory_space<vmem>>, vector<4x320xbf16>
    tpu.vector_store %arg11[%c44_467, %c0_468], %289 {strides = array<i32>} : memref<100x320xbf16, #tpu.memory_space<vmem>>, vector<4x320xbf16>,
    %c0_469 = arith.constant 0 : index
    %c42_470 = arith.constant 42 : index
    %291 = vector.load %arg10[%c0_469, %c42_470] : memref<4x512xbf16, #tpu.memory_space<vmem>>, vector<4x320xbf16>
    %c48_471 = arith.constant 48 : index
    %c0_472 = arith.constant 0 : index
    %292 = vector.load %arg11[%c48_471, %c0_472] : memref<100x320xbf16, #tpu.memory_space<vmem>>, vector<4x320xbf16>
    tpu.vector_store %arg11[%c48_471, %c0_472], %291 {strides = array<i32>} : memref<100x320xbf16, #tpu.memory_space<vmem>>, vector<4x320xbf16>,
    %c0_473 = arith.constant 0 : index
    %c43_474 = arith.constant 43 : index
    %293 = vector.load %arg10[%c0_473, %c43_474] : memref<4x512xbf16, #tpu.memory_space<vmem>>, vector<4x320xbf16>
    %c52_475 = arith.constant 52 : index
    %c0_476 = arith.constant 0 : index
    %294 = vector.load %arg11[%c52_475, %c0_476] : memref<100x320xbf16, #tpu.memory_space<vmem>>, vector<4x320xbf16>
    tpu.vector_store %arg11[%c52_475, %c0_476], %293 {strides = array<i32>} : memref<100x320xbf16, #tpu.memory_space<vmem>>, vector<4x320xbf16>,
    %c0_477 = arith.constant 0 : index
    %c44_478 = arith.constant 44 : index
    %295 = vector.load %arg10[%c0_477, %c44_478] : memref<4x512xbf16, #tpu.memory_space<vmem>>, vector<4x320xbf16>
    %c56_479 = arith.constant 56 : index
    %c0_480 = arith.constant 0 : index
    %296 = vector.load %arg11[%c56_479, %c0_480] : memref<100x320xbf16, #tpu.memory_space<vmem>>, vector<4x320xbf16>
    tpu.vector_store %arg11[%c56_479, %c0_480], %295 {strides = array<i32>} : memref<100x320xbf16, #tpu.memory_space<vmem>>, vector<4x320xbf16>,
    %c0_481 = arith.constant 0 : index
    %c60_482 = arith.constant 60 : index
    %297 = vector.load %arg10[%c0_481, %c60_482] : memref<4x512xbf16, #tpu.memory_space<vmem>>, vector<4x320xbf16>
    %c60_483 = arith.constant 60 : index
    %c0_484 = arith.constant 0 : index
    %298 = vector.load %arg11[%c60_483, %c0_484] : memref<100x320xbf16, #tpu.memory_space<vmem>>, vector<4x320xbf16>
    tpu.vector_store %arg11[%c60_483, %c0_484], %297 {strides = array<i32>} : memref<100x320xbf16, #tpu.memory_space<vmem>>, vector<4x320xbf16>,
    %c0_485 = arith.constant 0 : index
    %c61_486 = arith.constant 61 : index
    %299 = vector.load %arg10[%c0_485, %c61_486] : memref<4x512xbf16, #tpu.memory_space<vmem>>, vector<4x320xbf16>
    %c64_487 = arith.constant 64 : index
    %c0_488 = arith.constant 0 : index
    %300 = vector.load %arg11[%c64_487, %c0_488] : memref<100x320xbf16, #tpu.memory_space<vmem>>, vector<4x320xbf16>
    tpu.vector_store %arg11[%c64_487, %c0_488], %299 {strides = array<i32>} : memref<100x320xbf16, #tpu.memory_space<vmem>>, vector<4x320xbf16>,
    %c0_489 = arith.constant 0 : index
    %c62_490 = arith.constant 62 : index
    %301 = vector.load %arg10[%c0_489, %c62_490] : memref<4x512xbf16, #tpu.memory_space<vmem>>, vector<4x320xbf16>
    %c68_491 = arith.constant 68 : index
    %c0_492 = arith.constant 0 : index
    %302 = vector.load %arg11[%c68_491, %c0_492] : memref<100x320xbf16, #tpu.memory_space<vmem>>, vector<4x320xbf16>
    tpu.vector_store %arg11[%c68_491, %c0_492], %301 {strides = array<i32>} : memref<100x320xbf16, #tpu.memory_space<vmem>>, vector<4x320xbf16>,
    %c0_493 = arith.constant 0 : index
    %c63_494 = arith.constant 63 : index
    %303 = vector.load %arg10[%c0_493, %c63_494] : memref<4x512xbf16, #tpu.memory_space<vmem>>, vector<4x320xbf16>
    %c72_495 = arith.constant 72 : index
    %c0_496 = arith.constant 0 : index
    %304 = vector.load %arg11[%c72_495, %c0_496] : memref<100x320xbf16, #tpu.memory_space<vmem>>, vector<4x320xbf16>
    tpu.vector_store %arg11[%c72_495, %c0_496], %303 {strides = array<i32>} : memref<100x320xbf16, #tpu.memory_space<vmem>>, vector<4x320xbf16>,
    %c0_497 = arith.constant 0 : index
    %c64_498 = arith.constant 64 : index
    %305 = vector.load %arg10[%c0_497, %c64_498] : memref<4x512xbf16, #tpu.memory_space<vmem>>, vector<4x320xbf16>
    %c76_499 = arith.constant 76 : index
    %c0_500 = arith.constant 0 : index
    %306 = vector.load %arg11[%c76_499, %c0_500] : memref<100x320xbf16, #tpu.memory_space<vmem>>, vector<4x320xbf16>
    tpu.vector_store %arg11[%c76_499, %c0_500], %305 {strides = array<i32>} : memref<100x320xbf16, #tpu.memory_space<vmem>>, vector<4x320xbf16>,
    %c0_501 = arith.constant 0 : index
    %c80_502 = arith.constant 80 : index
    %307 = vector.load %arg10[%c0_501, %c80_502] : memref<4x512xbf16, #tpu.memory_space<vmem>>, vector<4x320xbf16>
    %c80_503 = arith.constant 80 : index
    %c0_504 = arith.constant 0 : index
    %308 = vector.load %arg11[%c80_503, %c0_504] : memref<100x320xbf16, #tpu.memory_space<vmem>>, vector<4x320xbf16>
    tpu.vector_store %arg11[%c80_503, %c0_504], %307 {strides = array<i32>} : memref<100x320xbf16, #tpu.memory_space<vmem>>, vector<4x320xbf16>,
    %c0_505 = arith.constant 0 : index
    %c81_506 = arith.constant 81 : index
    %309 = vector.load %arg10[%c0_505, %c81_506] : memref<4x512xbf16, #tpu.memory_space<vmem>>, vector<4x320xbf16>
    %c84_507 = arith.constant 84 : index
    %c0_508 = arith.constant 0 : index
    %310 = vector.load %arg11[%c84_507, %c0_508] : memref<100x320xbf16, #tpu.memory_space<vmem>>, vector<4x320xbf16>
    tpu.vector_store %arg11[%c84_507, %c0_508], %309 {strides = array<i32>} : memref<100x320xbf16, #tpu.memory_space<vmem>>, vector<4x320xbf16>,
    %c0_509 = arith.constant 0 : index
    %c82_510 = arith.constant 82 : index
    %311 = vector.load %arg10[%c0_509, %c82_510] : memref<4x512xbf16, #tpu.memory_space<vmem>>, vector<4x320xbf16>
    %c88_511 = arith.constant 88 : index
    %c0_512 = arith.constant 0 : index
    %312 = vector.load %arg11[%c88_511, %c0_512] : memref<100x320xbf16, #tpu.memory_space<vmem>>, vector<4x320xbf16>
    tpu.vector_store %arg11[%c88_511, %c0_512], %311 {strides = array<i32>} : memref<100x320xbf16, #tpu.memory_space<vmem>>, vector<4x320xbf16>,
    %c0_513 = arith.constant 0 : index
    %c83_514 = arith.constant 83 : index
    %313 = vector.load %arg10[%c0_513, %c83_514] : memref<4x512xbf16, #tpu.memory_space<vmem>>, vector<4x320xbf16>
    %c92_515 = arith.constant 92 : index
    %c0_516 = arith.constant 0 : index
    %314 = vector.load %arg11[%c92_515, %c0_516] : memref<100x320xbf16, #tpu.memory_space<vmem>>, vector<4x320xbf16>
    tpu.vector_store %arg11[%c92_515, %c0_516], %313 {strides = array<i32>} : memref<100x320xbf16, #tpu.memory_space<vmem>>, vector<4x320xbf16>,
    %c0_517 = arith.constant 0 : index
    %c84_518 = arith.constant 84 : index
    %315 = vector.load %arg10[%c0_517, %c84_518] : memref<4x512xbf16, #tpu.memory_space<vmem>>, vector<4x320xbf16>
    %c96_519 = arith.constant 96 : index
    %c0_520 = arith.constant 0 : index
    %316 = vector.load %arg11[%c96_519, %c0_520] : memref<100x320xbf16, #tpu.memory_space<vmem>>, vector<4x320xbf16>
    tpu.vector_store %arg11[%c96_519, %c0_520], %315 {strides = array<i32>} : memref<100x320xbf16, #tpu.memory_space<vmem>>, vector<4x320xbf16>,
    %c0_521 = arith.constant 0 : index
    %c0_522 = arith.constant 0 : index
    %317 = vector.load %arg11[%c0_521, %c0_522] : memref<100x320xbf16, #tpu.memory_space<vmem>>, vector<100x320xbf16>
    %cst_523 = arith.constant dense<0.000000e+00> : vector<4x320xf32>
    %318 = tpu.matmul %264, %317, %cst_523 {dimension_numbers = #tpu.dot_dimension_numbers<[1], [0], [0], [1], [0, 0, 1, 1], [], []>} : vector<4x100xbf16>, vector<100x320xbf16>, vector<4x320xf32> -> vector<4x320xf32>
    %319 = vector.broadcast %266 : vector<4x1xf32> to vector<4x320xf32>
    %320 = arith.addf %318, %319 : vector<4x320xf32>
    %cst_524 = arith.constant 0.000000e+00 : f32
    %321 = vector.broadcast %cst_524 : f32 to vector<4x320xf32>
    %322 = arith.maximumf %320, %321 : vector<4x320xf32>
    %323 = vector.broadcast %2 : vector<1x320xf32> to vector<4x320xf32>
    %324 = arith.mulf %322, %323 : vector<4x320xf32>
    %325 = arith.truncf %324 : vector<4x320xf32> to vector<4x320xbf16>
    %c0_525 = arith.constant 0 : index
    %c42_526 = arith.constant 42 : index
    %326 = vector.load %arg10[%c0_525, %c42_526] : memref<4x512xbf16, #tpu.memory_space<vmem>>, vector<4x320xbf16>
    tpu.vector_store %arg10[%c0_525, %c42_526], %325 {strides = array<i32>} : memref<4x512xbf16, #tpu.memory_space<vmem>>, vector<4x320xbf16>,
    %c2_527 = arith.constant 2 : index
    %c0_528 = arith.constant 0 : index
    %c0_529 = arith.constant 0 : index
    %327 = vector.load %arg4[%c2_527, %c0_528, %c0_529] : memref<3x4x100xbf16, #tpu.memory_space<vmem>>, vector<1x4x100xbf16>
    %328 = vector.shape_cast %327 : vector<1x4x100xbf16> to vector<4x100xbf16>
    %c2_530 = arith.constant 2 : index
    %c0_531 = arith.constant 0 : index
    %c0_532 = arith.constant 0 : index
    %329 = vector.load %arg5[%c2_530, %c0_531, %c0_532] : memref<3x4x1xf32, #tpu.memory_space<vmem>>, vector<1x4x1xf32>
    %330 = vector.shape_cast %329 : vector<1x4x1xf32> to vector<4x1xf32>
    %c0_533 = arith.constant 0 : index
    %c0_534 = arith.constant 0 : index
    %331 = vector.load %arg10[%c0_533, %c0_534] : memref<4x512xbf16, #tpu.memory_space<vmem>>, vector<4x320xbf16>
    %c0_535 = arith.constant 0 : index
    %c0_536 = arith.constant 0 : index
    %332 = vector.load %arg11[%c0_535, %c0_536] : memref<100x320xbf16, #tpu.memory_space<vmem>>, vector<4x320xbf16>
    tpu.vector_store %arg11[%c0_535, %c0_536], %331 {strides = array<i32>} : memref<100x320xbf16, #tpu.memory_space<vmem>>, vector<4x320xbf16>,
    %c0_537 = arith.constant 0 : index
    %c1_538 = arith.constant 1 : index
    %333 = vector.load %arg10[%c0_537, %c1_538] : memref<4x512xbf16, #tpu.memory_space<vmem>>, vector<4x320xbf16>
    %c4_539 = arith.constant 4 : index
    %c0_540 = arith.constant 0 : index
    %334 = vector.load %arg11[%c4_539, %c0_540] : memref<100x320xbf16, #tpu.memory_space<vmem>>, vector<4x320xbf16>
    tpu.vector_store %arg11[%c4_539, %c0_540], %333 {strides = array<i32>} : memref<100x320xbf16, #tpu.memory_space<vmem>>, vector<4x320xbf16>,
    %c0_541 = arith.constant 0 : index
    %c2_542 = arith.constant 2 : index
    %335 = vector.load %arg10[%c0_541, %c2_542] : memref<4x512xbf16, #tpu.memory_space<vmem>>, vector<4x320xbf16>
    %c8_543 = arith.constant 8 : index
    %c0_544 = arith.constant 0 : index
    %336 = vector.load %arg11[%c8_543, %c0_544] : memref<100x320xbf16, #tpu.memory_space<vmem>>, vector<4x320xbf16>
    tpu.vector_store %arg11[%c8_543, %c0_544], %335 {strides = array<i32>} : memref<100x320xbf16, #tpu.memory_space<vmem>>, vector<4x320xbf16>,
    %c0_545 = arith.constant 0 : index
    %c3_546 = arith.constant 3 : index
    %337 = vector.load %arg10[%c0_545, %c3_546] : memref<4x512xbf16, #tpu.memory_space<vmem>>, vector<4x320xbf16>
    %c12_547 = arith.constant 12 : index
    %c0_548 = arith.constant 0 : index
    %338 = vector.load %arg11[%c12_547, %c0_548] : memref<100x320xbf16, #tpu.memory_space<vmem>>, vector<4x320xbf16>
    tpu.vector_store %arg11[%c12_547, %c0_548], %337 {strides = array<i32>} : memref<100x320xbf16, #tpu.memory_space<vmem>>, vector<4x320xbf16>,
    %c0_549 = arith.constant 0 : index
    %c4_550 = arith.constant 4 : index
    %339 = vector.load %arg10[%c0_549, %c4_550] : memref<4x512xbf16, #tpu.memory_space<vmem>>, vector<4x320xbf16>
    %c16_551 = arith.constant 16 : index
    %c0_552 = arith.constant 0 : index
    %340 = vector.load %arg11[%c16_551, %c0_552] : memref<100x320xbf16, #tpu.memory_space<vmem>>, vector<4x320xbf16>
    tpu.vector_store %arg11[%c16_551, %c0_552], %339 {strides = array<i32>} : memref<100x320xbf16, #tpu.memory_space<vmem>>, vector<4x320xbf16>,
    %c0_553 = arith.constant 0 : index
    %c20_554 = arith.constant 20 : index
    %341 = vector.load %arg10[%c0_553, %c20_554] : memref<4x512xbf16, #tpu.memory_space<vmem>>, vector<4x320xbf16>
    %c20_555 = arith.constant 20 : index
    %c0_556 = arith.constant 0 : index
    %342 = vector.load %arg11[%c20_555, %c0_556] : memref<100x320xbf16, #tpu.memory_space<vmem>>, vector<4x320xbf16>
    tpu.vector_store %arg11[%c20_555, %c0_556], %341 {strides = array<i32>} : memref<100x320xbf16, #tpu.memory_space<vmem>>, vector<4x320xbf16>,
    %c0_557 = arith.constant 0 : index
    %c21_558 = arith.constant 21 : index
    %343 = vector.load %arg10[%c0_557, %c21_558] : memref<4x512xbf16, #tpu.memory_space<vmem>>, vector<4x320xbf16>
    %c24_559 = arith.constant 24 : index
    %c0_560 = arith.constant 0 : index
    %344 = vector.load %arg11[%c24_559, %c0_560] : memref<100x320xbf16, #tpu.memory_space<vmem>>, vector<4x320xbf16>
    tpu.vector_store %arg11[%c24_559, %c0_560], %343 {strides = array<i32>} : memref<100x320xbf16, #tpu.memory_space<vmem>>, vector<4x320xbf16>,
    %c0_561 = arith.constant 0 : index
    %c22_562 = arith.constant 22 : index
    %345 = vector.load %arg10[%c0_561, %c22_562] : memref<4x512xbf16, #tpu.memory_space<vmem>>, vector<4x320xbf16>
    %c28_563 = arith.constant 28 : index
    %c0_564 = arith.constant 0 : index
    %346 = vector.load %arg11[%c28_563, %c0_564] : memref<100x320xbf16, #tpu.memory_space<vmem>>, vector<4x320xbf16>
    tpu.vector_store %arg11[%c28_563, %c0_564], %345 {strides = array<i32>} : memref<100x320xbf16, #tpu.memory_space<vmem>>, vector<4x320xbf16>,
    %c0_565 = arith.constant 0 : index
    %c23_566 = arith.constant 23 : index
    %347 = vector.load %arg10[%c0_565, %c23_566] : memref<4x512xbf16, #tpu.memory_space<vmem>>, vector<4x320xbf16>
    %c32_567 = arith.constant 32 : index
    %c0_568 = arith.constant 0 : index
    %348 = vector.load %arg11[%c32_567, %c0_568] : memref<100x320xbf16, #tpu.memory_space<vmem>>, vector<4x320xbf16>
    tpu.vector_store %arg11[%c32_567, %c0_568], %347 {strides = array<i32>} : memref<100x320xbf16, #tpu.memory_space<vmem>>, vector<4x320xbf16>,
    %c0_569 = arith.constant 0 : index
    %c24_570 = arith.constant 24 : index
    %349 = vector.load %arg10[%c0_569, %c24_570] : memref<4x512xbf16, #tpu.memory_space<vmem>>, vector<4x320xbf16>
    %c36_571 = arith.constant 36 : index
    %c0_572 = arith.constant 0 : index
    %350 = vector.load %arg11[%c36_571, %c0_572] : memref<100x320xbf16, #tpu.memory_space<vmem>>, vector<4x320xbf16>
    tpu.vector_store %arg11[%c36_571, %c0_572], %349 {strides = array<i32>} : memref<100x320xbf16, #tpu.memory_space<vmem>>, vector<4x320xbf16>,
    %c0_573 = arith.constant 0 : index
    %c40_574 = arith.constant 40 : index
    %351 = vector.load %arg10[%c0_573, %c40_574] : memref<4x512xbf16, #tpu.memory_space<vmem>>, vector<4x320xbf16>
    %c40_575 = arith.constant 40 : index
    %c0_576 = arith.constant 0 : index
    %352 = vector.load %arg11[%c40_575, %c0_576] : memref<100x320xbf16, #tpu.memory_space<vmem>>, vector<4x320xbf16>
    tpu.vector_store %arg11[%c40_575, %c0_576], %351 {strides = array<i32>} : memref<100x320xbf16, #tpu.memory_space<vmem>>, vector<4x320xbf16>,
    %c0_577 = arith.constant 0 : index
    %c41_578 = arith.constant 41 : index
    %353 = vector.load %arg10[%c0_577, %c41_578] : memref<4x512xbf16, #tpu.memory_space<vmem>>, vector<4x320xbf16>
    %c44_579 = arith.constant 44 : index
    %c0_580 = arith.constant 0 : index
    %354 = vector.load %arg11[%c44_579, %c0_580] : memref<100x320xbf16, #tpu.memory_space<vmem>>, vector<4x320xbf16>
    tpu.vector_store %arg11[%c44_579, %c0_580], %353 {strides = array<i32>} : memref<100x320xbf16, #tpu.memory_space<vmem>>, vector<4x320xbf16>,
    %c0_581 = arith.constant 0 : index
    %c42_582 = arith.constant 42 : index
    %355 = vector.load %arg10[%c0_581, %c42_582] : memref<4x512xbf16, #tpu.memory_space<vmem>>, vector<4x320xbf16>
    %c48_583 = arith.constant 48 : index
    %c0_584 = arith.constant 0 : index
    %356 = vector.load %arg11[%c48_583, %c0_584] : memref<100x320xbf16, #tpu.memory_space<vmem>>, vector<4x320xbf16>
    tpu.vector_store %arg11[%c48_583, %c0_584], %355 {strides = array<i32>} : memref<100x320xbf16, #tpu.memory_space<vmem>>, vector<4x320xbf16>,
    %c0_585 = arith.constant 0 : index
    %c43_586 = arith.constant 43 : index
    %357 = vector.load %arg10[%c0_585, %c43_586] : memref<4x512xbf16, #tpu.memory_space<vmem>>, vector<4x320xbf16>
    %c52_587 = arith.constant 52 : index
    %c0_588 = arith.constant 0 : index
    %358 = vector.load %arg11[%c52_587, %c0_588] : memref<100x320xbf16, #tpu.memory_space<vmem>>, vector<4x320xbf16>
    tpu.vector_store %arg11[%c52_587, %c0_588], %357 {strides = array<i32>} : memref<100x320xbf16, #tpu.memory_space<vmem>>, vector<4x320xbf16>,
    %c0_589 = arith.constant 0 : index
    %c44_590 = arith.constant 44 : index
    %359 = vector.load %arg10[%c0_589, %c44_590] : memref<4x512xbf16, #tpu.memory_space<vmem>>, vector<4x320xbf16>
    %c56_591 = arith.constant 56 : index
    %c0_592 = arith.constant 0 : index
    %360 = vector.load %arg11[%c56_591, %c0_592] : memref<100x320xbf16, #tpu.memory_space<vmem>>, vector<4x320xbf16>
    tpu.vector_store %arg11[%c56_591, %c0_592], %359 {strides = array<i32>} : memref<100x320xbf16, #tpu.memory_space<vmem>>, vector<4x320xbf16>,
    %c0_593 = arith.constant 0 : index
    %c60_594 = arith.constant 60 : index
    %361 = vector.load %arg10[%c0_593, %c60_594] : memref<4x512xbf16, #tpu.memory_space<vmem>>, vector<4x320xbf16>
    %c60_595 = arith.constant 60 : index
    %c0_596 = arith.constant 0 : index
    %362 = vector.load %arg11[%c60_595, %c0_596] : memref<100x320xbf16, #tpu.memory_space<vmem>>, vector<4x320xbf16>
    tpu.vector_store %arg11[%c60_595, %c0_596], %361 {strides = array<i32>} : memref<100x320xbf16, #tpu.memory_space<vmem>>, vector<4x320xbf16>,
    %c0_597 = arith.constant 0 : index
    %c61_598 = arith.constant 61 : index
    %363 = vector.load %arg10[%c0_597, %c61_598] : memref<4x512xbf16, #tpu.memory_space<vmem>>, vector<4x320xbf16>
    %c64_599 = arith.constant 64 : index
    %c0_600 = arith.constant 0 : index
    %364 = vector.load %arg11[%c64_599, %c0_600] : memref<100x320xbf16, #tpu.memory_space<vmem>>, vector<4x320xbf16>
    tpu.vector_store %arg11[%c64_599, %c0_600], %363 {strides = array<i32>} : memref<100x320xbf16, #tpu.memory_space<vmem>>, vector<4x320xbf16>,
    %c0_601 = arith.constant 0 : index
    %c62_602 = arith.constant 62 : index
    %365 = vector.load %arg10[%c0_601, %c62_602] : memref<4x512xbf16, #tpu.memory_space<vmem>>, vector<4x320xbf16>
    %c68_603 = arith.constant 68 : index
    %c0_604 = arith.constant 0 : index
    %366 = vector.load %arg11[%c68_603, %c0_604] : memref<100x320xbf16, #tpu.memory_space<vmem>>, vector<4x320xbf16>
    tpu.vector_store %arg11[%c68_603, %c0_604], %365 {strides = array<i32>} : memref<100x320xbf16, #tpu.memory_space<vmem>>, vector<4x320xbf16>,
    %c0_605 = arith.constant 0 : index
    %c63_606 = arith.constant 63 : index
    %367 = vector.load %arg10[%c0_605, %c63_606] : memref<4x512xbf16, #tpu.memory_space<vmem>>, vector<4x320xbf16>
    %c72_607 = arith.constant 72 : index
    %c0_608 = arith.constant 0 : index
    %368 = vector.load %arg11[%c72_607, %c0_608] : memref<100x320xbf16, #tpu.memory_space<vmem>>, vector<4x320xbf16>
    tpu.vector_store %arg11[%c72_607, %c0_608], %367 {strides = array<i32>} : memref<100x320xbf16, #tpu.memory_space<vmem>>, vector<4x320xbf16>,
    %c0_609 = arith.constant 0 : index
    %c64_610 = arith.constant 64 : index
    %369 = vector.load %arg10[%c0_609, %c64_610] : memref<4x512xbf16, #tpu.memory_space<vmem>>, vector<4x320xbf16>
    %c76_611 = arith.constant 76 : index
    %c0_612 = arith.constant 0 : index
    %370 = vector.load %arg11[%c76_611, %c0_612] : memref<100x320xbf16, #tpu.memory_space<vmem>>, vector<4x320xbf16>
    tpu.vector_store %arg11[%c76_611, %c0_612], %369 {strides = array<i32>} : memref<100x320xbf16, #tpu.memory_space<vmem>>, vector<4x320xbf16>,
    %c0_613 = arith.constant 0 : index
    %c80_614 = arith.constant 80 : index
    %371 = vector.load %arg10[%c0_613, %c80_614] : memref<4x512xbf16, #tpu.memory_space<vmem>>, vector<4x320xbf16>
    %c80_615 = arith.constant 80 : index
    %c0_616 = arith.constant 0 : index
    %372 = vector.load %arg11[%c80_615, %c0_616] : memref<100x320xbf16, #tpu.memory_space<vmem>>, vector<4x320xbf16>
    tpu.vector_store %arg11[%c80_615, %c0_616], %371 {strides = array<i32>} : memref<100x320xbf16, #tpu.memory_space<vmem>>, vector<4x320xbf16>,
    %c0_617 = arith.constant 0 : index
    %c81_618 = arith.constant 81 : index
    %373 = vector.load %arg10[%c0_617, %c81_618] : memref<4x512xbf16, #tpu.memory_space<vmem>>, vector<4x320xbf16>
    %c84_619 = arith.constant 84 : index
    %c0_620 = arith.constant 0 : index
    %374 = vector.load %arg11[%c84_619, %c0_620] : memref<100x320xbf16, #tpu.memory_space<vmem>>, vector<4x320xbf16>
    tpu.vector_store %arg11[%c84_619, %c0_620], %373 {strides = array<i32>} : memref<100x320xbf16, #tpu.memory_space<vmem>>, vector<4x320xbf16>,
    %c0_621 = arith.constant 0 : index
    %c82_622 = arith.constant 82 : index
    %375 = vector.load %arg10[%c0_621, %c82_622] : memref<4x512xbf16, #tpu.memory_space<vmem>>, vector<4x320xbf16>
    %c88_623 = arith.constant 88 : index
    %c0_624 = arith.constant 0 : index
    %376 = vector.load %arg11[%c88_623, %c0_624] : memref<100x320xbf16, #tpu.memory_space<vmem>>, vector<4x320xbf16>
    tpu.vector_store %arg11[%c88_623, %c0_624], %375 {strides = array<i32>} : memref<100x320xbf16, #tpu.memory_space<vmem>>, vector<4x320xbf16>,
    %c0_625 = arith.constant 0 : index
    %c83_626 = arith.constant 83 : index
    %377 = vector.load %arg10[%c0_625, %c83_626] : memref<4x512xbf16, #tpu.memory_space<vmem>>, vector<4x320xbf16>
    %c92_627 = arith.constant 92 : index
    %c0_628 = arith.constant 0 : index
    %378 = vector.load %arg11[%c92_627, %c0_628] : memref<100x320xbf16, #tpu.memory_space<vmem>>, vector<4x320xbf16>
    tpu.vector_store %arg11[%c92_627, %c0_628], %377 {strides = array<i32>} : memref<100x320xbf16, #tpu.memory_space<vmem>>, vector<4x320xbf16>,
    %c0_629 = arith.constant 0 : index
    %c84_630 = arith.constant 84 : index
    %379 = vector.load %arg10[%c0_629, %c84_630] : memref<4x512xbf16, #tpu.memory_space<vmem>>, vector<4x320xbf16>
    %c96_631 = arith.constant 96 : index
    %c0_632 = arith.constant 0 : index
    %380 = vector.load %arg11[%c96_631, %c0_632] : memref<100x320xbf16, #tpu.memory_space<vmem>>, vector<4x320xbf16>
    tpu.vector_store %arg11[%c96_631, %c0_632], %379 {strides = array<i32>} : memref<100x320xbf16, #tpu.memory_space<vmem>>, vector<4x320xbf16>,
    %c0_633 = arith.constant 0 : index
    %c0_634 = arith.constant 0 : index
    %381 = vector.load %arg11[%c0_633, %c0_634] : memref<100x320xbf16, #tpu.memory_space<vmem>>, vector<100x320xbf16>
    %cst_635 = arith.constant dense<0.000000e+00> : vector<4x320xf32>
    %382 = tpu.matmul %328, %381, %cst_635 {dimension_numbers = #tpu.dot_dimension_numbers<[1], [0], [0], [1], [0, 0, 1, 1], [], []>} : vector<4x100xbf16>, vector<100x320xbf16>, vector<4x320xf32> -> vector<4x320xf32>
    %383 = vector.broadcast %330 : vector<4x1xf32> to vector<4x320xf32>
    %384 = arith.addf %382, %383 : vector<4x320xf32>
    %385 = arith.addf %384, %258 : vector<4x320xf32>
    %386 = vector.broadcast %2 : vector<1x320xf32> to vector<4x320xf32>
    %387 = arith.mulf %385, %386 : vector<4x320xf32>
    %388 = arith.truncf %387 : vector<4x320xf32> to vector<4x320xbf16>
    %c0_636 = arith.constant 0 : index
    %c42_637 = arith.constant 42 : index
    %389 = vector.load %arg10[%c0_636, %c42_637] : memref<4x512xbf16, #tpu.memory_space<vmem>>, vector<4x320xbf16>
    tpu.vector_store %arg10[%c0_636, %c42_637], %388 {strides = array<i32>} : memref<4x512xbf16, #tpu.memory_space<vmem>>, vector<4x320xbf16>,
    %c0_638 = arith.constant 0 : index
    %c21_639 = arith.constant 21 : index
    %390 = vector.load %arg10[%c0_638, %c21_639] : memref<4x512xbf16, #tpu.memory_space<vmem>>, vector<4x320xbf16>
    %c0_640 = arith.constant 0 : index
    %c0_641 = arith.constant 0 : index
    %391 = vector.load %arg11[%c0_640, %c0_641] : memref<100x320xbf16, #tpu.memory_space<vmem>>, vector<4x320xbf16>
    tpu.vector_store %arg11[%c0_640, %c0_641], %390 {strides = array<i32>} : memref<100x320xbf16, #tpu.memory_space<vmem>>, vector<4x320xbf16>,
    %c0_642 = arith.constant 0 : index
    %c22_643 = arith.constant 22 : index
    %392 = vector.load %arg10[%c0_642, %c22_643] : memref<4x512xbf16, #tpu.memory_space<vmem>>, vector<4x320xbf16>
    %c4_644 = arith.constant 4 : index
    %c0_645 = arith.constant 0 : index
    %393 = vector.load %arg11[%c4_644, %c0_645] : memref<100x320xbf16, #tpu.memory_space<vmem>>, vector<4x320xbf16>
    tpu.vector_store %arg11[%c4_644, %c0_645], %392 {strides = array<i32>} : memref<100x320xbf16, #tpu.memory_space<vmem>>, vector<4x320xbf16>,
    %c0_646 = arith.constant 0 : index
    %c23_647 = arith.constant 23 : index
    %394 = vector.load %arg10[%c0_646, %c23_647] : memref<4x512xbf16, #tpu.memory_space<vmem>>, vector<4x320xbf16>
    %c8_648 = arith.constant 8 : index
    %c0_649 = arith.constant 0 : index
    %395 = vector.load %arg11[%c8_648, %c0_649] : memref<100x320xbf16, #tpu.memory_space<vmem>>, vector<4x320xbf16>
    tpu.vector_store %arg11[%c8_648, %c0_649], %394 {strides = array<i32>} : memref<100x320xbf16, #tpu.memory_space<vmem>>, vector<4x320xbf16>,
    %c0_650 = arith.constant 0 : index
    %c41_651 = arith.constant 41 : index
    %396 = vector.load %arg10[%c0_650, %c41_651] : memref<4x512xbf16, #tpu.memory_space<vmem>>, vector<4x320xbf16>
    %c12_652 = arith.constant 12 : index
    %c0_653 = arith.constant 0 : index
    %397 = vector.load %arg11[%c12_652, %c0_653] : memref<100x320xbf16, #tpu.memory_space<vmem>>, vector<4x320xbf16>
    tpu.vector_store %arg11[%c12_652, %c0_653], %396 {strides = array<i32>} : memref<100x320xbf16, #tpu.memory_space<vmem>>, vector<4x320xbf16>,
    %c0_654 = arith.constant 0 : index
    %c42_655 = arith.constant 42 : index
    %398 = vector.load %arg10[%c0_654, %c42_655] : memref<4x512xbf16, #tpu.memory_space<vmem>>, vector<4x320xbf16>
    %c16_656 = arith.constant 16 : index
    %c0_657 = arith.constant 0 : index
    %399 = vector.load %arg11[%c16_656, %c0_657] : memref<100x320xbf16, #tpu.memory_space<vmem>>, vector<4x320xbf16>
    tpu.vector_store %arg11[%c16_656, %c0_657], %398 {strides = array<i32>} : memref<100x320xbf16, #tpu.memory_space<vmem>>, vector<4x320xbf16>,
    %c0_658 = arith.constant 0 : index
    %c43_659 = arith.constant 43 : index
    %400 = vector.load %arg10[%c0_658, %c43_659] : memref<4x512xbf16, #tpu.memory_space<vmem>>, vector<4x320xbf16>
    %c20_660 = arith.constant 20 : index
    %c0_661 = arith.constant 0 : index
    %401 = vector.load %arg11[%c20_660, %c0_661] : memref<100x320xbf16, #tpu.memory_space<vmem>>, vector<4x320xbf16>
    tpu.vector_store %arg11[%c20_660, %c0_661], %400 {strides = array<i32>} : memref<100x320xbf16, #tpu.memory_space<vmem>>, vector<4x320xbf16>,
    %c0_662 = arith.constant 0 : index
    %c61_663 = arith.constant 61 : index
    %402 = vector.load %arg10[%c0_662, %c61_663] : memref<4x512xbf16, #tpu.memory_space<vmem>>, vector<4x320xbf16>
    %c24_664 = arith.constant 24 : index
    %c0_665 = arith.constant 0 : index
    %403 = vector.load %arg11[%c24_664, %c0_665] : memref<100x320xbf16, #tpu.memory_space<vmem>>, vector<4x320xbf16>
    tpu.vector_store %arg11[%c24_664, %c0_665], %402 {strides = array<i32>} : memref<100x320xbf16, #tpu.memory_space<vmem>>, vector<4x320xbf16>,
    %c0_666 = arith.constant 0 : index
    %c62_667 = arith.constant 62 : index
    %404 = vector.load %arg10[%c0_666, %c62_667] : memref<4x512xbf16, #tpu.memory_space<vmem>>, vector<4x320xbf16>
    %c28_668 = arith.constant 28 : index
    %c0_669 = arith.constant 0 : index
    %405 = vector.load %arg11[%c28_668, %c0_669] : memref<100x320xbf16, #tpu.memory_space<vmem>>, vector<4x320xbf16>
    tpu.vector_store %arg11[%c28_668, %c0_669], %404 {strides = array<i32>} : memref<100x320xbf16, #tpu.memory_space<vmem>>, vector<4x320xbf16>,
    %c0_670 = arith.constant 0 : index
    %c63_671 = arith.constant 63 : index
    %406 = vector.load %arg10[%c0_670, %c63_671] : memref<4x512xbf16, #tpu.memory_space<vmem>>, vector<4x320xbf16>
    %c32_672 = arith.constant 32 : index
    %c0_673 = arith.constant 0 : index
    %407 = vector.load %arg11[%c32_672, %c0_673] : memref<100x320xbf16, #tpu.memory_space<vmem>>, vector<4x320xbf16>
    tpu.vector_store %arg11[%c32_672, %c0_673], %406 {strides = array<i32>} : memref<100x320xbf16, #tpu.memory_space<vmem>>, vector<4x320xbf16>,
    %c0_674 = arith.constant 0 : index
    %c0_675 = arith.constant 0 : index
    %408 = vector.load %arg6[%c0_674, %c0_675] : memref<8x36xbf16, #tpu.memory_space<vmem>>, vector<8x36xbf16>
    %c0_676 = arith.constant 0 : index
    %c0_677 = arith.constant 0 : index
    %409 = vector.load %arg11[%c0_676, %c0_677] : memref<100x320xbf16, #tpu.memory_space<vmem>>, vector<36x320xbf16>
    %cst_678 = arith.constant dense<0.000000e+00> : vector<8x320xf32>
    %410 = tpu.matmul %408, %409, %cst_678 {dimension_numbers = #tpu.dot_dimension_numbers<[1], [0], [0], [1], [0, 0, 1, 1], [], []>} : vector<8x36xbf16>, vector<36x320xbf16>, vector<8x320xf32> -> vector<8x320xf32>
    %c0_679 = arith.constant 0 : index
    %c0_680 = arith.constant 0 : index
    %411 = vector.load %arg7[%c0_679, %c0_680] : memref<8x1xf32, #tpu.memory_space<vmem>>, vector<8x1xf32>
    %412 = vector.broadcast %411 : vector<8x1xf32> to vector<8x320xf32>
    %413 = arith.addf %410, %412 : vector<8x320xf32>
    %cst_681 = arith.constant 0.000000e+00 : f32
    %414 = vector.broadcast %cst_681 : f32 to vector<8x320xf32>
    %415 = arith.maximumf %413, %414 : vector<8x320xf32>
    %c0_682 = arith.constant 0 : index
    %c0_683 = arith.constant 0 : index
    %c0_684 = arith.constant 0 : index
    %416 = vector.load %arg9[%c0_682, %c0_683, %c0_684] : memref<1x8x320xf32, #tpu.memory_space<vmem>>, vector<1x8x320xf32>
    %417 = vector.shape_cast %416 : vector<1x8x320xf32> to vector<8x320xf32>
    %418 = vector.shape_cast %415 : vector<8x320xf32> to vector<1x8x320xf32>
    tpu.vector_store %arg9[%c0_682, %c0_683, %c0_684], %418 {strides = array<i32>} : memref<1x8x320xf32, #tpu.memory_space<vmem>>, vector<1x8x320xf32>,
    return
  }
  func.func @transform_0(%arg0: i32) -> (i32, i32, i32) {
    %c0_i32 = arith.constant 0 : i32
    %c0_i32_0 = arith.constant 0 : i32
    %c0_i32_1 = arith.constant 0 : i32
    return %arg0, %c0_i32, %c0_i32_0 : i32, i32, i32
  }
  func.func @transform_1(%arg0: i32) -> (i32, i32, i32) {
    %c0_i32 = arith.constant 0 : i32
    %c0_i32_0 = arith.constant 0 : i32
    %c0_i32_1 = arith.constant 0 : i32
    %c0_i32_2 = arith.constant 0 : i32
    return %c0_i32, %c0_i32_0, %c0_i32_1 : i32, i32, i32
  }
  func.func @transform_2(%arg0: i32) -> (i32, i32, i32) {
    %c0_i32 = arith.constant 0 : i32
    %c0_i32_0 = arith.constant 0 : i32
    %c0_i32_1 = arith.constant 0 : i32
    %c0_i32_2 = arith.constant 0 : i32
    return %c0_i32, %c0_i32_0, %c0_i32_1 : i32, i32, i32
  }
  func.func @transform_3(%arg0: i32) -> (i32, i32, i32) {
    %c0_i32 = arith.constant 0 : i32
    %c0_i32_0 = arith.constant 0 : i32
    %c0_i32_1 = arith.constant 0 : i32
    %c0_i32_2 = arith.constant 0 : i32
    return %c0_i32, %c0_i32_0, %c0_i32_1 : i32, i32, i32
  }
  func.func @transform_4(%arg0: i32) -> (i32, i32, i32) {
    %c0_i32 = arith.constant 0 : i32
    %c0_i32_0 = arith.constant 0 : i32
    %c0_i32_1 = arith.constant 0 : i32
    %c0_i32_2 = arith.constant 0 : i32
    return %c0_i32, %c0_i32_0, %c0_i32_1 : i32, i32, i32
  }
  func.func @transform_5(%arg0: i32) -> (i32, i32) {
    %c0_i32 = arith.constant 0 : i32
    %c0_i32_0 = arith.constant 0 : i32
    %c0_i32_1 = arith.constant 0 : i32
    return %c0_i32, %c0_i32_0 : i32, i32
  }
  func.func @transform_6(%arg0: i32) -> (i32, i32) {
    %c0_i32 = arith.constant 0 : i32
    %c0_i32_0 = arith.constant 0 : i32
    %c0_i32_1 = arith.constant 0 : i32
    return %c0_i32, %c0_i32_0 : i32, i32
  }
  func.func @transform_7(%arg0: i32) -> (i32, i32) {
    %c0_i32 = arith.constant 0 : i32
    %c0_i32_0 = arith.constant 0 : i32
    %c0_i32_1 = arith.constant 0 : i32
    return %c0_i32, %c0_i32_0 : i32, i32
  }
  func.func @transform_8(%arg0: i32) -> (i32, i32, i32) {
    %c0_i32 = arith.constant 0 : i32
    %c0_i32_0 = arith.constant 0 : i32
    %c0_i32_1 = arith.constant 0 : i32
    return %arg0, %c0_i32, %c0_i32_0 : i32, i32, i32
  }
}

</mosaic_0001>

<bundles_post_ra>
// kernel: tile.11
= control target key start
LH: loop header
LB: loop body
LE: loop exit
PB: predicated region body
PF: predicated region fallthrough
CT: control target
= control target key end

     0   :  { %2 = vsyncpa [#allocation1], 0  ;;  %s42_s6 = smov [#allocation0]   ;;  %s59_s0 = inlined_call_operand.hbm [shape: f32[2], index: 0, kind: input, shape index: {}]   ;;  %s60_s1 = inlined_call_operand.vmem [shape: f32[4,1,1,2], index: 1, kind: output, shape index: {}]  }
   0x1   :  { %s9_s7 = sshll.u32 %s42_s6, 4  ;;  %s10_s7 = int_to_ptr.vmem [resolvable:$true] %s9_s7 }
   0x2   :  { %s28_s8 = scalar_lea.vmem %s10_s7, 16  ;;  %s32_s9 = scalar_lea.vmem %s10_s7, 32 }
   0x3   :  { %p29_p0 = scmp.ne.s32.totalorder %s10_s7, %s28_s8  ;;  %p33_p1 = scmp.lt.s32.totalorder %s10_s7, %s10_s7 }
   0x4   :  { %p34_p2 = scmp.lt.s32.totalorder %s32_s9, %s28_s8 }
   0x6   :  { %p35_p3 = por %p34_p2, %p33_p1 }
   0x8   :  { %p36_p4 = pnand %p35_p3, %p29_p0 }
   0xa   :  { %39 = shalt.err (!%p36_p4)
}
   0xb   :  { %12 = dma.hbm_to_vmem [thread:$0]  %s59_s0, 16, %s10_s7, [#allocation1]  }
   0xc   :  { %40 = dma.done.wait [#allocation1], 16  }
   0xd   :  { %41 = vsyncadd [#allocation1], 4294967280  ;;  %v16_v0 = vld [vmem:[#allocation0] ss:$0 sm:$0xff] }
   0xe   :  { %17 = vst [vmem:[%s60_s1] sm:$0xf] %v16_v0 }
   0xf   :  { %18 = vsyncpa [#allocation1], 1 }

// kernel: tile.0
= control target key start
LH: loop header
LB: loop body
LE: loop exit
PB: predicated region body
PF: predicated region fallthrough
CT: control target
= control target key end

     0   :  { %vm8_vm0 = vcmask 7168   ;;  %s38_s0 = inlined_call_operand.vmem [shape: f32[4,1,1,2], index: 0, kind: input, shape index: {}]   ;;  %s39_s1 = inlined_call_operand.vmem [shape: f32[8,1], index: 1, kind: output, shape index: {}]  }
   0x1   :  { %v5_v0 = vld [vmem:[%s38_s0] sm:$0xf]  ;;  %s18_s0 = smov 127  }
   0x2   :  { %6 = vst [vmem:[#allocation0] sm:$0xf] %v5_v0 }
   0x9   :  { %v10_v1 = vld [vmem:[#allocation0] sm:$0xf]  }
   0xa   :  { %v7_v2 = vld [vmem:[#allocation0] sm:$0xf]   ;;  %11 = vrot.lane.b32.xlu0 %v10_v1, %s18_s0 }
   0xb   :  { %9 = vst.msk [vmem:[%s39_s1] ss:$2 sm:$0xf] %vm8_vm0, %v7_v2  }
  0x7c   :  { %v12_v3 = vpop.permute.xlu0 %11  }
  0x7d   :  { %16 = vst.msk [vmem:[%s39_s1 + $0x1] ss:$2 sm:$0xf] %vm8_vm0, %v12_v3  }

// kernel: tile.16
= control target key start
LH: loop header
LB: loop body
LE: loop exit
PB: predicated region body
PF: predicated region fallthrough
CT: control target
= control target key end

     0   :  { %s28_s0 = inlined_call_operand.vmem [shape: f32[20], index: 0, kind: input, shape index: {}]   ;;  %s29_s1 = inlined_call_operand.vmem [shape: f32[16,20], index: 1, kind: output, shape index: {}]  }
   0x1   :  { %v4_v0 = vld [vmem:[%s28_s0] ss:$0 sm:$0xff] }
   0x2   :  { %5 = vst [vmem:[%s29_s1] sm:$0xff] %v4_v0  ;;  %8 = vst [vmem:[%s29_s1 + $0x8] sm:$0xff] %v4_v0 }

// kernel: tile.17
= control target key start
LH: loop header
LB: loop body
LE: loop exit
PB: predicated region body
PF: predicated region fallthrough
CT: control target
= control target key end

     0   :  { %vm9_vm0 = vcmask 64512   ;;  %vm22_vm1 = vcmask 130048   ;;  %s174_s14 = smov 120   ;;  %s175_s15 = smov 100   ;;  %vm3_vm2 = vcmask 162816   ;;  %vm13_vm3 = vcmask 97280   ;;  %s262_s0 = inlined_call_operand.vmem [shape: f32[16,20], index: 0, kind: input, shape index: {}]   ;;  %s263_s1 = inlined_call_operand.vmem [shape: f32[1,320], index: 1, kind: output, shape index: {}]  }
   0x1   :  { %v140_v0 = vld [vmem:[%s262_s0 + $0x6] sm:$0x1]   ;;  %v144_v3 = vld [vmem:[%s262_s0 + $0x5] sm:$0x1]   ;;  %v142_v4 = vld [vmem:[%s262_s0 + $0xc] sm:$0x1]  }
   0x2   :  { %v141_v1 = vld [vmem:[%s262_s0 + $0x6] sm:$0x1]   ;;  %34 = vrot.lane.b32.xlu1 %v144_v3, %s175_s15  ;;  %v143_v5 = vld [vmem:[%s262_s0 + $0xc] sm:$0x1]   ;;  %v145_v7 = vld [vmem:[%s262_s0 + $0xb] sm:$0x1]  }
   0x3   :  { %v10_v2 = vsel %vm9_vm0, %v141_v1, %v140_v0  ;;  %v23_v6 = vsel %vm22_vm1, %v143_v5, %v142_v4  ;;  %s176_s20 = smov 112   ;;  %s177_s21 = smov 92   ;;  %v146_v8 = vld [vmem:[%s262_s0 + $0x4] sm:$0x1]   ;;  %v147_v9 = vld [vmem:[%s262_s0 + $0xa] sm:$0x1]  }
   0x4   :  { %11 = vrot.lane.b32.xlu0 %v10_v2, %s174_s14  ;;  %v2_v10 = vld [vmem:[%s262_s0] sm:$0x1]   ;;  %s178_s28 = smov 80   ;;  %s179_s29 = smov 72   ;;  %v148_v11 = vld [vmem:[%s262_s0 + $0x3] sm:$0x1]  }
   0x5   :  { %4 = vst.msk [vmem:[#allocation0] sm:$0x1] %vm3_vm2, %v2_v10   ;;  %v149_v12 = vld [vmem:[%s262_s0 + $0x9] sm:$0x1]   ;;  %s180_s5 = smov 60   ;;  %s181_s6 = smov 52  }
   0x6   :  { %40 = vrot.lane.b32.xlu1 %v145_v7, %s177_s21  ;;  %v150_v13 = vld [vmem:[%s262_s0 + $0xf] sm:$0x1]   ;;  %v151_v14 = vld [vmem:[%s262_s0 + $0x2] sm:$0x1]   ;;  %s182_s11 = smov 44   ;;  %s183_s12 = smov 40  }
   0x7   :  { %v152_v15 = vld [vmem:[%s262_s0 + $0x8] sm:$0x1]   ;;  %v153_v16 = vld [vmem:[%s262_s0 + $0xe] sm:$0x1]   ;;  %s184_s17 = smov 32   ;;  %s185_s18 = smov 24  }
   0x8   :  { %24 = vrot.lane.b32.xlu0 %v23_v6, %s176_s20  ;;  %v154_v17 = vld [vmem:[%s262_s0 + $0x1] sm:$0x1]   ;;  %v155_v18 = vld [vmem:[%s262_s0 + $0x7] sm:$0x1]   ;;  %s186_s23 = smov 20   ;;  %s187_s24 = smov 12  }
   0x9   :  { %v156_v19 = vld [vmem:[%s262_s0 + $0xd] sm:$0x1]   ;;  %s188_s0 = smov 4   ;;  %vm16_vm4 = vcmask 1048512   ;;  %vm36_vm5 = vcmask 982816   ;;  %vm26_vm6 = vcmask 31744  }
   0xa   :  { %53 = vrot.lane.b32.xlu1 %v147_v9, %s179_s29  ;;  %vm29_vm7 = vcmask 1048448   ;;  %vm42_vm8 = vcmask 917216   ;;  %vm49_vm9 = vcmask 818816   ;;  %vm55_vm10 = vcmask 753216  }
   0xb   :  { %vm62_vm11 = vcmask 654816   ;;  %vm68_vm12 = vcmask 589216   ;;  %vm75_vm13 = vcmask 523616   ;;  %vm82_vm14 = vcmask 490816  }
   0xc   :  { %47 = vrot.lane.b32.xlu0 %v146_v8, %s178_s28  ;;  %vm88_vm15 = vcmask 425216   ;;  %vm95_vm0 = vcmask 359616   ;;  %vm102_vm1 = vcmask 326816   ;;  %vm108_vm2 = vcmask 261216  }
   0xe   :  { %66 = vrot.lane.b32.xlu1 %v149_v12, %s181_s6 }
  0x10   :  { %60 = vrot.lane.b32.xlu0 %v148_v11, %s180_s5 }
  0x12   :  { %80 = vrot.lane.b32.xlu1 %v151_v14, %s183_s12 }
  0x14   :  { %73 = vrot.lane.b32.xlu0 %v150_v13, %s182_s11 }
  0x16   :  { %93 = vrot.lane.b32.xlu1 %v153_v16, %s185_s18 }
  0x18   :  { %86 = vrot.lane.b32.xlu0 %v152_v15, %s184_s17 }
  0x1a   :  { %106 = vrot.lane.b32.xlu1 %v155_v18, %s187_s24 }
  0x1c   :  { %100 = vrot.lane.b32.xlu0 %v154_v17, %s186_s23 }
  0x20   :  { %113 = vrot.lane.b32.xlu0 %v156_v19, %s188_s0 }
  0x74   :  { %v35_v21 = vpop.permute.xlu1 %34  }
  0x76   :  { %v12_v20 = vpop.permute.xlu0 %11  }
  0x77   :  { %15 = vst.msk [vmem:[#allocation0 + $0x8] sm:$0x1] %vm13_vm3, %v12_v20   ;;  %vm115_vm3 = vcmask 195616  }
  0x78   :  { %17 = vst.msk [vmem:[#allocation0] sm:$0x1] %vm16_vm4, %v12_v20   ;;  %v41_v23 = vpop.permute.xlu1 %40  }
  0x79   :  { %37 = vst.msk [vmem:[#allocation0] sm:$0x1] %vm36_vm5, %v35_v21  }
  0x7a   :  { %v25_v22 = vpop.permute.xlu0 %24  }
  0x7b   :  { %28 = vst.msk [vmem:[#allocation0 + $0x10] sm:$0x1] %vm26_vm6, %v25_v22  }
  0x7c   :  { %31 = vst.msk [vmem:[#allocation0 + $0x8] sm:$0x1] %vm29_vm7, %v25_v22   ;;  %v54_v25 = vpop.permute.xlu1 %53  }
  0x7d   :  { %44 = vst.msk [vmem:[#allocation0 + $0x8] sm:$0x1] %vm42_vm8, %v41_v23  }
  0x7e   :  { %v48_v24 = vpop.permute.xlu0 %47   ;;  %57 = vst.msk [vmem:[#allocation0 + $0x8] sm:$0x1] %vm55_vm10, %v54_v25  }
  0x7f   :  { %50 = vst.msk [vmem:[#allocation0] sm:$0x1] %vm49_vm9, %v48_v24  }
  0x80   :  { %v67_v27 = vpop.permute.xlu1 %66  }
  0x81   :  { %70 = vst.msk [vmem:[#allocation0 + $0x8] sm:$0x1] %vm68_vm12, %v67_v27  }
  0x82   :  { %v61_v26 = vpop.permute.xlu0 %60  }
  0x83   :  { %63 = vst.msk [vmem:[#allocation0] sm:$0x1] %vm62_vm11, %v61_v26  }
  0x84   :  { %v81_v29 = vpop.permute.xlu1 %80  }
  0x85   :  { %83 = vst.msk [vmem:[#allocation0] sm:$0x1] %vm82_vm14, %v81_v29  }
  0x86   :  { %v74_v28 = vpop.permute.xlu0 %73  }
  0x87   :  { %77 = vst.msk [vmem:[#allocation0 + $0x10] sm:$0x1] %vm75_vm13, %v74_v28  }
  0x88   :  { %v94_v31 = vpop.permute.xlu1 %93  }
  0x89   :  { %97 = vst.msk [vmem:[#allocation0 + $0x10] sm:$0x1] %vm95_vm0, %v94_v31  }
  0x8a   :  { %v87_v30 = vpop.permute.xlu0 %86  }
  0x8b   :  { %90 = vst.msk [vmem:[#allocation0 + $0x8] sm:$0x1] %vm88_vm15, %v87_v30  }
  0x8c   :  { %v107_v33 = vpop.permute.xlu1 %106  }
  0x8d   :  { %110 = vst.msk [vmem:[#allocation0 + $0x8] sm:$0x1] %vm108_vm2, %v107_v33  }
  0x8e   :  { %v101_v32 = vpop.permute.xlu0 %100  }
  0x8f   :  { %103 = vst.msk [vmem:[#allocation0] sm:$0x1] %vm102_vm1, %v101_v32  }
  0x92   :  { %v114_v34 = vpop.permute.xlu0 %113  }
  0x93   :  { %117 = vst.msk [vmem:[#allocation0 + $0x10] sm:$0x1] %vm115_vm3, %v114_v34  }
  0x94   :  { %v127_v36 = vld [vmem:[#allocation0 + $0x8] sm:$0x1] }
  0x95   :  { %157 = vst [vmem:[%s263_s1 + $0x1] sm:$0x1] %v127_v36 }
  0x96   :  { %v122_v35 = vld [vmem:[#allocation0] sm:$0x1] }
  0x97   :  { %125 = vst [vmem:[%s263_s1] sm:$0x1] %v122_v35 }
  0x9a   :  { %v133_v37 = vld [vmem:[#allocation0 + $0x10] sm:$0x1] }
  0x9b   :  { %158 = vst [vmem:[%s263_s1 + $0x2] sm:$0x1] %v133_v37 }

// kernel: dblock_forward.1
= control target key start
LH: loop header
LB: loop body
LE: loop exit
PB: predicated region body
PF: predicated region fallthrough
CT: control target
= control target key end

     0   :  { %s7576_s27 = smov 0   ;;  %s9947_s0 = inlined_call_operand.vmem [shape: f32[2,4,320], index: 0, kind: input, shape index: {}]   ;;  %s9948_s1 = inlined_call_operand.vmem [shape: bf16[3,4,100], index: 1, kind: input, shape index: {}]   ;;  %s9949_s2 = inlined_call_operand.vmem [shape: f32[3,4,1], index: 2, kind: input, shape index: {}]   ;;  %s9950_s3 = inlined_call_operand.vmem [shape: bf16[3,4,100], index: 3, kind: input, shape index: {}]   ;;  %s9951_s4 = inlined_call_operand.vmem [shape: f32[3,4,1], index: 4, kind: input, shape index: {}]   ;;  %s9952_s5 = inlined_call_operand.vmem [shape: bf16[8,36], index: 5, kind: input, shape index: {}]   ;;  %s9953_s6 = inlined_call_operand.vmem [shape: f32[8,1], index: 6, kind: input, shape index: {}]   ;;  %s9954_s7 = inlined_call_operand.vmem [shape: f32[1,320], index: 7, kind: input, shape index: {}]   ;;  %s9955_s8 = inlined_call_operand.vmem [shape: f32[2,8,320], index: 8, kind: output, shape index: {}]  }
   0x1   :  { %10028 = sst [smem:[#allocation6_spill]] %s9947_s0 }
   0x2   :  { %10029 = sst [smem:[#allocation7_spill]] %s9952_s5 }
   0x3   :  { %10030 = sst [smem:[#allocation8_spill]] %s9953_s6 }
   0x4   :  { %10031 = sst [smem:[#allocation9_spill]] %s9954_s7 }
   0x5   :  { %10032 = sst [smem:[#allocation10_spill]] %s9955_s8 }
   0x6 LB: > { %10033 = sst [smem:[#allocation4_spill]] %s7500_s27  ;;  %s6798_s28 = sadd.s32 4294967295, %s7500_s27   ;;  %s7500_s27 = sphi %s7576_s27, %s18_s27  }
   0x7   : > { %p6802_p0 = scmp.ge.s32.totalorder %s7500_s27, 1  ;;  %p262_p1 = scmp.lt.s32.totalorder %s7500_s27, 3 }
   0x9   : > { %p263_p2 = pnand %p6802_p0, %p262_p1 }
   0xb   : > { %266 = sbr.rel (%p263_p2) target bundleno = 3888 (0xf30), region = 52 }
  0x10   : > { %p296_p3 = scmp.lt.s32.totalorder %s6798_s28, 1  ;;  %v312_v0 = vlaneseq  ;;  %v7502_v2 = vmov 1983009808   ;;  %v7503_v4 = vmov 0   ;;  %s10035_s7 = sld [smem:[#allocation9_spill]]  ;;  %vm362_vm0 = vcmask 1041744  }
  0x11   : > { %v342_v3 = vunpack.c.l.s4 %v7502_v2  ;;  %307 = vst [vmem:[#allocation2] sm:$0xff] %v7503_v4  ;;  %1300 = vmatprep.mubr.bf16.mxu0 %v7503_v4  ;;  %7193 = vset.pattern.permute.xlu1 %v7503_v4  ;;  %s10036_s0 = sld [smem:[#allocation6_spill]]  ;;  %s9956_s13 = smov 42   ;;  %vm363_vm1 = vcmask 1043458   ;;  %vm365_vm3 = vcmask 865284   ;;  %vm10027_vm4 = vcmask 343040  }
  0x12   : > { %s10184_s28 = smov (!%p296_p3, %s6798_s28), 1  ;;  %v313_v1 = vshrl.u32 %v312_v0, 7  ;;  %7194 = vset.pattern.permute.xlu0 %v7503_v4  ;;  %vm364_vm2 = vmor %vm363_vm1, %vm362_vm0  ;;  %vm390_vm6 = vcmask 517120   ;;  %s10016_s14 = smov 44   ;;  %vm7529_vm7 = vmmov 0   ;;  %vm1019_vm8 = vcmask 384000  }
  0x13   : > { %10034 = sst [smem:[#allocation5_spill]] %s10184_s28  ;;  %s7154_s9 = smul.u32 12, %s10184_s28  ;;  %v343_v12 = vunpack.c.0.s8 %v342_v3  ;;  %vm7615_vm5 = vmor %vm365_vm3, %vm364_vm2  ;;  %vm422_vm9 = vcmask 519170   ;;  %vm1081_vm10 = vcmask 367616   ;;  %vm415_vm11 = vcmask 1043456  }
  0x14   : > { %v314_v6 = vsub.s32 0, %v313_v1  ;;  %v318_v7 = vsub.s32 1, %v313_v1  ;;  %v322_v8 = vsub.s32 2, %v313_v1  ;;  %s10008_s15 = smov 48   ;;  %s10010_s16 = smov 47   ;;  %vm10026_vm12 = vcmask 359424  }
  0x15   : > { %v7610_v19 = vsub.s32 %v343_v12, %v313_v1  ;;  %s10012_s17 = smov 46   ;;  %s10014_s18 = smov 45   ;;  %vm10020_vm13 = vcmask 392192   ;;  %vm10019_vm14 = vcmask 375808   ;;  %vm9981_vm15 = vcmask 539648  }
  0x16   : > { %v308_v5 = vld [vmem:[%s10035_s7] sm:$0x7]  ;;  %s10004_s19 = smov 67   ;;  %s10006_s20 = smov 66   ;;  %vm1258_vm0 = vcmask 1041408   ;;  %vm9980_vm1 = vcmask 547840  }
  0x17   : > { %s7597_s12 = scalar_lea.vmem %s10036_s0, %s7154_s9  ;;  %v7599_v9 = vrot.slane %v308_v5, %v314_v6  ;;  %v7601_v10 = vrot.slane %v308_v5, %v318_v7  ;;  %v7603_v11 = vrot.slane %v308_v5, %v322_v8  ;;  %s10000_s21 = smov 65   ;;  %vm9983_vm2 = vcmask 523264  }
  0x18   : > { %v309_v13 = vld [vmem:[%s7597_s12] sm:$0xff]  ;;  %v310_v14 = vld [vmem:[%s7597_s12 + $0x8] sm:$0xf]  ;;  %s10002_s22 = smov 64   ;;  %s9968_s23 = smov 86   ;;  %vm9982_vm3 = vcmask 531456  }
  0x19   : > { %v327_v15 = vcombine.low %v7599_v9, %v7601_v10  ;;  %v330_v16 = vmul.f32 %v7603_v11, %v310_v14  ;;  %s9998_s24 = smov 85   ;;  %s9966_s25 = smov 84   ;;  %v7528_v14 = vmov 0.0  }
  0x1a   : > { %s9978_s26 = smov 68   ;;  %s9970_s29 = smov 105   ;;  %7036 = vmatprep.subr.bf16.mxu1 %v7528_v14  ;;  %7050 = vmatprep.mubr.msk.bf16.mxu1 %vm7529_vm7, %v7528_v14 }
  0x1b   : > { %v329_v17 = vmul.f32 %v327_v15, %v309_v13  ;;  %v336_v18 = vpack.c.bf16 %v330_v16, %v330_v16  ;;  %s9972_s30 = smov 104   ;;  %s9958_s9 = smov 88  }
  0x1c   : > { %s9962_s10 = smov 87   ;;  %s9960_s11 = smov 124  }
  0x1d   : > { %v332_v20 = vcombine.high %v329_v17, %v329_v17  ;;  %v354_v22 = vrot.slane %v336_v18, %v7610_v19  ;;  %s10056_s0 = smov 125   ;;  %s10074_s7 = smov 47  }
  0x1e   : > { %s10075_s27 = smov 45   ;;  %s10078_s8 = smov 127  }
  0x1f   : > { %v6805_v21 = vpack.c.bf16 %v332_v20, %v329_v17  ;;  %s10079_s5 = smov 126  }
  0x21   : > { %v347_v23 = vrot.slane %v6805_v21, %v7610_v19 }
  0x23   : > { %v355_v24 = vcombine.low %v347_v23, %v354_v22 }
  0x25   : > { %356 = vrot.lane.b32.xlu0 %v355_v24, %s9956_s13  ;;  %s9976_s13 = smov 108  }
  0x97   : > { %v357_v25 = vpop.permute.xlu0 %356 }
  0x98   : > { %v358_v27 = vrot.slane %v357_v25, 6 }
  0x9a   : > { %v360_v28 = vsel %vm10027_vm4, %v358_v27, %v357_v25 }
  0x9b   : > { %367 = vst.msk [vmem:[#allocation2] sm:$0x3f] %vm7615_vm5, %v360_v28 }
  0xa2   : > { %v370_v29 = vld [vmem:[#allocation2] sm:$0x3f] }
  0xa3   : > { %v7622_v30 = vld [vmem:[#allocation2] sm:$0xff]  ;;  %v372_v31 = vcombine.high %v370_v29, %v370_v29  ;;  %6806 = vst.sshfl [vmem:[#allocation3] sm:$0xf pattern:$0x76325410] %v370_v29 }
  0xa4   : > { %v1097_v32 = vrot.slane %v7622_v30, %v7610_v19  ;;  %v7630_v34 = vld [vmem:[#allocation2] sm:$0x3f]  ;;  %v1090_v5 = vcombine.high %v7622_v30, %v7622_v30  ;;  %v997_v12 = vcombine.low %v7622_v30, %v7622_v30 }
  0xa5   : > { %v386_v33 = vrot.slane %v372_v31, %v7610_v19  ;;  %v853_v35 = vrot.slane %v7630_v34, %v7610_v19  ;;  %v7636_v36 = vld [vmem:[#allocation2] sm:$0x3f]  ;;  %v846_v16 = vcombine.high %v7630_v34, %v7630_v34 }
  0xa6   : > { %1105 = vrot.lane.b32.xlu0 %v1097_v32, %s10016_s14  ;;  %981 = vrot.lane.b32.xlu1 %v1097_v32, %s10008_s15  ;;  %v7638_v37 = vld [vmem:[#allocation2] sm:$0x3f]  ;;  %v890_v38 = vrot.slane %v7636_v36, %v7610_v19  ;;  %v1104_v7 = vrot.slane %v1090_v5, %v7610_v19  ;;  %v1004_v13 = vrot.slane %v997_v12, %v7610_v19 }
  0xa7   : > { %391 = vst.msk [vmem:[#allocation3 + $0x8] sm:$0x3] %vm390_vm6, %v386_v33  ;;  %v913_v39 = vrot.slane %v7638_v37, %v7610_v19  ;;  %v7646_v40 = vld [vmem:[#allocation2] sm:$0x3f]  ;;  %v876_v15 = vcombine.low %v7636_v36, %v7636_v36  ;;  %v860_v18 = vrot.slane %v846_v16, %v7610_v19  ;;  %v906_v21 = vcombine.high %v7638_v37, %v7638_v37 }
  0xa8   : > { %v7648_v41 = vld [vmem:[#allocation2] sm:$0x3f]  ;;  %v950_v42 = vrot.slane %v7646_v40, %v7610_v19  ;;  %v936_v20 = vcombine.low %v7646_v40, %v7646_v40 }
  0xa9   : > { %v733_v43 = vrot.slane %v7648_v41, %v7610_v19  ;;  %v7656_v44 = vld [vmem:[#allocation2] sm:$0x3f]  ;;  %v883_v17 = vrot.slane %v876_v15, %v7610_v19  ;;  %v920_v23 = vrot.slane %v906_v21, %v7610_v19  ;;  %v726_v25 = vcombine.high %v7648_v41, %v7648_v41 }
  0xaa   : > { %1014 = vrot.lane.b32.xlu0 %v1097_v32, %s10010_s16  ;;  %1043 = vrot.lane.b32.xlu1 %v1097_v32, %s10012_s17  ;;  %v7658_v45 = vld [vmem:[#allocation2] sm:$0x3f]  ;;  %v770_v46 = vrot.slane %v7656_v44, %v7610_v19  ;;  %v943_v22 = vrot.slane %v936_v20, %v7610_v19  ;;  %v756_v24 = vcombine.low %v7656_v44, %v7656_v44 }
  0xab   : > { %v793_v47 = vrot.slane %v7658_v45, %v7610_v19  ;;  %v7666_v48 = vld [vmem:[#allocation2] sm:$0x3f]  ;;  %v740_v28 = vrot.slane %v726_v25, %v7610_v19  ;;  %v786_v30 = vcombine.high %v7658_v45, %v7658_v45 }
  0xac   : > { %v7668_v49 = vld [vmem:[#allocation2] sm:$0x3f]  ;;  %v830_v50 = vrot.slane %v7666_v48, %v7610_v19  ;;  %v763_v27 = vrot.slane %v756_v24, %v7610_v19  ;;  %v816_v29 = vcombine.low %v7666_v48, %v7666_v48 }
  0xad   : > { %v613_v51 = vrot.slane %v7668_v49, %v7610_v19  ;;  %v7676_v52 = vld [vmem:[#allocation2] sm:$0x3f]  ;;  %v606_v34 = vcombine.high %v7668_v49, %v7668_v49 }
  0xae   : > { %1076 = vrot.lane.b32.xlu0 %v1097_v32, %s10014_s18  ;;  %861 = vrot.lane.b32.xlu1 %v853_v35, %s10004_s19  ;;  %v7678_v53 = vld [vmem:[#allocation2] sm:$0x3f]  ;;  %v650_v54 = vrot.slane %v7676_v52, %v7610_v19  ;;  %v823_v31 = vrot.slane %v816_v29, %v7610_v19  ;;  %v800_v32 = vrot.slane %v786_v30, %v7610_v19 }
  0xaf   : > { %v673_v55 = vrot.slane %v7678_v53, %v7610_v19  ;;  %v7686_v56 = vld [vmem:[#allocation2] sm:$0x3f]  ;;  %v636_v33 = vcombine.low %v7676_v52, %v7676_v52  ;;  %v620_v36 = vrot.slane %v606_v34, %v7610_v19 }
  0xb0   : > { %v7688_v57 = vld [vmem:[#allocation2] sm:$0x3f]  ;;  %v710_v58 = vrot.slane %v7686_v56, %v7610_v19  ;;  %v696_v37 = vcombine.low %v7686_v56, %v7686_v56 }
  0xb1   : > { %v493_v59 = vrot.slane %v7688_v57, %v7610_v19  ;;  %v7696_v60 = vld [vmem:[#allocation2] sm:$0x3f]  ;;  %v643_v35 = vrot.slane %v636_v33, %v7610_v19 }
  0xb2   : > { %893 = vrot.lane.b32.xlu0 %v890_v38, %s10006_s20  ;;  %921 = vrot.lane.b32.xlu1 %v913_v39, %s10000_s21  ;;  %v7698_v61 = vld [vmem:[#allocation2] sm:$0x3f]  ;;  %v530_v62 = vrot.slane %v7696_v60, %v7610_v19  ;;  %v666_v38 = vcombine.high %v7678_v53, %v7678_v53  ;;  %v703_v39 = vrot.slane %v696_v37, %v7610_v19 }
  0xb3   : > { %v553_v63 = vrot.slane %v7698_v61, %v7610_v19  ;;  %v7706_v0 = vld [vmem:[#allocation2] sm:$0x3f]  ;;  %v516_v41 = vcombine.low %v7696_v60, %v7696_v60 }
  0xb4   : > { %v7708_v1 = vld [vmem:[#allocation2] sm:$0x3f]  ;;  %v590_v2 = vrot.slane %v7706_v0, %v7610_v19  ;;  %v680_v40 = vrot.slane %v666_v38, %v7610_v19  ;;  %v576_v45 = vcombine.low %v7706_v0, %v7706_v0 }
  0xb5   : > { %v433_v3 = vrot.slane %v7708_v1, %v7610_v19  ;;  %v7718_v6 = vld [vmem:[#allocation2] sm:$0x3f]  ;;  %v426_v49 = vcombine.high %v7708_v1, %v7708_v1 }
  0xb6   : > { %953 = vrot.lane.b32.xlu0 %v950_v42, %s10002_s22  ;;  %741 = vrot.lane.b32.xlu1 %v733_v43, %s9968_s23  ;;  %v408_v8 = vrot.slane %v7718_v6, %v7610_v19  ;;  %v486_v42 = vcombine.high %v7688_v57, %v7688_v57  ;;  %v523_v43 = vrot.slane %v516_v41, %v7610_v19  ;;  %v369_v57 = vld [vmem:[%s9949_s2] sm:$0xf] }
  0xb7   : > { %v440_v52 = vrot.slane %v426_v49, %v7610_v19 }
  0xb8   : > { %v500_v44 = vrot.slane %v486_v42, %v7610_v19 }
  0xba   : > { %773 = vrot.lane.b32.xlu0 %v770_v46, %s9998_s24  ;;  %801 = vrot.lane.b32.xlu1 %v793_v47, %s9966_s25  ;;  %v546_v46 = vcombine.high %v7698_v61, %v7698_v61  ;;  %v583_v47 = vrot.slane %v576_v45, %v7610_v19 }
  0xbc   : > { %v560_v48 = vrot.slane %v546_v46, %v7610_v19 }
  0xbe   : > { %833 = vrot.lane.b32.xlu0 %v830_v50, %s9978_s26  ;;  %621 = vrot.lane.b32.xlu1 %v613_v51, %s9970_s29  ;;  %v394_v50 = vcombine.low %v7718_v6, %v7718_v6  ;;  %v454_v51 = vld [vmem:[#allocation2] sm:$0x3f] }
  0xc0   : > { %v401_v53 = vrot.slane %v394_v50, %v7610_v19 }
  0xc2   : > { %653 = vrot.lane.b32.xlu0 %v650_v54, %s9972_s30  ;;  %681 = vrot.lane.b32.xlu1 %v673_v55, %s9958_s9  ;;  %s9964_s9 = smov 107   ;;  %v456_v54 = vcombine.low %v454_v51, %v454_v51  ;;  %v470_v55 = vrot.slane %v454_v51, %v7610_v19 }
  0xc4   : > { %v463_v56 = vrot.slane %v456_v54, %v7610_v19 }
  0xc6   : > { %713 = vrot.lane.b32.xlu0 %v710_v58, %s9962_s10  ;;  %501 = vrot.lane.b32.xlu1 %v493_v59, %s9960_s11  ;;  %s9974_s11 = smov 106   ;;  %s10021_s10 = smov 126  }
  0xca   : > { %533 = vrot.lane.b32.xlu0 %v530_v62, %s9976_s13  ;;  %561 = vrot.lane.b32.xlu1 %v553_v63, %s9964_s9  ;;  %s10023_s9 = smov 127  }
  0xce   : > { %593 = vrot.lane.b32.xlu0 %v590_v2, %s9974_s11  ;;  %441 = vrot.lane.b32.xlu1 %v433_v3, %s10021_s10 }
  0xd2   : > { %1107 = vrot.lane.b32.xlu1 %v1104_v7, %s10016_s14  ;;  %411 = vrot.lane.b32.xlu0 %v408_v8, %s10023_s9 }
  0xd6   : > { %1012 = vrot.lane.b32.xlu1 %v1004_v13, %s10010_s16  ;;  %983 = vrot.lane.b32.xlu0 %v1104_v7, %s10008_s15 }
  0xda   : > { %1074 = vrot.lane.b32.xlu1 %v1004_v13, %s10014_s18  ;;  %1045 = vrot.lane.b32.xlu0 %v1104_v7, %s10012_s17 }
  0xde   : > { %891 = vrot.lane.b32.xlu1 %v883_v17, %s10006_s20  ;;  %863 = vrot.lane.b32.xlu0 %v860_v18, %s10004_s19 }
  0xe2   : > { %951 = vrot.lane.b32.xlu1 %v943_v22, %s10002_s22  ;;  %923 = vrot.lane.b32.xlu0 %v920_v23, %s10000_s21 }
  0xe6   : > { %771 = vrot.lane.b32.xlu1 %v763_v27, %s9998_s24  ;;  %743 = vrot.lane.b32.xlu0 %v740_v28, %s9968_s23  ;;  %s10040_s23 = smov 88  }
  0xea   : > { %831 = vrot.lane.b32.xlu1 %v823_v31, %s9978_s26  ;;  %803 = vrot.lane.b32.xlu0 %v800_v32, %s9966_s25  ;;  %s10039_s25 = smov 87   ;;  %s10044_s26 = smov 68  }
  0xee   : > { %651 = vrot.lane.b32.xlu1 %v643_v35, %s9972_s30  ;;  %623 = vrot.lane.b32.xlu0 %v620_v36, %s9970_s29  ;;  %s10041_s29 = smov 124   ;;  %s10042_s30 = smov 107  }
  0xf2   : > { %711 = vrot.lane.b32.xlu1 %v703_v39, %s10039_s25  ;;  %683 = vrot.lane.b32.xlu0 %v680_v40, %s10040_s23 }
  0xf6   : > { %531 = vrot.lane.b32.xlu1 %v523_v43, %s9976_s13  ;;  %503 = vrot.lane.b32.xlu0 %v500_v44, %s10041_s29  ;;  %s10043_s13 = smov 42  }
  0xfa   : > { %591 = vrot.lane.b32.xlu1 %v583_v47, %s9974_s11  ;;  %563 = vrot.lane.b32.xlu0 %v560_v48, %s10042_s30  ;;  %s9996_s11 = smov 125  }
  0xfe   : > { %443 = vrot.lane.b32.xlu0 %v440_v52, %s10021_s10  ;;  %409 = vrot.lane.b32.xlu1 %v401_v53, %s10023_s9 }
 0x102   : > { %473 = vrot.lane.b32.xlu0 %v470_v55, %s9996_s11  ;;  %471 = vrot.lane.b32.xlu1 %v463_v56, %s9996_s11  ;;  %s10045_s11 = smov 86  }
 0x106   : > { %1147 = vperm.xlu1 %7193, %v369_v57  }
 0x118   : > { %v1106_v58 = vpop.permute.xlu0 %1105  ;;  %v982_v59 = vpop.permute.xlu1 %981 }
 0x119   : > { %v1109_v29 = vrot.slane %v1106_v58, 4  ;;  %v985_v36 = vrot.slane %v982_v59, 4 }
 0x11c   : > { %v1015_v60 = vpop.permute.xlu0 %1014  ;;  %v7816_v61 = vpop.permute.xlu1 %1043 }
 0x11d   : > { %v1017_v62 = vrot.slane %v1015_v60, 4  ;;  %v1047_v46 = vrot.slane %v7816_v61, 4 }
 0x11f   : > { %v1021_v63 = vsel %vm1019_vm8, %v1015_v60, %v1017_v62 }
 0x120   : > { %1025 = vst.msk [vmem:[#allocation3 + $0x80] sm:$0xc] %vm422_vm9, %v1021_v63  ;;  %v7820_v0 = vpop.permute.xlu0 %1076  ;;  %v7822_v1 = vpop.permute.xlu1 %861 }
 0x121   : > { %v1079_v2 = vrot.slane %v7820_v0, 4  ;;  %v865_v53 = vrot.slane %v7822_v1, 4 }
 0x123   : > { %v1083_v3 = vsel %vm1081_vm10, %v7820_v0, %v1079_v2 }
 0x124   : > { %1087 = vst.msk [vmem:[#allocation3 + $0x8c] sm:$0xc] %vm422_vm9, %v1083_v3  ;;  %v7828_v5 = vpop.permute.xlu0 %893  ;;  %v7830_v6 = vpop.permute.xlu1 %921 }
 0x125   : > { %903 = vst.msk [vmem:[#allocation3 + $0x68] sm:$0xc] %vm422_vm9, %v7828_v5  ;;  %v896_v54 = vrot.slane %v7828_v5, 4 }
 0x128   : > { %v7834_v7 = vpop.permute.xlu0 %953  ;;  %v7836_v8 = vpop.permute.xlu1 %741 }
 0x129   : > { %963 = vst.msk [vmem:[#allocation3 + $0x74] sm:$0xc] %vm422_vm9, %v7834_v7 }
 0x12c   : > { %v7840_v12 = vpop.permute.xlu0 %773  ;;  %v7842_v13 = vpop.permute.xlu1 %801 }
 0x12d   : > { %783 = vst.msk [vmem:[#allocation3 + $0x50] sm:$0xc] %vm422_vm9, %v7840_v12 }
 0x130   : > { %v7846_v15 = vpop.permute.xlu0 %833  ;;  %v7848_v16 = vpop.permute.xlu1 %621 }
 0x131   : > { %843 = vst.msk [vmem:[#allocation3 + $0x5c] sm:$0xc] %vm422_vm9, %v7846_v15 }
 0x134   : > { %v7852_v17 = vpop.permute.xlu0 %653  ;;  %v7854_v18 = vpop.permute.xlu1 %681 }
 0x135   : > { %663 = vst.msk [vmem:[#allocation3 + $0x38] sm:$0xc] %vm422_vm9, %v7852_v17 }
 0x138   : > { %v7858_v20 = vpop.permute.xlu0 %713  ;;  %v7860_v21 = vpop.permute.xlu1 %501 }
 0x139   : > { %723 = vst.msk [vmem:[#allocation3 + $0x44] sm:$0xc] %vm422_vm9, %v7858_v20 }
 0x13c   : > { %v7864_v22 = vpop.permute.xlu0 %533  ;;  %v7866_v23 = vpop.permute.xlu1 %561 }
 0x13d   : > { %543 = vst.msk [vmem:[#allocation3 + $0x20] sm:$0xc] %vm422_vm9, %v7864_v22 }
 0x140   : > { %v7870_v24 = vpop.permute.xlu0 %593  ;;  %v7872_v25 = vpop.permute.xlu1 %441 }
 0x141   : > { %603 = vst.msk [vmem:[#allocation3 + $0x2c] sm:$0xc] %vm422_vm9, %v7870_v24 }
 0x144   : > { %v1108_v27 = vpop.permute.xlu1 %1107  ;;  %v7876_v28 = vpop.permute.xlu0 %411 }
 0x145   : > { %v1110_v30 = vrot.slane %v1108_v27, 4  ;;  %423 = vst.msk [vmem:[#allocation3 + $0x8] sm:$0xc] %vm422_vm9, %v7876_v28 }
 0x147   : > { %v1111_v31 = vsel %vm415_vm11, %v1109_v29, %v1110_v30  ;;  %v1114_v32 = vsel %vm10026_vm12, %v1108_v27, %v1110_v30 }
 0x148   : > { %v1113_v33 = vsel %vm10026_vm12, %v1106_v58, %v1111_v31  ;;  %1118 = vst.msk [vmem:[#allocation3 + $0x98] sm:$0x3] %vm390_vm6, %v1114_v32  ;;  %v1013_v34 = vpop.permute.xlu1 %1012  ;;  %v984_v35 = vpop.permute.xlu0 %983  ;;  %v925_v32 = vrot.slane %v7830_v6, 4 }
 0x149   : > { %1117 = vst [vmem:[#allocation3 + $0x90] sm:$0x33] %v1113_v33  ;;  %v1016_v37 = vrot.slane %v1013_v34, 4  ;;  %v986_v38 = vrot.slane %v984_v35, 4  ;;  %v956_v33 = vrot.slane %v7834_v7, 4 }
 0x14b   : > { %v1018_v39 = vsel %vm415_vm11, %v1016_v37, %v1017_v62  ;;  %v987_v40 = vsel %vm415_vm11, %v985_v36, %v986_v38  ;;  %v990_v41 = vsel %vm10020_vm13, %v984_v35, %v986_v38 }
 0x14c   : > { %v1020_v42 = vsel %vm1019_vm8, %v1013_v34, %v1018_v39  ;;  %v989_v43 = vsel %vm10020_vm13, %v982_v59, %v987_v40  ;;  %994 = vst.msk [vmem:[#allocation3 + $0x80] sm:$0x3] %vm390_vm6, %v990_v41  ;;  %v1075_v44 = vpop.permute.xlu1 %1074  ;;  %v1046_v45 = vpop.permute.xlu0 %1045 }
 0x14d   : > { %1024 = vst [vmem:[#allocation3 + $0x78] sm:$0xcc] %v1020_v42  ;;  %993 = vst [vmem:[#allocation3 + $0x78] sm:$0x33] %v989_v43  ;;  %v1078_v47 = vrot.slane %v1075_v44, 4  ;;  %v1048_v48 = vrot.slane %v1046_v45, 4 }
 0x14e   : > { %v745_v43 = vrot.slane %v7836_v8, 4 }
 0x14f   : > { %v1080_v49 = vsel %vm415_vm11, %v1078_v47, %v1079_v2  ;;  %v1049_v50 = vsel %vm415_vm11, %v1047_v46, %v1048_v48  ;;  %v1052_v51 = vsel %vm10019_vm14, %v1046_v45, %v1048_v48  ;;  %v7218_v52 = vld [vmem:[#allocation3 + $0x98] ss:$0 sps:$4 sm:$0x33]  }
 0x150   : > { %v1082_v55 = vsel %vm1081_vm10, %v1075_v44, %v1080_v49  ;;  %v1051_v56 = vsel %vm10019_vm14, %v7816_v61, %v1049_v50  ;;  %1056 = vst.msk [vmem:[#allocation3 + $0x8c] sm:$0x3] %vm390_vm6, %v1052_v51  ;;  %v892_v57 = vpop.permute.xlu1 %891  ;;  %v864_v58 = vpop.permute.xlu0 %863  ;;  %v1143_v59 = vld [vmem:[#allocation3 + $0x90] sm:$0x33]  ;;  %v1266_v0 = vsel %vm1258_vm0, %v7218_v52, 0  ;;  %v776_v44 = vrot.slane %v7840_v12, 4 }
 0x151   : > { %1086 = vst [vmem:[#allocation3 + $0x84] sm:$0xcc] %v1082_v55  ;;  %1055 = vst [vmem:[#allocation3 + $0x84] sm:$0x33] %v1051_v56  ;;  %v895_v60 = vrot.slane %v892_v57, 4  ;;  %v866_v62 = vrot.slane %v864_v58, 4  ;;  %v6826_v63 = vcombine.high %v1143_v59, %v1143_v59  ;;  %7037 = vmatpush3.bf16.msra.mxu1 %v1266_v0  ;;  %v6825_v2 = vcombine.low %v1143_v59, %v1143_v59 }
 0x152   : > { %873 = vst.msk [vmem:[#allocation3 + $0x68] sm:$0x3] %vm390_vm6, %v864_v58  ;;  %7038 = vmatprep.subr.bf16.mxu1 %v7528_v14  ;;  %v805_v52 = vrot.slane %v7842_v13, 4  ;;  %v656_v0 = vrot.slane %v7852_v17, 4 }
 0x153   : > { %v897_v3 = vsel %vm415_vm11, %v895_v60, %v896_v54  ;;  %v867_v61 = vsel %vm415_vm11, %v865_v53, %v866_v62  ;;  %6828 = vmatprep.subr.msk.bf16.mxu0 %vm1258_vm0, %v6826_v63  ;;  %v1260_v29 = vsel %vm1258_vm0, %v6825_v2, 0  ;;  %v836_v53 = vrot.slane %v7846_v15, 4 }
 0x154   : > { %v899_v5 = vsel %vm9981_vm15, %v892_v57, %v897_v3  ;;  %v869_v27 = vsel %vm9980_vm1, %v7822_v1, %v867_v61  ;;  %v952_v30 = vpop.permute.xlu1 %951  ;;  %v924_v31 = vpop.permute.xlu0 %923  ;;  %1271 = vmatpush1.bf16.msra.mxu0 %v1260_v29  ;;  %vm9985_vm1 = vcmask 695296   ;;  %vm9984_vm15 = vcmask 703488  }
 0x155   : > { %902 = vst [vmem:[#allocation3 + $0x60] sm:$0xcc] %v899_v5  ;;  %872 = vst [vmem:[#allocation3 + $0x60] sm:$0x33] %v869_v27  ;;  %v955_v34 = vrot.slane %v952_v30, 4  ;;  %v926_v35 = vrot.slane %v924_v31, 4 }
 0x156   : > { %933 = vst.msk [vmem:[#allocation3 + $0x74] sm:$0x3] %vm390_vm6, %v924_v31  ;;  %v625_v63 = vrot.slane %v7848_v16, 4  ;;  %v685_v31 = vrot.slane %v7854_v18, 4 }
 0x157   : > { %v957_v36 = vsel %vm415_vm11, %v955_v34, %v956_v33  ;;  %v927_v1 = vsel %vm415_vm11, %v925_v32, %v926_v35  ;;  %v7220_v37 = vld [vmem:[#allocation3 + $0x80] ss:$12 sps:$4 sm:$0xff]   ;;  %v716_v32 = vrot.slane %v7858_v20, 4 }
 0x158   : > { %v959_v38 = vsel %vm9983_vm2, %v952_v30, %v957_v36  ;;  %v929_v39 = vsel %vm9982_vm3, %v7830_v6, %v927_v1  ;;  %v772_v40 = vpop.permute.xlu1 %771  ;;  %v744_v7 = vpop.permute.xlu0 %743  ;;  %v7221_v41 = vld [vmem:[#allocation3 + $0x7c] ss:$12 sps:$4 sm:$0xff]   ;;  %v7223_v42 = vld [vmem:[#allocation3 + $0x78] ss:$12 sps:$4 sm:$0xff]   ;;  %7039 = vmatpush3.bf16.msra.mxu1 %v7220_v37  ;;  %vm9987_vm3 = vcmask 556032   ;;  %vm9986_vm2 = vcmask 687104  }
 0x159   : > { %962 = vst [vmem:[#allocation3 + $0x6c] sm:$0xcc] %v959_v38  ;;  %932 = vst [vmem:[#allocation3 + $0x6c] sm:$0x33] %v929_v39  ;;  %v775_v45 = vrot.slane %v772_v40, 4  ;;  %v746_v46 = vrot.slane %v744_v7, 4  ;;  %1272 = vmatprep.subr.bf16.mxu0 %v7221_v41  ;;  %7040 = vmatprep.subr.bf16.mxu1 %v7528_v14 }
 0x15a   : > { %753 = vst.msk [vmem:[#allocation3 + $0x50] sm:$0x3] %vm390_vm6, %v744_v7  ;;  %1273 = vmatpush1.bf16.msra.mxu0 %v7223_v42  ;;  %v505_v39 = vrot.slane %v7860_v21, 4 }
 0x15b   : > { %v777_v6 = vsel %vm415_vm11, %v775_v45, %v776_v44  ;;  %v747_v47 = vsel %vm415_vm11, %v745_v43, %v746_v46  ;;  %v565_v44 = vrot.slane %v7866_v23, 4 }
 0x15c   : > { %v779_v48 = vsel %vm9985_vm1, %v772_v40, %v777_v6  ;;  %v749_v12 = vsel %vm9984_vm15, %v7836_v8, %v747_v47  ;;  %v832_v49 = vpop.permute.xlu1 %831  ;;  %v804_v50 = vpop.permute.xlu0 %803  ;;  %vm9989_vm15 = vcmask 850944   ;;  %vm9988_vm1 = vcmask 859136  }
 0x15d   : > { %v7224_v51 = vld [vmem:[#allocation3 + $0x68] ss:$12 sps:$4 sm:$0xff]   ;;  %782 = vst [vmem:[#allocation3 + $0x48] sm:$0xcc] %v779_v48  ;;  %752 = vst [vmem:[#allocation3 + $0x48] sm:$0x33] %v749_v12 }
 0x15e   : > { %v835_v54 = vrot.slane %v832_v49, 4  ;;  %v806_v55 = vrot.slane %v804_v50, 4  ;;  %813 = vst.msk [vmem:[#allocation3 + $0x5c] sm:$0x3] %vm390_vm6, %v804_v50  ;;  %7041 = vmatpush3.bf16.msra.mxu1 %v7224_v51  ;;  %v536_v40 = vrot.slane %v7864_v22, 4  ;;  %v596_v12 = vrot.slane %v7870_v24, 4 }
 0x15f   : > { %7042 = vmatprep.subr.bf16.mxu1 %v7528_v14 }
 0x160   : > { %v837_v56 = vsel %vm415_vm11, %v835_v54, %v836_v53  ;;  %v807_v57 = vsel %vm415_vm11, %v805_v52, %v806_v55  ;;  %v652_v15 = vpop.permute.xlu1 %651  ;;  %v624_v59 = vpop.permute.xlu0 %623  ;;  %v7225_v60 = vld [vmem:[#allocation3 + $0x64] ss:$12 sps:$4 sm:$0xff]   ;;  %v7227_v62 = vld [vmem:[#allocation3 + $0x60] ss:$12 sps:$4 sm:$0xff]   ;;  %v414_v54 = vrot.slane %v7876_v28, 4 }
 0x161   : > { %v839_v8 = vsel %vm9987_vm3, %v832_v49, %v837_v56  ;;  %v809_v58 = vsel %vm9986_vm2, %v7842_v13, %v807_v57  ;;  %v655_v2 = vrot.slane %v652_v15, 4  ;;  %v626_v3 = vrot.slane %v624_v59, 4  ;;  %633 = vst.msk [vmem:[#allocation3 + $0x38] sm:$0x3] %vm390_vm6, %v624_v59  ;;  %1274 = vmatprep.subr.bf16.mxu0 %v7225_v60 }
 0x162   : > { %842 = vst [vmem:[#allocation3 + $0x54] sm:$0xcc] %v839_v8  ;;  %812 = vst [vmem:[#allocation3 + $0x54] sm:$0x33] %v809_v58  ;;  %vm9991_vm2 = vcmask 711680   ;;  %1275 = vmatpush1.bf16.msra.mxu0 %v7227_v62  ;;  %vm9990_vm3 = vcmask 719872  }
 0x163   : > { %v657_v61 = vsel %vm415_vm11, %v655_v2, %v656_v0  ;;  %v627_v13 = vsel %vm415_vm11, %v625_v63, %v626_v3 }
 0x164   : > { %v659_v5 = vsel %vm9989_vm15, %v652_v15, %v657_v61  ;;  %v629_v27 = vsel %vm9988_vm1, %v7848_v16, %v627_v13  ;;  %v712_v29 = vpop.permute.xlu1 %711  ;;  %v684_v17 = vpop.permute.xlu0 %683  ;;  %vm9992_vm1 = vcmask 883712   ;;  %vm9993_vm15 = vcmask 1014784  }
 0x165   : > { %v7228_v30 = vld [vmem:[#allocation3 + $0x50] ss:$12 sps:$4 sm:$0xff]   ;;  %662 = vst [vmem:[#allocation3 + $0x30] sm:$0xcc] %v659_v5  ;;  %632 = vst [vmem:[#allocation3 + $0x30] sm:$0x33] %v629_v27 }
 0x166   : > { %v715_v33 = vrot.slane %v712_v29, 4  ;;  %v686_v34 = vrot.slane %v684_v17, 4  ;;  %693 = vst.msk [vmem:[#allocation3 + $0x44] sm:$0x3] %vm390_vm6, %v684_v17  ;;  %7043 = vmatpush3.bf16.msra.mxu1 %v7228_v30 }
 0x167   : > { %7044 = vmatprep.subr.bf16.mxu1 %v7528_v14 }
 0x168   : > { %v717_v35 = vsel %vm415_vm11, %v715_v33, %v716_v32  ;;  %v687_v36 = vsel %vm415_vm11, %v685_v31, %v686_v34  ;;  %v532_v20 = vpop.permute.xlu1 %531  ;;  %v504_v37 = vpop.permute.xlu0 %503  ;;  %v1128_v45 = vld [vmem:[#allocation3 + $0x38] sm:$0xf]  ;;  %v1120_v34 = vld [vmem:[#allocation3 + $0x8] sm:$0xf] }
 0x169   : > { %v719_v16 = vsel %vm9991_vm2, %v712_v29, %v717_v35  ;;  %v689_v1 = vsel %vm9990_vm3, %v7854_v18, %v687_v36  ;;  %v7229_v38 = vld [vmem:[#allocation3 + $0x4c] ss:$12 sps:$4 sm:$0xff]   ;;  %v535_v7 = vrot.slane %v532_v20, 4  ;;  %v506_v41 = vrot.slane %v504_v37, 4  ;;  %513 = vst.msk [vmem:[#allocation3 + $0x20] sm:$0x3] %vm390_vm6, %v504_v37 }
 0x16a   : > { %722 = vst [vmem:[#allocation3 + $0x3c] sm:$0xcc] %v719_v16  ;;  %692 = vst [vmem:[#allocation3 + $0x3c] sm:$0x33] %v689_v1  ;;  %v7231_v42 = vld [vmem:[#allocation3 + $0x48] ss:$12 sps:$4 sm:$0xff]   ;;  %1276 = vmatprep.subr.bf16.mxu0 %v7229_v38 }
 0x16b   : > { %v537_v43 = vsel %vm415_vm11, %v535_v7, %v536_v40  ;;  %v507_v18 = vsel %vm415_vm11, %v505_v39, %v506_v41  ;;  %vm598_vm3 = vcmask 867328   ;;  %1277 = vmatpush1.bf16.msra.mxu0 %v7231_v42  ;;  %vm9994_vm2 = vcmask 875520   ;;  %v368_v16 = vld [vmem:[%s9948_s1] sm:$0x3] }
 0x16c   : > { %v539_v46 = vsel %vm9992_vm1, %v532_v20, %v537_v43  ;;  %v509_v22 = vsel %vm9993_vm15, %v7860_v21, %v507_v18  ;;  %v592_v6 = vpop.permute.xlu1 %591  ;;  %v564_v47 = vpop.permute.xlu0 %563  ;;  %vm448_vm1 = vcmask 1031168   ;;  %vm9995_vm15 = vcmask 1039360   ;;  %v1127_v55 = vld [vmem:[#allocation3 + $0x30] sm:$0xff] }
 0x16d   : > { %v1130_v48 = vld [vmem:[#allocation3 + $0x44] sm:$0xf]  ;;  %542 = vst [vmem:[#allocation3 + $0x18] sm:$0xcc] %v539_v46  ;;  %512 = vst [vmem:[#allocation3 + $0x18] sm:$0x33] %v509_v22 }
 0x16e   : > { %v595_v49 = vrot.slane %v592_v6, 4  ;;  %v566_v50 = vrot.slane %v564_v47, 4  ;;  %573 = vst.msk [vmem:[#allocation3 + $0x2c] sm:$0x3] %vm390_vm6, %v564_v47  ;;  %v6815_v51 = vcombine.low %v1128_v45, %v1130_v48  ;;  %v445_v21 = vrot.slane %v7872_v25, 4 }
 0x170   : > { %v597_v52 = vsel %vm415_vm11, %v595_v49, %v596_v12  ;;  %v567_v53 = vsel %vm415_vm11, %v565_v44, %v566_v50  ;;  %7045 = vmatpush3.bf16.msra.mxu1 %v6815_v51  ;;  %v444_v57 = vpop.permute.xlu0 %443  ;;  %v410_v8 = vpop.permute.xlu1 %409  ;;  %v1124_v0 = vld [vmem:[#allocation3 + $0x20] sm:$0xf] }
 0x171   : > { %v599_v24 = vsel %vm598_vm3, %v592_v6, %v597_v52  ;;  %v569_v56 = vsel %vm9994_vm2, %v7866_v23, %v567_v53  ;;  %v1129_v58 = vld [vmem:[#allocation3 + $0x3c] sm:$0xff]  ;;  %7046 = vmatprep.subr.bf16.mxu1 %v7528_v14  ;;  %v446_v15 = vrot.slane %v444_v57, 4  ;;  %453 = vst.msk [vmem:[#allocation3 + $0x14] sm:$0x3] %vm390_vm6, %v444_v57  ;;  %v413_v59 = vrot.slane %v410_v8, 4 }
 0x172   : > { %602 = vst [vmem:[#allocation3 + $0x24] sm:$0xcc] %v599_v24  ;;  %572 = vst [vmem:[#allocation3 + $0x24] sm:$0x33] %v569_v56  ;;  %v6814_v60 = vcombine.high %v1127_v55, %v1129_v58  ;;  %v6813_v62 = vcombine.low %v1127_v55, %v1129_v58  ;;  %vm478_vm2 = vcmask 1022976  }
 0x173   : > { %v447_v28 = vsel %vm415_vm11, %v445_v21, %v446_v15  ;;  %v416_v63 = vsel %vm415_vm11, %v413_v59, %v414_v54 }
 0x174   : > { %1278 = vmatprep.subr.bf16.mxu0 %v6814_v60  ;;  %v449_v2 = vsel %vm448_vm1, %v7872_v25, %v447_v28  ;;  %v418_v3 = vsel %vm9995_vm15, %v410_v8, %v416_v63  ;;  %v474_v61 = vpop.permute.xlu0 %473  ;;  %v472_v13 = vpop.permute.xlu1 %471  ;;  %v1123_v30 = vld [vmem:[#allocation3 + $0x18] sm:$0xff]  ;;  %vm1254_vm15 = vcmask 818176  }
 0x175   : > { %v1126_v23 = vld [vmem:[#allocation3 + $0x2c] sm:$0xf]  ;;  %1279 = vmatpush1.bf16.msra.mxu0 %v6813_v62  ;;  %452 = vst [vmem:[#allocation3 + $0xc] sm:$0x33] %v449_v2  ;;  %421 = vst [vmem:[#allocation3] sm:$0xcc] %v418_v3 }
 0x176   : > { %v476_v5 = vrot.slane %v474_v61, 4  ;;  %483 = vst.msk [vmem:[#allocation3 + $0x14] sm:$0xc] %vm422_vm9, %v474_v61  ;;  %v475_v27 = vrot.slane %v472_v13, 4  ;;  %v6812_v29 = vcombine.low %v1124_v0, %v1126_v23 }
 0x178   : > { %v477_v17 = vsel %vm415_vm11, %v475_v27, %v476_v5  ;;  %7047 = vmatpush3.bf16.msra.mxu1 %v6812_v29 }
 0x179   : > { %v1125_v31 = vld [vmem:[#allocation3 + $0x24] sm:$0xff]  ;;  %v479_v25 = vsel %vm478_vm2, %v472_v13, %v477_v17  ;;  %7048 = vmatprep.subr.bf16.mxu1 %v7528_v14 }
 0x17a   : > { %482 = vst [vmem:[#allocation3 + $0xc] sm:$0xcc] %v479_v25  ;;  %v6811_v32 = vcombine.high %v1123_v30, %v1125_v31  ;;  %v6810_v33 = vcombine.low %v1123_v30, %v1125_v31 }
 0x17c   : > { %1280 = vmatprep.subr.bf16.mxu0 %v6811_v32  ;;  %v1119_v1 = vld [vmem:[#allocation3] sm:$0xff] }
 0x17d   : > { %v1122_v35 = vld [vmem:[#allocation3 + $0x14] sm:$0xf]  ;;  %1281 = vmatpush1.bf16.msra.mxu0 %v6810_v33 }
 0x17e   : > { %v6809_v36 = vcombine.low %v1120_v34, %v1122_v35 }
 0x180   : > { %7049 = vmatpush3.bf16.msra.mxu1 %v6809_v36 }
 0x181   : > { %v1121_v20 = vld [vmem:[#allocation3 + $0xc] sm:$0xff]  ;;  %7054 = vmatprep.subr.bf16.mxu1 %v7528_v14  ;;  %v1148_v40 = vpop.permute.xlu1 %1147 }
 0x182   : > { %v6808_v37 = vcombine.high %v1119_v1, %v1121_v20  ;;  %v6807_v38 = vcombine.low %v1119_v1, %v1121_v20 }
 0x183   : > { %7051 = vmatmul.mubr.msk.bf16.vlgmr.msra.gmra.mxu1 %vm1254_vm15, %v368_v16 }
 0x184   : > { %1282 = vmatprep.subr.bf16.mxu0 %v6808_v37  ;;  %7068 = vmatprep.mubr.msk.bf16.mxu1 %vm7529_vm7, %v7528_v14 }
 0x185   : > { %1283 = vmatpush1.bf16.msra.mxu0 %v6807_v38 }
 0x188   : > { %6829 = vmatmul.mubr.msk.bf16.vlgmr.msra.gmra.mxu0 %vm1254_vm15, %v368_v16 }
 0x189   : > { %2286 = vmatprep.mubr.bf16.mxu0 %v7503_v4 }
 0x243   : > { %v1343_v39 = vpop.f32.mrf.mxu1 }
 0x244   : > { %v1344_v7 = vadd.f32 %v1343_v39, %v1148_v40 }
 0x245   : > { %v7052_v41 = vpop.f32.mrf.mxu1 }
 0x246   : > { %v1351_v42 = vmax.f32 %v1344_v7, 0.0 }
 0x247   : > { %v1346_v43 = vpop.f32.mrf.mxu1 }
 0x248   : > { %v1302_v18 = vpop.f32.mrf.mxu0  ;;  %v1354_v44 = vmul.f32 %v1351_v42, %v7603_v11 }
 0x249   : > { %v1303_v45 = vadd.f32 %v1302_v18, %v1148_v40  ;;  %v7053_v46 = vpop.f32.mrf.mxu1 }
 0x24a   : > { %v1304_v22 = vpop.f32.mrf.mxu0  ;;  %v1357_v49 = vpack.c.bf16 %v1354_v44, %v1354_v44 }
 0x24b   : > { %v1349_v6 = vmax.f32 %v1303_v45, 0.0  ;;  %v1305_v47 = vadd.f32 %v1304_v22, %v1148_v40 }
 0x24c   : > { %v1306_v48 = vpop.f32.mrf.mxu0  ;;  %v1375_v21 = vrot.slane %v1357_v49, %v7610_v19 }
 0x24d   : > { %v1350_v12 = vmax.f32 %v1305_v47, 0.0  ;;  %v1352_v51 = vmul.f32 %v1349_v6, %v7599_v9 }
 0x24e   : > { %v1307_v50 = vpop.f32.mrf.mxu0 }
 0x24f   : > { %v1353_v52 = vmul.f32 %v1350_v12, %v7601_v10 }
 0x251   : > { %v6831_v53 = vpack.c.bf16 %v1353_v52, %v1352_v51 }
 0x253   : > { %v1368_v54 = vrot.slane %v6831_v53, %v7610_v19 }
 0x255   : > { %v1376_v55 = vcombine.low %v1368_v54, %v1375_v21 }
 0x257   : > { %1377 = vrot.lane.b32.xlu0 %v1376_v55, %s10043_s13 }
 0x2c9   : > { %v1378_v24 = vpop.permute.xlu0 %1377 }
 0x2ca   : > { %v1379_v56 = vrot.slane %v1378_v24, 6 }
 0x2cc   : > { %v1380_v57 = vsel %vm10027_vm4, %v1379_v56, %v1378_v24 }
 0x2cd   : > { %1382 = vst.msk [vmem:[#allocation2] sm:$0x3f] %vm7615_vm5, %v1380_v57 }
 0x2d4   : > { %v8000_v8 = vld [vmem:[#allocation2] sm:$0xff] }
 0x2d5   : > { %v2086_v58 = vrot.slane %v8000_v8, %v7610_v19  ;;  %v8006_v15 = vld [vmem:[#allocation2] sm:$0x3f]  ;;  %v2079_v45 = vcombine.high %v8000_v8, %v8000_v8  ;;  %v1989_v47 = vcombine.low %v8000_v8, %v8000_v8 }
 0x2d6   : > { %v1385_v59 = vld [vmem:[#allocation2] sm:$0x3f]  ;;  %v1886_v60 = vrot.slane %v8006_v15, %v7610_v19  ;;  %v1872_v12 = vcombine.low %v8006_v15, %v8006_v15 }
 0x2d7   : > { %2094 = vrot.lane.b32.xlu1 %v2086_v58, %s10016_s14  ;;  %2006 = vrot.lane.b32.xlu0 %v2086_v58, %s10010_s16  ;;  %6832 = vst.sshfl [vmem:[#allocation3] sm:$0xf pattern:$0x76325410] %v1385_v59  ;;  %v8012_v62 = vld [vmem:[#allocation2] sm:$0x3f]  ;;  %v1387_v13 = vcombine.high %v1385_v59, %v1385_v59  ;;  %v2093_v6 = vrot.slane %v2079_v45, %v7610_v19 }
 0x2d8   : > { %v8014_v28 = vld [vmem:[#allocation2] sm:$0x3f]  ;;  %v1944_v63 = vrot.slane %v8012_v62, %v7610_v19  ;;  %v1996_v48 = vrot.slane %v1989_v47, %v7610_v19  ;;  %v1879_v50 = vrot.slane %v1872_v12, %v7610_v19  ;;  %v1930_v52 = vcombine.low %v8012_v62, %v8012_v62 }
 0x2d9   : > { %v1850_v0 = vrot.slane %v8014_v28, %v7610_v19  ;;  %v8022_v23 = vld [vmem:[#allocation2] sm:$0x3f]  ;;  %v1401_v29 = vrot.slane %v1387_v13, %v7610_v19  ;;  %v1843_v49 = vcombine.high %v8014_v28, %v8014_v28 }
 0x2da   : > { %v8024_v2 = vld [vmem:[#allocation2] sm:$0x3f]  ;;  %v1908_v3 = vrot.slane %v8022_v23, %v7610_v19  ;;  %v1901_v53 = vcombine.high %v8022_v23, %v8022_v23  ;;  %v1937_v21 = vrot.slane %v1930_v52, %v7610_v19 }
 0x2db   : > { %2066 = vrot.lane.b32.xlu0 %v2086_v58, %s10014_s18  ;;  %1974 = vrot.lane.b32.xlu1 %v2086_v58, %s10008_s15  ;;  %v1770_v61 = vrot.slane %v8024_v2, %v7610_v19  ;;  %v8032_v5 = vld [vmem:[#allocation2] sm:$0x3f]  ;;  %1405 = vst.msk [vmem:[#allocation3 + $0x8] sm:$0x3] %vm390_vm6, %v1401_v29  ;;  %v1857_v51 = vrot.slane %v1843_v49, %v7610_v19 }
 0x2dc   : > { %v8034_v27 = vld [vmem:[#allocation2] sm:$0x3f]  ;;  %v1828_v17 = vrot.slane %v8032_v5, %v7610_v19  ;;  %v1915_v54 = vrot.slane %v1901_v53, %v7610_v19  ;;  %v1756_v55 = vcombine.low %v8024_v2, %v8024_v2  ;;  %v1814_v8 = vcombine.low %v8032_v5, %v8032_v5 }
 0x2dd   : > { %v1734_v30 = vrot.slane %v8034_v27, %v7610_v19  ;;  %v8044_v31 = vld [vmem:[#allocation2] sm:$0x3f]  ;;  %v1727_v24 = vcombine.high %v8034_v27, %v8034_v27 }
 0x2de   : > { %v8046_v25 = vld [vmem:[#allocation2] sm:$0x3f]  ;;  %v1792_v32 = vrot.slane %v8044_v31, %v7610_v19  ;;  %v1763_v56 = vrot.slane %v1756_v55, %v7610_v19  ;;  %v1821_v15 = vrot.slane %v1814_v8, %v7610_v19 }
 0x2df   : > { %2034 = vrot.lane.b32.xlu1 %v2086_v58, %s10012_s17  ;;  %1889 = vrot.lane.b32.xlu0 %v1886_v60, %s10006_s20  ;;  %v1654_v33 = vrot.slane %v8046_v25, %v7610_v19  ;;  %v8054_v34 = vld [vmem:[#allocation2] sm:$0x3f]  ;;  %s10050_s20 = smov 106   ;;  %v1741_v57 = vrot.slane %v1727_v24, %v7610_v19  ;;  %v1785_v58 = vcombine.high %v8044_v31, %v8044_v31 }
 0x2e0   : > { %v8056_v35 = vld [vmem:[#allocation2] sm:$0x3f]  ;;  %v1712_v36 = vrot.slane %v8054_v34, %v7610_v19  ;;  %v1640_v60 = vcombine.low %v8046_v25, %v8046_v25 }
 0x2e1   : > { %v1618_v16 = vrot.slane %v8056_v35, %v7610_v19  ;;  %v8064_v1 = vld [vmem:[#allocation2] sm:$0x3f]  ;;  %v1799_v59 = vrot.slane %v1785_v58, %v7610_v19  ;;  %v1611_v62 = vcombine.high %v8056_v35, %v8056_v35 }
 0x2e2   : > { %v8066_v20 = vld [vmem:[#allocation2] sm:$0x3f]  ;;  %v1676_v37 = vrot.slane %v8064_v1, %v7610_v19  ;;  %v1647_v28 = vrot.slane %v1640_v60, %v7610_v19  ;;  %v1669_v23 = vcombine.high %v8064_v1, %v8064_v1 }
 0x2e3   : > { %1947 = vrot.lane.b32.xlu0 %v1944_v63, %s10002_s22  ;;  %1858 = vrot.lane.b32.xlu1 %v1850_v0, %s10004_s19  ;;  %s10048_s22 = smov 105   ;;  %v1538_v38 = vrot.slane %v8066_v20, %v7610_v19  ;;  %v8074_v39 = vld [vmem:[#allocation2] sm:$0x3f]  ;;  %s10049_s19 = smov 108   ;;  %v1625_v63 = vrot.slane %v1611_v62, %v7610_v19  ;;  %v1698_v0 = vcombine.low %v8054_v34, %v8054_v34 }
 0x2e4   : > { %v8076_v40 = vld [vmem:[#allocation2] sm:$0x3f]  ;;  %v1596_v7 = vrot.slane %v8074_v39, %v7610_v19  ;;  %v1582_v29 = vcombine.low %v8074_v39, %v8074_v39 }
 0x2e5   : > { %v1502_v41 = vrot.slane %v8076_v40, %v7610_v19  ;;  %v8084_v42 = vld [vmem:[#allocation2] sm:$0x3f]  ;;  %v1705_v2 = vrot.slane %v1698_v0, %v7610_v19  ;;  %v1495_v13 = vcombine.high %v8076_v40, %v8076_v40 }
 0x2e6   : > { %v8086_v43 = vld [vmem:[#allocation2] sm:$0x3f]  ;;  %v1560_v18 = vrot.slane %v8084_v42, %v7610_v19 }
 0x2e7   : > { %1916 = vrot.lane.b32.xlu1 %v1908_v3, %s10000_s21  ;;  %1773 = vrot.lane.b32.xlu0 %v1770_v61, %s9998_s24  ;;  %s10046_s24 = smov 84   ;;  %s10047_s21 = smov 104   ;;  %v1422_v44 = vrot.slane %v8086_v43, %v7610_v19  ;;  %v8096_v46 = vld [vmem:[#allocation2] sm:$0x3f]  ;;  %v1683_v3 = vrot.slane %v1669_v23, %v7610_v19  ;;  %v1524_v61 = vcombine.low %v8066_v20, %v8066_v20 }
 0x2e8   : > { %v1444_v22 = vrot.slane %v8096_v46, %v7610_v19  ;;  %v1509_v27 = vrot.slane %v1495_v13, %v7610_v19  ;;  %v1437_v25 = vcombine.high %v8096_v46, %v8096_v46  ;;  %v1384_v20 = vld [vmem:[%s9951_s4] sm:$0xf] }
 0x2e9   : > { %v1531_v5 = vrot.slane %v1524_v61, %v7610_v19 }
 0x2ea   : > { %v1451_v34 = vrot.slane %v1437_v25, %v7610_v19 }
 0x2eb   : > { %1831 = vrot.lane.b32.xlu0 %v1828_v17, %s10044_s26  ;;  %1742 = vrot.lane.b32.xlu1 %v1734_v30, %s10045_s11  ;;  %v1553_v17 = vcombine.high %v8084_v42, %v8084_v42  ;;  %v1589_v30 = vrot.slane %v1582_v29, %v7610_v19 }
 0x2ed   : > { %v1567_v31 = vrot.slane %v1553_v17, %v7610_v19 }
 0x2ef   : > { %1800 = vrot.lane.b32.xlu1 %v1792_v32, %s10046_s24  ;;  %1657 = vrot.lane.b32.xlu0 %v1654_v33, %s10047_s21  ;;  %v1408_v32 = vcombine.low %v8086_v43, %v8086_v43  ;;  %v1464_v33 = vld [vmem:[#allocation2] sm:$0x3f] }
 0x2f1   : > { %v1415_v35 = vrot.slane %v1408_v32, %v7610_v19 }
 0x2f3   : > { %1715 = vrot.lane.b32.xlu0 %v1712_v36, %s10039_s25  ;;  %1626 = vrot.lane.b32.xlu1 %v1618_v16, %s10048_s22  ;;  %v1466_v36 = vcombine.low %v1464_v33, %v1464_v33  ;;  %v1480_v16 = vrot.slane %v1464_v33, %v7610_v19 }
 0x2f5   : > { %v1473_v1 = vrot.slane %v1466_v36, %v7610_v19 }
 0x2f7   : > { %1684 = vrot.lane.b32.xlu1 %v1676_v37, %s10040_s23  ;;  %1541 = vrot.lane.b32.xlu0 %v1538_v38, %s10049_s19 }
 0x2fb   : > { %1599 = vrot.lane.b32.xlu0 %v1596_v7, %s10050_s20  ;;  %1510 = vrot.lane.b32.xlu1 %v1502_v41, %s10041_s29 }
 0x2ff   : > { %1568 = vrot.lane.b32.xlu1 %v1560_v18, %s10042_s30  ;;  %1425 = vrot.lane.b32.xlu0 %v1422_v44, %s10023_s9 }
 0x303   : > { %1452 = vrot.lane.b32.xlu1 %v1444_v22, %s10021_s10  ;;  %2096 = vrot.lane.b32.xlu0 %v2093_v6, %s10016_s14  ;;  %s10055_s14 = smov 85  }
 0x307   : > { %2004 = vrot.lane.b32.xlu1 %v1996_v48, %s10010_s16  ;;  %1976 = vrot.lane.b32.xlu0 %v2093_v6, %s10008_s15  ;;  %s10051_s15 = smov 66   ;;  %s10052_s16 = smov 67  }
 0x30b   : > { %2064 = vrot.lane.b32.xlu1 %v1996_v48, %s10014_s18  ;;  %2036 = vrot.lane.b32.xlu0 %v2093_v6, %s10012_s17  ;;  %s10053_s17 = smov 64   ;;  %s10054_s18 = smov 65  }
 0x30f   : > { %1887 = vrot.lane.b32.xlu1 %v1879_v50, %s10051_s15  ;;  %1860 = vrot.lane.b32.xlu0 %v1857_v51, %s10052_s16 }
 0x313   : > { %1945 = vrot.lane.b32.xlu1 %v1937_v21, %s10053_s17  ;;  %1918 = vrot.lane.b32.xlu0 %v1915_v54, %s10054_s18 }
 0x317   : > { %1771 = vrot.lane.b32.xlu1 %v1763_v56, %s10055_s14  ;;  %1744 = vrot.lane.b32.xlu0 %v1741_v57, %s10045_s11 }
 0x31b   : > { %1829 = vrot.lane.b32.xlu1 %v1821_v15, %s10044_s26  ;;  %1802 = vrot.lane.b32.xlu0 %v1799_v59, %s10046_s24 }
 0x31f   : > { %1655 = vrot.lane.b32.xlu1 %v1647_v28, %s10047_s21  ;;  %1628 = vrot.lane.b32.xlu0 %v1625_v63, %s10048_s22 }
 0x323   : > { %1713 = vrot.lane.b32.xlu1 %v1705_v2, %s10039_s25  ;;  %1686 = vrot.lane.b32.xlu0 %v1683_v3, %s10040_s23 }
 0x327   : > { %1539 = vrot.lane.b32.xlu1 %v1531_v5, %s10049_s19  ;;  %1512 = vrot.lane.b32.xlu0 %v1509_v27, %s10041_s29 }
 0x32b   : > { %1597 = vrot.lane.b32.xlu1 %v1589_v30, %s10050_s20  ;;  %1570 = vrot.lane.b32.xlu0 %v1567_v31, %s10042_s30 }
 0x32f   : > { %1454 = vrot.lane.b32.xlu0 %v1451_v34, %s10021_s10  ;;  %1423 = vrot.lane.b32.xlu1 %v1415_v35, %s10023_s9  ;;  %s10076_s10 = smov 48   ;;  %s10077_s9 = smov 46  }
 0x333   : > { %1483 = vrot.lane.b32.xlu0 %v1480_v16, %s10056_s0  ;;  %1481 = vrot.lane.b32.xlu1 %v1473_v1, %s10056_s0 }
 0x337   : > { %2135 = vperm.xlu1 %7193, %v1384_v20  }
 0x349   : > { %v2095_v37 = vpop.permute.xlu1 %2094  ;;  %v2007_v38 = vpop.permute.xlu0 %2006 }
 0x34a   : > { %v2009_v39 = vrot.slane %v2007_v38, 4  ;;  %v2098_v8 = vrot.slane %v2095_v37, 4 }
 0x34c   : > { %v2012_v40 = vsel %vm1019_vm8, %v2007_v38, %v2009_v39 }
 0x34d   : > { %2016 = vst.msk [vmem:[#allocation3 + $0x80] sm:$0xc] %vm422_vm9, %v2012_v40  ;;  %v2067_v7 = vpop.permute.xlu0 %2066  ;;  %v1975_v41 = vpop.permute.xlu1 %1974 }
 0x34e   : > { %v2069_v42 = vrot.slane %v2067_v7, 4  ;;  %v1978_v63 = vrot.slane %v1975_v41, 4 }
 0x350   : > { %v2072_v43 = vsel %vm1081_vm10, %v2067_v7, %v2069_v42 }
 0x351   : > { %2076 = vst.msk [vmem:[#allocation3 + $0x8c] sm:$0xc] %vm422_vm9, %v2072_v43  ;;  %v2035_v18 = vpop.permute.xlu1 %2034  ;;  %v8195_v44 = vpop.permute.xlu0 %1889 }
 0x352   : > { %1898 = vst.msk [vmem:[#allocation3 + $0x68] sm:$0xc] %vm422_vm9, %v8195_v44  ;;  %v2038_v17 = vrot.slane %v2035_v18, 4  ;;  %v1892_v35 = vrot.slane %v8195_v44, 4 }
 0x355   : > { %v8199_v45 = vpop.permute.xlu0 %1947  ;;  %v8201_v46 = vpop.permute.xlu1 %1858 }
 0x356   : > { %1956 = vst.msk [vmem:[#allocation3 + $0x74] sm:$0xc] %vm422_vm9, %v8199_v45  ;;  %v1862_v36 = vrot.slane %v8201_v46, 4 }
 0x359   : > { %v8205_v22 = vpop.permute.xlu1 %1916  ;;  %v8207_v6 = vpop.permute.xlu0 %1773 }
 0x35a   : > { %1782 = vst.msk [vmem:[#allocation3 + $0x50] sm:$0xc] %vm422_vm9, %v8207_v6 }
 0x35d   : > { %v8211_v47 = vpop.permute.xlu0 %1831  ;;  %v8213_v48 = vpop.permute.xlu1 %1742 }
 0x35e   : > { %1840 = vst.msk [vmem:[#allocation3 + $0x5c] sm:$0xc] %vm422_vm9, %v8211_v47 }
 0x361   : > { %v8217_v12 = vpop.permute.xlu1 %1800  ;;  %v8219_v49 = vpop.permute.xlu0 %1657 }
 0x362   : > { %1666 = vst.msk [vmem:[#allocation3 + $0x38] sm:$0xc] %vm422_vm9, %v8219_v49 }
 0x365   : > { %v8223_v50 = vpop.permute.xlu0 %1715  ;;  %v8225_v51 = vpop.permute.xlu1 %1626 }
 0x366   : > { %1724 = vst.msk [vmem:[#allocation3 + $0x44] sm:$0xc] %vm422_vm9, %v8223_v50 }
 0x369   : > { %v8229_v52 = vpop.permute.xlu1 %1684  ;;  %v8231_v53 = vpop.permute.xlu0 %1541 }
 0x36a   : > { %1550 = vst.msk [vmem:[#allocation3 + $0x20] sm:$0xc] %vm422_vm9, %v8231_v53 }
 0x36d   : > { %v8235_v21 = vpop.permute.xlu0 %1599  ;;  %v8237_v54 = vpop.permute.xlu1 %1510 }
 0x36e   : > { %1608 = vst.msk [vmem:[#allocation3 + $0x2c] sm:$0xc] %vm422_vm9, %v8235_v21 }
 0x371   : > { %v8241_v55 = vpop.permute.xlu1 %1568  ;;  %v8243_v24 = vpop.permute.xlu0 %1425 }
 0x372   : > { %1434 = vst.msk [vmem:[#allocation3 + $0x8] sm:$0xc] %vm422_vm9, %v8243_v24 }
 0x375   : > { %v8247_v56 = vpop.permute.xlu1 %1452  ;;  %v2097_v57 = vpop.permute.xlu0 %2096 }
 0x376   : > { %v2099_v58 = vrot.slane %v2097_v57, 4 }
 0x378   : > { %v2100_v15 = vsel %vm415_vm11, %v2098_v8, %v2099_v58  ;;  %v2102_v59 = vsel %vm10026_vm12, %v2097_v57, %v2099_v58 }
 0x379   : > { %v2101_v60 = vsel %vm10026_vm12, %v2095_v37, %v2100_v15  ;;  %2106 = vst.msk [vmem:[#allocation3 + $0x98] sm:$0x3] %vm390_vm6, %v2102_v59  ;;  %v2005_v62 = vpop.permute.xlu1 %2004  ;;  %v1977_v28 = vpop.permute.xlu0 %1976  ;;  %v1950_v59 = vrot.slane %v8199_v45, 4 }
 0x37a   : > { %2105 = vst [vmem:[#allocation3 + $0x90] sm:$0x33] %v2101_v60  ;;  %v2008_v0 = vrot.slane %v2005_v62, 4  ;;  %v1979_v23 = vrot.slane %v1977_v28, 4  ;;  %v1920_v60 = vrot.slane %v8205_v22, 4 }
 0x37c   : > { %v2010_v2 = vsel %vm415_vm11, %v2008_v0, %v2009_v39  ;;  %v1980_v3 = vsel %vm415_vm11, %v1978_v63, %v1979_v23  ;;  %v1982_v61 = vsel %vm10020_vm13, %v1977_v28, %v1979_v23 }
 0x37d   : > { %v2011_v13 = vsel %vm1019_vm8, %v2005_v62, %v2010_v2  ;;  %v1981_v5 = vsel %vm10020_vm13, %v1975_v41, %v1980_v3  ;;  %1986 = vst.msk [vmem:[#allocation3 + $0x80] sm:$0x3] %vm390_vm6, %v1982_v61  ;;  %v2065_v27 = vpop.permute.xlu1 %2064  ;;  %v2037_v29 = vpop.permute.xlu0 %2036  ;;  %vm10058_vm13 = vcmask 547840  }
 0x37e   : > { %2015 = vst [vmem:[#allocation3 + $0x78] sm:$0xcc] %v2011_v13  ;;  %1985 = vst [vmem:[#allocation3 + $0x78] sm:$0x33] %v1981_v5  ;;  %v2068_v30 = vrot.slane %v2065_v27, 4  ;;  %v2039_v31 = vrot.slane %v2037_v29, 4 }
 0x37f   : > { %v1776_v5 = vrot.slane %v8207_v6, 4 }
 0x380   : > { %v2070_v25 = vsel %vm415_vm11, %v2068_v30, %v2069_v42  ;;  %v2040_v32 = vsel %vm415_vm11, %v2038_v17, %v2039_v31  ;;  %v2042_v33 = vsel %vm10019_vm14, %v2037_v29, %v2039_v31  ;;  %v7255_v34 = vld [vmem:[#allocation3 + $0x98] ss:$0 sps:$4 sm:$0x33]  }
 0x381   : > { %v2071_v16 = vsel %vm1081_vm10, %v2065_v27, %v2070_v25  ;;  %v2041_v1 = vsel %vm10019_vm14, %v2035_v18, %v2040_v32  ;;  %2046 = vst.msk [vmem:[#allocation3 + $0x8c] sm:$0x3] %vm390_vm6, %v2042_v33  ;;  %v1888_v20 = vpop.permute.xlu1 %1887  ;;  %v1861_v37 = vpop.permute.xlu0 %1860  ;;  %v2131_v38 = vld [vmem:[#allocation3 + $0x90] sm:$0x33]  ;;  %v2252_v41 = vsel %vm1258_vm0, %v7255_v34, 0  ;;  %vm10057_vm14 = vcmask 539648  }
 0x382   : > { %2075 = vst [vmem:[#allocation3 + $0x84] sm:$0xcc] %v2071_v16  ;;  %2045 = vst [vmem:[#allocation3 + $0x84] sm:$0x33] %v2041_v1  ;;  %v1891_v39 = vrot.slane %v1888_v20, 4  ;;  %v1863_v40 = vrot.slane %v1861_v37, 4  ;;  %v6852_v7 = vcombine.high %v2131_v38, %v2131_v38  ;;  %7055 = vmatpush3.bf16.msra.mxu1 %v2252_v41  ;;  %v6851_v42 = vcombine.low %v2131_v38, %v2131_v38 }
 0x383   : > { %1869 = vst.msk [vmem:[#allocation3 + $0x68] sm:$0x3] %vm390_vm6, %v1861_v37  ;;  %7056 = vmatprep.subr.bf16.mxu1 %v7528_v14  ;;  %v1746_v27 = vrot.slane %v8213_v48, 4  ;;  %v1834_v34 = vrot.slane %v8211_v47, 4  ;;  %v1630_v41 = vrot.slane %v8225_v51, 4 }
 0x384   : > { %v1893_v43 = vsel %vm415_vm11, %v1891_v39, %v1892_v35  ;;  %v1864_v18 = vsel %vm415_vm11, %v1862_v36, %v1863_v40  ;;  %6854 = vmatprep.subr.msk.bf16.mxu0 %vm1258_vm0, %v6852_v7  ;;  %v2246_v58 = vsel %vm1258_vm0, %v6851_v42, 0  ;;  %v1804_v35 = vrot.slane %v8217_v12, 4 }
 0x385   : > { %v1894_v44 = vsel %vm10057_vm14, %v1888_v20, %v1893_v43  ;;  %v1865_v57 = vsel %vm10058_vm13, %v8201_v46, %v1864_v18  ;;  %v1946_v8 = vpop.permute.xlu1 %1945  ;;  %v1919_v15 = vpop.permute.xlu0 %1918  ;;  %2257 = vmatpush1.bf16.msra.mxu0 %v2246_v58  ;;  %vm10059_vm13 = vcmask 523264   ;;  %vm10060_vm14 = vcmask 531456  }
 0x386   : > { %1897 = vst [vmem:[#allocation3 + $0x60] sm:$0xcc] %v1894_v44  ;;  %1868 = vst [vmem:[#allocation3 + $0x60] sm:$0x33] %v1865_v57  ;;  %v1949_v62 = vrot.slane %v1946_v8, 4  ;;  %v1921_v28 = vrot.slane %v1919_v15, 4 }
 0x387   : > { %1927 = vst.msk [vmem:[#allocation3 + $0x74] sm:$0x3] %vm390_vm6, %v1919_v15  ;;  %v1660_v7 = vrot.slane %v8219_v49, 4  ;;  %v1718_v15 = vrot.slane %v8223_v50, 4 }
 0x388   : > { %v1951_v63 = vsel %vm415_vm11, %v1949_v62, %v1950_v59  ;;  %v1922_v0 = vsel %vm415_vm11, %v1920_v60, %v1921_v28  ;;  %v7257_v46 = vld [vmem:[#allocation3 + $0x80] ss:$12 sps:$4 sm:$0xff]   ;;  %v1688_v59 = vrot.slane %v8229_v52, 4 }
 0x389   : > { %v1952_v23 = vsel %vm10059_vm13, %v1946_v8, %v1951_v63  ;;  %v1923_v2 = vsel %vm10060_vm14, %v8205_v22, %v1922_v0  ;;  %v1772_v45 = vpop.permute.xlu1 %1771  ;;  %v1745_v3 = vpop.permute.xlu0 %1744  ;;  %v7258_v61 = vld [vmem:[#allocation3 + $0x7c] ss:$12 sps:$4 sm:$0xff]   ;;  %v7260_v13 = vld [vmem:[#allocation3 + $0x78] ss:$12 sps:$4 sm:$0xff]   ;;  %7057 = vmatpush3.bf16.msra.mxu1 %v7257_v46  ;;  %vm10061_vm13 = vcmask 695296   ;;  %vm10062_vm14 = vcmask 703488  }
 0x38a   : > { %1955 = vst [vmem:[#allocation3 + $0x6c] sm:$0xcc] %v1952_v23  ;;  %1926 = vst [vmem:[#allocation3 + $0x6c] sm:$0x33] %v1923_v2  ;;  %v1775_v29 = vrot.slane %v1772_v45, 4  ;;  %v1747_v17 = vrot.slane %v1745_v3, 4  ;;  %2258 = vmatprep.subr.bf16.mxu0 %v7258_v61  ;;  %7058 = vmatprep.subr.bf16.mxu1 %v7528_v14 }
 0x38b   : > { %1753 = vst.msk [vmem:[#allocation3 + $0x50] sm:$0x3] %vm390_vm6, %v1745_v3  ;;  %2259 = vmatpush1.bf16.msra.mxu0 %v7260_v13  ;;  %v1514_v3 = vrot.slane %v8237_v54, 4 }
 0x38c   : > { %v1777_v22 = vsel %vm415_vm11, %v1775_v29, %v1776_v5  ;;  %v1748_v30 = vsel %vm415_vm11, %v1746_v27, %v1747_v17 }
 0x38d   : > { %v1778_v31 = vsel %vm10061_vm13, %v1772_v45, %v1777_v22  ;;  %v1749_v6 = vsel %vm10062_vm14, %v8213_v48, %v1748_v30  ;;  %v1830_v25 = vpop.permute.xlu1 %1829  ;;  %v1803_v32 = vpop.permute.xlu0 %1802  ;;  %vm10063_vm13 = vcmask 556032   ;;  %vm10064_vm14 = vcmask 687104  }
 0x38e   : > { %v7261_v33 = vld [vmem:[#allocation3 + $0x68] ss:$12 sps:$4 sm:$0xff]   ;;  %1781 = vst [vmem:[#allocation3 + $0x48] sm:$0xcc] %v1778_v31  ;;  %1752 = vst [vmem:[#allocation3 + $0x48] sm:$0x33] %v1749_v6 }
 0x38f   : > { %v1833_v36 = vrot.slane %v1830_v25, 4  ;;  %v1805_v16 = vrot.slane %v1803_v32, 4  ;;  %1811 = vst.msk [vmem:[#allocation3 + $0x5c] sm:$0x3] %vm390_vm6, %v1803_v32  ;;  %7059 = vmatpush3.bf16.msra.mxu1 %v7261_v33  ;;  %v1544_v45 = vrot.slane %v8231_v53, 4  ;;  %v1602_v30 = vrot.slane %v8235_v21, 4 }
 0x390   : > { %7060 = vmatprep.subr.bf16.mxu1 %v7528_v14  ;;  %v1572_v31 = vrot.slane %v8241_v55, 4 }
 0x391   : > { %v1835_v1 = vsel %vm415_vm11, %v1833_v36, %v1834_v34  ;;  %v1806_v20 = vsel %vm415_vm11, %v1804_v35, %v1805_v16  ;;  %v1656_v37 = vpop.permute.xlu1 %1655  ;;  %v1629_v38 = vpop.permute.xlu0 %1628  ;;  %v7262_v39 = vld [vmem:[#allocation3 + $0x64] ss:$12 sps:$4 sm:$0xff]   ;;  %v7264_v40 = vld [vmem:[#allocation3 + $0x60] ss:$12 sps:$4 sm:$0xff]   ;;  %v1428_v16 = vrot.slane %v8243_v24, 4 }
 0x392   : > { %v1836_v48 = vsel %vm10063_vm13, %v1830_v25, %v1835_v1  ;;  %v1807_v47 = vsel %vm10064_vm14, %v8217_v12, %v1806_v20  ;;  %v1659_v42 = vrot.slane %v1656_v37, 4  ;;  %v1631_v43 = vrot.slane %v1629_v38, 4  ;;  %1637 = vst.msk [vmem:[#allocation3 + $0x38] sm:$0x3] %vm390_vm6, %v1629_v38  ;;  %2260 = vmatprep.subr.bf16.mxu0 %v7262_v39 }
 0x393   : > { %1839 = vst [vmem:[#allocation3 + $0x54] sm:$0xcc] %v1836_v48  ;;  %1810 = vst [vmem:[#allocation3 + $0x54] sm:$0x33] %v1807_v47  ;;  %2261 = vmatpush1.bf16.msra.mxu0 %v7264_v40  ;;  %vm10065_vm13 = vcmask 850944   ;;  %vm10066_vm14 = vcmask 859136  }
 0x394   : > { %v1661_v18 = vsel %vm415_vm11, %v1659_v42, %v1660_v7  ;;  %v1632_v44 = vsel %vm415_vm11, %v1630_v41, %v1631_v43  ;;  %v1456_v1 = vrot.slane %v8247_v56, 4 }
 0x395   : > { %v1662_v12 = vsel %vm10065_vm13, %v1656_v37, %v1661_v18  ;;  %v1633_v57 = vsel %vm10066_vm14, %v8225_v51, %v1632_v44  ;;  %v1714_v49 = vpop.permute.xlu1 %1713  ;;  %v1687_v8 = vpop.permute.xlu0 %1686  ;;  %vm10067_vm13 = vcmask 711680   ;;  %vm10068_vm14 = vcmask 719872  }
 0x396   : > { %v7265_v58 = vld [vmem:[#allocation3 + $0x50] ss:$12 sps:$4 sm:$0xff]   ;;  %1665 = vst [vmem:[#allocation3 + $0x30] sm:$0xcc] %v1662_v12  ;;  %1636 = vst [vmem:[#allocation3 + $0x30] sm:$0x33] %v1633_v57 }
 0x397   : > { %v1717_v60 = vrot.slane %v1714_v49, 4  ;;  %v1689_v62 = vrot.slane %v1687_v8, 4  ;;  %1695 = vst.msk [vmem:[#allocation3 + $0x44] sm:$0x3] %vm390_vm6, %v1687_v8  ;;  %7061 = vmatpush3.bf16.msra.mxu1 %v7265_v58 }
 0x398   : > { %7062 = vmatprep.subr.bf16.mxu1 %v7528_v14 }
 0x399   : > { %v1719_v28 = vsel %vm415_vm11, %v1717_v60, %v1718_v15  ;;  %v1690_v63 = vsel %vm415_vm11, %v1688_v59, %v1689_v62  ;;  %v1540_v0 = vpop.permute.xlu1 %1539  ;;  %v1513_v46 = vpop.permute.xlu0 %1512  ;;  %v1383_v15 = vld [vmem:[%s9950_s3] sm:$0x3] }
 0x39a   : > { %v1720_v51 = vsel %vm10067_vm13, %v1714_v49, %v1719_v28  ;;  %v1691_v50 = vsel %vm10068_vm14, %v8229_v52, %v1690_v63  ;;  %v7266_v23 = vld [vmem:[#allocation3 + $0x4c] ss:$12 sps:$4 sm:$0xff]   ;;  %v7268_v2 = vld [vmem:[#allocation3 + $0x48] ss:$12 sps:$4 sm:$0xff]   ;;  %v1543_v61 = vrot.slane %v1540_v0, 4  ;;  %v1515_v13 = vrot.slane %v1513_v46, 4 }
 0x39b   : > { %1723 = vst [vmem:[#allocation3 + $0x3c] sm:$0xcc] %v1720_v51  ;;  %1694 = vst [vmem:[#allocation3 + $0x3c] sm:$0x33] %v1691_v50  ;;  %2262 = vmatprep.subr.bf16.mxu0 %v7266_v23  ;;  %vm10069_vm13 = vcmask 883712   ;;  %vm10070_vm14 = vcmask 1014784  }
 0x39c   : > { %1521 = vst.msk [vmem:[#allocation3 + $0x20] sm:$0x3] %vm390_vm6, %v1513_v46  ;;  %v1545_v5 = vsel %vm415_vm11, %v1543_v61, %v1544_v45  ;;  %v1516_v27 = vsel %vm415_vm11, %v1514_v3, %v1515_v13  ;;  %2263 = vmatpush1.bf16.msra.mxu0 %v7268_v2  ;;  %v7492_v46 = vld [vmem:[%s7597_s12 + $0x8] sm:$0xf]  ;;  %v7493_v61 = vld [vmem:[%s7597_s12] sm:$0xff]  ;;  %s10073_s12 = smov 44  }
 0x39d   : > { %v1546_v52 = vsel %vm10069_vm13, %v1540_v0, %v1545_v5  ;;  %v1517_v29 = vsel %vm10070_vm14, %v8237_v54, %v1516_v27  ;;  %v1598_v53 = vpop.permute.xlu1 %1597  ;;  %v1571_v17 = vpop.permute.xlu0 %1570  ;;  %vm10071_vm13 = vcmask 875520   ;;  %vm10072_vm14 = vcmask 1039360  }
 0x39e   : > { %v7269_v22 = vld [vmem:[#allocation3 + $0x38] ss:$12 sps:$4 sm:$0xff]   ;;  %1549 = vst [vmem:[#allocation3 + $0x18] sm:$0xcc] %v1546_v52  ;;  %1520 = vst [vmem:[#allocation3 + $0x18] sm:$0x33] %v1517_v29  ;;  %v2336_v13 = vcombine.high %v7493_v61, %v7493_v61 }
 0x39f   : > { %v1601_v6 = vrot.slane %v1598_v53, 4  ;;  %v1573_v25 = vrot.slane %v1571_v17, 4  ;;  %1579 = vst.msk [vmem:[#allocation3 + $0x2c] sm:$0x3] %vm390_vm6, %v1571_v17  ;;  %7063 = vmatpush3.bf16.msra.mxu1 %v7269_v22 }
 0x3a0   : > { %7064 = vmatprep.subr.bf16.mxu1 %v7528_v14 }
 0x3a1   : > { %v1603_v32 = vsel %vm415_vm11, %v1601_v6, %v1602_v30  ;;  %v1574_v33 = vsel %vm415_vm11, %v1572_v31, %v1573_v25  ;;  %v1455_v34 = vpop.permute.xlu0 %1454  ;;  %v1424_v35 = vpop.permute.xlu1 %1423 }
 0x3a2   : > { %v1604_v54 = vsel %vm598_vm3, %v1598_v53, %v1603_v32  ;;  %v1575_v21 = vsel %vm10071_vm13, %v8241_v55, %v1574_v33  ;;  %v7270_v36 = vld [vmem:[#allocation3 + $0x34] ss:$12 sps:$4 sm:$0xff]   ;;  %v1457_v20 = vrot.slane %v1455_v34, 4  ;;  %1463 = vst.msk [vmem:[#allocation3 + $0x14] sm:$0x3] %vm390_vm6, %v1455_v34  ;;  %v1427_v48 = vrot.slane %v1424_v35, 4 }
 0x3a3   : > { %1607 = vst [vmem:[#allocation3 + $0x24] sm:$0xcc] %v1604_v54  ;;  %1578 = vst [vmem:[#allocation3 + $0x24] sm:$0x33] %v1575_v21  ;;  %v7272_v47 = vld [vmem:[#allocation3 + $0x30] ss:$12 sps:$4 sm:$0xff]   ;;  %2264 = vmatprep.subr.bf16.mxu0 %v7270_v36 }
 0x3a4   : > { %v1458_v37 = vsel %vm415_vm11, %v1456_v1, %v1457_v20  ;;  %v1429_v38 = vsel %vm415_vm11, %v1427_v48, %v1428_v16  ;;  %2265 = vmatpush1.bf16.msra.mxu0 %v7272_v47  ;;  %v2112_v55 = vld [vmem:[#allocation3 + $0x20] sm:$0xf]  ;;  %vm10080_vm13 = vcmask 392192  }
 0x3a5   : > { %v1459_v24 = vsel %vm448_vm1, %v8247_v56, %v1458_v37  ;;  %v1430_v40 = vsel %vm10072_vm14, %v1424_v35, %v1429_v38  ;;  %v1484_v7 = vpop.permute.xlu0 %1483  ;;  %v1482_v41 = vpop.permute.xlu1 %1481  ;;  %v2108_v56 = vld [vmem:[#allocation3 + $0x8] sm:$0xf]  ;;  %vm10081_vm14 = vmmov %vm10080_vm13 }
 0x3a6   : > { %v2114_v39 = vld [vmem:[#allocation3 + $0x2c] sm:$0xf]  ;;  %1462 = vst [vmem:[#allocation3 + $0xc] sm:$0x33] %v1459_v24  ;;  %1433 = vst [vmem:[#allocation3] sm:$0xcc] %v1430_v40 }
 0x3a7   : > { %v1486_v42 = vrot.slane %v1484_v7, 4  ;;  %1492 = vst.msk [vmem:[#allocation3 + $0x14] sm:$0xc] %vm422_vm9, %v1484_v7  ;;  %v1485_v43 = vrot.slane %v1482_v41, 4  ;;  %v6838_v18 = vcombine.low %v2112_v55, %v2114_v39 }
 0x3a9   : > { %v1487_v44 = vsel %vm415_vm11, %v1485_v43, %v1486_v42  ;;  %7065 = vmatpush3.bf16.msra.mxu1 %v6838_v18 }
 0x3aa   : > { %v1488_v12 = vsel %vm478_vm2, %v1482_v41, %v1487_v44  ;;  %v7273_v57 = vld [vmem:[#allocation3 + $0x1c] ss:$12 sps:$4 sm:$0xff]   ;;  %v7275_v49 = vld [vmem:[#allocation3 + $0x18] ss:$12 sps:$4 sm:$0xff]   ;;  %7066 = vmatprep.subr.bf16.mxu1 %v7528_v14 }
 0x3ab   : > { %1491 = vst [vmem:[#allocation3 + $0xc] sm:$0xcc] %v1488_v12  ;;  %2266 = vmatprep.subr.bf16.mxu0 %v7273_v57 }
 0x3ac   : > { %2267 = vmatpush1.bf16.msra.mxu0 %v7275_v49 }
 0x3ad   : > { %v2107_v59 = vld [vmem:[#allocation3] sm:$0xff] }
 0x3ae   : > { %v2110_v8 = vld [vmem:[#allocation3 + $0x14] sm:$0xf] }
 0x3af   : > { %v6835_v58 = vcombine.low %v2108_v56, %v2110_v8 }
 0x3b1   : > { %7067 = vmatpush3.bf16.msra.mxu1 %v6835_v58 }
 0x3b2   : > { %v2109_v60 = vld [vmem:[#allocation3 + $0xc] sm:$0xff]  ;;  %7072 = vmatprep.subr.bf16.mxu1 %v7528_v14  ;;  %v2136_v63 = vpop.permute.xlu1 %2135 }
 0x3b3   : > { %v6834_v62 = vcombine.high %v2107_v59, %v2109_v60  ;;  %v6833_v28 = vcombine.low %v2107_v59, %v2109_v60 }
 0x3b4   : > { %7069 = vmatmul.mubr.msk.bf16.vlgmr.msra.gmra.mxu1 %vm1254_vm15, %v1383_v15 }
 0x3b5   : > { %2268 = vmatprep.subr.bf16.mxu0 %v6834_v62  ;;  %7086 = vmatprep.mubr.msk.bf16.mxu1 %vm7529_vm7, %v7528_v14 }
 0x3b6   : > { %2269 = vmatpush1.bf16.msra.mxu0 %v6833_v28 }
 0x3b9   : > { %6855 = vmatmul.mubr.msk.bf16.vlgmr.msra.gmra.mxu0 %vm1254_vm15, %v1383_v15 }
 0x3ba   : > { %3277 = vmatprep.mubr.bf16.mxu0 %v7503_v4 }
 0x474   : > { %v2329_v51 = vpop.f32.mrf.mxu1 }
 0x475   : > { %v2330_v50 = vadd.f32 %v2329_v51, %v2136_v63 }
 0x476   : > { %v7070_v0 = vpop.f32.mrf.mxu1 }
 0x477   : > { %v8359_v23 = vadd.f32 %v7492_v46, %v2330_v50 }
 0x478   : > { %v2332_v2 = vpop.f32.mrf.mxu1 }
 0x479   : > { %v2288_v45 = vpop.f32.mrf.mxu0  ;;  %v2343_v52 = vmul.f32 %v8359_v23, %v7603_v11 }
 0x47a   : > { %v2289_v3 = vadd.f32 %v2288_v45, %v2136_v63  ;;  %v7071_v5 = vpop.f32.mrf.mxu1 }
 0x47b   : > { %v2290_v27 = vpop.f32.mrf.mxu0  ;;  %v2346_v31 = vpack.c.bf16 %v2343_v52, %v2343_v52 }
 0x47c   : > { %v8364_v29 = vadd.f32 %v7493_v61, %v2289_v3  ;;  %v2291_v53 = vadd.f32 %v2290_v27, %v2136_v63 }
 0x47d   : > { %v2292_v17 = vpop.f32.mrf.mxu0  ;;  %v2364_v33 = vrot.slane %v2346_v31, %v7610_v19 }
 0x47e   : > { %v8366_v22 = vadd.f32 %v2336_v13, %v2291_v53  ;;  %v2341_v6 = vmul.f32 %v8364_v29, %v7599_v9 }
 0x47f   : > { %v2293_v30 = vpop.f32.mrf.mxu0 }
 0x480   : > { %v2342_v25 = vmul.f32 %v8366_v22, %v7601_v10 }
 0x482   : > { %v6857_v32 = vpack.c.bf16 %v2342_v25, %v2341_v6 }
 0x484   : > { %v2357_v54 = vrot.slane %v6857_v32, %v7610_v19 }
 0x486   : > { %v2365_v21 = vcombine.low %v2357_v54, %v2364_v33 }
 0x488   : > { %2366 = vrot.lane.b32.xlu0 %v2365_v21, %s10043_s13 }
 0x4fa   : > { %v2367_v34 = vpop.permute.xlu0 %2366 }
 0x4fb   : > { %v2368_v35 = vrot.slane %v2367_v34, 6 }
 0x4fd   : > { %v2369_v36 = vsel %vm10027_vm4, %v2368_v35, %v2367_v34 }
 0x4fe   : > { %2371 = vst.msk [vmem:[#allocation2] sm:$0x3f] %vm7615_vm5, %v2369_v36 }
 0x505   : > { %v8378_v16 = vld [vmem:[#allocation2] sm:$0xff] }
 0x506   : > { %v3077_v1 = vrot.slane %v8378_v16, %v7610_v19  ;;  %v8384_v20 = vld [vmem:[#allocation2] sm:$0x3f]  ;;  %v3070_v27 = vcombine.high %v8378_v16, %v8378_v16  ;;  %v2980_v30 = vcombine.low %v8378_v16, %v8378_v16 }
 0x507   : > { %v2376_v48 = vld [vmem:[#allocation2] sm:$0x3f]  ;;  %v2877_v47 = vrot.slane %v8384_v20, %v7610_v19  ;;  %v2863_v6 = vcombine.low %v8384_v20, %v8384_v20 }
 0x508   : > { %3085 = vrot.lane.b32.xlu1 %v3077_v1, %s10073_s12  ;;  %2997 = vrot.lane.b32.xlu0 %v3077_v1, %s10074_s7  ;;  %6860 = vst.sshfl [vmem:[#allocation3] sm:$0xf pattern:$0x76325410] %v2376_v48  ;;  %v8390_v37 = vld [vmem:[#allocation2] sm:$0x3f]  ;;  %v2378_v42 = vcombine.high %v2376_v48, %v2376_v48  ;;  %v3084_v17 = vrot.slane %v3070_v27, %v7610_v19 }
 0x509   : > { %v8392_v38 = vld [vmem:[#allocation2] sm:$0x3f]  ;;  %v2935_v55 = vrot.slane %v8390_v37, %v7610_v19  ;;  %v2987_v31 = vrot.slane %v2980_v30, %v7610_v19  ;;  %v2870_v32 = vrot.slane %v2863_v6, %v7610_v19  ;;  %v2921_v54 = vcombine.low %v8390_v37, %v8390_v37 }
 0x50a   : > { %v2841_v39 = vrot.slane %v8392_v38, %v7610_v19  ;;  %v8400_v24 = vld [vmem:[#allocation2] sm:$0x3f]  ;;  %v2392_v44 = vrot.slane %v2378_v42, %v7610_v19  ;;  %v2834_v25 = vcombine.high %v8392_v38, %v8392_v38 }
 0x50b   : > { %v8402_v40 = vld [vmem:[#allocation2] sm:$0x3f]  ;;  %v2899_v7 = vrot.slane %v8400_v24, %v7610_v19  ;;  %v2892_v21 = vcombine.high %v8400_v24, %v8400_v24  ;;  %v2928_v34 = vrot.slane %v2921_v54, %v7610_v19 }
 0x50c   : > { %3057 = vrot.lane.b32.xlu0 %v3077_v1, %s10075_s27  ;;  %2965 = vrot.lane.b32.xlu1 %v3077_v1, %s10076_s10  ;;  %v2761_v41 = vrot.slane %v8402_v40, %v7610_v19  ;;  %v8410_v43 = vld [vmem:[#allocation2] sm:$0x3f]  ;;  %2396 = vst.msk [vmem:[#allocation3 + $0x8] sm:$0x3] %vm390_vm6, %v2392_v44  ;;  %v2848_v33 = vrot.slane %v2834_v25, %v7610_v19 }
 0x50d   : > { %v8412_v18 = vld [vmem:[#allocation2] sm:$0x3f]  ;;  %v2819_v12 = vrot.slane %v8410_v43, %v7610_v19  ;;  %v2906_v35 = vrot.slane %v2892_v21, %v7610_v19  ;;  %v2747_v36 = vcombine.low %v8402_v40, %v8402_v40  ;;  %v2805_v48 = vcombine.low %v8410_v43, %v8410_v43 }
 0x50e   : > { %v2725_v57 = vrot.slane %v8412_v18, %v7610_v19  ;;  %v8422_v49 = vld [vmem:[#allocation2] sm:$0x3f]  ;;  %v2718_v16 = vcombine.high %v8412_v18, %v8412_v18 }
 0x50f   : > { %v8424_v56 = vld [vmem:[#allocation2] sm:$0x3f]  ;;  %v2783_v8 = vrot.slane %v8422_v49, %v7610_v19  ;;  %v2812_v37 = vrot.slane %v2805_v48, %v7610_v19 }
 0x510   : > { %3025 = vrot.lane.b32.xlu1 %v3077_v1, %s10077_s9  ;;  %2880 = vrot.lane.b32.xlu0 %v2877_v47, %s10051_s15  ;;  %v2645_v58 = vrot.slane %v8424_v56, %v7610_v19  ;;  %v8432_v15 = vld [vmem:[#allocation2] sm:$0x3f]  ;;  %v2754_v1 = vrot.slane %v2747_v36, %v7610_v19  ;;  %v2732_v20 = vrot.slane %v2718_v16, %v7610_v19 }
 0x511   : > { %v8434_v59 = vld [vmem:[#allocation2] sm:$0x3f]  ;;  %v2703_v60 = vrot.slane %v8432_v15, %v7610_v19  ;;  %v2776_v47 = vcombine.high %v8422_v49, %v8422_v49 }
 0x512   : > { %v2609_v62 = vrot.slane %v8434_v59, %v7610_v19  ;;  %v8442_v28 = vld [vmem:[#allocation2] sm:$0x3f] }
 0x513   : > { %v8444_v63 = vld [vmem:[#allocation2] sm:$0x3f]  ;;  %v2667_v51 = vrot.slane %v8442_v28, %v7610_v19  ;;  %v2790_v38 = vrot.slane %v2776_v47, %v7610_v19 }
 0x514   : > { %2938 = vrot.lane.b32.xlu0 %v2935_v55, %s10053_s17  ;;  %2849 = vrot.lane.b32.xlu1 %v2841_v39, %s10052_s16  ;;  %v2529_v50 = vrot.slane %v8444_v63, %v7610_v19  ;;  %v8452_v0 = vld [vmem:[#allocation2] sm:$0x3f]  ;;  %v2631_v55 = vcombine.low %v8424_v56, %v8424_v56  ;;  %v2602_v39 = vcombine.high %v8434_v59, %v8434_v59 }
 0x515   : > { %v8454_v46 = vld [vmem:[#allocation2] sm:$0x3f]  ;;  %v2587_v2 = vrot.slane %v8452_v0, %v7610_v19  ;;  %v2515_v18 = vcombine.low %v8444_v63, %v8444_v63  ;;  %v2573_v49 = vcombine.low %v8452_v0, %v8452_v0 }
 0x516   : > { %v2493_v45 = vrot.slane %v8454_v46, %v7610_v19  ;;  %v8462_v3 = vld [vmem:[#allocation2] sm:$0x3f]  ;;  %v2638_v24 = vrot.slane %v2631_v55, %v7610_v19  ;;  %v2616_v40 = vrot.slane %v2602_v39, %v7610_v19  ;;  %v2486_v44 = vcombine.high %v8454_v46, %v8454_v46 }
 0x517   : > { %v8464_v61 = vld [vmem:[#allocation2] sm:$0x3f]  ;;  %v2551_v13 = vrot.slane %v8462_v3, %v7610_v19  ;;  %v2544_v56 = vcombine.high %v8462_v3, %v8462_v3 }
 0x518   : > { %2907 = vrot.lane.b32.xlu1 %v2899_v7, %s10054_s18  ;;  %2764 = vrot.lane.b32.xlu0 %v2761_v41, %s10055_s14  ;;  %v2413_v5 = vrot.slane %v8464_v61, %v7610_v19  ;;  %v8474_v52 = vld [vmem:[#allocation2] sm:$0x3f]  ;;  %v2689_v7 = vcombine.low %v8432_v15, %v8432_v15  ;;  %v2660_v41 = vcombine.high %v8442_v28, %v8442_v28 }
 0x519   : > { %v2435_v53 = vrot.slane %v8474_v52, %v7610_v19  ;;  %v2428_v15 = vcombine.high %v8474_v52, %v8474_v52  ;;  %v2399_v59 = vcombine.low %v8464_v61, %v8464_v61  ;;  %v6859_v0 = vld [vmem:[%s9949_s2 + $0x4] sm:$0xf] }
 0x51a   : > { %v2696_v42 = vrot.slane %v2689_v7, %v7610_v19  ;;  %v2674_v43 = vrot.slane %v2660_v41, %v7610_v19 }
 0x51b   : > { %v2406_v28 = vrot.slane %v2399_v59, %v7610_v19 }
 0x51c   : > { %2822 = vrot.lane.b32.xlu0 %v2819_v12, %s10044_s26  ;;  %2733 = vrot.lane.b32.xlu1 %v2725_v57, %s10045_s11  ;;  %v2522_v12 = vrot.slane %v2515_v18, %v7610_v19  ;;  %v2500_v57 = vrot.slane %v2486_v44, %v7610_v19 }
 0x520   : > { %2791 = vrot.lane.b32.xlu1 %v2783_v8, %s10046_s24  ;;  %2648 = vrot.lane.b32.xlu0 %v2645_v58, %s10047_s21  ;;  %v2580_v8 = vrot.slane %v2573_v49, %v7610_v19  ;;  %v2558_v58 = vrot.slane %v2544_v56, %v7610_v19 }
 0x524   : > { %2706 = vrot.lane.b32.xlu0 %v2703_v60, %s10039_s25  ;;  %2617 = vrot.lane.b32.xlu1 %v2609_v62, %s10048_s22  ;;  %v2455_v60 = vld [vmem:[#allocation2] sm:$0x3f]  ;;  %v2442_v62 = vrot.slane %v2428_v15, %v7610_v19 }
 0x525   : > { %v2457_v63 = vcombine.low %v2455_v60, %v2455_v60 }
 0x528   : > { %2675 = vrot.lane.b32.xlu1 %v2667_v51, %s10040_s23  ;;  %2532 = vrot.lane.b32.xlu0 %v2529_v50, %s10049_s19  ;;  %v2471_v51 = vrot.slane %v2455_v60, %v7610_v19  ;;  %v2464_v50 = vrot.slane %v2457_v63, %v7610_v19 }
 0x52c   : > { %2590 = vrot.lane.b32.xlu0 %v2587_v2, %s10050_s20  ;;  %2501 = vrot.lane.b32.xlu1 %v2493_v45, %s10041_s29 }
 0x530   : > { %2559 = vrot.lane.b32.xlu1 %v2551_v13, %s10042_s30  ;;  %2416 = vrot.lane.b32.xlu0 %v2413_v5, %s10078_s8 }
 0x534   : > { %2443 = vrot.lane.b32.xlu1 %v2435_v53, %s10079_s5  ;;  %3087 = vrot.lane.b32.xlu0 %v3084_v17, %s10073_s12 }
 0x538   : > { %2995 = vrot.lane.b32.xlu1 %v2987_v31, %s10074_s7  ;;  %2967 = vrot.lane.b32.xlu0 %v3084_v17, %s10076_s10 }
 0x53c   : > { %3055 = vrot.lane.b32.xlu1 %v2987_v31, %s10075_s27  ;;  %3027 = vrot.lane.b32.xlu0 %v3084_v17, %s10077_s9 }
 0x540   : > { %2878 = vrot.lane.b32.xlu1 %v2870_v32, %s10051_s15  ;;  %2851 = vrot.lane.b32.xlu0 %v2848_v33, %s10052_s16 }
 0x544   : > { %2936 = vrot.lane.b32.xlu1 %v2928_v34, %s10053_s17  ;;  %2909 = vrot.lane.b32.xlu0 %v2906_v35, %s10054_s18 }
 0x548   : > { %2762 = vrot.lane.b32.xlu1 %v2754_v1, %s10055_s14  ;;  %2735 = vrot.lane.b32.xlu0 %v2732_v20, %s10045_s11 }
 0x54c   : > { %2820 = vrot.lane.b32.xlu1 %v2812_v37, %s10044_s26  ;;  %2793 = vrot.lane.b32.xlu0 %v2790_v38, %s10046_s24 }
 0x550   : > { %2646 = vrot.lane.b32.xlu1 %v2638_v24, %s10047_s21  ;;  %2619 = vrot.lane.b32.xlu0 %v2616_v40, %s10048_s22 }
 0x554   : > { %2704 = vrot.lane.b32.xlu1 %v2696_v42, %s10039_s25  ;;  %2677 = vrot.lane.b32.xlu0 %v2674_v43, %s10040_s23 }
 0x558   : > { %2530 = vrot.lane.b32.xlu1 %v2522_v12, %s10049_s19  ;;  %2503 = vrot.lane.b32.xlu0 %v2500_v57, %s10041_s29 }
 0x55c   : > { %2588 = vrot.lane.b32.xlu1 %v2580_v8, %s10050_s20  ;;  %2561 = vrot.lane.b32.xlu0 %v2558_v58, %s10042_s30 }
 0x560   : > { %2445 = vrot.lane.b32.xlu0 %v2442_v62, %s10079_s5  ;;  %2414 = vrot.lane.b32.xlu1 %v2406_v28, %s10078_s8 }
 0x564   : > { %2474 = vrot.lane.b32.xlu0 %v2471_v51, %s10056_s0  ;;  %2472 = vrot.lane.b32.xlu1 %v2464_v50, %s10056_s0 }
 0x568   : > { %3126 = vperm.xlu1 %7193, %v6859_v0  }
 0x57a   : > { %v3086_v46 = vpop.permute.xlu1 %3085  ;;  %v2998_v2 = vpop.permute.xlu0 %2997 }
 0x57b   : > { %v3000_v45 = vrot.slane %v2998_v2, 4  ;;  %v3089_v38 = vrot.slane %v3086_v46, 4 }
 0x57d   : > { %v3003_v3 = vsel %vm1019_vm8, %v2998_v2, %v3000_v45 }
 0x57e   : > { %3007 = vst.msk [vmem:[#allocation3 + $0x80] sm:$0xc] %vm422_vm9, %v3003_v3  ;;  %v3058_v61 = vpop.permute.xlu0 %3057  ;;  %v2966_v13 = vpop.permute.xlu1 %2965 }
 0x57f   : > { %v3060_v5 = vrot.slane %v3058_v61, 4  ;;  %v2969_v42 = vrot.slane %v2966_v13, 4 }
 0x581   : > { %v3063_v27 = vsel %vm1081_vm10, %v3058_v61, %v3060_v5 }
 0x582   : > { %3067 = vst.msk [vmem:[#allocation3 + $0x8c] sm:$0xc] %vm422_vm9, %v3063_v27  ;;  %v3026_v52 = vpop.permute.xlu1 %3025  ;;  %v8573_v53 = vpop.permute.xlu0 %2880 }
 0x583   : > { %2889 = vst.msk [vmem:[#allocation3 + $0x68] sm:$0xc] %vm422_vm9, %v8573_v53  ;;  %v3029_v15 = vrot.slane %v3026_v52, 4  ;;  %v2883_v50 = vrot.slane %v8573_v53, 4 }
 0x586   : > { %v8577_v17 = vpop.permute.xlu0 %2938  ;;  %v8579_v30 = vpop.permute.xlu1 %2849 }
 0x587   : > { %2947 = vst.msk [vmem:[#allocation3 + $0x74] sm:$0xc] %vm422_vm9, %v8577_v17  ;;  %v2853_v0 = vrot.slane %v8579_v30, 4 }
 0x58a   : > { %v8583_v31 = vpop.permute.xlu1 %2907  ;;  %v8585_v6 = vpop.permute.xlu0 %2764 }
 0x58b   : > { %2773 = vst.msk [vmem:[#allocation3 + $0x50] sm:$0xc] %vm422_vm9, %v8585_v6 }
 0x58e   : > { %v8589_v25 = vpop.permute.xlu0 %2822  ;;  %v8591_v32 = vpop.permute.xlu1 %2733 }
 0x58f   : > { %2831 = vst.msk [vmem:[#allocation3 + $0x5c] sm:$0xc] %vm422_vm9, %v8589_v25 }
 0x592   : > { %v8595_v33 = vpop.permute.xlu1 %2791  ;;  %v8597_v54 = vpop.permute.xlu0 %2648 }
 0x593   : > { %2657 = vst.msk [vmem:[#allocation3 + $0x38] sm:$0xc] %vm422_vm9, %v8597_v54 }
 0x596   : > { %v8601_v21 = vpop.permute.xlu0 %2706  ;;  %v8603_v34 = vpop.permute.xlu1 %2617 }
 0x597   : > { %2715 = vst.msk [vmem:[#allocation3 + $0x44] sm:$0xc] %vm422_vm9, %v8601_v21 }
 0x59a   : > { %v8607_v35 = vpop.permute.xlu1 %2675  ;;  %v8609_v36 = vpop.permute.xlu0 %2532 }
 0x59b   : > { %2541 = vst.msk [vmem:[#allocation3 + $0x20] sm:$0xc] %vm422_vm9, %v8609_v36 }
 0x59e   : > { %v8613_v16 = vpop.permute.xlu0 %2590  ;;  %v8615_v1 = vpop.permute.xlu1 %2501 }
 0x59f   : > { %2599 = vst.msk [vmem:[#allocation3 + $0x2c] sm:$0xc] %vm422_vm9, %v8613_v16 }
 0x5a2   : > { %v8619_v20 = vpop.permute.xlu1 %2559  ;;  %v8621_v48 = vpop.permute.xlu0 %2416 }
 0x5a3   : > { %2425 = vst.msk [vmem:[#allocation3 + $0x8] sm:$0xc] %vm422_vm9, %v8621_v48 }
 0x5a6   : > { %v8625_v47 = vpop.permute.xlu1 %2443  ;;  %v3088_v37 = vpop.permute.xlu0 %3087 }
 0x5a7   : > { %v3090_v55 = vrot.slane %v3088_v37, 4 }
 0x5a9   : > { %v3091_v39 = vsel %vm415_vm11, %v3089_v38, %v3090_v55  ;;  %v3093_v24 = vsel %vm10026_vm12, %v3088_v37, %v3090_v55 }
 0x5aa   : > { %v3092_v40 = vsel %vm10026_vm12, %v3086_v46, %v3091_v39  ;;  %3097 = vst.msk [vmem:[#allocation3 + $0x98] sm:$0x3] %vm390_vm6, %v3093_v24  ;;  %v2996_v7 = vpop.permute.xlu1 %2995  ;;  %v2968_v41 = vpop.permute.xlu0 %2967  ;;  %vm10082_vm12 = vcmask 375808  }
 0x5ab   : > { %3096 = vst [vmem:[#allocation3 + $0x90] sm:$0x33] %v3092_v40  ;;  %v2999_v43 = vrot.slane %v2996_v7, 4  ;;  %v2970_v18 = vrot.slane %v2968_v41, 4 }
 0x5ad   : > { %v3001_v44 = vsel %vm415_vm11, %v2999_v43, %v3000_v45  ;;  %v2971_v12 = vsel %vm415_vm11, %v2969_v42, %v2970_v18  ;;  %v2973_v57 = vsel %vm10080_vm13, %v2968_v41, %v2970_v18  ;;  %vm10083_vm13 = vmmov %vm10082_vm12  ;;  %v2941_v41 = vrot.slane %v8577_v17, 4 }
 0x5ae   : > { %v3002_v49 = vsel %vm1019_vm8, %v2996_v7, %v3001_v44  ;;  %v2972_v56 = vsel %vm10081_vm14, %v2966_v13, %v2971_v12  ;;  %2977 = vst.msk [vmem:[#allocation3 + $0x80] sm:$0x3] %vm390_vm6, %v2973_v57  ;;  %v3056_v8 = vpop.permute.xlu1 %3055  ;;  %v3028_v58 = vpop.permute.xlu0 %3027  ;;  %vm10085_vm14 = vcmask 547840   ;;  %v2911_v42 = vrot.slane %v8583_v31, 4 }
 0x5af   : > { %3006 = vst [vmem:[#allocation3 + $0x78] sm:$0xcc] %v3002_v49  ;;  %2976 = vst [vmem:[#allocation3 + $0x78] sm:$0x33] %v2972_v56  ;;  %v3059_v59 = vrot.slane %v3056_v8, 4  ;;  %v3030_v60 = vrot.slane %v3028_v58, 4 }
 0x5b1   : > { %v3061_v62 = vsel %vm415_vm11, %v3059_v59, %v3060_v5  ;;  %v3031_v28 = vsel %vm415_vm11, %v3029_v15, %v3030_v60  ;;  %v3033_v63 = vsel %vm10082_vm12, %v3028_v58, %v3030_v60  ;;  %v7298_v51 = vld [vmem:[#allocation3 + $0x98] ss:$0 sps:$4 sm:$0x33]   ;;  %vm10084_vm12 = vcmask 539648  }
 0x5b2   : > { %v3062_v46 = vsel %vm1081_vm10, %v3056_v8, %v3061_v62  ;;  %v3032_v2 = vsel %vm10083_vm13, %v3026_v52, %v3031_v28  ;;  %3037 = vst.msk [vmem:[#allocation3 + $0x8c] sm:$0x3] %vm390_vm6, %v3033_v63  ;;  %v2879_v45 = vpop.permute.xlu1 %2878  ;;  %v2852_v3 = vpop.permute.xlu0 %2851  ;;  %v3122_v61 = vld [vmem:[#allocation3 + $0x90] sm:$0x33]  ;;  %v3243_v53 = vsel %vm1258_vm0, %v7298_v51, 0  ;;  %vm10086_vm13 = vcmask 523264  }
 0x5b3   : > { %3066 = vst [vmem:[#allocation3 + $0x84] sm:$0xcc] %v3062_v46  ;;  %3036 = vst [vmem:[#allocation3 + $0x84] sm:$0x33] %v3032_v2  ;;  %v2882_v13 = vrot.slane %v2879_v45, 4  ;;  %v2854_v5 = vrot.slane %v2852_v3, 4  ;;  %v6880_v27 = vcombine.high %v3122_v61, %v3122_v61  ;;  %7073 = vmatpush3.bf16.msra.mxu1 %v3243_v53  ;;  %v6879_v37 = vcombine.low %v3122_v61, %v3122_v61 }
 0x5b4   : > { %2860 = vst.msk [vmem:[#allocation3 + $0x68] sm:$0x3] %vm390_vm6, %v2852_v3  ;;  %7074 = vmatprep.subr.bf16.mxu1 %v7528_v14  ;;  %v2767_v15 = vrot.slane %v8585_v6, 4  ;;  %v2737_v59 = vrot.slane %v8591_v32, 4  ;;  %v2825_v46 = vrot.slane %v8589_v25, 4  ;;  %v2795_v2 = vrot.slane %v8595_v33, 4 }
 0x5b5   : > { %v2884_v38 = vsel %vm415_vm11, %v2882_v13, %v2883_v50  ;;  %v2855_v52 = vsel %vm415_vm11, %v2853_v0, %v2854_v5  ;;  %6882 = vmatprep.subr.msk.bf16.mxu0 %vm1258_vm0, %v6880_v27  ;;  %v3237_v40 = vsel %vm1258_vm0, %v6879_v37, 0 }
 0x5b6   : > { %v2885_v55 = vsel %vm10084_vm12, %v2879_v45, %v2884_v38  ;;  %v2856_v39 = vsel %vm10085_vm14, %v8579_v30, %v2855_v52  ;;  %v2937_v24 = vpop.permute.xlu1 %2936  ;;  %v2910_v7 = vpop.permute.xlu0 %2909  ;;  %3248 = vmatpush1.bf16.msra.mxu0 %v3237_v40  ;;  %vm10087_vm12 = vcmask 531456   ;;  %vm10088_vm14 = vcmask 695296  }
 0x5b7   : > { %2888 = vst [vmem:[#allocation3 + $0x60] sm:$0xcc] %v2885_v55  ;;  %2859 = vst [vmem:[#allocation3 + $0x60] sm:$0x33] %v2856_v39  ;;  %v2940_v43 = vrot.slane %v2937_v24, 4  ;;  %v2912_v18 = vrot.slane %v2910_v7, 4 }
 0x5b8   : > { %2918 = vst.msk [vmem:[#allocation3 + $0x74] sm:$0x3] %vm390_vm6, %v2910_v7  ;;  %v2651_v38 = vrot.slane %v8597_v54, 4  ;;  %v2621_v52 = vrot.slane %v8603_v34, 4 }
 0x5b9   : > { %v2942_v44 = vsel %vm415_vm11, %v2940_v43, %v2941_v41  ;;  %v2913_v12 = vsel %vm415_vm11, %v2911_v42, %v2912_v18  ;;  %v7300_v30 = vld [vmem:[#allocation3 + $0x80] ss:$12 sps:$4 sm:$0xff]   ;;  %v2709_v43 = vrot.slane %v8601_v21, 4  ;;  %v2679_v18 = vrot.slane %v8607_v35, 4 }
 0x5ba   : > { %v2943_v57 = vsel %vm10086_vm13, %v2937_v24, %v2942_v44  ;;  %v2914_v49 = vsel %vm10087_vm12, %v8583_v31, %v2913_v12  ;;  %v2763_v17 = vpop.permute.xlu1 %2762  ;;  %v2736_v56 = vpop.permute.xlu0 %2735  ;;  %v7301_v8 = vld [vmem:[#allocation3 + $0x7c] ss:$12 sps:$4 sm:$0xff]   ;;  %v7303_v58 = vld [vmem:[#allocation3 + $0x78] ss:$12 sps:$4 sm:$0xff]   ;;  %7075 = vmatpush3.bf16.msra.mxu1 %v7300_v30  ;;  %vm10089_vm13 = vcmask 703488   ;;  %vm10090_vm12 = vcmask 556032  }
 0x5bb   : > { %2946 = vst [vmem:[#allocation3 + $0x6c] sm:$0xcc] %v2943_v57  ;;  %2917 = vst [vmem:[#allocation3 + $0x6c] sm:$0x33] %v2914_v49  ;;  %v2766_v60 = vrot.slane %v2763_v17, 4  ;;  %v2738_v62 = vrot.slane %v2736_v56, 4  ;;  %3249 = vmatprep.subr.bf16.mxu0 %v7301_v8  ;;  %7076 = vmatprep.subr.bf16.mxu1 %v7528_v14 }
 0x5bc   : > { %2744 = vst.msk [vmem:[#allocation3 + $0x50] sm:$0x3] %vm390_vm6, %v2736_v56  ;;  %3250 = vmatpush1.bf16.msra.mxu0 %v7303_v58  ;;  %v2535_v58 = vrot.slane %v8609_v36, 4 }
 0x5bd   : > { %v2768_v31 = vsel %vm415_vm11, %v2766_v60, %v2767_v15  ;;  %v2739_v28 = vsel %vm415_vm11, %v2737_v59, %v2738_v62  ;;  %v2505_v15 = vrot.slane %v8615_v1, 4 }
 0x5be   : > { %v2769_v63 = vsel %vm10088_vm14, %v2763_v17, %v2768_v31  ;;  %v2740_v6 = vsel %vm10089_vm13, %v8591_v32, %v2739_v28  ;;  %v2821_v51 = vpop.permute.xlu1 %2820  ;;  %v2794_v50 = vpop.permute.xlu0 %2793  ;;  %vm10091_vm14 = vcmask 687104   ;;  %vm10092_vm13 = vcmask 850944  }
 0x5bf   : > { %v7304_v0 = vld [vmem:[#allocation3 + $0x68] ss:$12 sps:$4 sm:$0xff]   ;;  %2772 = vst [vmem:[#allocation3 + $0x48] sm:$0xcc] %v2769_v63  ;;  %2743 = vst [vmem:[#allocation3 + $0x48] sm:$0x33] %v2740_v6 }
 0x5c0   : > { %v2824_v45 = vrot.slane %v2821_v51, 4  ;;  %v2796_v3 = vrot.slane %v2794_v50, 4  ;;  %2802 = vst.msk [vmem:[#allocation3 + $0x5c] sm:$0x3] %vm390_vm6, %v2794_v50  ;;  %7077 = vmatpush3.bf16.msra.mxu1 %v7304_v0  ;;  %v2563_v50 = vrot.slane %v8619_v20, 4 }
 0x5c1   : > { %7078 = vmatprep.subr.bf16.mxu1 %v7528_v14 }
 0x5c2   : > { %v2826_v61 = vsel %vm415_vm11, %v2824_v45, %v2825_v46  ;;  %v2797_v13 = vsel %vm415_vm11, %v2795_v2, %v2796_v3  ;;  %v2647_v5 = vpop.permute.xlu1 %2646  ;;  %v2620_v27 = vpop.permute.xlu0 %2619  ;;  %v7305_v53 = vld [vmem:[#allocation3 + $0x64] ss:$12 sps:$4 sm:$0xff]   ;;  %v7307_v37 = vld [vmem:[#allocation3 + $0x60] ss:$12 sps:$4 sm:$0xff]  }
 0x5c3   : > { %v2827_v32 = vsel %vm10090_vm12, %v2821_v51, %v2826_v61  ;;  %v2798_v25 = vsel %vm10091_vm14, %v8595_v33, %v2797_v13  ;;  %v2650_v55 = vrot.slane %v2647_v5, 4  ;;  %v2622_v39 = vrot.slane %v2620_v27, 4  ;;  %2628 = vst.msk [vmem:[#allocation3 + $0x38] sm:$0x3] %vm390_vm6, %v2620_v27  ;;  %3251 = vmatprep.subr.bf16.mxu0 %v7305_v53 }
 0x5c4   : > { %2830 = vst [vmem:[#allocation3 + $0x54] sm:$0xcc] %v2827_v32  ;;  %2801 = vst [vmem:[#allocation3 + $0x54] sm:$0x33] %v2798_v25  ;;  %3252 = vmatpush1.bf16.msra.mxu0 %v7307_v37  ;;  %vm10093_vm12 = vcmask 859136   ;;  %vm10094_vm14 = vcmask 711680  }
 0x5c5   : > { %v2652_v24 = vsel %vm415_vm11, %v2650_v55, %v2651_v38  ;;  %v2623_v40 = vsel %vm415_vm11, %v2621_v52, %v2622_v39  ;;  %v2593_v51 = vrot.slane %v8613_v16, 4  ;;  %v2419_v25 = vrot.slane %v8621_v48, 4 }
 0x5c6   : > { %v2653_v33 = vsel %vm10092_vm13, %v2647_v5, %v2652_v24  ;;  %v2624_v7 = vsel %vm10093_vm12, %v8603_v34, %v2623_v40  ;;  %v2705_v54 = vpop.permute.xlu1 %2704  ;;  %v2678_v41 = vpop.permute.xlu0 %2677  ;;  %vm10095_vm13 = vcmask 719872   ;;  %vm10096_vm12 = vcmask 883712  }
 0x5c7   : > { %v7308_v42 = vld [vmem:[#allocation3 + $0x50] ss:$12 sps:$4 sm:$0xff]   ;;  %2656 = vst [vmem:[#allocation3 + $0x30] sm:$0xcc] %v2653_v33  ;;  %2627 = vst [vmem:[#allocation3 + $0x30] sm:$0x33] %v2624_v7 }
 0x5c8   : > { %v2708_v44 = vrot.slane %v2705_v54, 4  ;;  %v2680_v12 = vrot.slane %v2678_v41, 4  ;;  %2686 = vst.msk [vmem:[#allocation3 + $0x44] sm:$0x3] %vm390_vm6, %v2678_v41  ;;  %7079 = vmatpush3.bf16.msra.mxu1 %v7308_v42  ;;  %v2447_v5 = vrot.slane %v8625_v47, 4 }
 0x5c9   : > { %7080 = vmatprep.subr.bf16.mxu1 %v7528_v14  ;;  %v6858_v42 = vld [vmem:[%s9948_s1 + $0x2] sm:$0x3] }
 0x5ca   : > { %v2710_v30 = vsel %vm415_vm11, %v2708_v44, %v2709_v43  ;;  %v2681_v57 = vsel %vm415_vm11, %v2679_v18, %v2680_v12  ;;  %v2531_v49 = vpop.permute.xlu1 %2530  ;;  %v2504_v17 = vpop.permute.xlu0 %2503 }
 0x5cb   : > { %v2711_v34 = vsel %vm10094_vm14, %v2705_v54, %v2710_v30  ;;  %v2682_v21 = vsel %vm10095_vm13, %v8607_v35, %v2681_v57  ;;  %v7309_v56 = vld [vmem:[#allocation3 + $0x4c] ss:$12 sps:$4 sm:$0xff]   ;;  %v7311_v8 = vld [vmem:[#allocation3 + $0x48] ss:$12 sps:$4 sm:$0xff]   ;;  %v2534_v59 = vrot.slane %v2531_v49, 4  ;;  %v2506_v60 = vrot.slane %v2504_v17, 4 }
 0x5cc   : > { %2714 = vst [vmem:[#allocation3 + $0x3c] sm:$0xcc] %v2711_v34  ;;  %2685 = vst [vmem:[#allocation3 + $0x3c] sm:$0x33] %v2682_v21  ;;  %3253 = vmatprep.subr.bf16.mxu0 %v7309_v56  ;;  %vm10097_vm14 = vcmask 1014784   ;;  %vm10098_vm13 = vcmask 875520  }
 0x5cd   : > { %2512 = vst.msk [vmem:[#allocation3 + $0x20] sm:$0x3] %vm390_vm6, %v2504_v17  ;;  %v2536_v62 = vsel %vm415_vm11, %v2534_v59, %v2535_v58  ;;  %v2507_v31 = vsel %vm415_vm11, %v2505_v15, %v2506_v60  ;;  %3254 = vmatpush1.bf16.msra.mxu0 %v7311_v8 }
 0x5ce   : > { %v2537_v35 = vsel %vm10096_vm12, %v2531_v49, %v2536_v62  ;;  %v2508_v28 = vsel %vm10097_vm14, %v8615_v1, %v2507_v31  ;;  %v2589_v36 = vpop.permute.xlu1 %2588  ;;  %v2562_v63 = vpop.permute.xlu0 %2561  ;;  %vm10099_vm12 = vcmask 1039360   ;;  %vm10100_vm14 = vcmask 359424  }
 0x5cf   : > { %v7312_v6 = vld [vmem:[#allocation3 + $0x38] ss:$12 sps:$4 sm:$0xff]   ;;  %2540 = vst [vmem:[#allocation3 + $0x18] sm:$0xcc] %v2537_v35  ;;  %2511 = vst [vmem:[#allocation3 + $0x18] sm:$0x33] %v2508_v28 }
 0x5d0   : > { %v2592_v0 = vrot.slane %v2589_v36, 4  ;;  %v2564_v46 = vrot.slane %v2562_v63, 4  ;;  %2570 = vst.msk [vmem:[#allocation3 + $0x2c] sm:$0x3] %vm390_vm6, %v2562_v63  ;;  %7081 = vmatpush3.bf16.msra.mxu1 %v7312_v6 }
 0x5d1   : > { %7082 = vmatprep.subr.bf16.mxu1 %v7528_v14 }
 0x5d2   : > { %v2594_v2 = vsel %vm415_vm11, %v2592_v0, %v2593_v51  ;;  %v2565_v45 = vsel %vm415_vm11, %v2563_v50, %v2564_v46  ;;  %v2446_v3 = vpop.permute.xlu0 %2445  ;;  %v2415_v61 = vpop.permute.xlu1 %2414 }
 0x5d3   : > { %v2595_v1 = vsel %vm598_vm3, %v2589_v36, %v2594_v2  ;;  %v2566_v16 = vsel %vm10098_vm13, %v8619_v20, %v2565_v45  ;;  %v7313_v13 = vld [vmem:[#allocation3 + $0x34] ss:$12 sps:$4 sm:$0xff]   ;;  %v7315_v32 = vld [vmem:[#allocation3 + $0x30] ss:$12 sps:$4 sm:$0xff]   ;;  %v2448_v27 = vrot.slane %v2446_v3, 4  ;;  %v2418_v53 = vrot.slane %v2415_v61, 4  ;;  %vm10101_vm13 = vmmov %vm10100_vm14 }
 0x5d4   : > { %2598 = vst [vmem:[#allocation3 + $0x24] sm:$0xcc] %v2595_v1  ;;  %2569 = vst [vmem:[#allocation3 + $0x24] sm:$0x33] %v2566_v16  ;;  %3255 = vmatprep.subr.bf16.mxu0 %v7313_v13 }
 0x5d5   : > { %2454 = vst.msk [vmem:[#allocation3 + $0x14] sm:$0x3] %vm390_vm6, %v2446_v3  ;;  %v2449_v37 = vsel %vm415_vm11, %v2447_v5, %v2448_v27  ;;  %v2420_v38 = vsel %vm415_vm11, %v2418_v53, %v2419_v25  ;;  %3256 = vmatpush1.bf16.msra.mxu0 %v7315_v32 }
 0x5d6   : > { %v2450_v20 = vsel %vm448_vm1, %v8625_v47, %v2449_v37  ;;  %v2421_v52 = vsel %vm10099_vm12, %v2415_v61, %v2420_v38  ;;  %v2475_v48 = vpop.permute.xlu0 %2474  ;;  %v2473_v55 = vpop.permute.xlu1 %2472  ;;  %vm10102_vm12 = vcmask 392192  }
 0x5d7   : > { %v7316_v39 = vld [vmem:[#allocation3 + $0x20] ss:$12 sps:$4 sm:$0xff]   ;;  %2453 = vst [vmem:[#allocation3 + $0xc] sm:$0x33] %v2450_v20  ;;  %2424 = vst [vmem:[#allocation3] sm:$0xcc] %v2421_v52 }
 0x5d8   : > { %v2477_v24 = vrot.slane %v2475_v48, 4  ;;  %2483 = vst.msk [vmem:[#allocation3 + $0x14] sm:$0xc] %vm422_vm9, %v2475_v48  ;;  %v2476_v40 = vrot.slane %v2473_v55, 4  ;;  %7083 = vmatpush3.bf16.msra.mxu1 %v7316_v39 }
 0x5d9   : > { %7084 = vmatprep.subr.bf16.mxu1 %v7528_v14 }
 0x5da   : > { %v2478_v33 = vsel %vm415_vm11, %v2476_v40, %v2477_v24 }
 0x5db   : > { %v2479_v7 = vsel %vm478_vm2, %v2473_v55, %v2478_v33  ;;  %v7317_v54 = vld [vmem:[#allocation3 + $0x1c] ss:$12 sps:$4 sm:$0xff]   ;;  %v7319_v47 = vld [vmem:[#allocation3 + $0x18] ss:$12 sps:$4 sm:$0xff]  }
 0x5dc   : > { %2482 = vst [vmem:[#allocation3 + $0xc] sm:$0xcc] %v2479_v7  ;;  %3257 = vmatprep.subr.bf16.mxu0 %v7317_v54 }
 0x5dd   : > { %3258 = vmatpush1.bf16.msra.mxu0 %v7319_v47 }
 0x5df   : > { %v7321_v41 = vld [vmem:[#allocation3 + $0x8] ss:$12 sps:$4 sm:$0xff]  }
 0x5e0   : > { %7085 = vmatpush3.bf16.msra.mxu1 %v7321_v41 }
 0x5e1   : > { %7090 = vmatprep.subr.bf16.mxu1 %v7528_v14 }
 0x5e3   : > { %v7322_v43 = vld [vmem:[#allocation3 + $0x4] ss:$12 sps:$4 sm:$0xff]   ;;  %v7324_v18 = vld [vmem:[#allocation3] ss:$12 sps:$4 sm:$0xff]   ;;  %7087 = vmatmul.mubr.msk.bf16.vlgmr.msra.gmra.mxu1 %vm1254_vm15, %v6858_v42  ;;  %v3127_v44 = vpop.permute.xlu1 %3126 }
 0x5e4   : > { %3259 = vmatprep.subr.bf16.mxu0 %v7322_v43  ;;  %7104 = vmatprep.mubr.msk.bf16.mxu1 %vm7529_vm7, %v7528_v14 }
 0x5e5   : > { %3260 = vmatpush1.bf16.msra.mxu0 %v7324_v18 }
 0x5e8   : > { %6883 = vmatmul.mubr.msk.bf16.vlgmr.msra.gmra.mxu0 %vm1254_vm15, %v6858_v42 }
 0x5e9   : > { %4265 = vmatprep.mubr.bf16.mxu0 %v7503_v4 }
 0x6a3   : > { %v3320_v12 = vpop.f32.mrf.mxu1 }
 0x6a4   : > { %v3321_v30 = vadd.f32 %v3320_v12, %v3127_v44 }
 0x6a5   : > { %v7088_v57 = vpop.f32.mrf.mxu1 }
 0x6a6   : > { %v3328_v34 = vmax.f32 %v3321_v30, 0.0 }
 0x6a7   : > { %v3323_v21 = vpop.f32.mrf.mxu1 }
 0x6a8   : > { %v3279_v49 = vpop.f32.mrf.mxu0  ;;  %v3331_v58 = vmul.f32 %v3328_v34, %v7603_v11 }
 0x6a9   : > { %v3280_v17 = vadd.f32 %v3279_v49, %v3127_v44  ;;  %v7089_v56 = vpop.f32.mrf.mxu1 }
 0x6aa   : > { %v3281_v8 = vpop.f32.mrf.mxu0  ;;  %v3334_v35 = vpack.c.bf16 %v3331_v58, %v3331_v58 }
 0x6ab   : > { %v3326_v15 = vmax.f32 %v3280_v17, 0.0  ;;  %v3282_v59 = vadd.f32 %v3281_v8, %v3127_v44 }
 0x6ac   : > { %v3283_v60 = vpop.f32.mrf.mxu0  ;;  %v3352_v6 = vrot.slane %v3334_v35, %v7610_v19 }
 0x6ad   : > { %v3327_v62 = vmax.f32 %v3282_v59, 0.0  ;;  %v3329_v28 = vmul.f32 %v3326_v15, %v7599_v9 }
 0x6ae   : > { %v3284_v31 = vpop.f32.mrf.mxu0 }
 0x6af   : > { %v3330_v36 = vmul.f32 %v3327_v62, %v7601_v10 }
 0x6b1   : > { %v6885_v63 = vpack.c.bf16 %v3330_v36, %v3329_v28 }
 0x6b3   : > { %v3345_v51 = vrot.slane %v6885_v63, %v7610_v19 }
 0x6b5   : > { %v3353_v50 = vcombine.low %v3345_v51, %v3352_v6 }
 0x6b7   : > { %3354 = vrot.lane.b32.xlu0 %v3353_v50, %s10043_s13 }
 0x729   : > { %v3355_v0 = vpop.permute.xlu0 %3354 }
 0x72a   : > { %v3356_v46 = vrot.slane %v3355_v0, 6 }
 0x72c   : > { %v3357_v2 = vsel %vm10027_vm4, %v3356_v46, %v3355_v0  ;;  %vm10103_vm4 = vmmov %vm10102_vm12 }
 0x72d   : > { %3359 = vst.msk [vmem:[#allocation2] sm:$0x3f] %vm7615_vm5, %v3357_v2 }
 0x734   : > { %v8745_v45 = vld [vmem:[#allocation2] sm:$0xff] }
 0x735   : > { %v4065_v1 = vrot.slane %v8745_v45, %v7610_v19  ;;  %v8751_v16 = vld [vmem:[#allocation2] sm:$0x3f]  ;;  %v4058_v15 = vcombine.high %v8745_v45, %v8745_v45  ;;  %v3968_v31 = vcombine.low %v8745_v45, %v8745_v45 }
 0x736   : > { %v3364_v3 = vld [vmem:[#allocation2] sm:$0x3f]  ;;  %v3865_v61 = vrot.slane %v8751_v16, %v7610_v19  ;;  %v3851_v28 = vcombine.low %v8751_v16, %v8751_v16 }
 0x737   : > { %4073 = vrot.lane.b32.xlu1 %v4065_v1, %s10073_s12  ;;  %3985 = vrot.lane.b32.xlu0 %v4065_v1, %s10074_s7  ;;  %6888 = vst.sshfl [vmem:[#allocation3] sm:$0xf pattern:$0x76325410] %v3364_v3  ;;  %v8757_v13 = vld [vmem:[#allocation2] sm:$0x3f]  ;;  %v3366_v20 = vcombine.high %v3364_v3, %v3364_v3  ;;  %v4072_v62 = vrot.slane %v4058_v15, %v7610_v19 }
 0x738   : > { %v8759_v32 = vld [vmem:[#allocation2] sm:$0x3f]  ;;  %v3923_v25 = vrot.slane %v8757_v13, %v7610_v19  ;;  %v3975_v35 = vrot.slane %v3968_v31, %v7610_v19  ;;  %v3858_v63 = vrot.slane %v3851_v28, %v7610_v19  ;;  %v3909_v51 = vcombine.low %v8757_v13, %v8757_v13 }
 0x739   : > { %v3829_v5 = vrot.slane %v8759_v32, %v7610_v19  ;;  %v8767_v27 = vld [vmem:[#allocation2] sm:$0x3f]  ;;  %v3380_v55 = vrot.slane %v3366_v20, %v7610_v19  ;;  %v3822_v36 = vcombine.high %v8759_v32, %v8759_v32 }
 0x73a   : > { %v8769_v53 = vld [vmem:[#allocation2] sm:$0x3f]  ;;  %v3887_v37 = vrot.slane %v8767_v27, %v7610_v19  ;;  %v3880_v50 = vcombine.high %v8767_v27, %v8767_v27  ;;  %v3916_v0 = vrot.slane %v3909_v51, %v7610_v19 }
 0x73b   : > { %4045 = vrot.lane.b32.xlu0 %v4065_v1, %s10075_s27  ;;  %3953 = vrot.lane.b32.xlu1 %v4065_v1, %s10076_s10  ;;  %v3749_v38 = vrot.slane %v8769_v53, %v7610_v19  ;;  %v8777_v52 = vld [vmem:[#allocation2] sm:$0x3f]  ;;  %3384 = vst.msk [vmem:[#allocation3 + $0x8] sm:$0x3] %vm390_vm6, %v3380_v55  ;;  %v3836_v6 = vrot.slane %v3822_v36, %v7610_v19 }
 0x73c   : > { %v8779_v48 = vld [vmem:[#allocation2] sm:$0x3f]  ;;  %v3807_v39 = vrot.slane %v8777_v52, %v7610_v19  ;;  %v3894_v46 = vrot.slane %v3880_v50, %v7610_v19  ;;  %v3735_v2 = vcombine.low %v8769_v53, %v8769_v53  ;;  %v3793_v3 = vcombine.low %v8777_v52, %v8777_v52 }
 0x73d   : > { %v3713_v24 = vrot.slane %v8779_v48, %v7610_v19  ;;  %v8789_v40 = vld [vmem:[#allocation2] sm:$0x3f]  ;;  %v3706_v45 = vcombine.high %v8779_v48, %v8779_v48 }
 0x73e   : > { %v8791_v33 = vld [vmem:[#allocation2] sm:$0x3f]  ;;  %v3771_v7 = vrot.slane %v8789_v40, %v7610_v19  ;;  %v3800_v13 = vrot.slane %v3793_v3, %v7610_v19 }
 0x73f   : > { %4013 = vrot.lane.b32.xlu1 %v4065_v1, %s10077_s9  ;;  %3868 = vrot.lane.b32.xlu0 %v3865_v61, %s10051_s15  ;;  %v3633_v54 = vrot.slane %v8791_v33, %v7610_v19  ;;  %v8799_v47 = vld [vmem:[#allocation2] sm:$0x3f]  ;;  %v3742_v1 = vrot.slane %v3735_v2, %v7610_v19  ;;  %v3720_v16 = vrot.slane %v3706_v45, %v7610_v19 }
 0x740   : > { %v8801_v41 = vld [vmem:[#allocation2] sm:$0x3f]  ;;  %v3691_v42 = vrot.slane %v8799_v47, %v7610_v19  ;;  %v3764_v61 = vcombine.high %v8789_v40, %v8789_v40 }
 0x741   : > { %v3597_v43 = vrot.slane %v8801_v41, %v7610_v19  ;;  %v8809_v18 = vld [vmem:[#allocation2] sm:$0x3f] }
 0x742   : > { %v8811_v44 = vld [vmem:[#allocation2] sm:$0x3f]  ;;  %v3655_v12 = vrot.slane %v8809_v18, %v7610_v19  ;;  %v3778_v32 = vrot.slane %v3764_v61, %v7610_v19 }
 0x743   : > { %3926 = vrot.lane.b32.xlu0 %v3923_v25, %s10053_s17  ;;  %3837 = vrot.lane.b32.xlu1 %v3829_v5, %s10052_s16  ;;  %v3517_v30 = vrot.slane %v8811_v44, %v7610_v19  ;;  %v8819_v57 = vld [vmem:[#allocation2] sm:$0x3f]  ;;  %v3619_v25 = vcombine.low %v8791_v33, %v8791_v33  ;;  %v3590_v5 = vcombine.high %v8801_v41, %v8801_v41 }
 0x744   : > { %v8821_v34 = vld [vmem:[#allocation2] sm:$0x3f]  ;;  %v3575_v21 = vrot.slane %v8819_v57, %v7610_v19  ;;  %v3503_v48 = vcombine.low %v8811_v44, %v8811_v44  ;;  %v3561_v40 = vcombine.low %v8819_v57, %v8819_v57 }
 0x745   : > { %v3481_v49 = vrot.slane %v8821_v34, %v7610_v19  ;;  %v8829_v17 = vld [vmem:[#allocation2] sm:$0x3f]  ;;  %v3626_v27 = vrot.slane %v3619_v25, %v7610_v19  ;;  %v3604_v53 = vrot.slane %v3590_v5, %v7610_v19  ;;  %v3474_v55 = vcombine.high %v8821_v34, %v8821_v34 }
 0x746   : > { %v8831_v56 = vld [vmem:[#allocation2] sm:$0x3f]  ;;  %v3539_v8 = vrot.slane %v8829_v17, %v7610_v19  ;;  %v3532_v33 = vcombine.high %v8829_v17, %v8829_v17 }
 0x747   : > { %3895 = vrot.lane.b32.xlu1 %v3887_v37, %s10054_s18  ;;  %3752 = vrot.lane.b32.xlu0 %v3749_v38, %s10055_s14  ;;  %v3401_v58 = vrot.slane %v8831_v56, %v7610_v19  ;;  %v8841_v59 = vld [vmem:[#allocation2] sm:$0x3f]  ;;  %v3677_v37 = vcombine.low %v8799_v47, %v8799_v47  ;;  %v3648_v38 = vcombine.high %v8809_v18, %v8809_v18 }
 0x748   : > { %v3423_v60 = vrot.slane %v8841_v59, %v7610_v19  ;;  %v3416_v47 = vcombine.high %v8841_v59, %v8841_v59  ;;  %v3387_v41 = vcombine.low %v8831_v56, %v8831_v56  ;;  %v6887_v57 = vld [vmem:[%s9951_s4 + $0x4] sm:$0xf] }
 0x749   : > { %v3684_v20 = vrot.slane %v3677_v37, %v7610_v19  ;;  %v3662_v52 = vrot.slane %v3648_v38, %v7610_v19 }
 0x74a   : > { %v3394_v18 = vrot.slane %v3387_v41, %v7610_v19 }
 0x74b   : > { %3810 = vrot.lane.b32.xlu0 %v3807_v39, %s10044_s26  ;;  %3721 = vrot.lane.b32.xlu1 %v3713_v24, %s10045_s11  ;;  %v3510_v39 = vrot.slane %v3503_v48, %v7610_v19  ;;  %v3488_v24 = vrot.slane %v3474_v55, %v7610_v19 }
 0x74f   : > { %3779 = vrot.lane.b32.xlu1 %v3771_v7, %s10046_s24  ;;  %3636 = vrot.lane.b32.xlu0 %v3633_v54, %s10047_s21  ;;  %v3568_v7 = vrot.slane %v3561_v40, %v7610_v19  ;;  %v3546_v54 = vrot.slane %v3532_v33, %v7610_v19 }
 0x753   : > { %3694 = vrot.lane.b32.xlu0 %v3691_v42, %s10039_s25  ;;  %3605 = vrot.lane.b32.xlu1 %v3597_v43, %s10048_s22  ;;  %v3443_v42 = vld [vmem:[#allocation2] sm:$0x3f]  ;;  %v3430_v43 = vrot.slane %v3416_v47, %v7610_v19 }
 0x754   : > { %v3445_v44 = vcombine.low %v3443_v42, %v3443_v42 }
 0x757   : > { %3663 = vrot.lane.b32.xlu1 %v3655_v12, %s10040_s23  ;;  %3520 = vrot.lane.b32.xlu0 %v3517_v30, %s10049_s19  ;;  %v3459_v12 = vrot.slane %v3443_v42, %v7610_v19  ;;  %v3452_v30 = vrot.slane %v3445_v44, %v7610_v19 }
 0x75b   : > { %3578 = vrot.lane.b32.xlu0 %v3575_v21, %s10050_s20  ;;  %3489 = vrot.lane.b32.xlu1 %v3481_v49, %s10041_s29 }
 0x75f   : > { %3547 = vrot.lane.b32.xlu1 %v3539_v8, %s10042_s30  ;;  %3404 = vrot.lane.b32.xlu0 %v3401_v58, %s10078_s8 }
 0x763   : > { %3431 = vrot.lane.b32.xlu1 %v3423_v60, %s10079_s5  ;;  %4075 = vrot.lane.b32.xlu0 %v4072_v62, %s10073_s12 }
 0x767   : > { %3983 = vrot.lane.b32.xlu1 %v3975_v35, %s10074_s7  ;;  %3955 = vrot.lane.b32.xlu0 %v4072_v62, %s10076_s10 }
 0x76b   : > { %4043 = vrot.lane.b32.xlu1 %v3975_v35, %s10075_s27  ;;  %4015 = vrot.lane.b32.xlu0 %v4072_v62, %s10077_s9 }
 0x76f   : > { %3866 = vrot.lane.b32.xlu1 %v3858_v63, %s10051_s15  ;;  %3839 = vrot.lane.b32.xlu0 %v3836_v6, %s10052_s16 }
 0x773   : > { %3924 = vrot.lane.b32.xlu1 %v3916_v0, %s10053_s17  ;;  %3897 = vrot.lane.b32.xlu0 %v3894_v46, %s10054_s18 }
 0x777   : > { %3750 = vrot.lane.b32.xlu1 %v3742_v1, %s10055_s14  ;;  %3723 = vrot.lane.b32.xlu0 %v3720_v16, %s10045_s11 }
 0x77b   : > { %3808 = vrot.lane.b32.xlu1 %v3800_v13, %s10044_s26  ;;  %3781 = vrot.lane.b32.xlu0 %v3778_v32, %s10046_s24 }
 0x77f   : > { %3634 = vrot.lane.b32.xlu1 %v3626_v27, %s10047_s21  ;;  %3607 = vrot.lane.b32.xlu0 %v3604_v53, %s10048_s22 }
 0x783   : > { %3692 = vrot.lane.b32.xlu1 %v3684_v20, %s10039_s25  ;;  %3665 = vrot.lane.b32.xlu0 %v3662_v52, %s10040_s23 }
 0x787   : > { %3518 = vrot.lane.b32.xlu1 %v3510_v39, %s10049_s19  ;;  %3491 = vrot.lane.b32.xlu0 %v3488_v24, %s10041_s29 }
 0x78b   : > { %3576 = vrot.lane.b32.xlu1 %v3568_v7, %s10050_s20  ;;  %3549 = vrot.lane.b32.xlu0 %v3546_v54, %s10042_s30 }
 0x78f   : > { %3433 = vrot.lane.b32.xlu0 %v3430_v43, %s10079_s5  ;;  %3402 = vrot.lane.b32.xlu1 %v3394_v18, %s10078_s8 }
 0x793   : > { %3462 = vrot.lane.b32.xlu0 %v3459_v12, %s10056_s0  ;;  %3460 = vrot.lane.b32.xlu1 %v3452_v30, %s10056_s0 }
 0x797   : > { %4114 = vperm.xlu1 %7193, %v6887_v57  }
 0x7a9   : > { %v4074_v34 = vpop.permute.xlu1 %4073  ;;  %v3986_v21 = vpop.permute.xlu0 %3985 }
 0x7aa   : > { %v3988_v49 = vrot.slane %v3986_v21, 4  ;;  %v4077_v32 = vrot.slane %v4074_v34, 4 }
 0x7ac   : > { %v3991_v17 = vsel %vm1019_vm8, %v3986_v21, %v3988_v49 }
 0x7ad   : > { %3995 = vst.msk [vmem:[#allocation3 + $0x80] sm:$0xc] %vm422_vm9, %v3991_v17  ;;  %v4046_v56 = vpop.permute.xlu0 %4045  ;;  %v3954_v8 = vpop.permute.xlu1 %3953 }
 0x7ae   : > { %v4048_v58 = vrot.slane %v4046_v56, 4  ;;  %v3957_v20 = vrot.slane %v3954_v8, 4 }
 0x7b0   : > { %v4051_v15 = vsel %vm1081_vm10, %v4046_v56, %v4048_v58 }
 0x7b1   : > { %4055 = vst.msk [vmem:[#allocation3 + $0x8c] sm:$0xc] %vm422_vm9, %v4051_v15  ;;  %v4014_v59 = vpop.permute.xlu1 %4013  ;;  %v8940_v60 = vpop.permute.xlu0 %3868 }
 0x7b2   : > { %3877 = vst.msk [vmem:[#allocation3 + $0x68] sm:$0xc] %vm422_vm9, %v8940_v60  ;;  %v4017_v47 = vrot.slane %v4014_v59, 4  ;;  %v3871_v30 = vrot.slane %v8940_v60, 4 }
 0x7b5   : > { %v8944_v62 = vpop.permute.xlu0 %3926  ;;  %v8946_v31 = vpop.permute.xlu1 %3837 }
 0x7b6   : > { %3935 = vst.msk [vmem:[#allocation3 + $0x74] sm:$0xc] %vm422_vm9, %v8944_v62  ;;  %v3841_v57 = vrot.slane %v8946_v31, 4 }
 0x7b9   : > { %v8950_v35 = vpop.permute.xlu1 %3895  ;;  %v8952_v28 = vpop.permute.xlu0 %3752 }
 0x7ba   : > { %3761 = vst.msk [vmem:[#allocation3 + $0x50] sm:$0xc] %vm422_vm9, %v8952_v28 }
 0x7bd   : > { %v8956_v36 = vpop.permute.xlu0 %3810  ;;  %v8958_v63 = vpop.permute.xlu1 %3721 }
 0x7be   : > { %3819 = vst.msk [vmem:[#allocation3 + $0x5c] sm:$0xc] %vm422_vm9, %v8956_v36 }
 0x7c1   : > { %v8962_v6 = vpop.permute.xlu1 %3779  ;;  %v8964_v51 = vpop.permute.xlu0 %3636 }
 0x7c2   : > { %3645 = vst.msk [vmem:[#allocation3 + $0x38] sm:$0xc] %vm422_vm9, %v8964_v51 }
 0x7c5   : > { %v8968_v50 = vpop.permute.xlu0 %3694  ;;  %v8970_v0 = vpop.permute.xlu1 %3605 }
 0x7c6   : > { %3703 = vst.msk [vmem:[#allocation3 + $0x44] sm:$0xc] %vm422_vm9, %v8968_v50 }
 0x7c9   : > { %v8974_v46 = vpop.permute.xlu1 %3663  ;;  %v8976_v2 = vpop.permute.xlu0 %3520 }
 0x7ca   : > { %3529 = vst.msk [vmem:[#allocation3 + $0x20] sm:$0xc] %vm422_vm9, %v8976_v2 }
 0x7cd   : > { %v8980_v45 = vpop.permute.xlu0 %3578  ;;  %v8982_v1 = vpop.permute.xlu1 %3489 }
 0x7ce   : > { %3587 = vst.msk [vmem:[#allocation3 + $0x2c] sm:$0xc] %vm422_vm9, %v8980_v45 }
 0x7d1   : > { %v8986_v16 = vpop.permute.xlu1 %3547  ;;  %v8988_v3 = vpop.permute.xlu0 %3404 }
 0x7d2   : > { %3413 = vst.msk [vmem:[#allocation3 + $0x8] sm:$0xc] %vm422_vm9, %v8988_v3 }
 0x7d5   : > { %v8992_v61 = vpop.permute.xlu1 %3431  ;;  %v4076_v13 = vpop.permute.xlu0 %4075 }
 0x7d6   : > { %v4078_v25 = vrot.slane %v4076_v13, 4 }
 0x7d8   : > { %v4079_v5 = vsel %vm415_vm11, %v4077_v32, %v4078_v25  ;;  %v4081_v27 = vsel %vm10100_vm14, %v4076_v13, %v4078_v25  ;;  %vm10104_vm14 = vcmask 375808  }
 0x7d9   : > { %v4080_v53 = vsel %vm10101_vm13, %v4074_v34, %v4079_v5  ;;  %4085 = vst.msk [vmem:[#allocation3 + $0x98] sm:$0x3] %vm390_vm6, %v4081_v27  ;;  %v3984_v37 = vpop.permute.xlu1 %3983  ;;  %v3956_v38 = vpop.permute.xlu0 %3955  ;;  %vm10106_vm13 = vcmask 539648  }
 0x7da   : > { %4084 = vst [vmem:[#allocation3 + $0x90] sm:$0x33] %v4080_v53  ;;  %v3987_v52 = vrot.slane %v3984_v37, 4  ;;  %v3958_v48 = vrot.slane %v3956_v38, 4 }
 0x7dc   : > { %v3989_v55 = vsel %vm415_vm11, %v3987_v52, %v3988_v49  ;;  %v3959_v39 = vsel %vm415_vm11, %v3957_v20, %v3958_v48  ;;  %v3961_v24 = vsel %vm10102_vm12, %v3956_v38, %v3958_v48  ;;  %vm10107_vm12 = vcmask 547840  }
 0x7dd   : > { %v3990_v40 = vsel %vm1019_vm8, %v3984_v37, %v3989_v55  ;;  %v3960_v33 = vsel %vm10103_vm4, %v3954_v8, %v3959_v39  ;;  %3965 = vst.msk [vmem:[#allocation3 + $0x80] sm:$0x3] %vm390_vm6, %v3961_v24  ;;  %v4044_v7 = vpop.permute.xlu1 %4043  ;;  %v4016_v54 = vpop.permute.xlu0 %4015  ;;  %vm10105_vm4 = vmmov %vm10104_vm14  ;;  %v3929_v38 = vrot.slane %v8944_v62, 4  ;;  %v3899_v20 = vrot.slane %v8950_v35, 4 }
 0x7de   : > { %3994 = vst [vmem:[#allocation3 + $0x78] sm:$0xcc] %v3990_v40  ;;  %3964 = vst [vmem:[#allocation3 + $0x78] sm:$0x33] %v3960_v33  ;;  %v4047_v41 = vrot.slane %v4044_v7, 4  ;;  %v4018_v42 = vrot.slane %v4016_v54, 4 }
 0x7e0   : > { %v4049_v43 = vsel %vm415_vm11, %v4047_v41, %v4048_v58  ;;  %v4019_v18 = vsel %vm415_vm11, %v4017_v47, %v4018_v42  ;;  %v4021_v44 = vsel %vm10104_vm14, %v4016_v54, %v4018_v42  ;;  %v7347_v12 = vld [vmem:[#allocation3 + $0x98] ss:$0 sps:$4 sm:$0x33]   ;;  %vm10108_vm14 = vcmask 523264  }
 0x7e1   : > { %v4050_v34 = vsel %vm1081_vm10, %v4044_v7, %v4049_v43  ;;  %v4020_v21 = vsel %vm10105_vm4, %v4014_v59, %v4019_v18  ;;  %4025 = vst.msk [vmem:[#allocation3 + $0x8c] sm:$0x3] %vm390_vm6, %v4021_v44  ;;  %v3867_v49 = vpop.permute.xlu1 %3866  ;;  %v3840_v17 = vpop.permute.xlu0 %3839  ;;  %v4110_v56 = vld [vmem:[#allocation3 + $0x90] sm:$0x33]  ;;  %v4231_v60 = vsel %vm1258_vm0, %v7347_v12, 0  ;;  %vm10109_vm4 = vcmask 531456  }
 0x7e2   : > { %4054 = vst [vmem:[#allocation3 + $0x84] sm:$0xcc] %v4050_v34  ;;  %4024 = vst [vmem:[#allocation3 + $0x84] sm:$0x33] %v4020_v21  ;;  %v3870_v8 = vrot.slane %v3867_v49, 4  ;;  %v3842_v58 = vrot.slane %v3840_v17, 4  ;;  %v6908_v15 = vcombine.high %v4110_v56, %v4110_v56  ;;  %7091 = vmatpush3.bf16.msra.mxu1 %v4231_v60  ;;  %v6907_v13 = vcombine.low %v4110_v56, %v4110_v56 }
 0x7e3   : > { %3848 = vst.msk [vmem:[#allocation3 + $0x68] sm:$0x3] %vm390_vm6, %v3840_v17  ;;  %7092 = vmatprep.subr.bf16.mxu1 %v7528_v14  ;;  %v3755_v47 = vrot.slane %v8952_v28, 4  ;;  %v3725_v41 = vrot.slane %v8958_v63, 4  ;;  %v3813_v34 = vrot.slane %v8956_v36, 4  ;;  %v3783_v21 = vrot.slane %v8962_v6, 4 }
 0x7e4   : > { %v3872_v32 = vsel %vm415_vm11, %v3870_v8, %v3871_v30  ;;  %v3843_v59 = vsel %vm415_vm11, %v3841_v57, %v3842_v58  ;;  %6910 = vmatprep.subr.msk.bf16.mxu0 %vm1258_vm0, %v6908_v15  ;;  %v4225_v53 = vsel %vm1258_vm0, %v6907_v13, 0 }
 0x7e5   : > { %v3873_v25 = vsel %vm10106_vm13, %v3867_v49, %v3872_v32  ;;  %v3844_v5 = vsel %vm10107_vm12, %v8946_v31, %v3843_v59  ;;  %v3925_v27 = vpop.permute.xlu1 %3924  ;;  %v3898_v37 = vpop.permute.xlu0 %3897  ;;  %4236 = vmatpush1.bf16.msra.mxu0 %v4225_v53  ;;  %vm10110_vm13 = vcmask 695296   ;;  %vm10111_vm12 = vcmask 703488  }
 0x7e6   : > { %3876 = vst [vmem:[#allocation3 + $0x60] sm:$0xcc] %v3873_v25  ;;  %3847 = vst [vmem:[#allocation3 + $0x60] sm:$0x33] %v3844_v5  ;;  %v3928_v52 = vrot.slane %v3925_v27, 4  ;;  %v3900_v48 = vrot.slane %v3898_v37, 4 }
 0x7e7   : > { %3906 = vst.msk [vmem:[#allocation3 + $0x74] sm:$0x3] %vm390_vm6, %v3898_v37  ;;  %v3639_v32 = vrot.slane %v8964_v51, 4  ;;  %v3609_v59 = vrot.slane %v8970_v0, 4 }
 0x7e8   : > { %v3930_v55 = vsel %vm415_vm11, %v3928_v52, %v3929_v38  ;;  %v3901_v39 = vsel %vm415_vm11, %v3899_v20, %v3900_v48  ;;  %v7349_v31 = vld [vmem:[#allocation3 + $0x80] ss:$12 sps:$4 sm:$0xff]   ;;  %v3697_v52 = vrot.slane %v8968_v50, 4  ;;  %v3667_v48 = vrot.slane %v8974_v46, 4 }
 0x7e9   : > { %v3931_v24 = vsel %vm10108_vm14, %v3925_v27, %v3930_v55  ;;  %v3902_v40 = vsel %vm10109_vm4, %v8950_v35, %v3901_v39  ;;  %v3751_v62 = vpop.permute.xlu1 %3750  ;;  %v3724_v33 = vpop.permute.xlu0 %3723  ;;  %v7350_v7 = vld [vmem:[#allocation3 + $0x7c] ss:$12 sps:$4 sm:$0xff]   ;;  %v7352_v54 = vld [vmem:[#allocation3 + $0x78] ss:$12 sps:$4 sm:$0xff]   ;;  %7093 = vmatpush3.bf16.msra.mxu1 %v7349_v31  ;;  %vm10112_vm14 = vcmask 556032   ;;  %vm10113_vm4 = vcmask 687104  }
 0x7ea   : > { %3934 = vst [vmem:[#allocation3 + $0x6c] sm:$0xcc] %v3931_v24  ;;  %3905 = vst [vmem:[#allocation3 + $0x6c] sm:$0x33] %v3902_v40  ;;  %v3754_v42 = vrot.slane %v3751_v62, 4  ;;  %v3726_v43 = vrot.slane %v3724_v33, 4  ;;  %4237 = vmatprep.subr.bf16.mxu0 %v7350_v7  ;;  %7094 = vmatprep.subr.bf16.mxu1 %v7528_v14 }
 0x7eb   : > { %3732 = vst.msk [vmem:[#allocation3 + $0x50] sm:$0x3] %vm390_vm6, %v3724_v33  ;;  %4238 = vmatpush1.bf16.msra.mxu0 %v7352_v54  ;;  %v3523_v54 = vrot.slane %v8976_v2, 4 }
 0x7ec   : > { %v3756_v35 = vsel %vm415_vm11, %v3754_v42, %v3755_v47  ;;  %v3727_v18 = vsel %vm415_vm11, %v3725_v41, %v3726_v43  ;;  %v3493_v47 = vrot.slane %v8982_v1, 4 }
 0x7ed   : > { %v3757_v44 = vsel %vm10110_vm13, %v3751_v62, %v3756_v35  ;;  %v3728_v28 = vsel %vm10111_vm12, %v8958_v63, %v3727_v18  ;;  %v3809_v12 = vpop.permute.xlu1 %3808  ;;  %v3782_v30 = vpop.permute.xlu0 %3781  ;;  %vm10114_vm13 = vcmask 850944   ;;  %vm10115_vm12 = vcmask 859136  }
 0x7ee   : > { %v7353_v57 = vld [vmem:[#allocation3 + $0x68] ss:$12 sps:$4 sm:$0xff]   ;;  %3760 = vst [vmem:[#allocation3 + $0x48] sm:$0xcc] %v3757_v44  ;;  %3731 = vst [vmem:[#allocation3 + $0x48] sm:$0x33] %v3728_v28 }
 0x7ef   : > { %v3812_v49 = vrot.slane %v3809_v12, 4  ;;  %v3784_v17 = vrot.slane %v3782_v30, 4  ;;  %3790 = vst.msk [vmem:[#allocation3 + $0x5c] sm:$0x3] %vm390_vm6, %v3782_v30  ;;  %7095 = vmatpush3.bf16.msra.mxu1 %v7353_v57  ;;  %v3551_v30 = vrot.slane %v8986_v16, 4 }
 0x7f0   : > { %7096 = vmatprep.subr.bf16.mxu1 %v7528_v14 }
 0x7f1   : > { %v3814_v56 = vsel %vm415_vm11, %v3812_v49, %v3813_v34  ;;  %v3785_v8 = vsel %vm415_vm11, %v3783_v21, %v3784_v17  ;;  %v3635_v58 = vpop.permute.xlu1 %3634  ;;  %v3608_v15 = vpop.permute.xlu0 %3607  ;;  %v7354_v60 = vld [vmem:[#allocation3 + $0x64] ss:$12 sps:$4 sm:$0xff]   ;;  %v7356_v13 = vld [vmem:[#allocation3 + $0x60] ss:$12 sps:$4 sm:$0xff]  }
 0x7f2   : > { %v3815_v63 = vsel %vm10112_vm14, %v3809_v12, %v3814_v56  ;;  %v3786_v36 = vsel %vm10113_vm4, %v8962_v6, %v3785_v8  ;;  %v3638_v25 = vrot.slane %v3635_v58, 4  ;;  %v3610_v5 = vrot.slane %v3608_v15, 4  ;;  %3616 = vst.msk [vmem:[#allocation3 + $0x38] sm:$0x3] %vm390_vm6, %v3608_v15  ;;  %4239 = vmatprep.subr.bf16.mxu0 %v7354_v60 }
 0x7f3   : > { %3818 = vst [vmem:[#allocation3 + $0x54] sm:$0xcc] %v3815_v63  ;;  %3789 = vst [vmem:[#allocation3 + $0x54] sm:$0x33] %v3786_v36  ;;  %4240 = vmatpush1.bf16.msra.mxu0 %v7356_v13  ;;  %vm10116_vm14 = vcmask 711680   ;;  %vm10117_vm4 = vcmask 719872  }
 0x7f4   : > { %v3640_v27 = vsel %vm415_vm11, %v3638_v25, %v3639_v32  ;;  %v3611_v53 = vsel %vm415_vm11, %v3609_v59, %v3610_v5  ;;  %v3581_v12 = vrot.slane %v8980_v45, 4  ;;  %v3407_v36 = vrot.slane %v8988_v3, 4 }
 0x7f5   : > { %v3641_v6 = vsel %vm10114_vm13, %v3635_v58, %v3640_v27  ;;  %v3612_v37 = vsel %vm10115_vm12, %v8970_v0, %v3611_v53  ;;  %v3693_v51 = vpop.permute.xlu1 %3692  ;;  %v3666_v38 = vpop.permute.xlu0 %3665  ;;  %vm10118_vm13 = vcmask 883712   ;;  %vm10119_vm12 = vcmask 1014784  }
 0x7f6   : > { %v7357_v20 = vld [vmem:[#allocation3 + $0x50] ss:$12 sps:$4 sm:$0xff]   ;;  %3644 = vst [vmem:[#allocation3 + $0x30] sm:$0xcc] %v3641_v6  ;;  %3615 = vst [vmem:[#allocation3 + $0x30] sm:$0x33] %v3612_v37 }
 0x7f7   : > { %v3696_v55 = vrot.slane %v3693_v51, 4  ;;  %v3668_v39 = vrot.slane %v3666_v38, 4  ;;  %3674 = vst.msk [vmem:[#allocation3 + $0x44] sm:$0x3] %vm390_vm6, %v3666_v38  ;;  %7097 = vmatpush3.bf16.msra.mxu1 %v7357_v20  ;;  %v3435_v58 = vrot.slane %v8992_v61, 4 }
 0x7f8   : > { %7098 = vmatprep.subr.bf16.mxu1 %v7528_v14  ;;  %v6886_v20 = vld [vmem:[%s9950_s3 + $0x2] sm:$0x3] }
 0x7f9   : > { %v3698_v31 = vsel %vm415_vm11, %v3696_v55, %v3697_v52  ;;  %v3669_v24 = vsel %vm415_vm11, %v3667_v48, %v3668_v39  ;;  %v3519_v40 = vpop.permute.xlu1 %3518  ;;  %v3492_v62 = vpop.permute.xlu0 %3491 }
 0x7fa   : > { %v3699_v0 = vsel %vm10116_vm14, %v3693_v51, %v3698_v31  ;;  %v3670_v50 = vsel %vm10117_vm4, %v8974_v46, %v3669_v24  ;;  %v7358_v33 = vld [vmem:[#allocation3 + $0x4c] ss:$12 sps:$4 sm:$0xff]   ;;  %v7360_v7 = vld [vmem:[#allocation3 + $0x48] ss:$12 sps:$4 sm:$0xff]   ;;  %v3522_v41 = vrot.slane %v3519_v40, 4  ;;  %v3494_v42 = vrot.slane %v3492_v62, 4 }
 0x7fb   : > { %3702 = vst [vmem:[#allocation3 + $0x3c] sm:$0xcc] %v3699_v0  ;;  %3673 = vst [vmem:[#allocation3 + $0x3c] sm:$0x33] %v3670_v50  ;;  %4241 = vmatprep.subr.bf16.mxu0 %v7358_v33  ;;  %vm10120_vm14 = vcmask 875520   ;;  %vm10121_vm4 = vcmask 1039360  }
 0x7fc   : > { %3500 = vst.msk [vmem:[#allocation3 + $0x20] sm:$0x3] %vm390_vm6, %v3492_v62  ;;  %v3524_v43 = vsel %vm415_vm11, %v3522_v41, %v3523_v54  ;;  %v3495_v35 = vsel %vm415_vm11, %v3493_v47, %v3494_v42  ;;  %4242 = vmatpush1.bf16.msra.mxu0 %v7360_v7 }
 0x7fd   : > { %v3525_v46 = vsel %vm10118_vm13, %v3519_v40, %v3524_v43  ;;  %v3496_v18 = vsel %vm10119_vm12, %v8982_v1, %v3495_v35  ;;  %v3577_v2 = vpop.permute.xlu1 %3576  ;;  %v3550_v44 = vpop.permute.xlu0 %3549  ;;  %vm10122_vm13 = vcmask 343040   ;;  %vm10123_vm12 = vcmask 359424  }
 0x7fe   : > { %v7361_v28 = vld [vmem:[#allocation3 + $0x38] ss:$12 sps:$4 sm:$0xff]   ;;  %3528 = vst [vmem:[#allocation3 + $0x18] sm:$0xcc] %v3525_v46  ;;  %3499 = vst [vmem:[#allocation3 + $0x18] sm:$0x33] %v3496_v18 }
 0x7ff   : > { %v3580_v57 = vrot.slane %v3577_v2, 4  ;;  %v3552_v34 = vrot.slane %v3550_v44, 4  ;;  %3558 = vst.msk [vmem:[#allocation3 + $0x2c] sm:$0x3] %vm390_vm6, %v3550_v44  ;;  %7099 = vmatpush3.bf16.msra.mxu1 %v7361_v28 }
 0x800   : > { %7100 = vmatprep.subr.bf16.mxu1 %v7528_v14 }
 0x801   : > { %v3582_v21 = vsel %vm415_vm11, %v3580_v57, %v3581_v12  ;;  %v3553_v49 = vsel %vm415_vm11, %v3551_v30, %v3552_v34  ;;  %v3434_v17 = vpop.permute.xlu0 %3433  ;;  %v3403_v56 = vpop.permute.xlu1 %3402 }
 0x802   : > { %v3583_v1 = vsel %vm598_vm3, %v3577_v2, %v3582_v21  ;;  %v3554_v45 = vsel %vm10120_vm14, %v8986_v16, %v3553_v49  ;;  %v7362_v8 = vld [vmem:[#allocation3 + $0x34] ss:$12 sps:$4 sm:$0xff]   ;;  %v7364_v63 = vld [vmem:[#allocation3 + $0x30] ss:$12 sps:$4 sm:$0xff]   ;;  %v3436_v15 = vrot.slane %v3434_v17, 4  ;;  %v3406_v60 = vrot.slane %v3403_v56, 4  ;;  %vm10124_vm14 = vmmov %vm10123_vm12 }
 0x803   : > { %3586 = vst [vmem:[#allocation3 + $0x24] sm:$0xcc] %v3583_v1  ;;  %3557 = vst [vmem:[#allocation3 + $0x24] sm:$0x33] %v3554_v45  ;;  %4243 = vmatprep.subr.bf16.mxu0 %v7362_v8 }
 0x804   : > { %3442 = vst.msk [vmem:[#allocation3 + $0x14] sm:$0x3] %vm390_vm6, %v3434_v17  ;;  %v3437_v13 = vsel %vm415_vm11, %v3435_v58, %v3436_v15  ;;  %v3408_v32 = vsel %vm415_vm11, %v3406_v60, %v3407_v36  ;;  %4244 = vmatpush1.bf16.msra.mxu0 %v7364_v63 }
 0x805   : > { %v3438_v16 = vsel %vm448_vm1, %v8992_v61, %v3437_v13  ;;  %v3409_v59 = vsel %vm10121_vm4, %v3403_v56, %v3408_v32  ;;  %v3463_v3 = vpop.permute.xlu0 %3462  ;;  %v3461_v25 = vpop.permute.xlu1 %3460  ;;  %vm10125_vm4 = vcmask 392192  }
 0x806   : > { %v7365_v5 = vld [vmem:[#allocation3 + $0x20] ss:$12 sps:$4 sm:$0xff]   ;;  %3441 = vst [vmem:[#allocation3 + $0xc] sm:$0x33] %v3438_v16  ;;  %3412 = vst [vmem:[#allocation3] sm:$0xcc] %v3409_v59 }
 0x807   : > { %v3465_v27 = vrot.slane %v3463_v3, 4  ;;  %3471 = vst.msk [vmem:[#allocation3 + $0x14] sm:$0xc] %vm422_vm9, %v3463_v3  ;;  %v3464_v53 = vrot.slane %v3461_v25, 4  ;;  %7101 = vmatpush3.bf16.msra.mxu1 %v7365_v5 }
 0x808   : > { %7102 = vmatprep.subr.bf16.mxu1 %v7528_v14 }
 0x809   : > { %v3466_v6 = vsel %vm415_vm11, %v3464_v53, %v3465_v27 }
 0x80a   : > { %v3467_v37 = vsel %vm478_vm2, %v3461_v25, %v3466_v6  ;;  %v7366_v51 = vld [vmem:[#allocation3 + $0x1c] ss:$12 sps:$4 sm:$0xff]   ;;  %v7368_v61 = vld [vmem:[#allocation3 + $0x18] ss:$12 sps:$4 sm:$0xff]  }
 0x80b   : > { %3470 = vst [vmem:[#allocation3 + $0xc] sm:$0xcc] %v3467_v37  ;;  %4245 = vmatprep.subr.bf16.mxu0 %v7366_v51 }
 0x80c   : > { %4246 = vmatpush1.bf16.msra.mxu0 %v7368_v61 }
 0x80e   : > { %v7370_v38 = vld [vmem:[#allocation3 + $0x8] ss:$12 sps:$4 sm:$0xff]  }
 0x80f   : > { %7103 = vmatpush3.bf16.msra.mxu1 %v7370_v38 }
 0x810   : > { %7108 = vmatprep.subr.bf16.mxu1 %v7528_v14 }
 0x812   : > { %v7371_v52 = vld [vmem:[#allocation3 + $0x4] ss:$12 sps:$4 sm:$0xff]   ;;  %v7373_v48 = vld [vmem:[#allocation3] ss:$12 sps:$4 sm:$0xff]   ;;  %7105 = vmatmul.mubr.msk.bf16.vlgmr.msra.gmra.mxu1 %vm1254_vm15, %v6886_v20  ;;  %v4115_v55 = vpop.permute.xlu1 %4114 }
 0x813   : > { %4247 = vmatprep.subr.bf16.mxu0 %v7371_v52  ;;  %7122 = vmatprep.mubr.msk.bf16.mxu1 %vm7529_vm7, %v7528_v14 }
 0x814   : > { %4248 = vmatpush1.bf16.msra.mxu0 %v7373_v48 }
 0x817   : > { %6911 = vmatmul.mubr.msk.bf16.vlgmr.msra.gmra.mxu0 %vm1254_vm15, %v6886_v20 }
 0x818   : > { %5253 = vmatprep.mubr.bf16.mxu0 %v7503_v4 }
 0x8d2   : > { %v4308_v39 = vpop.f32.mrf.mxu1 }
 0x8d3   : > { %v4309_v31 = vadd.f32 %v4308_v39, %v4115_v55 }
 0x8d4   : > { %v7106_v24 = vpop.f32.mrf.mxu1 }
 0x8d5   : > { %v9104_v0 = vadd.f32 %v4309_v31, %v8359_v23 }
 0x8d6   : > { %v4311_v50 = vpop.f32.mrf.mxu1 }
 0x8d7   : > { %v4267_v40 = vpop.f32.mrf.mxu0  ;;  %v4319_v54 = vmul.f32 %v9104_v0, %v7603_v11 }
 0x8d8   : > { %v4268_v62 = vadd.f32 %v4267_v40, %v4115_v55  ;;  %v7107_v33 = vpop.f32.mrf.mxu1 }
 0x8d9   : > { %v4269_v7 = vpop.f32.mrf.mxu0  ;;  %v4322_v46 = vpack.c.bf16 %v4319_v54, %v4319_v54 }
 0x8da   : > { %v9109_v47 = vadd.f32 %v4268_v62, %v8364_v29  ;;  %v4270_v41 = vadd.f32 %v4269_v7, %v4115_v55 }
 0x8db   : > { %v4271_v42 = vpop.f32.mrf.mxu0  ;;  %v4340_v44 = vrot.slane %v4322_v46, %v7610_v19 }
 0x8dc   : > { %v9112_v43 = vadd.f32 %v4270_v41, %v8366_v22  ;;  %v4317_v23 = vmul.f32 %v9109_v47, %v7599_v9 }
 0x8dd   : > { %v4272_v35 = vpop.f32.mrf.mxu0 }
 0x8de   : > { %v4318_v18 = vmul.f32 %v9112_v43, %v7601_v10 }
 0x8e0   : > { %v6913_v2 = vpack.c.bf16 %v4318_v18, %v4317_v23 }
 0x8e2   : > { %v4333_v28 = vrot.slane %v6913_v2, %v7610_v19 }
 0x8e4   : > { %v4341_v29 = vcombine.low %v4333_v28, %v4340_v44 }
 0x8e6   : > { %4342 = vrot.lane.b32.xlu0 %v4341_v29, %s10043_s13 }
 0x958   : > { %v4343_v12 = vpop.permute.xlu0 %4342 }
 0x959   : > { %v4344_v30 = vrot.slane %v4343_v12, 6 }
 0x95b   : > { %v4345_v22 = vsel %vm10122_vm13, %v4344_v30, %v4343_v12  ;;  %vm10126_vm13 = vmmov %vm10125_vm4 }
 0x95c   : > { %4347 = vst.msk [vmem:[#allocation2] sm:$0x3f] %vm7615_vm5, %v4345_v22 }
 0x963   : > { %v9124_v57 = vld [vmem:[#allocation2] sm:$0xff] }
 0x964   : > { %v5053_v34 = vrot.slane %v9124_v57, %v7610_v19  ;;  %v9130_v21 = vld [vmem:[#allocation2] sm:$0x3f]  ;;  %v5046_v7 = vcombine.high %v9124_v57, %v9124_v57  ;;  %v4956_v35 = vcombine.low %v9124_v57, %v9124_v57 }
 0x965   : > { %v4352_v49 = vld [vmem:[#allocation2] sm:$0x3f]  ;;  %v4853_v1 = vrot.slane %v9130_v21, %v7610_v19  ;;  %v4839_v23 = vcombine.low %v9130_v21, %v9130_v21 }
 0x966   : > { %5061 = vrot.lane.b32.xlu1 %v5053_v34, %s10073_s12  ;;  %4973 = vrot.lane.b32.xlu0 %v5053_v34, %s10074_s7  ;;  %6916 = vst.sshfl [vmem:[#allocation3] sm:$0xf pattern:$0x76325410] %v4352_v49  ;;  %v9136_v45 = vld [vmem:[#allocation2] sm:$0x3f]  ;;  %v4354_v60 = vcombine.high %v4352_v49, %v4352_v49  ;;  %v5060_v42 = vrot.slane %v5046_v7, %v7610_v19 }
 0x967   : > { %v9138_v17 = vld [vmem:[#allocation2] sm:$0x3f]  ;;  %v4911_v56 = vrot.slane %v9136_v45, %v7610_v19  ;;  %v4963_v46 = vrot.slane %v4956_v35, %v7610_v19  ;;  %v4846_v2 = vrot.slane %v4839_v23, %v7610_v19  ;;  %v4897_v28 = vcombine.low %v9136_v45, %v9136_v45 }
 0x968   : > { %v4817_v8 = vrot.slane %v9138_v17, %v7610_v19  ;;  %v9146_v63 = vld [vmem:[#allocation2] sm:$0x3f]  ;;  %v4368_v16 = vrot.slane %v4354_v60, %v7610_v19  ;;  %v4810_v18 = vcombine.high %v9138_v17, %v9138_v17 }
 0x969   : > { %v9148_v36 = vld [vmem:[#allocation2] sm:$0x3f]  ;;  %v4875_v58 = vrot.slane %v9146_v63, %v7610_v19  ;;  %v4868_v29 = vcombine.high %v9146_v63, %v9146_v63  ;;  %v4904_v12 = vrot.slane %v4897_v28, %v7610_v19 }
 0x96a   : > { %5033 = vrot.lane.b32.xlu0 %v5053_v34, %s10075_s27  ;;  %4941 = vrot.lane.b32.xlu1 %v5053_v34, %s10076_s10  ;;  %v4737_v15 = vrot.slane %v9148_v36, %v7610_v19  ;;  %v9156_v13 = vld [vmem:[#allocation2] sm:$0x3f]  ;;  %4372 = vst.msk [vmem:[#allocation3 + $0x8] sm:$0x3] %vm390_vm6, %v4368_v16  ;;  %v4824_v44 = vrot.slane %v4810_v18, %v7610_v19 }
 0x96b   : > { %v9158_v32 = vld [vmem:[#allocation2] sm:$0x3f]  ;;  %v4795_v59 = vrot.slane %v9156_v13, %v7610_v19  ;;  %v4882_v30 = vrot.slane %v4868_v29, %v7610_v19  ;;  %v4723_v22 = vcombine.low %v9148_v36, %v9148_v36  ;;  %v4781_v49 = vcombine.low %v9156_v13, %v9156_v13 }
 0x96c   : > { %v4701_v3 = vrot.slane %v9158_v32, %v7610_v19  ;;  %v9168_v25 = vld [vmem:[#allocation2] sm:$0x3f]  ;;  %v4694_v57 = vcombine.high %v9158_v32, %v9158_v32 }
 0x96d   : > { %v9170_v5 = vld [vmem:[#allocation2] sm:$0x3f]  ;;  %v4759_v27 = vrot.slane %v9168_v25, %v7610_v19  ;;  %v4788_v45 = vrot.slane %v4781_v49, %v7610_v19 }
 0x96e   : > { %5001 = vrot.lane.b32.xlu1 %v5053_v34, %s10077_s9  ;;  %4856 = vrot.lane.b32.xlu0 %v4853_v1, %s10051_s15  ;;  %v4621_v53 = vrot.slane %v9170_v5, %v7610_v19  ;;  %v9178_v6 = vld [vmem:[#allocation2] sm:$0x3f]  ;;  %v4730_v34 = vrot.slane %v4723_v22, %v7610_v19  ;;  %v4708_v21 = vrot.slane %v4694_v57, %v7610_v19 }
 0x96f   : > { %v9180_v37 = vld [vmem:[#allocation2] sm:$0x3f]  ;;  %v4679_v51 = vrot.slane %v9178_v6, %v7610_v19  ;;  %v4752_v1 = vcombine.high %v9168_v25, %v9168_v25 }
 0x970   : > { %v4585_v61 = vrot.slane %v9180_v37, %v7610_v19  ;;  %v9188_v38 = vld [vmem:[#allocation2] sm:$0x3f] }
 0x971   : > { %v9190_v20 = vld [vmem:[#allocation2] sm:$0x3f]  ;;  %v4643_v52 = vrot.slane %v9188_v38, %v7610_v19  ;;  %v4766_v17 = vrot.slane %v4752_v1, %v7610_v19 }
 0x972   : > { %4914 = vrot.lane.b32.xlu0 %v4911_v56, %s10053_s17  ;;  %4825 = vrot.lane.b32.xlu1 %v4817_v8, %s10052_s16  ;;  %v4505_v48 = vrot.slane %v9190_v20, %v7610_v19  ;;  %v9198_v55 = vld [vmem:[#allocation2] sm:$0x3f]  ;;  %v4607_v56 = vcombine.low %v9170_v5, %v9170_v5  ;;  %v4578_v8 = vcombine.high %v9180_v37, %v9180_v37 }
 0x973   : > { %v9200_v39 = vld [vmem:[#allocation2] sm:$0x3f]  ;;  %v4563_v31 = vrot.slane %v9198_v55, %v7610_v19  ;;  %v4491_v32 = vcombine.low %v9190_v20, %v9190_v20  ;;  %v4549_v25 = vcombine.low %v9198_v55, %v9198_v55  ;;  %v6915_v55 = vld [vmem:[%s9949_s2 + $0x8] sm:$0xf] }
 0x974   : > { %v4469_v24 = vrot.slane %v9200_v39, %v7610_v19  ;;  %v9208_v50 = vld [vmem:[#allocation2] sm:$0x3f]  ;;  %v4614_v63 = vrot.slane %v4607_v56, %v7610_v19  ;;  %v4592_v36 = vrot.slane %v4578_v8, %v7610_v19  ;;  %v4462_v16 = vcombine.high %v9200_v39, %v9200_v39 }
 0x975   : > { %v9210_v40 = vld [vmem:[#allocation2] sm:$0x3f]  ;;  %v4527_v62 = vrot.slane %v9208_v50, %v7610_v19  ;;  %v4520_v5 = vcombine.high %v9208_v50, %v9208_v50 }
 0x976   : > { %4883 = vrot.lane.b32.xlu1 %v4875_v58, %s10054_s18  ;;  %4740 = vrot.lane.b32.xlu0 %v4737_v15, %s10055_s14  ;;  %v4389_v33 = vrot.slane %v9210_v40, %v7610_v19  ;;  %v9220_v54 = vld [vmem:[#allocation2] sm:$0x3f]  ;;  %v4665_v58 = vcombine.low %v9178_v6, %v9178_v6  ;;  %v4636_v15 = vcombine.high %v9188_v38, %v9188_v38 }
 0x977   : > { %v4411_v41 = vrot.slane %v9220_v54, %v7610_v19  ;;  %v4404_v6 = vcombine.high %v9220_v54, %v9220_v54  ;;  %v4375_v37 = vcombine.low %v9210_v40, %v9210_v40 }
 0x978   : > { %v4672_v60 = vrot.slane %v4665_v58, %v7610_v19  ;;  %v4650_v13 = vrot.slane %v4636_v15, %v7610_v19 }
 0x979   : > { %v4382_v38 = vrot.slane %v4375_v37, %v7610_v19 }
 0x97a   : > { %4798 = vrot.lane.b32.xlu0 %v4795_v59, %s10044_s26  ;;  %4709 = vrot.lane.b32.xlu1 %v4701_v3, %s10045_s11  ;;  %v4498_v59 = vrot.slane %v4491_v32, %v7610_v19  ;;  %v4476_v3 = vrot.slane %v4462_v16, %v7610_v19 }
 0x97e   : > { %4767 = vrot.lane.b32.xlu1 %v4759_v27, %s10046_s24  ;;  %4624 = vrot.lane.b32.xlu0 %v4621_v53, %s10047_s21  ;;  %v4556_v27 = vrot.slane %v4549_v25, %v7610_v19  ;;  %v4534_v53 = vrot.slane %v4520_v5, %v7610_v19 }
 0x982   : > { %4682 = vrot.lane.b32.xlu0 %v4679_v51, %s10039_s25  ;;  %4593 = vrot.lane.b32.xlu1 %v4585_v61, %s10048_s22  ;;  %v4431_v51 = vld [vmem:[#allocation2] sm:$0x3f]  ;;  %v4418_v61 = vrot.slane %v4404_v6, %v7610_v19 }
 0x983   : > { %v4433_v20 = vcombine.low %v4431_v51, %v4431_v51 }
 0x986   : > { %4651 = vrot.lane.b32.xlu1 %v4643_v52, %s10040_s23  ;;  %4508 = vrot.lane.b32.xlu0 %v4505_v48, %s10049_s19  ;;  %v4447_v52 = vrot.slane %v4431_v51, %v7610_v19  ;;  %v4440_v48 = vrot.slane %v4433_v20, %v7610_v19 }
 0x98a   : > { %4566 = vrot.lane.b32.xlu0 %v4563_v31, %s10050_s20  ;;  %4477 = vrot.lane.b32.xlu1 %v4469_v24, %s10041_s29 }
 0x98e   : > { %4535 = vrot.lane.b32.xlu1 %v4527_v62, %s10042_s30  ;;  %4392 = vrot.lane.b32.xlu0 %v4389_v33, %s10078_s8 }
 0x992   : > { %4419 = vrot.lane.b32.xlu1 %v4411_v41, %s10079_s5  ;;  %5063 = vrot.lane.b32.xlu0 %v5060_v42, %s10073_s12 }
 0x996   : > { %4971 = vrot.lane.b32.xlu1 %v4963_v46, %s10074_s7  ;;  %4943 = vrot.lane.b32.xlu0 %v5060_v42, %s10076_s10 }
 0x99a   : > { %5031 = vrot.lane.b32.xlu1 %v4963_v46, %s10075_s27  ;;  %5003 = vrot.lane.b32.xlu0 %v5060_v42, %s10077_s9 }
 0x99e   : > { %4854 = vrot.lane.b32.xlu1 %v4846_v2, %s10051_s15  ;;  %4827 = vrot.lane.b32.xlu0 %v4824_v44, %s10052_s16 }
 0x9a2   : > { %4912 = vrot.lane.b32.xlu1 %v4904_v12, %s10053_s17  ;;  %4885 = vrot.lane.b32.xlu0 %v4882_v30, %s10054_s18 }
 0x9a6   : > { %4738 = vrot.lane.b32.xlu1 %v4730_v34, %s10055_s14  ;;  %4711 = vrot.lane.b32.xlu0 %v4708_v21, %s10045_s11 }
 0x9aa   : > { %4796 = vrot.lane.b32.xlu1 %v4788_v45, %s10044_s26  ;;  %4769 = vrot.lane.b32.xlu0 %v4766_v17, %s10046_s24 }
 0x9ae   : > { %4622 = vrot.lane.b32.xlu1 %v4614_v63, %s10047_s21  ;;  %4595 = vrot.lane.b32.xlu0 %v4592_v36, %s10048_s22 }
 0x9b2   : > { %4680 = vrot.lane.b32.xlu1 %v4672_v60, %s10039_s25  ;;  %4653 = vrot.lane.b32.xlu0 %v4650_v13, %s10040_s23 }
 0x9b6   : > { %4506 = vrot.lane.b32.xlu1 %v4498_v59, %s10049_s19  ;;  %4479 = vrot.lane.b32.xlu0 %v4476_v3, %s10041_s29 }
 0x9ba   : > { %4564 = vrot.lane.b32.xlu1 %v4556_v27, %s10050_s20  ;;  %4537 = vrot.lane.b32.xlu0 %v4534_v53, %s10042_s30 }
 0x9be   : > { %4421 = vrot.lane.b32.xlu0 %v4418_v61, %s10079_s5  ;;  %4390 = vrot.lane.b32.xlu1 %v4382_v38, %s10078_s8 }
 0x9c2   : > { %4450 = vrot.lane.b32.xlu0 %v4447_v52, %s10056_s0  ;;  %4448 = vrot.lane.b32.xlu1 %v4440_v48, %s10056_s0 }
 0x9c6   : > { %5102 = vperm.xlu1 %7193, %v6915_v55  }
 0x9d8   : > { %v5062_v39 = vpop.permute.xlu1 %5061  ;;  %v4974_v31 = vpop.permute.xlu0 %4973 }
 0x9d9   : > { %v4976_v24 = vrot.slane %v4974_v31, 4  ;;  %v5065_v17 = vrot.slane %v5062_v39, 4 }
 0x9db   : > { %v4979_v50 = vsel %vm1019_vm8, %v4974_v31, %v4976_v24 }
 0x9dc   : > { %4983 = vst.msk [vmem:[#allocation3 + $0x80] sm:$0xc] %vm422_vm9, %v4979_v50  ;;  %v5034_v40 = vpop.permute.xlu0 %5033  ;;  %v4942_v62 = vpop.permute.xlu1 %4941 }
 0x9dd   : > { %v5036_v33 = vrot.slane %v5034_v40, 4  ;;  %v4945_v60 = vrot.slane %v4942_v62, 4 }
 0x9df   : > { %v5039_v7 = vsel %vm1081_vm10, %v5034_v40, %v5036_v33 }
 0x9e0   : > { %5043 = vst.msk [vmem:[#allocation3 + $0x8c] sm:$0xc] %vm422_vm9, %v5039_v7  ;;  %v5002_v54 = vpop.permute.xlu1 %5001  ;;  %v9319_v41 = vpop.permute.xlu0 %4856 }
 0x9e1   : > { %4865 = vst.msk [vmem:[#allocation3 + $0x68] sm:$0xc] %vm422_vm9, %v9319_v41  ;;  %v5005_v6 = vrot.slane %v5002_v54, 4  ;;  %v4859_v48 = vrot.slane %v9319_v41, 4 }
 0x9e4   : > { %v9323_v42 = vpop.permute.xlu0 %4914  ;;  %v9325_v35 = vpop.permute.xlu1 %4825 }
 0x9e5   : > { %4923 = vst.msk [vmem:[#allocation3 + $0x74] sm:$0xc] %vm422_vm9, %v9323_v42  ;;  %v4829_v55 = vrot.slane %v9325_v35, 4 }
 0x9e8   : > { %v9329_v46 = vpop.permute.xlu1 %4883  ;;  %v9331_v23 = vpop.permute.xlu0 %4740 }
 0x9e9   : > { %4749 = vst.msk [vmem:[#allocation3 + $0x50] sm:$0xc] %vm422_vm9, %v9331_v23 }
 0x9ec   : > { %v9335_v18 = vpop.permute.xlu0 %4798  ;;  %v9337_v2 = vpop.permute.xlu1 %4709 }
 0x9ed   : > { %4807 = vst.msk [vmem:[#allocation3 + $0x5c] sm:$0xc] %vm422_vm9, %v9335_v18 }
 0x9f0   : > { %v9341_v44 = vpop.permute.xlu1 %4767  ;;  %v9343_v28 = vpop.permute.xlu0 %4624 }
 0x9f1   : > { %4633 = vst.msk [vmem:[#allocation3 + $0x38] sm:$0xc] %vm422_vm9, %v9343_v28 }
 0x9f4   : > { %v9347_v29 = vpop.permute.xlu0 %4682  ;;  %v9349_v12 = vpop.permute.xlu1 %4593 }
 0x9f5   : > { %4691 = vst.msk [vmem:[#allocation3 + $0x44] sm:$0xc] %vm422_vm9, %v9347_v29 }
 0x9f8   : > { %v9353_v30 = vpop.permute.xlu1 %4651  ;;  %v9355_v22 = vpop.permute.xlu0 %4508 }
 0x9f9   : > { %4517 = vst.msk [vmem:[#allocation3 + $0x20] sm:$0xc] %vm422_vm9, %v9355_v22 }
 0x9fc   : > { %v9359_v57 = vpop.permute.xlu0 %4566  ;;  %v9361_v34 = vpop.permute.xlu1 %4477 }
 0x9fd   : > { %4575 = vst.msk [vmem:[#allocation3 + $0x2c] sm:$0xc] %vm422_vm9, %v9359_v57 }
 0xa00   : > { %v9365_v21 = vpop.permute.xlu1 %4535  ;;  %v9367_v49 = vpop.permute.xlu0 %4392 }
 0xa01   : > { %4401 = vst.msk [vmem:[#allocation3 + $0x8] sm:$0xc] %vm422_vm9, %v9367_v49 }
 0xa04   : > { %v9371_v1 = vpop.permute.xlu1 %4419  ;;  %v5064_v45 = vpop.permute.xlu0 %5063 }
 0xa05   : > { %v5066_v56 = vrot.slane %v5064_v45, 4 }
 0xa07   : > { %v5067_v8 = vsel %vm415_vm11, %v5065_v17, %v5066_v56  ;;  %v5069_v63 = vsel %vm10123_vm12, %v5064_v45, %v5066_v56  ;;  %vm10127_vm12 = vcmask 375808  }
 0xa08   : > { %v5068_v36 = vsel %vm10124_vm14, %v5062_v39, %v5067_v8  ;;  %5073 = vst.msk [vmem:[#allocation3 + $0x98] sm:$0x3] %vm390_vm6, %v5069_v63  ;;  %v4972_v58 = vpop.permute.xlu1 %4971  ;;  %v4944_v15 = vpop.permute.xlu0 %4943  ;;  %vm10128_vm14 = vmmov %vm10127_vm12 }
 0xa09   : > { %5072 = vst [vmem:[#allocation3 + $0x90] sm:$0x33] %v5068_v36  ;;  %v4975_v13 = vrot.slane %v4972_v58, 4  ;;  %v4946_v32 = vrot.slane %v4944_v15, 4 }
 0xa0b   : > { %v4977_v16 = vsel %vm415_vm11, %v4975_v13, %v4976_v24  ;;  %v4947_v59 = vsel %vm415_vm11, %v4945_v60, %v4946_v32  ;;  %v4949_v3 = vsel %vm10125_vm4, %v4944_v15, %v4946_v32  ;;  %vm10129_vm4 = vcmask 539648  }
 0xa0c   : > { %v4978_v25 = vsel %vm1019_vm8, %v4972_v58, %v4977_v16  ;;  %v4948_v5 = vsel %vm10126_vm13, %v4942_v62, %v4947_v59  ;;  %4953 = vst.msk [vmem:[#allocation3 + $0x80] sm:$0x3] %vm390_vm6, %v4949_v3  ;;  %v5032_v27 = vpop.permute.xlu1 %5031  ;;  %v5004_v53 = vpop.permute.xlu0 %5003  ;;  %vm10130_vm13 = vcmask 547840   ;;  %v4917_v15 = vrot.slane %v9323_v42, 4 }
 0xa0d   : > { %4982 = vst [vmem:[#allocation3 + $0x78] sm:$0xcc] %v4978_v25  ;;  %4952 = vst [vmem:[#allocation3 + $0x78] sm:$0x33] %v4948_v5  ;;  %v5035_v37 = vrot.slane %v5032_v27, 4  ;;  %v5006_v51 = vrot.slane %v5004_v53, 4 }
 0xa0e   : > { %v4887_v60 = vrot.slane %v9329_v46, 4 }
 0xa0f   : > { %v5037_v61 = vsel %vm415_vm11, %v5035_v37, %v5036_v33  ;;  %v5007_v38 = vsel %vm415_vm11, %v5005_v6, %v5006_v51  ;;  %v5009_v20 = vsel %vm10127_vm12, %v5004_v53, %v5006_v51  ;;  %v7396_v52 = vld [vmem:[#allocation3 + $0x98] ss:$0 sps:$4 sm:$0x33]   ;;  %vm10131_vm12 = vcmask 523264  }
 0xa10   : > { %v5038_v39 = vsel %vm1081_vm10, %v5032_v27, %v5037_v61  ;;  %v5008_v31 = vsel %vm10128_vm14, %v5002_v54, %v5007_v38  ;;  %5013 = vst.msk [vmem:[#allocation3 + $0x8c] sm:$0x3] %vm390_vm6, %v5009_v20  ;;  %v4855_v24 = vpop.permute.xlu1 %4854  ;;  %v4828_v50 = vpop.permute.xlu0 %4827  ;;  %v5098_v40 = vld [vmem:[#allocation3 + $0x90] sm:$0x33]  ;;  %v5219_v41 = vsel %vm1258_vm0, %v7396_v52, 0  ;;  %vm10132_vm14 = vcmask 531456  }
 0xa11   : > { %5042 = vst [vmem:[#allocation3 + $0x84] sm:$0xcc] %v5038_v39  ;;  %5012 = vst [vmem:[#allocation3 + $0x84] sm:$0x33] %v5008_v31  ;;  %v4858_v62 = vrot.slane %v4855_v24, 4  ;;  %v4830_v33 = vrot.slane %v4828_v50, 4  ;;  %v6936_v7 = vcombine.high %v5098_v40, %v5098_v40  ;;  %7109 = vmatpush3.bf16.msra.mxu1 %v5219_v41  ;;  %v6935_v45 = vcombine.low %v5098_v40, %v5098_v40 }
 0xa12   : > { %4836 = vst.msk [vmem:[#allocation3 + $0x68] sm:$0x3] %vm390_vm6, %v4828_v50  ;;  %7110 = vmatprep.subr.bf16.mxu1 %v7528_v14  ;;  %v4743_v6 = vrot.slane %v9331_v23, 4  ;;  %v4713_v37 = vrot.slane %v9337_v2, 4  ;;  %v4801_v39 = vrot.slane %v9335_v18, 4  ;;  %v4771_v31 = vrot.slane %v9341_v44, 4 }
 0xa13   : > { %v4860_v17 = vsel %vm415_vm11, %v4858_v62, %v4859_v48  ;;  %v4831_v54 = vsel %vm415_vm11, %v4829_v55, %v4830_v33  ;;  %6938 = vmatprep.subr.msk.bf16.mxu0 %vm1258_vm0, %v6936_v7  ;;  %v5213_v36 = vsel %vm1258_vm0, %v6935_v45, 0 }
 0xa14   : > { %v4861_v56 = vsel %vm10129_vm4, %v4855_v24, %v4860_v17  ;;  %v4832_v8 = vsel %vm10130_vm13, %v9325_v35, %v4831_v54  ;;  %v4913_v63 = vpop.permute.xlu1 %4912  ;;  %v4886_v58 = vpop.permute.xlu0 %4885  ;;  %5224 = vmatpush1.bf16.msra.mxu0 %v5213_v36  ;;  %vm10133_vm4 = vcmask 695296   ;;  %vm10134_vm13 = vcmask 703488  }
 0xa15   : > { %4864 = vst [vmem:[#allocation3 + $0x60] sm:$0xcc] %v4861_v56  ;;  %4835 = vst [vmem:[#allocation3 + $0x60] sm:$0x33] %v4832_v8  ;;  %v4916_v13 = vrot.slane %v4913_v63, 4  ;;  %v4888_v32 = vrot.slane %v4886_v58, 4 }
 0xa16   : > { %4894 = vst.msk [vmem:[#allocation3 + $0x74] sm:$0x3] %vm390_vm6, %v4886_v58  ;;  %v4627_v17 = vrot.slane %v9343_v28, 4  ;;  %v4597_v54 = vrot.slane %v9349_v12, 4 }
 0xa17   : > { %v4918_v16 = vsel %vm415_vm11, %v4916_v13, %v4917_v15  ;;  %v4889_v59 = vsel %vm415_vm11, %v4887_v60, %v4888_v32  ;;  %v7398_v35 = vld [vmem:[#allocation3 + $0x80] ss:$12 sps:$4 sm:$0xff]   ;;  %v4685_v13 = vrot.slane %v9347_v29, 4  ;;  %v4655_v32 = vrot.slane %v9353_v30, 4 }
 0xa18   : > { %v4919_v3 = vsel %vm10131_vm12, %v4913_v63, %v4918_v16  ;;  %v4890_v25 = vsel %vm10132_vm14, %v9329_v46, %v4889_v59  ;;  %v4739_v42 = vpop.permute.xlu1 %4738  ;;  %v4712_v5 = vpop.permute.xlu0 %4711  ;;  %v7399_v27 = vld [vmem:[#allocation3 + $0x7c] ss:$12 sps:$4 sm:$0xff]   ;;  %v7401_v53 = vld [vmem:[#allocation3 + $0x78] ss:$12 sps:$4 sm:$0xff]   ;;  %7111 = vmatpush3.bf16.msra.mxu1 %v7398_v35  ;;  %vm10135_vm12 = vcmask 556032   ;;  %vm10136_vm14 = vcmask 687104  }
 0xa19   : > { %4922 = vst [vmem:[#allocation3 + $0x6c] sm:$0xcc] %v4919_v3  ;;  %4893 = vst [vmem:[#allocation3 + $0x6c] sm:$0x33] %v4890_v25  ;;  %v4742_v51 = vrot.slane %v4739_v42, 4  ;;  %v4714_v61 = vrot.slane %v4712_v5, 4  ;;  %5225 = vmatprep.subr.bf16.mxu0 %v7399_v27  ;;  %7112 = vmatprep.subr.bf16.mxu1 %v7528_v14 }
 0xa1a   : > { %4720 = vst.msk [vmem:[#allocation3 + $0x50] sm:$0x3] %vm390_vm6, %v4712_v5  ;;  %5226 = vmatpush1.bf16.msra.mxu0 %v7401_v53  ;;  %v4511_v53 = vrot.slane %v9355_v22, 4 }
 0xa1b   : > { %v4744_v46 = vsel %vm415_vm11, %v4742_v51, %v4743_v6  ;;  %v4715_v38 = vsel %vm415_vm11, %v4713_v37, %v4714_v61  ;;  %v4481_v6 = vrot.slane %v9361_v34, 4 }
 0xa1c   : > { %v4745_v20 = vsel %vm10133_vm4, %v4739_v42, %v4744_v46  ;;  %v4716_v23 = vsel %vm10134_vm13, %v9337_v2, %v4715_v38  ;;  %v4797_v52 = vpop.permute.xlu1 %4796  ;;  %v4770_v48 = vpop.permute.xlu0 %4769  ;;  %vm10137_vm4 = vcmask 850944   ;;  %vm10138_vm13 = vcmask 859136  }
 0xa1d   : > { %v7402_v55 = vld [vmem:[#allocation3 + $0x68] ss:$12 sps:$4 sm:$0xff]   ;;  %4748 = vst [vmem:[#allocation3 + $0x48] sm:$0xcc] %v4745_v20  ;;  %4719 = vst [vmem:[#allocation3 + $0x48] sm:$0x33] %v4716_v23 }
 0xa1e   : > { %v4800_v24 = vrot.slane %v4797_v52, 4  ;;  %v4772_v50 = vrot.slane %v4770_v48, 4  ;;  %4778 = vst.msk [vmem:[#allocation3 + $0x5c] sm:$0x3] %vm390_vm6, %v4770_v48  ;;  %7113 = vmatpush3.bf16.msra.mxu1 %v7402_v55  ;;  %v4539_v48 = vrot.slane %v9365_v21, 4 }
 0xa1f   : > { %7114 = vmatprep.subr.bf16.mxu1 %v7528_v14 }
 0xa20   : > { %v4802_v40 = vsel %vm415_vm11, %v4800_v24, %v4801_v39  ;;  %v4773_v62 = vsel %vm415_vm11, %v4771_v31, %v4772_v50  ;;  %v4623_v33 = vpop.permute.xlu1 %4622  ;;  %v4596_v7 = vpop.permute.xlu0 %4595  ;;  %v7403_v41 = vld [vmem:[#allocation3 + $0x64] ss:$12 sps:$4 sm:$0xff]   ;;  %v7405_v45 = vld [vmem:[#allocation3 + $0x60] ss:$12 sps:$4 sm:$0xff]  }
 0xa21   : > { %v4803_v2 = vsel %vm10135_vm12, %v4797_v52, %v4802_v40  ;;  %v4774_v18 = vsel %vm10136_vm14, %v9341_v44, %v4773_v62  ;;  %v4626_v56 = vrot.slane %v4623_v33, 4  ;;  %v4598_v8 = vrot.slane %v4596_v7, 4  ;;  %4604 = vst.msk [vmem:[#allocation3 + $0x38] sm:$0x3] %vm390_vm6, %v4596_v7  ;;  %5227 = vmatprep.subr.bf16.mxu0 %v7403_v41 }
 0xa22   : > { %4806 = vst [vmem:[#allocation3 + $0x54] sm:$0xcc] %v4803_v2  ;;  %4777 = vst [vmem:[#allocation3 + $0x54] sm:$0x33] %v4774_v18  ;;  %5228 = vmatpush1.bf16.msra.mxu0 %v7405_v45  ;;  %vm10139_vm12 = vcmask 711680   ;;  %vm10140_vm14 = vcmask 719872  }
 0xa23   : > { %v4628_v63 = vsel %vm415_vm11, %v4626_v56, %v4627_v17  ;;  %v4599_v36 = vsel %vm415_vm11, %v4597_v54, %v4598_v8  ;;  %v4569_v52 = vrot.slane %v9359_v57, 4  ;;  %v4395_v18 = vrot.slane %v9367_v49, 4 }
 0xa24   : > { %v4629_v44 = vsel %vm10137_vm4, %v4623_v33, %v4628_v63  ;;  %v4600_v58 = vsel %vm10138_vm13, %v9349_v12, %v4599_v36  ;;  %v4681_v28 = vpop.permute.xlu1 %4680  ;;  %v4654_v15 = vpop.permute.xlu0 %4653  ;;  %vm10141_vm4 = vcmask 883712   ;;  %vm10142_vm13 = vcmask 1014784  }
 0xa25   : > { %v7406_v60 = vld [vmem:[#allocation3 + $0x50] ss:$12 sps:$4 sm:$0xff]   ;;  %4632 = vst [vmem:[#allocation3 + $0x30] sm:$0xcc] %v4629_v44  ;;  %4603 = vst [vmem:[#allocation3 + $0x30] sm:$0x33] %v4600_v58 }
 0xa26   : > { %v4684_v16 = vrot.slane %v4681_v28, 4  ;;  %v4656_v59 = vrot.slane %v4654_v15, 4  ;;  %4662 = vst.msk [vmem:[#allocation3 + $0x44] sm:$0x3] %vm390_vm6, %v4654_v15  ;;  %7115 = vmatpush3.bf16.msra.mxu1 %v7406_v60  ;;  %v4423_v33 = vrot.slane %v9371_v1, 4 }
 0xa27   : > { %7116 = vmatprep.subr.bf16.mxu1 %v7528_v14  ;;  %v6914_v60 = vld [vmem:[%s9948_s1 + $0x4] sm:$0x3] }
 0xa28   : > { %v4686_v35 = vsel %vm415_vm11, %v4684_v16, %v4685_v13  ;;  %v4657_v3 = vsel %vm415_vm11, %v4655_v32, %v4656_v59  ;;  %v4507_v25 = vpop.permute.xlu1 %4506  ;;  %v4480_v42 = vpop.permute.xlu0 %4479 }
 0xa29   : > { %v4687_v12 = vsel %vm10139_vm12, %v4681_v28, %v4686_v35  ;;  %v4658_v29 = vsel %vm10140_vm14, %v9353_v30, %v4657_v3  ;;  %v7407_v5 = vld [vmem:[#allocation3 + $0x4c] ss:$12 sps:$4 sm:$0xff]   ;;  %v7409_v27 = vld [vmem:[#allocation3 + $0x48] ss:$12 sps:$4 sm:$0xff]   ;;  %v4510_v37 = vrot.slane %v4507_v25, 4  ;;  %v4482_v51 = vrot.slane %v4480_v42, 4 }
 0xa2a   : > { %4690 = vst [vmem:[#allocation3 + $0x3c] sm:$0xcc] %v4687_v12  ;;  %4661 = vst [vmem:[#allocation3 + $0x3c] sm:$0x33] %v4658_v29  ;;  %5229 = vmatprep.subr.bf16.mxu0 %v7407_v5  ;;  %vm10143_vm12 = vcmask 875520   ;;  %vm10144_vm14 = vcmask 1039360  }
 0xa2b   : > { %4488 = vst.msk [vmem:[#allocation3 + $0x20] sm:$0x3] %vm390_vm6, %v4480_v42  ;;  %v4512_v61 = vsel %vm415_vm11, %v4510_v37, %v4511_v53  ;;  %v4483_v46 = vsel %vm415_vm11, %v4481_v6, %v4482_v51  ;;  %5230 = vmatpush1.bf16.msra.mxu0 %v7409_v27 }
 0xa2c   : > { %v4513_v30 = vsel %vm10141_vm4, %v4507_v25, %v4512_v61  ;;  %v4484_v38 = vsel %vm10142_vm13, %v9361_v34, %v4483_v46  ;;  %v4565_v22 = vpop.permute.xlu1 %4564  ;;  %v4538_v20 = vpop.permute.xlu0 %4537  ;;  %vm10145_vm4 = vcmask 343040   ;;  %vm10146_vm13 = vcmask 359424  }
 0xa2d   : > { %v7410_v23 = vld [vmem:[#allocation3 + $0x38] ss:$12 sps:$4 sm:$0xff]   ;;  %4516 = vst [vmem:[#allocation3 + $0x18] sm:$0xcc] %v4513_v30  ;;  %4487 = vst [vmem:[#allocation3 + $0x18] sm:$0x33] %v4484_v38 }
 0xa2e   : > { %v4568_v55 = vrot.slane %v4565_v22, 4  ;;  %v4540_v39 = vrot.slane %v4538_v20, 4  ;;  %4546 = vst.msk [vmem:[#allocation3 + $0x2c] sm:$0x3] %vm390_vm6, %v4538_v20  ;;  %7117 = vmatpush3.bf16.msra.mxu1 %v7410_v23 }
 0xa2f   : > { %7118 = vmatprep.subr.bf16.mxu1 %v7528_v14 }
 0xa30   : > { %v4570_v31 = vsel %vm415_vm11, %v4568_v55, %v4569_v52  ;;  %v4541_v24 = vsel %vm415_vm11, %v4539_v48, %v4540_v39  ;;  %v4422_v50 = vpop.permute.xlu0 %4421  ;;  %v4391_v40 = vpop.permute.xlu1 %4390 }
 0xa31   : > { %v4571_v34 = vsel %vm598_vm3, %v4565_v22, %v4570_v31  ;;  %v4542_v57 = vsel %vm10143_vm12, %v9365_v21, %v4541_v24  ;;  %v7411_v62 = vld [vmem:[#allocation3 + $0x34] ss:$12 sps:$4 sm:$0xff]   ;;  %v7413_v2 = vld [vmem:[#allocation3 + $0x30] ss:$12 sps:$4 sm:$0xff]   ;;  %v4424_v7 = vrot.slane %v4422_v50, 4  ;;  %v4394_v41 = vrot.slane %v4391_v40, 4  ;;  %vm10147_vm12 = vmmov %vm10146_vm13 }
 0xa32   : > { %4574 = vst [vmem:[#allocation3 + $0x24] sm:$0xcc] %v4571_v34  ;;  %4545 = vst [vmem:[#allocation3 + $0x24] sm:$0x33] %v4542_v57  ;;  %5231 = vmatprep.subr.bf16.mxu0 %v7411_v62 }
 0xa33   : > { %4430 = vst.msk [vmem:[#allocation3 + $0x14] sm:$0x3] %vm390_vm6, %v4422_v50  ;;  %v4425_v45 = vsel %vm415_vm11, %v4423_v33, %v4424_v7  ;;  %v4396_v17 = vsel %vm415_vm11, %v4394_v41, %v4395_v18  ;;  %5232 = vmatpush1.bf16.msra.mxu0 %v7413_v2 }
 0xa34   : > { %v4426_v21 = vsel %vm448_vm1, %v9371_v1, %v4425_v45  ;;  %v4397_v54 = vsel %vm10144_vm14, %v4391_v40, %v4396_v17  ;;  %v4451_v49 = vpop.permute.xlu0 %4450  ;;  %v4449_v56 = vpop.permute.xlu1 %4448  ;;  %vm10148_vm14 = vcmask 392192  }
 0xa35   : > { %v7414_v8 = vld [vmem:[#allocation3 + $0x20] ss:$12 sps:$4 sm:$0xff]   ;;  %4429 = vst [vmem:[#allocation3 + $0xc] sm:$0x33] %v4426_v21  ;;  %4400 = vst [vmem:[#allocation3] sm:$0xcc] %v4397_v54 }
 0xa36   : > { %v4453_v63 = vrot.slane %v4451_v49, 4  ;;  %4459 = vst.msk [vmem:[#allocation3 + $0x14] sm:$0xc] %vm422_vm9, %v4451_v49  ;;  %v4452_v36 = vrot.slane %v4449_v56, 4  ;;  %7119 = vmatpush3.bf16.msra.mxu1 %v7414_v8 }
 0xa37   : > { %7120 = vmatprep.subr.bf16.mxu1 %v7528_v14 }
 0xa38   : > { %v4454_v44 = vsel %vm415_vm11, %v4452_v36, %v4453_v63 }
 0xa39   : > { %v4455_v58 = vsel %vm478_vm2, %v4449_v56, %v4454_v44  ;;  %v7415_v28 = vld [vmem:[#allocation3 + $0x1c] ss:$12 sps:$4 sm:$0xff]   ;;  %v7417_v1 = vld [vmem:[#allocation3 + $0x18] ss:$12 sps:$4 sm:$0xff]  }
 0xa3a   : > { %4458 = vst [vmem:[#allocation3 + $0xc] sm:$0xcc] %v4455_v58  ;;  %5233 = vmatprep.subr.bf16.mxu0 %v7415_v28 }
 0xa3b   : > { %5234 = vmatpush1.bf16.msra.mxu0 %v7417_v1 }
 0xa3d   : > { %v7419_v15 = vld [vmem:[#allocation3 + $0x8] ss:$12 sps:$4 sm:$0xff]  }
 0xa3e   : > { %7121 = vmatpush3.bf16.msra.mxu1 %v7419_v15 }
 0xa3f   : > { %7126 = vmatprep.subr.bf16.mxu1 %v7528_v14 }
 0xa41   : > { %v7420_v13 = vld [vmem:[#allocation3 + $0x4] ss:$12 sps:$4 sm:$0xff]   ;;  %v7422_v32 = vld [vmem:[#allocation3] ss:$12 sps:$4 sm:$0xff]   ;;  %7123 = vmatmul.mubr.msk.bf16.vlgmr.msra.gmra.mxu1 %vm1254_vm15, %v6914_v60  ;;  %v5103_v16 = vpop.permute.xlu1 %5102 }
 0xa42   : > { %5235 = vmatprep.subr.bf16.mxu0 %v7420_v13  ;;  %7140 = vmatprep.mubr.msk.bf16.mxu1 %vm7529_vm7, %v7528_v14 }
 0xa43   : > { %5236 = vmatpush1.bf16.msra.mxu0 %v7422_v32 }
 0xa46   : > { %6939 = vmatmul.mubr.msk.bf16.vlgmr.msra.gmra.mxu0 %vm1254_vm15, %v6914_v60 }
 0xa47   : > { %6241 = vmatprep.mubr.bf16.mxu0 %v7503_v4 }
 0xb01   : > { %v5296_v59 = vpop.f32.mrf.mxu1 }
 0xb02   : > { %v5297_v35 = vadd.f32 %v5296_v59, %v5103_v16 }
 0xb03   : > { %v7124_v3 = vpop.f32.mrf.mxu1 }
 0xb04   : > { %v5304_v12 = vmax.f32 %v5297_v35, 0.0 }
 0xb05   : > { %v5299_v29 = vpop.f32.mrf.mxu1 }
 0xb06   : > { %v5255_v25 = vpop.f32.mrf.mxu0  ;;  %v5307_v53 = vmul.f32 %v5304_v12, %v7603_v11 }
 0xb07   : > { %v5256_v42 = vadd.f32 %v5255_v25, %v5103_v16  ;;  %v7125_v5 = vpop.f32.mrf.mxu1 }
 0xb08   : > { %v5257_v27 = vpop.f32.mrf.mxu0  ;;  %v5310_v30 = vpack.c.bf16 %v5307_v53, %v5307_v53 }
 0xb09   : > { %v5302_v6 = vmax.f32 %v5256_v42, 0.0  ;;  %v5258_v37 = vadd.f32 %v5257_v27, %v5103_v16 }
 0xb0a   : > { %v5259_v51 = vpop.f32.mrf.mxu0  ;;  %v5328_v23 = vrot.slane %v5310_v30, %v7610_v19 }
 0xb0b   : > { %v5303_v61 = vmax.f32 %v5258_v37, 0.0  ;;  %v5305_v38 = vmul.f32 %v5302_v6, %v7599_v9 }
 0xb0c   : > { %v5260_v46 = vpop.f32.mrf.mxu0 }
 0xb0d   : > { %v5306_v22 = vmul.f32 %v5303_v61, %v7601_v10 }
 0xb0f   : > { %v6941_v20 = vpack.c.bf16 %v5306_v22, %v5305_v38 }
 0xb11   : > { %v5321_v52 = vrot.slane %v6941_v20, %v7610_v19 }
 0xb13   : > { %v5329_v48 = vcombine.low %v5321_v52, %v5328_v23 }
 0xb15   : > { %5330 = vrot.lane.b32.xlu0 %v5329_v48, %s10043_s13 }
 0xb87   : > { %v5331_v55 = vpop.permute.xlu0 %5330 }
 0xb88   : > { %v5332_v39 = vrot.slane %v5331_v55, 6 }
 0xb8a   : > { %v5333_v31 = vsel %vm10145_vm4, %v5332_v39, %v5331_v55  ;;  %vm10149_vm4 = vmmov %vm10148_vm14 }
 0xb8b   : > { %5335 = vst.msk [vmem:[#allocation2] sm:$0x3f] %vm7615_vm5, %v5333_v31 }
 0xb92   : > { %v9491_v24 = vld [vmem:[#allocation2] sm:$0xff] }
 0xb93   : > { %v6041_v34 = vrot.slane %v9491_v24, %v7610_v19  ;;  %v9497_v57 = vld [vmem:[#allocation2] sm:$0x3f]  ;;  %v6034_v6 = vcombine.high %v9491_v24, %v9491_v24  ;;  %v5944_v46 = vcombine.low %v9491_v24, %v9491_v24 }
 0xb94   : > { %v5340_v50 = vld [vmem:[#allocation2] sm:$0x3f]  ;;  %v5841_v40 = vrot.slane %v9497_v57, %v7610_v19  ;;  %v5827_v38 = vcombine.low %v9497_v57, %v9497_v57 }
 0xb95   : > { %6049 = vrot.lane.b32.xlu1 %v6041_v34, %s10073_s12  ;;  %5961 = vrot.lane.b32.xlu0 %v6041_v34, %s10074_s7  ;;  %6944 = vst.sshfl [vmem:[#allocation3] sm:$0xf pattern:$0x76325410] %v5340_v50  ;;  %v9503_v62 = vld [vmem:[#allocation2] sm:$0x3f]  ;;  %v5342_v21 = vcombine.high %v5340_v50, %v5340_v50  ;;  %v6048_v61 = vrot.slane %v6034_v6, %v7610_v19 }
 0xb96   : > { %v9505_v2 = vld [vmem:[#allocation2] sm:$0x3f]  ;;  %v5899_v18 = vrot.slane %v9503_v62, %v7610_v19  ;;  %v5951_v30 = vrot.slane %v5944_v46, %v7610_v19  ;;  %v5834_v20 = vrot.slane %v5827_v38, %v7610_v19  ;;  %v5885_v52 = vcombine.low %v9503_v62, %v9503_v62 }
 0xb97   : > { %v5805_v33 = vrot.slane %v9505_v2, %v7610_v19  ;;  %v9513_v7 = vld [vmem:[#allocation2] sm:$0x3f]  ;;  %v5356_v56 = vrot.slane %v5342_v21, %v7610_v19  ;;  %v5798_v22 = vcombine.high %v9505_v2, %v9505_v2 }
 0xb98   : > { %v9515_v41 = vld [vmem:[#allocation2] sm:$0x3f]  ;;  %v5863_v45 = vrot.slane %v9513_v7, %v7610_v19  ;;  %v5856_v48 = vcombine.high %v9513_v7, %v9513_v7  ;;  %v5892_v55 = vrot.slane %v5885_v52, %v7610_v19 }
 0xb99   : > { %6021 = vrot.lane.b32.xlu0 %v6041_v34, %s10075_s27  ;;  %5929 = vrot.lane.b32.xlu1 %v6041_v34, %s10076_s10  ;;  %v5725_v17 = vrot.slane %v9515_v41, %v7610_v19  ;;  %v9523_v54 = vld [vmem:[#allocation2] sm:$0x3f]  ;;  %5360 = vst.msk [vmem:[#allocation3 + $0x8] sm:$0x3] %vm390_vm6, %v5356_v56  ;;  %v5812_v23 = vrot.slane %v5798_v22, %v7610_v19 }
 0xb9a   : > { %v9525_v49 = vld [vmem:[#allocation2] sm:$0x3f]  ;;  %v5783_v8 = vrot.slane %v9523_v54, %v7610_v19  ;;  %v5870_v39 = vrot.slane %v5856_v48, %v7610_v19  ;;  %v5711_v31 = vcombine.low %v9515_v41, %v9515_v41  ;;  %v5769_v50 = vcombine.low %v9523_v54, %v9523_v54 }
 0xb9b   : > { %v5689_v63 = vrot.slane %v9525_v49, %v7610_v19  ;;  %v9535_v36 = vld [vmem:[#allocation2] sm:$0x3f]  ;;  %v5682_v24 = vcombine.high %v9525_v49, %v9525_v49 }
 0xb9c   : > { %v9537_v44 = vld [vmem:[#allocation2] sm:$0x3f]  ;;  %v5747_v58 = vrot.slane %v9535_v36, %v7610_v19  ;;  %v5776_v62 = vrot.slane %v5769_v50, %v7610_v19 }
 0xb9d   : > { %5989 = vrot.lane.b32.xlu1 %v6041_v34, %s10077_s9  ;;  %5844 = vrot.lane.b32.xlu0 %v5841_v40, %s10051_s15  ;;  %v5609_v28 = vrot.slane %v9537_v44, %v7610_v19  ;;  %v9545_v1 = vld [vmem:[#allocation2] sm:$0x3f]  ;;  %v5718_v34 = vrot.slane %v5711_v31, %v7610_v19  ;;  %v5696_v57 = vrot.slane %v5682_v24, %v7610_v19 }
 0xb9e   : > { %v9547_v15 = vld [vmem:[#allocation2] sm:$0x3f]  ;;  %v5667_v60 = vrot.slane %v9545_v1, %v7610_v19  ;;  %v5740_v40 = vcombine.high %v9535_v36, %v9535_v36 }
 0xb9f   : > { %v5573_v13 = vrot.slane %v9547_v15, %v7610_v19  ;;  %v9555_v32 = vld [vmem:[#allocation2] sm:$0x3f] }
 0xba0   : > { %v9557_v16 = vld [vmem:[#allocation2] sm:$0x3f]  ;;  %v5631_v59 = vrot.slane %v9555_v32, %v7610_v19  ;;  %v5754_v2 = vrot.slane %v5740_v40, %v7610_v19 }
 0xba1   : > { %5902 = vrot.lane.b32.xlu0 %v5899_v18, %s10053_s17  ;;  %5813 = vrot.lane.b32.xlu1 %v5805_v33, %s10052_s16  ;;  %v5493_v35 = vrot.slane %v9557_v16, %v7610_v19  ;;  %v9565_v3 = vld [vmem:[#allocation2] sm:$0x3f]  ;;  %v5595_v18 = vcombine.low %v9537_v44, %v9537_v44  ;;  %v5566_v33 = vcombine.high %v9547_v15, %v9547_v15 }
 0xba2   : > { %v9567_v12 = vld [vmem:[#allocation2] sm:$0x3f]  ;;  %v5551_v29 = vrot.slane %v9565_v3, %v7610_v19  ;;  %v5479_v49 = vcombine.low %v9557_v16, %v9557_v16  ;;  %v5537_v36 = vcombine.low %v9565_v3, %v9565_v3  ;;  %v6943_v3 = vld [vmem:[%s9951_s4 + $0x8] sm:$0xf] }
 0xba3   : > { %v5457_v25 = vrot.slane %v9567_v12, %v7610_v19  ;;  %v9575_v42 = vld [vmem:[#allocation2] sm:$0x3f]  ;;  %v5602_v7 = vrot.slane %v5595_v18, %v7610_v19  ;;  %v5580_v41 = vrot.slane %v5566_v33, %v7610_v19  ;;  %v5450_v56 = vcombine.high %v9567_v12, %v9567_v12 }
 0xba4   : > { %v9577_v5 = vld [vmem:[#allocation2] sm:$0x3f]  ;;  %v5515_v27 = vrot.slane %v9575_v42, %v7610_v19  ;;  %v5508_v44 = vcombine.high %v9575_v42, %v9575_v42 }
 0xba5   : > { %5871 = vrot.lane.b32.xlu1 %v5863_v45, %s10054_s18  ;;  %5728 = vrot.lane.b32.xlu0 %v5725_v17, %s10055_s14  ;;  %v5377_v53 = vrot.slane %v9577_v5, %v7610_v19  ;;  %v9587_v37 = vld [vmem:[#allocation2] sm:$0x3f]  ;;  %v5653_v45 = vcombine.low %v9545_v1, %v9545_v1  ;;  %v5624_v17 = vcombine.high %v9555_v32, %v9555_v32 }
 0xba6   : > { %v5399_v51 = vrot.slane %v9587_v37, %v7610_v19  ;;  %v5392_v1 = vcombine.high %v9587_v37, %v9587_v37  ;;  %v5363_v15 = vcombine.low %v9577_v5, %v9577_v5 }
 0xba7   : > { %v5660_v21 = vrot.slane %v5653_v45, %v7610_v19  ;;  %v5638_v54 = vrot.slane %v5624_v17, %v7610_v19 }
 0xba8   : > { %v5370_v32 = vrot.slane %v5363_v15, %v7610_v19 }
 0xba9   : > { %5786 = vrot.lane.b32.xlu0 %v5783_v8, %s10044_s26  ;;  %5697 = vrot.lane.b32.xlu1 %v5689_v63, %s10045_s11  ;;  %v5486_v8 = vrot.slane %v5479_v49, %v7610_v19  ;;  %v5464_v63 = vrot.slane %v5450_v56, %v7610_v19 }
 0xbad   : > { %5755 = vrot.lane.b32.xlu1 %v5747_v58, %s10046_s24  ;;  %5612 = vrot.lane.b32.xlu0 %v5609_v28, %s10047_s21  ;;  %v5544_v58 = vrot.slane %v5537_v36, %v7610_v19  ;;  %v5522_v28 = vrot.slane %v5508_v44, %v7610_v19 }
 0xbb1   : > { %5670 = vrot.lane.b32.xlu0 %v5667_v60, %s10039_s25  ;;  %5581 = vrot.lane.b32.xlu1 %v5573_v13, %s10048_s22  ;;  %v5419_v60 = vld [vmem:[#allocation2] sm:$0x3f]  ;;  %v5406_v13 = vrot.slane %v5392_v1, %v7610_v19 }
 0xbb2   : > { %v5421_v16 = vcombine.low %v5419_v60, %v5419_v60 }
 0xbb5   : > { %5639 = vrot.lane.b32.xlu1 %v5631_v59, %s10040_s23  ;;  %5496 = vrot.lane.b32.xlu0 %v5493_v35, %s10049_s19  ;;  %v5435_v59 = vrot.slane %v5419_v60, %v7610_v19  ;;  %v5428_v35 = vrot.slane %v5421_v16, %v7610_v19 }
 0xbb9   : > { %5554 = vrot.lane.b32.xlu0 %v5551_v29, %s10050_s20  ;;  %5465 = vrot.lane.b32.xlu1 %v5457_v25, %s10041_s29 }
 0xbbd   : > { %5523 = vrot.lane.b32.xlu1 %v5515_v27, %s10042_s30  ;;  %5380 = vrot.lane.b32.xlu0 %v5377_v53, %s10078_s8 }
 0xbc1   : > { %5407 = vrot.lane.b32.xlu1 %v5399_v51, %s10079_s5  ;;  %6051 = vrot.lane.b32.xlu0 %v6048_v61, %s10073_s12 }
 0xbc5   : > { %5959 = vrot.lane.b32.xlu1 %v5951_v30, %s10074_s7  ;;  %5931 = vrot.lane.b32.xlu0 %v6048_v61, %s10076_s10 }
 0xbc9   : > { %6019 = vrot.lane.b32.xlu1 %v5951_v30, %s10075_s27  ;;  %5991 = vrot.lane.b32.xlu0 %v6048_v61, %s10077_s9 }
 0xbcd   : > { %5842 = vrot.lane.b32.xlu1 %v5834_v20, %s10051_s15  ;;  %5815 = vrot.lane.b32.xlu0 %v5812_v23, %s10052_s16 }
 0xbd1   : > { %5900 = vrot.lane.b32.xlu1 %v5892_v55, %s10053_s17  ;;  %5873 = vrot.lane.b32.xlu0 %v5870_v39, %s10054_s18 }
 0xbd5   : > { %5726 = vrot.lane.b32.xlu1 %v5718_v34, %s10055_s14  ;;  %5699 = vrot.lane.b32.xlu0 %v5696_v57, %s10045_s11 }
 0xbd9   : > { %5784 = vrot.lane.b32.xlu1 %v5776_v62, %s10044_s26  ;;  %5757 = vrot.lane.b32.xlu0 %v5754_v2, %s10046_s24 }
 0xbdd   : > { %5610 = vrot.lane.b32.xlu1 %v5602_v7, %s10047_s21  ;;  %5583 = vrot.lane.b32.xlu0 %v5580_v41, %s10048_s22  ;;  %s10179_s21 = sld [smem:[#allocation7_spill]] }
 0xbe1   : > { %5668 = vrot.lane.b32.xlu1 %v5660_v21, %s10039_s25  ;;  %5641 = vrot.lane.b32.xlu0 %v5638_v54, %s10040_s23 }
 0xbe5   : > { %5494 = vrot.lane.b32.xlu1 %v5486_v8, %s10049_s19  ;;  %5467 = vrot.lane.b32.xlu0 %v5464_v63, %s10041_s29 }
 0xbe9   : > { %5552 = vrot.lane.b32.xlu1 %v5544_v58, %s10050_s20  ;;  %5525 = vrot.lane.b32.xlu0 %v5522_v28, %s10042_s30 }
 0xbed   : > { %5409 = vrot.lane.b32.xlu0 %v5406_v13, %s10079_s5  ;;  %5378 = vrot.lane.b32.xlu1 %v5370_v32, %s10078_s8 }
 0xbf1   : > { %5438 = vrot.lane.b32.xlu0 %v5435_v59, %s10056_s0  ;;  %5436 = vrot.lane.b32.xlu1 %v5428_v35, %s10056_s0 }
 0xbf5   : > { %6090 = vperm.xlu1 %7193, %v6943_v3  }
 0xc07   : > { %v6050_v12 = vpop.permute.xlu1 %6049  ;;  %v5962_v29 = vpop.permute.xlu0 %5961 }
 0xc08   : > { %v5964_v25 = vrot.slane %v5962_v29, 4  ;;  %v6053_v2 = vrot.slane %v6050_v12, 4 }
 0xc0a   : > { %v5967_v42 = vsel %vm1019_vm8, %v5962_v29, %v5964_v25 }
 0xc0b   : > { %5971 = vst.msk [vmem:[#allocation3 + $0x80] sm:$0xc] %vm422_vm9, %v5967_v42  ;;  %v6022_v5 = vpop.permute.xlu0 %6021  ;;  %v5930_v27 = vpop.permute.xlu1 %5929 }
 0xc0c   : > { %v6024_v53 = vrot.slane %v6022_v5, 4  ;;  %v5933_v21 = vrot.slane %v5930_v27, 4 }
 0xc0e   : > { %v6027_v6 = vsel %vm1081_vm10, %v6022_v5, %v6024_v53 }
 0xc0f   : > { %6031 = vst.msk [vmem:[#allocation3 + $0x8c] sm:$0xc] %vm422_vm9, %v6027_v6  ;;  %v5990_v37 = vpop.permute.xlu1 %5989  ;;  %v9686_v51 = vpop.permute.xlu0 %5844 }
 0xc10   : > { %5853 = vst.msk [vmem:[#allocation3 + $0x68] sm:$0xc] %vm422_vm9, %v9686_v51  ;;  %v5993_v1 = vrot.slane %v5990_v37, 4  ;;  %v5847_v35 = vrot.slane %v9686_v51, 4 }
 0xc13   : > { %v9690_v61 = vpop.permute.xlu0 %5902  ;;  %v9692_v46 = vpop.permute.xlu1 %5813 }
 0xc14   : > { %5911 = vst.msk [vmem:[#allocation3 + $0x74] sm:$0xc] %vm422_vm9, %v9690_v61  ;;  %v5817_v3 = vrot.slane %v9692_v46, 4 }
 0xc17   : > { %v9696_v30 = vpop.permute.xlu1 %5871  ;;  %v9698_v38 = vpop.permute.xlu0 %5728 }
 0xc18   : > { %5737 = vst.msk [vmem:[#allocation3 + $0x50] sm:$0xc] %vm422_vm9, %v9698_v38 }
 0xc1b   : > { %v9702_v22 = vpop.permute.xlu0 %5786  ;;  %v9704_v20 = vpop.permute.xlu1 %5697 }
 0xc1c   : > { %5795 = vst.msk [vmem:[#allocation3 + $0x5c] sm:$0xc] %vm422_vm9, %v9702_v22 }
 0xc1f   : > { %v9708_v23 = vpop.permute.xlu1 %5755  ;;  %v9710_v52 = vpop.permute.xlu0 %5612 }
 0xc20   : > { %5621 = vst.msk [vmem:[#allocation3 + $0x38] sm:$0xc] %vm422_vm9, %v9710_v52 }
 0xc23   : > { %v9714_v48 = vpop.permute.xlu0 %5670  ;;  %v9716_v55 = vpop.permute.xlu1 %5581 }
 0xc24   : > { %5679 = vst.msk [vmem:[#allocation3 + $0x44] sm:$0xc] %vm422_vm9, %v9714_v48 }
 0xc27   : > { %v9720_v39 = vpop.permute.xlu1 %5639  ;;  %v9722_v31 = vpop.permute.xlu0 %5496 }
 0xc28   : > { %5505 = vst.msk [vmem:[#allocation3 + $0x20] sm:$0xc] %vm422_vm9, %v9722_v31 }
 0xc2b   : > { %v9726_v24 = vpop.permute.xlu0 %5554  ;;  %v9728_v34 = vpop.permute.xlu1 %5465 }
 0xc2c   : > { %5563 = vst.msk [vmem:[#allocation3 + $0x2c] sm:$0xc] %vm422_vm9, %v9726_v24 }
 0xc2f   : > { %v9732_v57 = vpop.permute.xlu1 %5523  ;;  %v9734_v50 = vpop.permute.xlu0 %5380 }
 0xc30   : > { %5389 = vst.msk [vmem:[#allocation3 + $0x8] sm:$0xc] %vm422_vm9, %v9734_v50 }
 0xc33   : > { %v9738_v40 = vpop.permute.xlu1 %5407  ;;  %v6052_v62 = vpop.permute.xlu0 %6051 }
 0xc34   : > { %v6054_v18 = vrot.slane %v6052_v62, 4 }
 0xc36   : > { %v6055_v33 = vsel %vm415_vm11, %v6053_v2, %v6054_v18  ;;  %v6057_v7 = vsel %vm10146_vm13, %v6052_v62, %v6054_v18  ;;  %vm10150_vm13 = vcmask 375808  }
 0xc37   : > { %v6056_v41 = vsel %vm10147_vm12, %v6050_v12, %v6055_v33  ;;  %6061 = vst.msk [vmem:[#allocation3 + $0x98] sm:$0x3] %vm390_vm6, %v6057_v7  ;;  %v5960_v45 = vpop.permute.xlu1 %5959  ;;  %v5932_v17 = vpop.permute.xlu0 %5931  ;;  %vm10153_vm12 = vcmask 547840  }
 0xc38   : > { %6060 = vst [vmem:[#allocation3 + $0x90] sm:$0x33] %v6056_v41  ;;  %v5963_v54 = vrot.slane %v5960_v45, 4  ;;  %v5934_v49 = vrot.slane %v5932_v17, 4 }
 0xc3a   : > { %v5965_v56 = vsel %vm415_vm11, %v5963_v54, %v5964_v25  ;;  %v5935_v8 = vsel %vm415_vm11, %v5933_v21, %v5934_v49  ;;  %v5937_v63 = vsel %vm10148_vm14, %v5932_v17, %v5934_v49  ;;  %v5905_v17 = vrot.slane %v9690_v61, 4 }
 0xc3b   : > { %v5966_v36 = vsel %vm1019_vm8, %v5960_v45, %v5965_v56  ;;  %v5936_v44 = vsel %vm10149_vm4, %v5930_v27, %v5935_v8  ;;  %5941 = vst.msk [vmem:[#allocation3 + $0x80] sm:$0x3] %vm390_vm6, %v5937_v63  ;;  %v6020_v58 = vpop.permute.xlu1 %6019  ;;  %v5992_v28 = vpop.permute.xlu0 %5991  ;;  %vm10151_vm8 = vmmov %vm10150_vm13  ;;  %v5875_v21 = vrot.slane %v9696_v30, 4  ;;  %vm10154_vm14 = vcmask 523264  }
 0xc3c   : > { %5970 = vst [vmem:[#allocation3 + $0x78] sm:$0xcc] %v5966_v36  ;;  %5940 = vst [vmem:[#allocation3 + $0x78] sm:$0x33] %v5936_v44  ;;  %v6023_v15 = vrot.slane %v6020_v58, 4  ;;  %v5994_v60 = vrot.slane %v5992_v28, 4 }
 0xc3d   : > { %vm10155_vm4 = vcmask 531456  }
 0xc3e   : > { %v6025_v13 = vsel %vm415_vm11, %v6023_v15, %v6024_v53  ;;  %v5995_v32 = vsel %vm415_vm11, %v5993_v1, %v5994_v60  ;;  %v5997_v16 = vsel %vm10150_vm13, %v5992_v28, %v5994_v60  ;;  %v7445_v59 = vld [vmem:[#allocation3 + $0x98] ss:$0 sps:$4 sm:$0x33]   ;;  %v5731_v1 = vrot.slane %v9698_v38, 4 }
 0xc3f   : > { %v6026_v12 = vsel %vm1081_vm10, %v6020_v58, %v6025_v13  ;;  %v5996_v29 = vsel %vm10151_vm8, %v5990_v37, %v5995_v32  ;;  %6001 = vst.msk [vmem:[#allocation3 + $0x8c] sm:$0x3] %vm390_vm6, %v5997_v16  ;;  %v5843_v25 = vpop.permute.xlu1 %5842  ;;  %v5816_v42 = vpop.permute.xlu0 %5815  ;;  %v6086_v5 = vld [vmem:[#allocation3 + $0x90] sm:$0x33]  ;;  %v6207_v51 = vsel %vm1258_vm0, %v7445_v59, 0  ;;  %vm10152_vm10 = vcmask 539648  }
 0xc40   : > { %6030 = vst [vmem:[#allocation3 + $0x84] sm:$0xcc] %v6026_v12  ;;  %6000 = vst [vmem:[#allocation3 + $0x84] sm:$0x33] %v5996_v29  ;;  %v5846_v27 = vrot.slane %v5843_v25, 4  ;;  %v5818_v53 = vrot.slane %v5816_v42, 4  ;;  %v6964_v6 = vcombine.high %v6086_v5, %v6086_v5  ;;  %7127 = vmatpush3.bf16.msra.mxu1 %v6207_v51  ;;  %v6963_v62 = vcombine.low %v6086_v5, %v6086_v5 }
 0xc41   : > { %5824 = vst.msk [vmem:[#allocation3 + $0x68] sm:$0x3] %vm390_vm6, %v5816_v42  ;;  %7128 = vmatprep.subr.bf16.mxu1 %v7528_v14  ;;  %v5701_v15 = vrot.slane %v9704_v20, 4  ;;  %vm10156_vm13 = vcmask 695296   ;;  %vm10157_vm8 = vcmask 703488   ;;  %v5789_v12 = vrot.slane %v9702_v22, 4 }
 0xc42   : > { %v5848_v2 = vsel %vm415_vm11, %v5846_v27, %v5847_v35  ;;  %v5819_v37 = vsel %vm415_vm11, %v5817_v3, %v5818_v53  ;;  %6966 = vmatprep.subr.msk.bf16.mxu0 %vm1258_vm0, %v6964_v6  ;;  %v6201_v41 = vsel %vm1258_vm0, %v6963_v62, 0  ;;  %v5759_v29 = vrot.slane %v9708_v23, 4 }
 0xc43   : > { %v5849_v18 = vsel %vm10152_vm10, %v5843_v25, %v5848_v2  ;;  %v5820_v33 = vsel %vm10153_vm12, %v9692_v46, %v5819_v37  ;;  %v5901_v7 = vpop.permute.xlu1 %5900  ;;  %v5874_v45 = vpop.permute.xlu0 %5873  ;;  %6212 = vmatpush1.bf16.msra.mxu0 %v6201_v41  ;;  %vm10158_vm10 = vcmask 556032   ;;  %vm10159_vm12 = vcmask 687104  }
 0xc44   : > { %5852 = vst [vmem:[#allocation3 + $0x60] sm:$0xcc] %v5849_v18  ;;  %5823 = vst [vmem:[#allocation3 + $0x60] sm:$0x33] %v5820_v33  ;;  %v5904_v54 = vrot.slane %v5901_v7, 4  ;;  %v5876_v49 = vrot.slane %v5874_v45, 4 }
 0xc45   : > { %5882 = vst.msk [vmem:[#allocation3 + $0x74] sm:$0x3] %vm390_vm6, %v5874_v45  ;;  %v5615_v2 = vrot.slane %v9710_v52, 4  ;;  %v5585_v37 = vrot.slane %v9716_v55, 4 }
 0xc46   : > { %v5906_v56 = vsel %vm415_vm11, %v5904_v54, %v5905_v17  ;;  %v5877_v8 = vsel %vm415_vm11, %v5875_v21, %v5876_v49  ;;  %v7447_v46 = vld [vmem:[#allocation3 + $0x80] ss:$12 sps:$4 sm:$0xff]   ;;  %v5673_v54 = vrot.slane %v9714_v48, 4  ;;  %v5643_v49 = vrot.slane %v9720_v39, 4 }
 0xc47   : > { %v5907_v63 = vsel %vm10154_vm14, %v5901_v7, %v5906_v56  ;;  %v5878_v36 = vsel %vm10155_vm4, %v9696_v30, %v5877_v8  ;;  %v5727_v61 = vpop.permute.xlu1 %5726  ;;  %v5700_v44 = vpop.permute.xlu0 %5699  ;;  %v7448_v58 = vld [vmem:[#allocation3 + $0x78] ss:$12 sps:$4 sm:$0xff]   ;;  %v7450_v28 = vld [vmem:[#allocation3 + $0x7c] ss:$12 sps:$4 sm:$0xff]   ;;  %7129 = vmatpush3.bf16.msra.mxu1 %v7447_v46  ;;  %vm10160_vm14 = vcmask 850944   ;;  %vm10161_vm4 = vcmask 859136  }
 0xc48   : > { %5910 = vst [vmem:[#allocation3 + $0x6c] sm:$0xcc] %v5907_v63  ;;  %5881 = vst [vmem:[#allocation3 + $0x6c] sm:$0x33] %v5878_v36  ;;  %v5730_v60 = vrot.slane %v5727_v61, 4  ;;  %v5702_v13 = vrot.slane %v5700_v44, 4  ;;  %6213 = vmatprep.subr.bf16.mxu0 %v7450_v28  ;;  %7130 = vmatprep.subr.bf16.mxu1 %v7528_v14 }
 0xc49   : > { %5708 = vst.msk [vmem:[#allocation3 + $0x50] sm:$0x3] %vm390_vm6, %v5700_v44  ;;  %6214 = vmatpush1.bf16.msra.mxu0 %v7448_v58  ;;  %v5499_v28 = vrot.slane %v9722_v31, 4 }
 0xc4a   : > { %v5732_v30 = vsel %vm415_vm11, %v5730_v60, %v5731_v1  ;;  %v5703_v32 = vsel %vm415_vm11, %v5701_v15, %v5702_v13  ;;  %v5469_v1 = vrot.slane %v9728_v34, 4 }
 0xc4b   : > { %v5733_v16 = vsel %vm10156_vm13, %v5727_v61, %v5732_v30  ;;  %v5704_v38 = vsel %vm10157_vm8, %v9704_v20, %v5703_v32  ;;  %v5785_v59 = vpop.permute.xlu1 %5784  ;;  %v5758_v35 = vpop.permute.xlu0 %5757  ;;  %vm10162_vm13 = vcmask 711680   ;;  %vm10163_vm8 = vcmask 719872  }
 0xc4c   : > { %v7451_v3 = vld [vmem:[#allocation3 + $0x68] ss:$12 sps:$4 sm:$0xff]   ;;  %5736 = vst [vmem:[#allocation3 + $0x48] sm:$0xcc] %v5733_v16  ;;  %5707 = vst [vmem:[#allocation3 + $0x48] sm:$0x33] %v5704_v38 }
 0xc4d   : > { %v5788_v25 = vrot.slane %v5785_v59, 4  ;;  %v5760_v42 = vrot.slane %v5758_v35, 4  ;;  %5766 = vst.msk [vmem:[#allocation3 + $0x5c] sm:$0x3] %vm390_vm6, %v5758_v35  ;;  %7131 = vmatpush3.bf16.msra.mxu1 %v7451_v3  ;;  %v5527_v35 = vrot.slane %v9732_v57, 4 }
 0xc4e   : > { %7132 = vmatprep.subr.bf16.mxu1 %v7528_v14 }
 0xc4f   : > { %v5790_v5 = vsel %vm415_vm11, %v5788_v25, %v5789_v12  ;;  %v5761_v27 = vsel %vm415_vm11, %v5759_v29, %v5760_v42  ;;  %v5611_v53 = vpop.permute.xlu1 %5610  ;;  %v5584_v6 = vpop.permute.xlu0 %5583  ;;  %v7452_v51 = vld [vmem:[#allocation3 + $0x60] ss:$12 sps:$4 sm:$0xff]   ;;  %v7454_v62 = vld [vmem:[#allocation3 + $0x64] ss:$12 sps:$4 sm:$0xff]  }
 0xc50   : > { %v5791_v20 = vsel %vm10158_vm10, %v5785_v59, %v5790_v5  ;;  %v5762_v22 = vsel %vm10159_vm12, %v9708_v23, %v5761_v27  ;;  %v5614_v18 = vrot.slane %v5611_v53, 4  ;;  %v5586_v33 = vrot.slane %v5584_v6, 4  ;;  %5592 = vst.msk [vmem:[#allocation3 + $0x38] sm:$0x3] %vm390_vm6, %v5584_v6  ;;  %6215 = vmatprep.subr.bf16.mxu0 %v7454_v62 }
 0xc51   : > { %5794 = vst [vmem:[#allocation3 + $0x54] sm:$0xcc] %v5791_v20  ;;  %5765 = vst [vmem:[#allocation3 + $0x54] sm:$0x33] %v5762_v22  ;;  %6216 = vmatpush1.bf16.msra.mxu0 %v7452_v51  ;;  %vm10164_vm10 = vcmask 883712   ;;  %vm10165_vm12 = vcmask 1014784  }
 0xc52   : > { %v5616_v7 = vsel %vm415_vm11, %v5614_v18, %v5615_v2  ;;  %v5587_v41 = vsel %vm415_vm11, %v5585_v37, %v5586_v33  ;;  %v5557_v59 = vrot.slane %v9726_v24, 4  ;;  %v5383_v22 = vrot.slane %v9734_v50, 4 }
 0xc53   : > { %v5617_v23 = vsel %vm10160_vm14, %v5611_v53, %v5616_v7  ;;  %v5588_v45 = vsel %vm10161_vm4, %v9716_v55, %v5587_v41  ;;  %v5669_v52 = vpop.permute.xlu1 %5668  ;;  %v5642_v17 = vpop.permute.xlu0 %5641  ;;  %vm10166_vm14 = vcmask 875520   ;;  %v5411_v53 = vrot.slane %v9738_v40, 4 }
 0xc54   : > { %v7455_v21 = vld [vmem:[#allocation3 + $0x50] ss:$12 sps:$4 sm:$0xff]   ;;  %5620 = vst [vmem:[#allocation3 + $0x30] sm:$0xcc] %v5617_v23  ;;  %5591 = vst [vmem:[#allocation3 + $0x30] sm:$0x33] %v5588_v45 }
 0xc55   : > { %v5672_v56 = vrot.slane %v5669_v52, 4  ;;  %v5644_v8 = vrot.slane %v5642_v17, 4  ;;  %5650 = vst.msk [vmem:[#allocation3 + $0x44] sm:$0x3] %vm390_vm6, %v5642_v17  ;;  %7133 = vmatpush3.bf16.msra.mxu1 %v7455_v21  ;;  %vm10167_vm4 = vcmask 1039360  }
 0xc56   : > { %7134 = vmatprep.subr.bf16.mxu1 %v7528_v14  ;;  %v6942_v21 = vld [vmem:[%s9950_s3 + $0x4] sm:$0x3] }
 0xc57   : > { %v5674_v46 = vsel %vm415_vm11, %v5672_v56, %v5673_v54  ;;  %v5645_v63 = vsel %vm415_vm11, %v5643_v49, %v5644_v8  ;;  %v5495_v36 = vpop.permute.xlu1 %5494  ;;  %v5468_v61 = vpop.permute.xlu0 %5467 }
 0xc58   : > { %v5675_v55 = vsel %vm10162_vm13, %v5669_v52, %v5674_v46  ;;  %v5646_v48 = vsel %vm10163_vm8, %v9720_v39, %v5645_v63  ;;  %v7456_v44 = vld [vmem:[#allocation3 + $0x48] ss:$12 sps:$4 sm:$0xff]   ;;  %v7458_v58 = vld [vmem:[#allocation3 + $0x4c] ss:$12 sps:$4 sm:$0xff]   ;;  %v5498_v15 = vrot.slane %v5495_v36, 4  ;;  %v5470_v60 = vrot.slane %v5468_v61, 4  ;;  %vm10175_vm8 = vmmov %vm10166_vm14 }
 0xc59   : > { %5678 = vst [vmem:[#allocation3 + $0x3c] sm:$0xcc] %v5675_v55  ;;  %5649 = vst [vmem:[#allocation3 + $0x3c] sm:$0x33] %v5646_v48  ;;  %6217 = vmatprep.subr.bf16.mxu0 %v7458_v58  ;;  %vm10174_vm13 = vcmask 539648  }
 0xc5a   : > { %5476 = vst.msk [vmem:[#allocation3 + $0x20] sm:$0x3] %vm390_vm6, %v5468_v61  ;;  %v5500_v13 = vsel %vm415_vm11, %v5498_v15, %v5499_v28  ;;  %v5471_v30 = vsel %vm415_vm11, %v5469_v1, %v5470_v60  ;;  %6218 = vmatpush1.bf16.msra.mxu0 %v7456_v44 }
 0xc5b   : > { %v5501_v39 = vsel %vm10164_vm10, %v5495_v36, %v5500_v13  ;;  %v5472_v32 = vsel %vm10165_vm12, %v9728_v34, %v5471_v30  ;;  %v5553_v31 = vpop.permute.xlu1 %5552  ;;  %v5526_v16 = vpop.permute.xlu0 %5525 }
 0xc5c   : > { %v7459_v38 = vld [vmem:[#allocation3 + $0x38] ss:$12 sps:$4 sm:$0xff]   ;;  %5504 = vst [vmem:[#allocation3 + $0x18] sm:$0xcc] %v5501_v39  ;;  %5475 = vst [vmem:[#allocation3 + $0x18] sm:$0x33] %v5472_v32 }
 0xc5d   : > { %v5556_v3 = vrot.slane %v5553_v31, 4  ;;  %v5528_v12 = vrot.slane %v5526_v16, 4  ;;  %5534 = vst.msk [vmem:[#allocation3 + $0x2c] sm:$0x3] %vm390_vm6, %v5526_v16  ;;  %7135 = vmatpush3.bf16.msra.mxu1 %v7459_v38 }
 0xc5e   : > { %7136 = vmatprep.subr.bf16.mxu1 %v7528_v14 }
 0xc5f   : > { %v5558_v29 = vsel %vm415_vm11, %v5556_v3, %v5557_v59  ;;  %v5529_v25 = vsel %vm415_vm11, %v5527_v35, %v5528_v12  ;;  %v5410_v42 = vpop.permute.xlu0 %5409  ;;  %v5379_v5 = vpop.permute.xlu1 %5378 }
 0xc60   : > { %v5559_v34 = vsel %vm598_vm3, %v5553_v31, %v5558_v29  ;;  %v5530_v24 = vsel %vm10166_vm14, %v9732_v57, %v5529_v25  ;;  %v7460_v27 = vld [vmem:[#allocation3 + $0x30] ss:$12 sps:$4 sm:$0xff]   ;;  %v7462_v20 = vld [vmem:[#allocation3 + $0x34] ss:$12 sps:$4 sm:$0xff]   ;;  %v5412_v6 = vrot.slane %v5410_v42, 4  ;;  %v5382_v51 = vrot.slane %v5379_v5, 4 }
 0xc61   : > { %5562 = vst [vmem:[#allocation3 + $0x24] sm:$0xcc] %v5559_v34  ;;  %5533 = vst [vmem:[#allocation3 + $0x24] sm:$0x33] %v5530_v24  ;;  %6219 = vmatprep.subr.bf16.mxu0 %v7462_v20 }
 0xc62   : > { %5418 = vst.msk [vmem:[#allocation3 + $0x14] sm:$0x3] %vm390_vm6, %v5410_v42  ;;  %v5413_v62 = vsel %vm415_vm11, %v5411_v53, %v5412_v6  ;;  %v5384_v2 = vsel %vm415_vm11, %v5382_v51, %v5383_v22  ;;  %6220 = vmatpush1.bf16.msra.mxu0 %v7460_v27 }
 0xc63   : > { %v5414_v57 = vsel %vm448_vm1, %v9738_v40, %v5413_v62  ;;  %v5385_v37 = vsel %vm10167_vm4, %v5379_v5, %v5384_v2  ;;  %v5439_v50 = vpop.permute.xlu0 %5438  ;;  %v5437_v18 = vpop.permute.xlu1 %5436  ;;  %vm10172_vm1 = vcmask 547840  }
 0xc64   : > { %v7463_v33 = vld [vmem:[#allocation3 + $0x20] ss:$12 sps:$4 sm:$0xff]   ;;  %5417 = vst [vmem:[#allocation3 + $0xc] sm:$0x33] %v5414_v57  ;;  %5388 = vst [vmem:[#allocation3] sm:$0xcc] %v5385_v37 }
 0xc65   : > { %v5441_v7 = vrot.slane %v5439_v50, 4  ;;  %5447 = vst.msk [vmem:[#allocation3 + $0x14] sm:$0xc] %vm422_vm9, %v5439_v50  ;;  %v5440_v41 = vrot.slane %v5437_v18, 4  ;;  %7137 = vmatpush3.bf16.msra.mxu1 %v7463_v33 }
 0xc66   : > { %7138 = vmatprep.subr.bf16.mxu1 %v7528_v14 }
 0xc67   : > { %v5442_v23 = vsel %vm415_vm11, %v5440_v41, %v5441_v7 }
 0xc68   : > { %v5443_v45 = vsel %vm478_vm2, %v5437_v18, %v5442_v23  ;;  %v7464_v52 = vld [vmem:[#allocation3 + $0x1c] ss:$12 sps:$4 sm:$0xff]   ;;  %v7466_v40 = vld [vmem:[#allocation3 + $0x18] ss:$12 sps:$4 sm:$0xff]   ;;  %vm10173_vm2 = vcmask 695296  }
 0xc69   : > { %5446 = vst [vmem:[#allocation3 + $0xc] sm:$0xcc] %v5443_v45  ;;  %6221 = vmatprep.subr.bf16.mxu0 %v7464_v52 }
 0xc6a   : > { %6222 = vmatpush1.bf16.msra.mxu0 %v7466_v40 }
 0xc6c   : > { %v7468_v17 = vld [vmem:[#allocation3 + $0x8] ss:$12 sps:$4 sm:$0xff]  }
 0xc6d   : > { %7139 = vmatpush3.bf16.msra.mxu1 %v7468_v17 }
 0xc6e   : > { %7144 = vmatprep.subr.bf16.mxu1 %v7528_v14 }
 0xc70   : > { %v7469_v54 = vld [vmem:[#allocation3 + $0x4] ss:$12 sps:$4 sm:$0xff]   ;;  %v7471_v49 = vld [vmem:[#allocation3] ss:$12 sps:$4 sm:$0xff]   ;;  %7141 = vmatmul.mubr.msk.bf16.vlgmr.msra.gmra.mxu1 %vm1254_vm15, %v6942_v21  ;;  %v6091_v56 = vpop.permute.xlu1 %6090 }
 0xc71   : > { %6223 = vmatprep.subr.bf16.mxu0 %v7469_v54  ;;  %7150 = vmatprep.mubr.msk.bf16.mxu1 %vm7529_vm7, %v7528_v14  ;;  %vm10168_vm7 = vcmask 343040  }
 0xc72   : > { %6224 = vmatpush1.bf16.msra.mxu0 %v7471_v49 }
 0xc75   : > { %6967 = vmatmul.mubr.msk.bf16.vlgmr.msra.gmra.mxu0 %vm1254_vm15, %v6942_v21  ;;  %vm10171_vm15 = vcmask 703488  }
 0xc76   : > { %6687 = vmatprep.mubr.bf16.mxu0 %v7503_v4 }
 0xd30   : > { %v6284_v8 = vpop.f32.mrf.mxu1 }
 0xd31   : > { %v6285_v46 = vadd.f32 %v6284_v8, %v6091_v56 }
 0xd32   : > { %v7142_v63 = vpop.f32.mrf.mxu1 }
 0xd33   : > { %v6292_v55 = vadd.f32 %v6285_v46, %v9104_v0 }
 0xd34   : > { %v6287_v48 = vpop.f32.mrf.mxu1 }
 0xd35   : > { %v6243_v36 = vpop.f32.mrf.mxu0  ;;  %v6295_v28 = vmul.f32 %v6292_v55, %v7603_v11 }
 0xd36   : > { %v6244_v61 = vadd.f32 %v6243_v36, %v6091_v56  ;;  %v7143_v44 = vpop.f32.mrf.mxu1 }
 0xd37   : > { %v6245_v58 = vpop.f32.mrf.mxu0  ;;  %v6298_v30 = vpack.c.bf16 %v6295_v28, %v6295_v28 }
 0xd38   : > { %v6290_v1 = vadd.f32 %v6244_v61, %v9109_v47  ;;  %v6246_v15 = vadd.f32 %v6245_v58, %v6091_v56 }
 0xd39   : > { %v6247_v60 = vpop.f32.mrf.mxu0  ;;  %v6316_v31 = vrot.slane %v6298_v30, %v7610_v19 }
 0xd3a   : > { %v6291_v13 = vadd.f32 %v6246_v15, %v9112_v43  ;;  %v6293_v39 = vmul.f32 %v6290_v1, %v7599_v9 }
 0xd3b   : > { %v6248_v4 = vpop.f32.mrf.mxu0 }
 0xd3c   : > { %v6294_v32 = vmul.f32 %v6291_v13, %v7601_v10 }
 0xd3e   : > { %v6969_v0 = vpack.c.bf16 %v6294_v32, %v6293_v39 }
 0xd40   : > { %v6309_v16 = vrot.slane %v6969_v0, %v7610_v19 }
 0xd42   : > { %v6317_v38 = vcombine.low %v6309_v16, %v6316_v31 }
 0xd44   : > { %6318 = vrot.lane.b32.xlu0 %v6317_v38, %s10043_s13 }
 0xdb6   : > { %v6319_v11 = vpop.permute.xlu0 %6318 }
 0xdb7   : > { %v6320_v47 = vrot.slane %v6319_v11, 6 }
 0xdb9   : > { %v6321_v59 = vsel %vm10168_vm7, %v6320_v47, %v6319_v11 }
 0xdba   : > { %6323 = vst.msk [vmem:[#allocation2] sm:$0x3f] %vm7615_vm5, %v6321_v59  ;;  %vm10170_vm5 = vcmask 531456  }
 0xdc1   : > { %v6556_v43 = vld [vmem:[#allocation2] sm:$0x3f] }
 0xdc2   : > { %v6469_v35 = vld [vmem:[#allocation2] sm:$0x3f]  ;;  %v6565_v9 = vrot.slane %v6556_v43, %v7610_v19  ;;  %v6558_v5 = vcombine.high %v6556_v43, %v6556_v43 }
 0xdc3   : > { %v6485_v10 = vrot.slane %v6469_v35, %v7610_v19  ;;  %v6527_v3 = vld [vmem:[#allocation2] sm:$0x3f]  ;;  %v6471_v57 = vcombine.low %v6469_v35, %v6469_v35 }
 0xdc4   : > { %v6440_v12 = vld [vmem:[#allocation2] sm:$0x3f]  ;;  %6573 = vrot.lane.b32.xlu1 %v6565_v9, %s10054_s18  ;;  %v6543_v29 = vrot.slane %v6527_v3, %v7610_v19  ;;  %v6572_v20 = vrot.slane %v6558_v5, %v7610_v19  ;;  %v6529_v18 = vcombine.low %v6527_v3, %v6527_v3 }
 0xdc5   : > { %6488 = vrot.lane.b32.xlu0 %v6485_v10, %s10055_s14  ;;  %v6449_v25 = vrot.slane %v6440_v12, %v7610_v19  ;;  %v6498_v34 = vld [vmem:[#allocation2] sm:$0x3f]  ;;  %v6442_v53 = vcombine.high %v6440_v12, %v6440_v12  ;;  %v6478_v50 = vrot.slane %v6471_v57, %v7610_v19 }
 0xdc6   : > { %v6353_v24 = vld [vmem:[#allocation2] sm:$0x3f]  ;;  %v6507_v26 = vrot.slane %v6498_v34, %v7610_v19  ;;  %v6500_v2 = vcombine.high %v6498_v34, %v6498_v34  ;;  %v6536_v7 = vrot.slane %v6529_v18, %v7610_v19 }
 0xdc7   : > { %v6369_v42 = vrot.slane %v6353_v24, %v7610_v19  ;;  %v6324_v27 = vld [vmem:[#allocation2] sm:$0x3f]  ;;  %v6456_v51 = vrot.slane %v6442_v53, %v7610_v19  ;;  %v6355_v23 = vcombine.low %v6353_v24, %v6353_v24 }
 0xdc8   : > { %6457 = vrot.lane.b32.xlu1 %v6449_v25, %s10045_s11  ;;  %v6333_v22 = vrot.slane %v6324_v27, %v7610_v19  ;;  %v6382_v6 = vld [vmem:[#allocation2] sm:$0x3f]  ;;  %v6514_v37 = vrot.slane %v6500_v2, %v7610_v19  ;;  %v6326_v33 = vcombine.high %v6324_v27, %v6324_v27 }
 0xdc9   : > { %6546 = vrot.lane.b32.xlu0 %v6543_v29, %s10051_s15  ;;  %v6391_v62 = vrot.slane %v6382_v6, %v7610_v19  ;;  %v6384_v45 = vcombine.high %v6382_v6, %v6382_v6  ;;  %v6411_v52 = vld [vmem:[#allocation2] sm:$0x3f]  ;;  %v6362_v40 = vrot.slane %v6355_v23, %v7610_v19 }
 0xdca   : > { %v6340_v41 = vrot.slane %v6326_v33, %v7610_v19  ;;  %v6413_v21 = vcombine.low %v6411_v52, %v6411_v52  ;;  %v6427_v49 = vrot.slane %v6411_v52, %v7610_v19 }
 0xdcb   : > { %v6398_v17 = vrot.slane %v6384_v45, %v7610_v19 }
 0xdcc   : > { %6515 = vrot.lane.b32.xlu1 %v6507_v26, %s10052_s16  ;;  %v6420_v54 = vrot.slane %v6413_v21, %v7610_v19 }
 0xdcd   : > { %6372 = vrot.lane.b32.xlu0 %v6369_v42, %s10050_s20 }
 0xdd0   : > { %6341 = vrot.lane.b32.xlu1 %v6333_v22, %s10042_s30 }
 0xdd1   : > { %6575 = vrot.lane.b32.xlu0 %v6572_v20, %s10054_s18 }
 0xdd4   : > { %6399 = vrot.lane.b32.xlu1 %v6391_v62, %s10048_s22 }
 0xdd5   : > { %6459 = vrot.lane.b32.xlu0 %v6456_v51, %s10045_s11 }
 0xdd8   : > { %6486 = vrot.lane.b32.xlu1 %v6478_v50, %s10055_s14 }
 0xdd9   : > { %6517 = vrot.lane.b32.xlu0 %v6514_v37, %s10052_s16  ;;  %s10178_s16 = sld [smem:[#allocation5_spill]] }
 0xddc   : > { %6544 = vrot.lane.b32.xlu1 %v6536_v7, %s10051_s15  ;;  %s10169_s15 = sld [smem:[#allocation8_spill]] }
 0xddd   : > { %6343 = vrot.lane.b32.xlu0 %v6340_v41, %s10042_s30 }
 0xde0   : > { %6370 = vrot.lane.b32.xlu1 %v6362_v40, %s10050_s20 }
 0xde1   : > { %6401 = vrot.lane.b32.xlu0 %v6398_v17, %s10048_s22  ;;  %s7155_s22 = smul.u32 24, %s10178_s16 }
 0xde2   : > { %v6596_v56 = vld [vmem:[%s10169_s15] sm:$0xff] }
 0xde4   : > { %6428 = vrot.lane.b32.xlu1 %v6420_v54, %s10039_s25 }
 0xde5   : > { %6430 = vrot.lane.b32.xlu0 %v6427_v49, %s10039_s25  ;;  %s10180_s25 = sld [smem:[#allocation10_spill]] }
 0xde8   : > { %6599 = vperm.xlu1 %7193, %v6596_v56  }
 0xdeb   : > { %s305_s29 = scalar_lea.vmem %s10180_s25, %s7155_s22 }
 0xe36   : > { %v6574_v8 = vpop.permute.xlu1 %6573 }
 0xe37   : > { %v6489_v46 = vpop.permute.xlu0 %6488  ;;  %v6577_v44 = vrot.slane %v6574_v8, 4 }
 0xe38   : > { %6497 = vst.msk [vmem:[#allocation3 + $0x20] sm:$0xc] %vm422_vm9, %v6489_v46  ;;  %v6491_v16 = vrot.slane %v6489_v46, 4 }
 0xe3a   : > { %v6458_v55 = vpop.permute.xlu1 %6457 }
 0xe3b   : > { %v6547_v63 = vpop.permute.xlu0 %6546  ;;  %v6461_v13 = vrot.slane %v6458_v55, 4 }
 0xe3c   : > { %6555 = vst.msk [vmem:[#allocation3 + $0x2c] sm:$0xc] %vm422_vm9, %v6547_v63  ;;  %v6549_v9 = vrot.slane %v6547_v63, 4 }
 0xe3e   : > { %v6516_v48 = vpop.permute.xlu1 %6515 }
 0xe3f   : > { %v9902_v36 = vpop.permute.xlu0 %6372  ;;  %v6519_v38 = vrot.slane %v6516_v48, 4 }
 0xe40   : > { %6381 = vst.msk [vmem:[#allocation3 + $0x8] sm:$0xc] %vm422_vm9, %v9902_v36  ;;  %v6375_v57 = vrot.slane %v9902_v36, 4 }
 0xe42   : > { %v6342_v61 = vpop.permute.xlu1 %6341 }
 0xe43   : > { %v6576_v19 = vpop.permute.xlu0 %6575  ;;  %v6345_v10 = vrot.slane %v6342_v61, 4 }
 0xe44   : > { %v6578_v58 = vrot.slane %v6576_v19, 4  ;;  %6584 = vst.msk [vmem:[#allocation3 + $0x38] sm:$0x3] %vm390_vm6, %v6576_v19 }
 0xe46   : > { %v6579_v28 = vsel %vm415_vm11, %v6577_v44, %v6578_v58  ;;  %v6400_v60 = vpop.permute.xlu1 %6399 }
 0xe47   : > { %v6580_v1 = vsel %vm10170_vm5, %v6574_v8, %v6579_v28  ;;  %v6460_v15 = vpop.permute.xlu0 %6459  ;;  %v6403_v37 = vrot.slane %v6400_v60, 4  ;;  %v6585_v8 = vld [vmem:[%s10179_s21] sm:$0xf] }
 0xe48   : > { %6583 = vst [vmem:[#allocation3 + $0x30] sm:$0x33] %v6580_v1  ;;  %v6462_v4 = vrot.slane %v6460_v15, 4  ;;  %6468 = vst.msk [vmem:[#allocation3 + $0x20] sm:$0x3] %vm390_vm6, %v6460_v15 }
 0xe4a   : > { %v6463_v30 = vsel %vm415_vm11, %v6461_v13, %v6462_v4  ;;  %v6487_v0 = vpop.permute.xlu1 %6486 }
 0xe4b   : > { %v6464_v39 = vsel %vm10171_vm15, %v6458_v55, %v6463_v30  ;;  %v6518_v32 = vpop.permute.xlu0 %6517  ;;  %v7481_v31 = vld [vmem:[#allocation3 + $0x38] ss:$0 sps:$4 sm:$0x33]   ;;  %v6490_v47 = vrot.slane %v6487_v0, 4 }
 0xe4c   : > { %6467 = vst [vmem:[#allocation3 + $0x18] sm:$0x33] %v6464_v39  ;;  %v6520_v11 = vrot.slane %v6518_v32, 4  ;;  %6526 = vst.msk [vmem:[#allocation3 + $0x2c] sm:$0x3] %vm390_vm6, %v6518_v32  ;;  %v6653_v59 = vsel %vm1258_vm0, %v7481_v31, 0 }
 0xe4d   : > { %v6492_v35 = vsel %vm415_vm11, %v6490_v47, %v6491_v16  ;;  %7145 = vmatpush3.bf16.msra.mxu1 %v6653_v59 }
 0xe4e   : > { %v6521_v43 = vsel %vm415_vm11, %v6519_v38, %v6520_v11  ;;  %v6493_v12 = vsel %vm10173_vm2, %v6487_v0, %v6492_v35  ;;  %v6545_v29 = vpop.permute.xlu1 %6544  ;;  %7146 = vmatprep.subr.bf16.mxu1 %v7528_v14 }
 0xe4f   : > { %v6522_v3 = vsel %vm10172_vm1, %v6516_v48, %v6521_v43  ;;  %v6344_v25 = vpop.permute.xlu0 %6343  ;;  %v6594_v34 = vld [vmem:[#allocation3 + $0x30] sm:$0x33]  ;;  %6496 = vst [vmem:[#allocation3 + $0x18] sm:$0xcc] %v6493_v12  ;;  %v6548_v24 = vrot.slane %v6545_v29, 4 }
 0xe50   : > { %6525 = vst [vmem:[#allocation3 + $0x24] sm:$0x33] %v6522_v3  ;;  %v6346_v26 = vrot.slane %v6344_v25, 4  ;;  %6352 = vst.msk [vmem:[#allocation3 + $0x8] sm:$0x3] %vm390_vm6, %v6344_v25  ;;  %v6977_v42 = vcombine.high %v6594_v34, %v6594_v34  ;;  %v6976_v5 = vcombine.low %v6594_v34, %v6594_v34 }
 0xe51   : > { %v6550_v27 = vsel %vm415_vm11, %v6548_v24, %v6549_v9 }
 0xe52   : > { %v6347_v20 = vsel %vm415_vm11, %v6345_v10, %v6346_v26  ;;  %6979 = vmatprep.subr.msk.bf16.mxu0 %vm1258_vm0, %v6977_v42  ;;  %v6647_v22 = vsel %vm1258_vm0, %v6976_v5, 0  ;;  %v6551_v53 = vsel %vm10174_vm13, %v6545_v29, %v6550_v27  ;;  %v6371_v51 = vpop.permute.xlu1 %6370  ;;  %vm10176_vm0 = vcmask 859136  }
 0xe53   : > { %v6348_v6 = vsel %vm10175_vm8, %v6342_v61, %v6347_v20  ;;  %6666 = vmatpush1.bf16.msra.mxu0 %v6647_v22  ;;  %v6402_v62 = vpop.permute.xlu0 %6401  ;;  %v7484_v2 = vld [vmem:[#allocation3 + $0x20] ss:$12 sps:$4 sm:$0xff]   ;;  %6554 = vst [vmem:[#allocation3 + $0x24] sm:$0xcc] %v6551_v53  ;;  %v6374_v50 = vrot.slane %v6371_v51, 4 }
 0xe54   : > { %6351 = vst [vmem:[#allocation3] sm:$0x33] %v6348_v6  ;;  %v6404_v18 = vrot.slane %v6402_v62, 4  ;;  %6410 = vst.msk [vmem:[#allocation3 + $0x14] sm:$0x3] %vm390_vm6, %v6402_v62  ;;  %7147 = vmatpush3.bf16.msra.mxu1 %v7484_v2  ;;  %vm10177_vm6 = vcmask 711680  }
 0xe55   : > { %v6376_v33 = vsel %vm415_vm11, %v6374_v50, %v6375_v57  ;;  %7148 = vmatprep.subr.bf16.mxu1 %v7528_v14 }
 0xe56   : > { %v6405_v7 = vsel %vm415_vm11, %v6403_v37, %v6404_v18  ;;  %v6377_v41 = vsel %vm598_vm3, %v6371_v51, %v6376_v33  ;;  %v6429_v45 = vpop.permute.xlu1 %6428  ;;  %vm6642_vm3 = vcmask 293888  }
 0xe57   : > { %v6406_v23 = vsel %vm10176_vm0, %v6400_v60, %v6405_v7  ;;  %v6431_v52 = vpop.permute.xlu0 %6430  ;;  %6380 = vst [vmem:[#allocation3] sm:$0xcc] %v6377_v41  ;;  %v6432_v40 = vrot.slane %v6429_v45, 4 }
 0xe58   : > { %6409 = vst [vmem:[#allocation3 + $0xc] sm:$0x33] %v6406_v23  ;;  %v6433_v17 = vrot.slane %v6431_v52, 4  ;;  %6439 = vst.msk [vmem:[#allocation3 + $0x14] sm:$0xc] %vm422_vm9, %v6431_v52  ;;  %vm10181_vm9 = vcmask 523264  }
 0xe5a   : > { %v6434_v21 = vsel %vm415_vm11, %v6432_v40, %v6433_v17  ;;  %v7485_v49 = vld [vmem:[#allocation3 + $0x18] ss:$12 sps:$4 sm:$0xff]   ;;  %v7487_v56 = vld [vmem:[#allocation3 + $0x1c] ss:$12 sps:$4 sm:$0xff]  }
 0xe5b   : > { %v6435_v54 = vsel %vm10177_vm6, %v6429_v45, %v6434_v21  ;;  %6667 = vmatprep.subr.bf16.mxu0 %v7487_v56 }
 0xe5c   : > { %6438 = vst [vmem:[#allocation3 + $0xc] sm:$0xcc] %v6435_v54  ;;  %6668 = vmatpush1.bf16.msra.mxu0 %v7485_v49 }
 0xe5f   : > { %v7488_v14 = vld [vmem:[#allocation3 + $0x8] ss:$12 sps:$4 sm:$0xff]  }
 0xe60   : > { %7149 = vmatpush3.bf16.msra.mxu1 %v7488_v14 }
 0xe63   : > { %v7489_v46 = vld [vmem:[#allocation3] ss:$12 sps:$4 sm:$0xff]   ;;  %v7491_v63 = vld [vmem:[#allocation3 + $0x4] ss:$12 sps:$4 sm:$0xff]   ;;  %7151 = vmatmul.mubr.msk.bf16.vlgmr.msra.gmra.mxu1 %vm6642_vm3, %v6585_v8  ;;  %v6600_v55 = vpop.permute.xlu1 %6599 }
 0xe64   : > { %6669 = vmatprep.subr.bf16.mxu0 %v7491_v63 }
 0xe65   : > { %6670 = vmatpush1.bf16.msra.mxu0 %v7489_v46 }
 0xe68   : > { %6980 = vmatmul.mubr.msk.bf16.vlgmr.msra.gmra.mxu0 %vm6642_vm3, %v6585_v8 }
 0xf23   : > { %v6730_v48 = vpop.f32.mrf.mxu1 }
 0xf24   : > { %v6731_v36 = vadd.f32 %v6730_v48, %v6600_v55 }
 0xf25   : > { %v7152_v19 = vpop.f32.mrf.mxu1 }
 0xf26   : > { %v6738_v61 = vmax.f32 %v6731_v36, 0.0 }
 0xf27   : > { %v6733_v44 = vpop.f32.mrf.mxu1 }
 0xf28   : > { %v6689_v58 = vpop.f32.mrf.mxu0  ;;  %6742 = vst.msk [vmem:[%s305_s29 + $0x10] sm:$0xff] %vm10181_vm9, %v6738_v61 }
 0xf29   : > { %v6690_v28 = vadd.f32 %v6689_v58, %v6600_v55  ;;  %v7153_v1 = vpop.f32.mrf.mxu1 }
 0xf2a   : > { %v6691_v15 = vpop.f32.mrf.mxu0 }
 0xf2b   : > { %v6736_v60 = vmax.f32 %v6690_v28, 0.0  ;;  %v6692_v13 = vadd.f32 %v6691_v15, %v6600_v55 }
 0xf2c   : > { %v6693_v4 = vpop.f32.mrf.mxu0 }
 0xf2d   : > { %6739 = vst [vmem:[%s305_s29] sm:$0xff] %v6736_v60  ;;  %v6737_v30 = vmax.f32 %v6692_v13, 0.0 }
 0xf2e   : > { %v6694_v39 = vpop.f32.mrf.mxu0 }
 0xf2f   : > { %6740 = vst [vmem:[%s305_s29 + $0x8] sm:$0xff] %v6737_v30 }
 0xf30 PF: > { %s10182_s30 = sld [smem:[#allocation4_spill]] }
 0xf36   : > { %s18_s27 = sadd.s32 1, %s10182_s30  }
 0xf37   : > { %p15_p4 = scmp.ge.s32.totalorder %s18_s27, 4  }
 0xf39   :  { %17 = sbr.rel (!%p15_p4) target bundleno = 6 (0x6), region = 90 }

</bundles_post_ra>
